<compile_context>
chip_gen: v5e
topology: v5e:2x2
jax: 0.10.0
libtpu: 0.0.40
codegen_flags: <defaults>
</compile_context>

<pallas_src>
import functools

import jax
import jax.numpy as jnp
from jax.experimental import pallas as pl
from jax.experimental.pallas import tpu as pltpu

LN_EPS = 1e-5

# MXU-input / weight dtype.  jnp.bfloat16 halves weight VMEM and doubles MXU throughput on
# v6e/v7x (accumulation stays f32 via preferred_element_type); kept f32 here so the demo matches
# the f32 PyTorch module within tight tolerances.
WEIGHT_DTYPE = jnp.float32


# ------------------------------- small helpers ---------------------------------

def _round_up(x, m):
    return (x + m - 1) // m * m


def _nbytes(shape, itemsize=4):
    n = 1
    for s in shape:
        n *= s
    return n * itemsize


def _vmem_limit(block_shapes, scratch_shapes=()):
    # Conservative: count every block double-buffered + scratch + headroom, then clamp to a
    # range that is valid on v5e/v6e (128 MiB physical) and v7x (64 MiB physical).
    est = sum(2 * _nbytes(s) for s in block_shapes)
    est += sum(_nbytes(s) for s in scratch_shapes)
    est += 8 << 20
    return int(min(max(est, 16 << 20), 60 << 20))


def _const_spec(shape):
    """BlockSpec for a grid-invariant operand (constant index_map), single-buffered.

    pl.Buffered(1) avoids double-buffering large weights in VMEM; fall back to the default
    pipelining if this JAX build does not accept pipeline_mode.
    """
    index_map = lambda *_: (0,) * len(shape)
    try:
        return pl.BlockSpec(shape, index_map, pipeline_mode=pl.Buffered(1))
    except (TypeError, AttributeError):
        return pl.BlockSpec(shape, index_map)


def _layernorm(v, gamma, beta):
    # One-pass LayerNorm (eps matches torch.nn.LayerNorm).  sum(x) and sum(x*x) are independent
    # XLU reductions -> shorter serial chain than the two-pass mean/var form.
    inv_n = 1.0 / v.shape[-1]
    s = jnp.sum(v, axis=-1, keepdims=True)
    s2 = jnp.sum(v * v, axis=-1, keepdims=True)
    mu = s * inv_n
    var = jnp.maximum(s2 * inv_n - mu * mu, 0.0)
    return (v - mu) * jax.lax.rsqrt(var + LN_EPS) * gamma + beta


def _sigmoid(x):
    # sigmoid(x) == 0.5 * tanh(0.5 * x) + 0.5 : one EUP transcendental instead of exp + recip.
    return 0.5 * jnp.tanh(0.5 * x) + 0.5


# ------------------- kernel 1: time-parallel input projection ------------------

def _input_proj_kernel(x_ref, w_ref, b_ref, g_ref, beta_ref, o_ref):
    # o = LayerNorm_ih(x @ W_ih^T + b_ih) for a tile of rows (rows = flattened time*batch).
    x = x_ref[...].astype(w_ref.dtype)
    z = jnp.dot(x, w_ref[...], preferred_element_type=jnp.float32) + b_ref[...]
    o_ref[...] = _layernorm(z, g_ref[...], beta_ref[...]).astype(o_ref.dtype)


def _choose_row_tile(rows):
    for cand in (512, 256, 128, 64, 32, 16, 8):
        if rows % cand == 0:
            return cand
    return rows


def _input_projection(x, params):
    """LN_ih(x @ W_ih^T + b_ih) for all timesteps at once. x: (S, Bp, In) -> (S, Bp, 4H) f32."""
    S, Bp, In = x.shape
    H4 = params["weight_ih"].shape[0]
    R = S * Bp
    TM = _choose_row_tile(R)

    x2 = x.reshape(R, In)
    w = params["weight_ih"].T.astype(WEIGHT_DTYPE)                 # (In, 4H)
    b = params["bias_ih"].reshape(1, H4).astype(jnp.float32)
    g = params["ln_ih_gamma"].reshape(1, H4).astype(jnp.float32)
    beta = params["ln_ih_beta"].reshape(1, H4).astype(jnp.float32)

    vmem = _vmem_limit([(TM, In), (In, H4), (1, H4), (1, H4), (1, H4), (TM, H4)])

    gx2 = pl.pallas_call(
        _input_proj_kernel,
        out_shape=jax.ShapeDtypeStruct((R, H4), jnp.float32),
        grid_spec=pltpu.PrefetchScalarGridSpec(
            num_scalar_prefetch=0,
            grid=(R // TM,),
            in_specs=[
                pl.BlockSpec((TM, In), lambda r: (r, 0)),          # x rows
                _const_spec((In, H4)),                             # W_ih^T
                _const_spec((1, H4)),                              # b_ih
                _const_spec((1, H4)),                              # ln_ih gamma
                _const_spec((1, H4)),                              # ln_ih beta
            ],
            out_specs=pl.BlockSpec((TM, H4), lambda r: (r, 0)),
        ),
        compiler_params=pltpu.CompilerParams(
            dimension_semantics=("parallel",),
            vmem_limit_bytes=vmem),
    )(x2, w, b, g, beta)
    return gx2.reshape(S, Bp, H4)


# --------------------------- kernel 2: recurrence -------------------------------

def _recurrent_kernel(gx_ref, h0_ref, c0_ref, whh_ref, bhh_ref,
                      g_hh_ref, b_hh_ref, g_ho_ref, b_ho_ref,
                      y_ref, hy_ref, cy_ref, h_sc, c_sc,
                      *, hidden_size, t_chunk, batch_block):
    H = hidden_size
    bb = batch_block
    tci = pl.program_id(1)                      # time-chunk index (inner, "arbitrary")

    @pl.when(tci == 0)
    def _():
        h_sc[...] = h0_ref[...].astype(jnp.float32)
        c_sc[...] = c0_ref[...].astype(jnp.float32)

    # Hoist weight / LN-parameter loads and their broadcasts out of the inner time loop.
    whh = whh_ref[...]
    bhh = jnp.broadcast_to(bhh_ref[...].astype(jnp.float32), (bb, 4 * H))
    g_hh = jnp.broadcast_to(g_hh_ref[...], (bb, 4 * H))
    b_hh = jnp.broadcast_to(b_hh_ref[...], (bb, 4 * H))
    g_ho = jnp.broadcast_to(g_ho_ref[...], (bb, H))
    b_ho = jnp.broadcast_to(b_ho_ref[...], (bb, H))

    def step(t, carry):
        h = h_sc[...]
        c = c_sc[...]
        hh = jnp.dot(h.astype(whh.dtype), whh, preferred_element_type=jnp.float32) + bhh
        # gx already holds LN_ih(x W_ih^T + b_ih) for this timestep (hoisted off the recurrence).
        gates = gx_ref[t].astype(jnp.float32) + _layernorm(hh, g_hh, b_hh)
        # Gate order per the PyTorch module forward: sigmoid(first 3H) = i, f, o ; tanh(last H) = g.
        i_g = _sigmoid(gates[:, 0:H])
        f_g = _sigmoid(gates[:, H:2 * H])
        o_g = _sigmoid(gates[:, 2 * H:3 * H])
        g_g = jnp.tanh(gates[:, 3 * H:4 * H])
        cy = f_g * c + i_g * g_g
        hy = o_g * jnp.tanh(_layernorm(cy, g_ho, b_ho))
        h_sc[...] = hy
        c_sc[...] = cy
        y_ref[t] = hy.astype(y_ref.dtype)
        return carry

    jax.lax.fori_loop(0, t_chunk, step, 0, unroll=True)

    # Written unconditionally every chunk; the resident output block is flushed when the batch
    # block changes / at grid end, so the last (final-timestep) write wins.
    hy_ref[...] = h_sc[...].astype(hy_ref.dtype)
    cy_ref[...] = c_sc[...].astype(cy_ref.dtype)


def _recurrence(gx, h0, c0, params, t_chunk, out_dtype):
    S, Bp, H4 = gx.shape
    H = H4 // 4
    # Split the batch into two blocks when possible so the "parallel" grid axis can be sharded
    # across TensorCores (v7x megacore); blocks stay sublane-aligned (multiple of 8 rows).
    B_blk = Bp // 2 if (Bp % 16 == 0) else Bp
    n_bb = Bp // B_blk
    n_tc = S // t_chunk

    whh = params["weight_hh"].T.astype(WEIGHT_DTYPE)               # (H, 4H)
    bhh = params["bias_hh"].reshape(1, H4).astype(jnp.float32)
    g_hh = params["ln_hh_gamma"].reshape(1, H4).astype(jnp.float32)
    b_hh = params["ln_hh_beta"].reshape(1, H4).astype(jnp.float32)
    g_ho = params["ln_ho_gamma"].reshape(1, H).astype(jnp.float32)
    b_ho = params["ln_ho_beta"].reshape(1, H).astype(jnp.float32)

    kernel = functools.partial(_recurrent_kernel, hidden_size=H,
                               t_chunk=t_chunk, batch_block=B_blk)

    block_shapes = [(t_chunk, B_blk, H4), (B_blk, H), (B_blk, H), (H, H4),
                    (1, H4), (1, H4), (1, H4), (1, H), (1, H),
                    (t_chunk, B_blk, H), (B_blk, H), (B_blk, H)]
    vmem = _vmem_limit(block_shapes, scratch_shapes=[(B_blk, H), (B_blk, H)])

    y, hy, cy = pl.pallas_call(
        kernel,
        out_shape=(
            jax.ShapeDtypeStruct((S, Bp, H), out_dtype),
            jax.ShapeDtypeStruct((Bp, H), out_dtype),
            jax.ShapeDtypeStruct((Bp, H), out_dtype),
        ),
        grid_spec=pltpu.PrefetchScalarGridSpec(
            num_scalar_prefetch=0,
            grid=(n_bb, n_tc),
            in_specs=[
                pl.BlockSpec((t_chunk, B_blk, H4), lambda b, t: (t, b, 0)),   # LN_ih(ih) chunk
                pl.BlockSpec((B_blk, H), lambda b, t: (b, 0)),                # h0
                pl.BlockSpec((B_blk, H), lambda b, t: (b, 0)),                # c0
                _const_spec((H, H4)),                                         # W_hh^T
                _const_spec((1, H4)),                                         # b_hh
                _const_spec((1, H4)),                                         # ln_hh gamma
                _const_spec((1, H4)),                                         # ln_hh beta
                _const_spec((1, H)),                                          # ln_ho gamma
                _const_spec((1, H)),                                          # ln_ho beta
            ],
            out_specs=[
                pl.BlockSpec((t_chunk, B_blk, H), lambda b, t: (t, b, 0)),    # y
                pl.BlockSpec((B_blk, H), lambda b, t: (b, 0)),                # hy
                pl.BlockSpec((B_blk, H), lambda b, t: (b, 0)),                # cy
            ],
            scratch_shapes=[
                pltpu.VMEM((B_blk, H), jnp.float32),
                pltpu.VMEM((B_blk, H), jnp.float32),
            ],
        ),
        compiler_params=pltpu.CompilerParams(
            dimension_semantics=("parallel", "arbitrary"),
            vmem_limit_bytes=vmem),
    )(gx, h0, c0, whh, bhh, g_hh, b_hh, g_ho, b_ho)
    return y, hy, cy


def lstm_layer_forward(x, h0, c0, params, t_chunk):
    """One LayerNormLSTMCell over the whole (batch-padded) sequence. x: (S, Bp, In)."""
    gx = _input_projection(x, params)        # (S, Bp, 4H) f32, LN_ih already applied
    return _recurrence(gx, h0, c0, params, t_chunk, x.dtype)


# ------------------------------ top-level forward -------------------------------

def layernorm_lstm_forward(x, layer_params, hidden=None):
    """LayerNormLSTM forward (unidirectional, batch_first=False).

    x: (seq_len, batch, input_size)
    returns: y (S, B, H), (hy (num_layers, B, H), cy (num_layers, B, H))
    """
    S, B, _ = x.shape
    L = len(layer_params)
    H = layer_params[0]["weight_hh"].shape[1]

    Bp = _round_up(B, 8)                                     # sublane-aligned batch
    t_chunk = next(d for d in (8, 4, 2, 1) if S % d == 0)    # timesteps per grid step

    if hidden is None:
        hx = jnp.zeros((L, Bp, H), x.dtype)
        cx = jnp.zeros((L, Bp, H), x.dtype)
    else:
        hx, cx = hidden
        if Bp != B:
            hx = jnp.pad(hx, ((0, 0), (0, Bp - B), (0, 0)))
            cx = jnp.pad(cx, ((0, 0), (0, Bp - B), (0, 0)))

    cur = x if Bp == B else jnp.pad(x, ((0, 0), (0, Bp - B), (0, 0)))
    # TODO(synk): inter-layer activations could be carried in bf16 to halve HBM traffic between
    # layers; kept in x.dtype for exact f32 module semantics.
    hys, cys = [], []
    for l in range(L):
        cur, hy, cy = lstm_layer_forward(cur, hx[l], cx[l], layer_params[l], t_chunk)
        hys.append(hy)
        cys.append(cy)

    y = cur[:, :B]
    hy = jnp.stack(hys)[:, :B]
    cy = jnp.stack(cys)[:, :B]
    return y, (hy, cy)


# ----------------------- pure-JAX reference (for sanity) ------------------------

def _ln_ref(v, gamma, beta):
    mu = jnp.mean(v, axis=-1, keepdims=True)
    var = jnp.mean((v - mu) ** 2, axis=-1, keepdims=True)
    return (v - mu) * jax.lax.rsqrt(var + LN_EPS) * gamma + beta


def _ref_cell(x, h, c, p):
    H = p["weight_hh"].shape[1]
    ih = x @ p["weight_ih"].T + p["bias_ih"]
    hh = h @ p["weight_hh"].T + p["bias_hh"]
    gates = (_ln_ref(ih, p["ln_ih_gamma"], p["ln_ih_beta"])
             + _ln_ref(hh, p["ln_hh_gamma"], p["ln_hh_beta"]))
    i = jax.nn.sigmoid(gates[:, 0:H])
    f = jax.nn.sigmoid(gates[:, H:2 * H])
    o = jax.nn.sigmoid(gates[:, 2 * H:3 * H])
    g = jnp.tanh(gates[:, 3 * H:4 * H])
    cy = f * c + i * g
    hy = o * jnp.tanh(_ln_ref(cy, p["ln_ho_gamma"], p["ln_ho_beta"]))
    return hy, cy


def _ref_forward(x, layer_params):
    S, B, _ = x.shape
    H = layer_params[0]["weight_hh"].shape[1]
    cur = x
    hys, cys = [], []
    for p in layer_params:
        h = jnp.zeros((B, H), x.dtype)
        c = jnp.zeros((B, H), x.dtype)
        ys = []
        for t in range(S):
            h, c = _ref_cell(cur[t], h, c, p)
            ys.append(h)
        cur = jnp.stack(ys)
        hys.append(h)
        cys.append(c)
    return cur, (jnp.stack(hys), jnp.stack(cys))


# ----------------------------- parameter init -----------------------------------

def init_params(key, input_size, hidden_size, num_layers):
    params = []
    k = 1.0 / jnp.sqrt(hidden_size)
    for layer in range(num_layers):
        in_sz = input_size if layer == 0 else hidden_size
        key, k1, k2, k3, k4 = jax.random.split(key, 5)
        p = {
            "weight_ih": jax.random.uniform(k1, (4 * hidden_size, in_sz), jnp.float32, -k, k),
            "weight_hh": jax.random.uniform(k2, (4 * hidden_size, hidden_size), jnp.float32, -k, k),
            "bias_ih": jax.random.uniform(k3, (4 * hidden_size,), jnp.float32, -k, k),
            "bias_hh": jax.random.uniform(k4, (4 * hidden_size,), jnp.float32, -k, k),
            # torch.nn.LayerNorm default init: gamma=1, beta=0
            "ln_ih_gamma": jnp.ones((4 * hidden_size,), jnp.float32),
            "ln_ih_beta": jnp.zeros((4 * hidden_size,), jnp.float32),
            "ln_hh_gamma": jnp.ones((4 * hidden_size,), jnp.float32),
            "ln_hh_beta": jnp.zeros((4 * hidden_size,), jnp.float32),
            "ln_ho_gamma": jnp.ones((hidden_size,), jnp.float32),
            "ln_ho_beta": jnp.zeros((hidden_size,), jnp.float32),
        }
        params.append(p)
    return params


if __name__ == "__main__":
    # Lane/sublane-friendly small shapes: H=128 keeps gate slices 128-aligned and the y output
    # lane-dense; batch 10 exercises padding to 16 (two sublane-aligned batch blocks).
    SEQ, BATCH, INPUT, HIDDEN, LAYERS = 16, 10, 64, 128, 2

    key = jax.random.PRNGKey(0)
    key, kx = jax.random.split(key)
    x = jax.random.normal(kx, (SEQ, BATCH, INPUT), jnp.float32)
    params = init_params(key, INPUT, HIDDEN, LAYERS)

    fwd = jax.jit(layernorm_lstm_forward)
    y, (hy, cy) = fwd(x, params)
    jax.block_until_ready((y, hy, cy))

    # sanity check against a pure-JAX reference
    y_ref, (hy_ref, cy_ref) = _ref_forward(x, params)
    assert y.shape == (SEQ, BATCH, HIDDEN)
    assert hy.shape == (LAYERS, BATCH, HIDDEN) and cy.shape == (LAYERS, BATCH, HIDDEN)
    assert jnp.allclose(y, y_ref, atol=5e-4, rtol=5e-4), float(jnp.max(jnp.abs(y - y_ref)))
    assert jnp.allclose(hy, hy_ref, atol=5e-4, rtol=5e-4), float(jnp.max(jnp.abs(hy - hy_ref)))
    assert jnp.allclose(cy, cy_ref, atol=5e-4, rtol=5e-4), float(jnp.max(jnp.abs(cy - cy_ref)))

    print("KERNEL_OK")
</pallas_src>

<mosaic_0001>
module attributes {stable_mosaic.version = 11 : i64} {
  func.func @_input_proj_kernel(%arg0: i32, %arg1: memref<256x64xf32, #tpu.memory_space<vmem>>, %arg2: memref<64x512xf32, #tpu.memory_space<vmem>>, %arg3: memref<1x512xf32, #tpu.memory_space<vmem>>, %arg4: memref<1x512xf32, #tpu.memory_space<vmem>>, %arg5: memref<1x512xf32, #tpu.memory_space<vmem>>, %arg6: memref<256x512xf32, #tpu.memory_space<vmem>>) attributes {dimension_semantics = [#tpu.dimension_semantics<parallel>], iteration_bounds = array<i64: 1>, scalar_prefetch = 0 : i64, scratch_operands = 0 : i64, tpu.core_type = #tpu.core_type<tc>, window_params = [{transform_indices = @transform_0, window_bounds = array<i64: 256, 64>}, {pipeline_mode = #tpu.pipeline_mode<synchronous>, transform_indices = @transform_1, window_bounds = array<i64: 64, 512>}, {pipeline_mode = #tpu.pipeline_mode<synchronous>, transform_indices = @transform_2, window_bounds = array<i64: 1, 512>}, {pipeline_mode = #tpu.pipeline_mode<synchronous>, transform_indices = @transform_3, window_bounds = array<i64: 1, 512>}, {pipeline_mode = #tpu.pipeline_mode<synchronous>, transform_indices = @transform_4, window_bounds = array<i64: 1, 512>}, {transform_indices = @transform_5, window_bounds = array<i64: 256, 512>}]} {
    %c0 = arith.constant 0 : index
    %c0_0 = arith.constant 0 : index
    %0 = vector.load %arg1[%c0, %c0_0] : memref<256x64xf32, #tpu.memory_space<vmem>>, vector<256x64xf32>
    %c0_1 = arith.constant 0 : index
    %c0_2 = arith.constant 0 : index
    %1 = vector.load %arg2[%c0_1, %c0_2] : memref<64x512xf32, #tpu.memory_space<vmem>>, vector<64x512xf32>
    %cst = arith.constant dense<0.000000e+00> : vector<256x512xf32>
    %2 = tpu.matmul %0, %1, %cst {dimension_numbers = #tpu.dot_dimension_numbers<[1], [0], [0], [1], [0, 0, 1, 1], [], []>} : vector<256x64xf32>, vector<64x512xf32>, vector<256x512xf32> -> vector<256x512xf32>
    %c0_3 = arith.constant 0 : index
    %c0_4 = arith.constant 0 : index
    %3 = vector.load %arg3[%c0_3, %c0_4] : memref<1x512xf32, #tpu.memory_space<vmem>>, vector<1x512xf32>
    %4 = vector.broadcast %3 : vector<1x512xf32> to vector<256x512xf32>
    %5 = arith.addf %2, %4 : vector<256x512xf32>
    %c0_5 = arith.constant 0 : index
    %c0_6 = arith.constant 0 : index
    %6 = vector.load %arg4[%c0_5, %c0_6] : memref<1x512xf32, #tpu.memory_space<vmem>>, vector<1x512xf32>
    %c0_7 = arith.constant 0 : index
    %c0_8 = arith.constant 0 : index
    %7 = vector.load %arg5[%c0_7, %c0_8] : memref<1x512xf32, #tpu.memory_space<vmem>>, vector<1x512xf32>
    %cst_9 = arith.constant dense<0.000000e+00> : vector<256xf32>
    %8 = vector.multi_reduction <add>, %5, %cst_9 [1] : vector<256x512xf32> to vector<256xf32>
    %9 = vector.shape_cast %8 : vector<256xf32> to vector<256x1xf32>
    %10 = arith.mulf %5, %5 : vector<256x512xf32>
    %cst_10 = arith.constant dense<0.000000e+00> : vector<256xf32>
    %11 = vector.multi_reduction <add>, %10, %cst_10 [1] : vector<256x512xf32> to vector<256xf32>
    %12 = vector.shape_cast %11 : vector<256xf32> to vector<256x1xf32>
    %cst_11 = arith.constant 0.001953125 : f32
    %13 = vector.broadcast %cst_11 : f32 to vector<256x1xf32>
    %14 = arith.mulf %9, %13 : vector<256x1xf32>
    %cst_12 = arith.constant 0.001953125 : f32
    %15 = vector.broadcast %cst_12 : f32 to vector<256x1xf32>
    %16 = arith.mulf %12, %15 : vector<256x1xf32>
    %17 = arith.mulf %14, %14 : vector<256x1xf32>
    %18 = arith.subf %16, %17 : vector<256x1xf32>
    %cst_13 = arith.constant 0.000000e+00 : f32
    %19 = vector.broadcast %cst_13 : f32 to vector<256x1xf32>
    %20 = arith.maximumf %18, %19 : vector<256x1xf32>
    %21 = vector.broadcast %14 : vector<256x1xf32> to vector<256x512xf32>
    %22 = arith.subf %5, %21 : vector<256x512xf32>
    %cst_14 = arith.constant 9.99999974E-6 : f32
    %23 = vector.broadcast %cst_14 : f32 to vector<256x1xf32>
    %24 = arith.addf %20, %23 : vector<256x1xf32>
    %25 = math.rsqrt %24 : vector<256x1xf32>
    %26 = vector.broadcast %25 : vector<256x1xf32> to vector<256x512xf32>
    %27 = arith.mulf %22, %26 : vector<256x512xf32>
    %28 = vector.broadcast %6 : vector<1x512xf32> to vector<256x512xf32>
    %29 = arith.mulf %27, %28 : vector<256x512xf32>
    %30 = vector.broadcast %7 : vector<1x512xf32> to vector<256x512xf32>
    %31 = arith.addf %29, %30 : vector<256x512xf32>
    %c0_15 = arith.constant 0 : index
    %c0_16 = arith.constant 0 : index
    %32 = vector.load %arg6[%c0_15, %c0_16] : memref<256x512xf32, #tpu.memory_space<vmem>>, vector<256x512xf32>
    tpu.vector_store %arg6[%c0_15, %c0_16], %31 {strides = array<i32>} : memref<256x512xf32, #tpu.memory_space<vmem>>, vector<256x512xf32>,
    return
  }
  func.func @transform_0(%arg0: i32) -> (i32, i32) {
    %c0_i32 = arith.constant 0 : i32
    %c0_i32_0 = arith.constant 0 : i32
    return %arg0, %c0_i32 : i32, i32
  }
  func.func @transform_1(%arg0: i32) -> (i32, i32) {
    %c0_i32 = arith.constant 0 : i32
    %c0_i32_0 = arith.constant 0 : i32
    %c0_i32_1 = arith.constant 0 : i32
    return %c0_i32, %c0_i32_0 : i32, i32
  }
  func.func @transform_2(%arg0: i32) -> (i32, i32) {
    %c0_i32 = arith.constant 0 : i32
    %c0_i32_0 = arith.constant 0 : i32
    %c0_i32_1 = arith.constant 0 : i32
    return %c0_i32, %c0_i32_0 : i32, i32
  }
  func.func @transform_3(%arg0: i32) -> (i32, i32) {
    %c0_i32 = arith.constant 0 : i32
    %c0_i32_0 = arith.constant 0 : i32
    %c0_i32_1 = arith.constant 0 : i32
    return %c0_i32, %c0_i32_0 : i32, i32
  }
  func.func @transform_4(%arg0: i32) -> (i32, i32) {
    %c0_i32 = arith.constant 0 : i32
    %c0_i32_0 = arith.constant 0 : i32
    %c0_i32_1 = arith.constant 0 : i32
    return %c0_i32, %c0_i32_0 : i32, i32
  }
  func.func @transform_5(%arg0: i32) -> (i32, i32) {
    %c0_i32 = arith.constant 0 : i32
    %c0_i32_0 = arith.constant 0 : i32
    return %arg0, %c0_i32 : i32, i32
  }
}

module attributes {stable_mosaic.version = 11 : i64} {
  func.func @_input_proj_kernel(%arg0: i32, %arg1: memref<256x128xf32, #tpu.memory_space<vmem>>, %arg2: memref<128x512xf32, #tpu.memory_space<vmem>>, %arg3: memref<1x512xf32, #tpu.memory_space<vmem>>, %arg4: memref<1x512xf32, #tpu.memory_space<vmem>>, %arg5: memref<1x512xf32, #tpu.memory_space<vmem>>, %arg6: memref<256x512xf32, #tpu.memory_space<vmem>>) attributes {dimension_semantics = [#tpu.dimension_semantics<parallel>], iteration_bounds = array<i64: 1>, scalar_prefetch = 0 : i64, scratch_operands = 0 : i64, tpu.core_type = #tpu.core_type<tc>, window_params = [{transform_indices = @transform_0, window_bounds = array<i64: 256, 128>}, {pipeline_mode = #tpu.pipeline_mode<synchronous>, transform_indices = @transform_1, window_bounds = array<i64: 128, 512>}, {pipeline_mode = #tpu.pipeline_mode<synchronous>, transform_indices = @transform_2, window_bounds = array<i64: 1, 512>}, {pipeline_mode = #tpu.pipeline_mode<synchronous>, transform_indices = @transform_3, window_bounds = array<i64: 1, 512>}, {pipeline_mode = #tpu.pipeline_mode<synchronous>, transform_indices = @transform_4, window_bounds = array<i64: 1, 512>}, {transform_indices = @transform_5, window_bounds = array<i64: 256, 512>}]} {
    %c0 = arith.constant 0 : index
    %c0_0 = arith.constant 0 : index
    %0 = vector.load %arg1[%c0, %c0_0] : memref<256x128xf32, #tpu.memory_space<vmem>>, vector<256x128xf32>
    %c0_1 = arith.constant 0 : index
    %c0_2 = arith.constant 0 : index
    %1 = vector.load %arg2[%c0_1, %c0_2] : memref<128x512xf32, #tpu.memory_space<vmem>>, vector<128x512xf32>
    %cst = arith.constant dense<0.000000e+00> : vector<256x512xf32>
    %2 = tpu.matmul %0, %1, %cst {dimension_numbers = #tpu.dot_dimension_numbers<[1], [0], [0], [1], [0, 0, 1, 1], [], []>} : vector<256x128xf32>, vector<128x512xf32>, vector<256x512xf32> -> vector<256x512xf32>
    %c0_3 = arith.constant 0 : index
    %c0_4 = arith.constant 0 : index
    %3 = vector.load %arg3[%c0_3, %c0_4] : memref<1x512xf32, #tpu.memory_space<vmem>>, vector<1x512xf32>
    %4 = vector.broadcast %3 : vector<1x512xf32> to vector<256x512xf32>
    %5 = arith.addf %2, %4 : vector<256x512xf32>
    %c0_5 = arith.constant 0 : index
    %c0_6 = arith.constant 0 : index
    %6 = vector.load %arg4[%c0_5, %c0_6] : memref<1x512xf32, #tpu.memory_space<vmem>>, vector<1x512xf32>
    %c0_7 = arith.constant 0 : index
    %c0_8 = arith.constant 0 : index
    %7 = vector.load %arg5[%c0_7, %c0_8] : memref<1x512xf32, #tpu.memory_space<vmem>>, vector<1x512xf32>
    %cst_9 = arith.constant dense<0.000000e+00> : vector<256xf32>
    %8 = vector.multi_reduction <add>, %5, %cst_9 [1] : vector<256x512xf32> to vector<256xf32>
    %9 = vector.shape_cast %8 : vector<256xf32> to vector<256x1xf32>
    %10 = arith.mulf %5, %5 : vector<256x512xf32>
    %cst_10 = arith.constant dense<0.000000e+00> : vector<256xf32>
    %11 = vector.multi_reduction <add>, %10, %cst_10 [1] : vector<256x512xf32> to vector<256xf32>
    %12 = vector.shape_cast %11 : vector<256xf32> to vector<256x1xf32>
    %cst_11 = arith.constant 0.001953125 : f32
    %13 = vector.broadcast %cst_11 : f32 to vector<256x1xf32>
    %14 = arith.mulf %9, %13 : vector<256x1xf32>
    %cst_12 = arith.constant 0.001953125 : f32
    %15 = vector.broadcast %cst_12 : f32 to vector<256x1xf32>
    %16 = arith.mulf %12, %15 : vector<256x1xf32>
    %17 = arith.mulf %14, %14 : vector<256x1xf32>
    %18 = arith.subf %16, %17 : vector<256x1xf32>
    %cst_13 = arith.constant 0.000000e+00 : f32
    %19 = vector.broadcast %cst_13 : f32 to vector<256x1xf32>
    %20 = arith.maximumf %18, %19 : vector<256x1xf32>
    %21 = vector.broadcast %14 : vector<256x1xf32> to vector<256x512xf32>
    %22 = arith.subf %5, %21 : vector<256x512xf32>
    %cst_14 = arith.constant 9.99999974E-6 : f32
    %23 = vector.broadcast %cst_14 : f32 to vector<256x1xf32>
    %24 = arith.addf %20, %23 : vector<256x1xf32>
    %25 = math.rsqrt %24 : vector<256x1xf32>
    %26 = vector.broadcast %25 : vector<256x1xf32> to vector<256x512xf32>
    %27 = arith.mulf %22, %26 : vector<256x512xf32>
    %28 = vector.broadcast %6 : vector<1x512xf32> to vector<256x512xf32>
    %29 = arith.mulf %27, %28 : vector<256x512xf32>
    %30 = vector.broadcast %7 : vector<1x512xf32> to vector<256x512xf32>
    %31 = arith.addf %29, %30 : vector<256x512xf32>
    %c0_15 = arith.constant 0 : index
    %c0_16 = arith.constant 0 : index
    %32 = vector.load %arg6[%c0_15, %c0_16] : memref<256x512xf32, #tpu.memory_space<vmem>>, vector<256x512xf32>
    tpu.vector_store %arg6[%c0_15, %c0_16], %31 {strides = array<i32>} : memref<256x512xf32, #tpu.memory_space<vmem>>, vector<256x512xf32>,
    return
  }
  func.func @transform_0(%arg0: i32) -> (i32, i32) {
    %c0_i32 = arith.constant 0 : i32
    %c0_i32_0 = arith.constant 0 : i32
    return %arg0, %c0_i32 : i32, i32
  }
  func.func @transform_1(%arg0: i32) -> (i32, i32) {
    %c0_i32 = arith.constant 0 : i32
    %c0_i32_0 = arith.constant 0 : i32
    %c0_i32_1 = arith.constant 0 : i32
    return %c0_i32, %c0_i32_0 : i32, i32
  }
  func.func @transform_2(%arg0: i32) -> (i32, i32) {
    %c0_i32 = arith.constant 0 : i32
    %c0_i32_0 = arith.constant 0 : i32
    %c0_i32_1 = arith.constant 0 : i32
    return %c0_i32, %c0_i32_0 : i32, i32
  }
  func.func @transform_3(%arg0: i32) -> (i32, i32) {
    %c0_i32 = arith.constant 0 : i32
    %c0_i32_0 = arith.constant 0 : i32
    %c0_i32_1 = arith.constant 0 : i32
    return %c0_i32, %c0_i32_0 : i32, i32
  }
  func.func @transform_4(%arg0: i32) -> (i32, i32) {
    %c0_i32 = arith.constant 0 : i32
    %c0_i32_0 = arith.constant 0 : i32
    %c0_i32_1 = arith.constant 0 : i32
    return %c0_i32, %c0_i32_0 : i32, i32
  }
  func.func @transform_5(%arg0: i32) -> (i32, i32) {
    %c0_i32 = arith.constant 0 : i32
    %c0_i32_0 = arith.constant 0 : i32
    return %arg0, %c0_i32 : i32, i32
  }
}

module attributes {stable_mosaic.version = 11 : i64} {
  func.func @_recurrent_kernel(%arg0: i32, %arg1: i32, %arg2: memref<8x8x512xf32, #tpu.memory_space<vmem>>, %arg3: memref<8x128xf32, #tpu.memory_space<vmem>>, %arg4: memref<8x128xf32, #tpu.memory_space<vmem>>, %arg5: memref<128x512xf32, #tpu.memory_space<vmem>>, %arg6: memref<1x512xf32, #tpu.memory_space<vmem>>, %arg7: memref<1x512xf32, #tpu.memory_space<vmem>>, %arg8: memref<1x512xf32, #tpu.memory_space<vmem>>, %arg9: memref<1x128xf32, #tpu.memory_space<vmem>>, %arg10: memref<1x128xf32, #tpu.memory_space<vmem>>, %arg11: memref<8x8x128xf32, #tpu.memory_space<vmem>>, %arg12: memref<8x128xf32, #tpu.memory_space<vmem>>, %arg13: memref<8x128xf32, #tpu.memory_space<vmem>>, %arg14: memref<8x128xf32, #tpu.memory_space<vmem>>, %arg15: memref<8x128xf32, #tpu.memory_space<vmem>>) attributes {dimension_semantics = [#tpu.dimension_semantics<parallel>, #tpu.dimension_semantics<arbitrary>], iteration_bounds = array<i64: 2, 2>, scalar_prefetch = 0 : i64, scratch_operands = 2 : i64, tpu.core_type = #tpu.core_type<tc>, window_params = [{transform_indices = @transform_0, window_bounds = array<i64: 8, 8, 512>}, {transform_indices = @transform_1, window_bounds = array<i64: 8, 128>}, {transform_indices = @transform_2, window_bounds = array<i64: 8, 128>}, {pipeline_mode = #tpu.pipeline_mode<synchronous>, transform_indices = @transform_3, window_bounds = array<i64: 128, 512>}, {pipeline_mode = #tpu.pipeline_mode<synchronous>, transform_indices = @transform_4, window_bounds = array<i64: 1, 512>}, {pipeline_mode = #tpu.pipeline_mode<synchronous>, transform_indices = @transform_5, window_bounds = array<i64: 1, 512>}, {pipeline_mode = #tpu.pipeline_mode<synchronous>, transform_indices = @transform_6, window_bounds = array<i64: 1, 512>}, {pipeline_mode = #tpu.pipeline_mode<synchronous>, transform_indices = @transform_7, window_bounds = array<i64: 1, 128>}, {pipeline_mode = #tpu.pipeline_mode<synchronous>, transform_indices = @transform_8, window_bounds = array<i64: 1, 128>}, {transform_indices = @transform_9, window_bounds = array<i64: 8, 8, 128>}, {transform_indices = @transform_10, window_bounds = array<i64: 8, 128>}, {transform_indices = @transform_11, window_bounds = array<i64: 8, 128>}]} {
    %c0_i32 = arith.constant 0 : i32
    %0 = arith.cmpi eq, %arg1, %c0_i32 : i32
    %1 = arith.extui %0 : i1 to i32
    %c0_i32_0 = arith.constant 0 : i32
    %2 = arith.cmpi ne, %1, %c0_i32_0 : i32
    scf.if %2 {
      %c0_292 = arith.constant 0 : index
      %c0_293 = arith.constant 0 : index
      %735 = vector.load %arg3[%c0_292, %c0_293] : memref<8x128xf32, #tpu.memory_space<vmem>>, vector<8x128xf32>
      %c0_294 = arith.constant 0 : index
      %c0_295 = arith.constant 0 : index
      %736 = vector.load %arg14[%c0_294, %c0_295] : memref<8x128xf32, #tpu.memory_space<vmem>>, vector<8x128xf32>
      tpu.vector_store %arg14[%c0_294, %c0_295], %735 {strides = array<i32>} : memref<8x128xf32, #tpu.memory_space<vmem>>, vector<8x128xf32>,
      %c0_296 = arith.constant 0 : index
      %c0_297 = arith.constant 0 : index
      %737 = vector.load %arg4[%c0_296, %c0_297] : memref<8x128xf32, #tpu.memory_space<vmem>>, vector<8x128xf32>
      %c0_298 = arith.constant 0 : index
      %c0_299 = arith.constant 0 : index
      %738 = vector.load %arg15[%c0_298, %c0_299] : memref<8x128xf32, #tpu.memory_space<vmem>>, vector<8x128xf32>
      tpu.vector_store %arg15[%c0_298, %c0_299], %737 {strides = array<i32>} : memref<8x128xf32, #tpu.memory_space<vmem>>, vector<8x128xf32>,
    } else {
    }
    %c0 = arith.constant 0 : index
    %c0_1 = arith.constant 0 : index
    %3 = vector.load %arg5[%c0, %c0_1] : memref<128x512xf32, #tpu.memory_space<vmem>>, vector<128x512xf32>
    %c0_2 = arith.constant 0 : index
    %c0_3 = arith.constant 0 : index
    %4 = vector.load %arg6[%c0_2, %c0_3] : memref<1x512xf32, #tpu.memory_space<vmem>>, vector<1x512xf32>
    %5 = vector.shape_cast %4 : vector<1x512xf32> to vector<1x512xf32>
    %6 = vector.broadcast %5 : vector<1x512xf32> to vector<8x512xf32>
    %c0_4 = arith.constant 0 : index
    %c0_5 = arith.constant 0 : index
    %7 = vector.load %arg7[%c0_4, %c0_5] : memref<1x512xf32, #tpu.memory_space<vmem>>, vector<1x512xf32>
    %8 = vector.shape_cast %7 : vector<1x512xf32> to vector<1x512xf32>
    %9 = vector.broadcast %8 : vector<1x512xf32> to vector<8x512xf32>
    %c0_6 = arith.constant 0 : index
    %c0_7 = arith.constant 0 : index
    %10 = vector.load %arg8[%c0_6, %c0_7] : memref<1x512xf32, #tpu.memory_space<vmem>>, vector<1x512xf32>
    %11 = vector.shape_cast %10 : vector<1x512xf32> to vector<1x512xf32>
    %12 = vector.broadcast %11 : vector<1x512xf32> to vector<8x512xf32>
    %c0_8 = arith.constant 0 : index
    %c0_9 = arith.constant 0 : index
    %13 = vector.load %arg9[%c0_8, %c0_9] : memref<1x128xf32, #tpu.memory_space<vmem>>, vector<1x128xf32>
    %14 = vector.shape_cast %13 : vector<1x128xf32> to vector<1x128xf32>
    %15 = vector.broadcast %14 : vector<1x128xf32> to vector<8x128xf32>
    %c0_10 = arith.constant 0 : index
    %c0_11 = arith.constant 0 : index
    %16 = vector.load %arg10[%c0_10, %c0_11] : memref<1x128xf32, #tpu.memory_space<vmem>>, vector<1x128xf32>
    %17 = vector.shape_cast %16 : vector<1x128xf32> to vector<1x128xf32>
    %18 = vector.broadcast %17 : vector<1x128xf32> to vector<8x128xf32>
    %c0_i32_12 = arith.constant 0 : i32
    %c0_13 = arith.constant 0 : index
    %c0_14 = arith.constant 0 : index
    %19 = vector.load %arg14[%c0_13, %c0_14] : memref<8x128xf32, #tpu.memory_space<vmem>>, vector<8x128xf32>
    %c0_15 = arith.constant 0 : index
    %c0_16 = arith.constant 0 : index
    %20 = vector.load %arg15[%c0_15, %c0_16] : memref<8x128xf32, #tpu.memory_space<vmem>>, vector<8x128xf32>
    %cst = arith.constant dense<0.000000e+00> : vector<8x512xf32>
    %21 = tpu.matmul %19, %3, %cst {dimension_numbers = #tpu.dot_dimension_numbers<[1], [0], [0], [1], [0, 0, 1, 1], [], []>} : vector<8x128xf32>, vector<128x512xf32>, vector<8x512xf32> -> vector<8x512xf32>
    %22 = arith.addf %21, %6 : vector<8x512xf32>
    %23 = arith.index_cast %c0_i32_12 : i32 to index
    %c0_17 = arith.constant 0 : index
    %c0_18 = arith.constant 0 : index
    %24 = vector.load %arg2[%23, %c0_17, %c0_18] : memref<8x8x512xf32, #tpu.memory_space<vmem>>, vector<1x8x512xf32>
    %25 = vector.shape_cast %24 : vector<1x8x512xf32> to vector<8x512xf32>
    %cst_19 = arith.constant dense<0.000000e+00> : vector<8xf32>
    %26 = vector.multi_reduction <add>, %22, %cst_19 [1] : vector<8x512xf32> to vector<8xf32>
    %27 = vector.shape_cast %26 : vector<8xf32> to vector<8x1xf32>
    %28 = arith.mulf %22, %22 : vector<8x512xf32>
    %cst_20 = arith.constant dense<0.000000e+00> : vector<8xf32>
    %29 = vector.multi_reduction <add>, %28, %cst_20 [1] : vector<8x512xf32> to vector<8xf32>
    %30 = vector.shape_cast %29 : vector<8xf32> to vector<8x1xf32>
    %cst_21 = arith.constant 0.001953125 : f32
    %31 = vector.broadcast %cst_21 : f32 to vector<8x1xf32>
    %32 = arith.mulf %27, %31 : vector<8x1xf32>
    %cst_22 = arith.constant 0.001953125 : f32
    %33 = vector.broadcast %cst_22 : f32 to vector<8x1xf32>
    %34 = arith.mulf %30, %33 : vector<8x1xf32>
    %35 = arith.mulf %32, %32 : vector<8x1xf32>
    %36 = arith.subf %34, %35 : vector<8x1xf32>
    %cst_23 = arith.constant 0.000000e+00 : f32
    %37 = vector.broadcast %cst_23 : f32 to vector<8x1xf32>
    %38 = arith.maximumf %36, %37 : vector<8x1xf32>
    %39 = vector.broadcast %32 : vector<8x1xf32> to vector<8x512xf32>
    %40 = arith.subf %22, %39 : vector<8x512xf32>
    %cst_24 = arith.constant 9.99999974E-6 : f32
    %41 = vector.broadcast %cst_24 : f32 to vector<8x1xf32>
    %42 = arith.addf %38, %41 : vector<8x1xf32>
    %43 = math.rsqrt %42 : vector<8x1xf32>
    %44 = vector.broadcast %43 : vector<8x1xf32> to vector<8x512xf32>
    %45 = arith.mulf %40, %44 : vector<8x512xf32>
    %46 = arith.mulf %45, %9 : vector<8x512xf32>
    %47 = arith.addf %46, %12 : vector<8x512xf32>
    %48 = arith.addf %25, %47 : vector<8x512xf32>
    %49 = vector.extract_strided_slice %48 {offsets = [0, 0], sizes = [8, 128], strides = [1, 1]} : vector<8x512xf32> to vector<8x128xf32>
    %cst_25 = arith.constant 5.000000e-01 : f32
    %50 = vector.broadcast %cst_25 : f32 to vector<8x128xf32>
    %51 = arith.mulf %50, %49 : vector<8x128xf32>
    %52 = math.tanh %51 : vector<8x128xf32>
    %cst_26 = arith.constant 5.000000e-01 : f32
    %53 = vector.broadcast %cst_26 : f32 to vector<8x128xf32>
    %54 = arith.mulf %53, %52 : vector<8x128xf32>
    %cst_27 = arith.constant 5.000000e-01 : f32
    %55 = vector.broadcast %cst_27 : f32 to vector<8x128xf32>
    %56 = arith.addf %54, %55 : vector<8x128xf32>
    %57 = vector.extract_strided_slice %48 {offsets = [0, 128], sizes = [8, 128], strides = [1, 1]} : vector<8x512xf32> to vector<8x128xf32>
    %cst_28 = arith.constant 5.000000e-01 : f32
    %58 = vector.broadcast %cst_28 : f32 to vector<8x128xf32>
    %59 = arith.mulf %58, %57 : vector<8x128xf32>
    %60 = math.tanh %59 : vector<8x128xf32>
    %cst_29 = arith.constant 5.000000e-01 : f32
    %61 = vector.broadcast %cst_29 : f32 to vector<8x128xf32>
    %62 = arith.mulf %61, %60 : vector<8x128xf32>
    %cst_30 = arith.constant 5.000000e-01 : f32
    %63 = vector.broadcast %cst_30 : f32 to vector<8x128xf32>
    %64 = arith.addf %62, %63 : vector<8x128xf32>
    %65 = vector.extract_strided_slice %48 {offsets = [0, 256], sizes = [8, 128], strides = [1, 1]} : vector<8x512xf32> to vector<8x128xf32>
    %cst_31 = arith.constant 5.000000e-01 : f32
    %66 = vector.broadcast %cst_31 : f32 to vector<8x128xf32>
    %67 = arith.mulf %66, %65 : vector<8x128xf32>
    %68 = math.tanh %67 : vector<8x128xf32>
    %cst_32 = arith.constant 5.000000e-01 : f32
    %69 = vector.broadcast %cst_32 : f32 to vector<8x128xf32>
    %70 = arith.mulf %69, %68 : vector<8x128xf32>
    %cst_33 = arith.constant 5.000000e-01 : f32
    %71 = vector.broadcast %cst_33 : f32 to vector<8x128xf32>
    %72 = arith.addf %70, %71 : vector<8x128xf32>
    %73 = vector.extract_strided_slice %48 {offsets = [0, 384], sizes = [8, 128], strides = [1, 1]} : vector<8x512xf32> to vector<8x128xf32>
    %74 = math.tanh %73 : vector<8x128xf32>
    %75 = arith.mulf %64, %20 : vector<8x128xf32>
    %76 = arith.mulf %56, %74 : vector<8x128xf32>
    %77 = arith.addf %75, %76 : vector<8x128xf32>
    %cst_34 = arith.constant dense<0.000000e+00> : vector<8xf32>
    %78 = vector.multi_reduction <add>, %77, %cst_34 [1] : vector<8x128xf32> to vector<8xf32>
    %79 = vector.shape_cast %78 : vector<8xf32> to vector<8x1xf32>
    %80 = arith.mulf %77, %77 : vector<8x128xf32>
    %cst_35 = arith.constant dense<0.000000e+00> : vector<8xf32>
    %81 = vector.multi_reduction <add>, %80, %cst_35 [1] : vector<8x128xf32> to vector<8xf32>
    %82 = vector.shape_cast %81 : vector<8xf32> to vector<8x1xf32>
    %cst_36 = arith.constant 7.812500e-03 : f32
    %83 = vector.broadcast %cst_36 : f32 to vector<8x1xf32>
    %84 = arith.mulf %79, %83 : vector<8x1xf32>
    %cst_37 = arith.constant 7.812500e-03 : f32
    %85 = vector.broadcast %cst_37 : f32 to vector<8x1xf32>
    %86 = arith.mulf %82, %85 : vector<8x1xf32>
    %87 = arith.mulf %84, %84 : vector<8x1xf32>
    %88 = arith.subf %86, %87 : vector<8x1xf32>
    %cst_38 = arith.constant 0.000000e+00 : f32
    %89 = vector.broadcast %cst_38 : f32 to vector<8x1xf32>
    %90 = arith.maximumf %88, %89 : vector<8x1xf32>
    %91 = vector.broadcast %84 : vector<8x1xf32> to vector<8x128xf32>
    %92 = arith.subf %77, %91 : vector<8x128xf32>
    %cst_39 = arith.constant 9.99999974E-6 : f32
    %93 = vector.broadcast %cst_39 : f32 to vector<8x1xf32>
    %94 = arith.addf %90, %93 : vector<8x1xf32>
    %95 = math.rsqrt %94 : vector<8x1xf32>
    %96 = vector.broadcast %95 : vector<8x1xf32> to vector<8x128xf32>
    %97 = arith.mulf %92, %96 : vector<8x128xf32>
    %98 = arith.mulf %97, %15 : vector<8x128xf32>
    %99 = arith.addf %98, %18 : vector<8x128xf32>
    %100 = math.tanh %99 : vector<8x128xf32>
    %101 = arith.mulf %72, %100 : vector<8x128xf32>
    %c0_40 = arith.constant 0 : index
    %c0_41 = arith.constant 0 : index
    %102 = vector.load %arg14[%c0_40, %c0_41] : memref<8x128xf32, #tpu.memory_space<vmem>>, vector<8x128xf32>
    tpu.vector_store %arg14[%c0_40, %c0_41], %101 {strides = array<i32>} : memref<8x128xf32, #tpu.memory_space<vmem>>, vector<8x128xf32>,
    %c0_42 = arith.constant 0 : index
    %c0_43 = arith.constant 0 : index
    %103 = vector.load %arg15[%c0_42, %c0_43] : memref<8x128xf32, #tpu.memory_space<vmem>>, vector<8x128xf32>
    tpu.vector_store %arg15[%c0_42, %c0_43], %77 {strides = array<i32>} : memref<8x128xf32, #tpu.memory_space<vmem>>, vector<8x128xf32>,
    %104 = arith.index_cast %c0_i32_12 : i32 to index
    %c0_44 = arith.constant 0 : index
    %c0_45 = arith.constant 0 : index
    %105 = vector.load %arg11[%104, %c0_44, %c0_45] : memref<8x8x128xf32, #tpu.memory_space<vmem>>, vector<1x8x128xf32>
    %106 = vector.shape_cast %105 : vector<1x8x128xf32> to vector<8x128xf32>
    %107 = vector.shape_cast %101 : vector<8x128xf32> to vector<1x8x128xf32>
    tpu.vector_store %arg11[%104, %c0_44, %c0_45], %107 {strides = array<i32>} : memref<8x8x128xf32, #tpu.memory_space<vmem>>, vector<1x8x128xf32>,
    %c1_i32 = arith.constant 1 : i32
    %c0_46 = arith.constant 0 : index
    %c0_47 = arith.constant 0 : index
    %108 = vector.load %arg14[%c0_46, %c0_47] : memref<8x128xf32, #tpu.memory_space<vmem>>, vector<8x128xf32>
    %c0_48 = arith.constant 0 : index
    %c0_49 = arith.constant 0 : index
    %109 = vector.load %arg15[%c0_48, %c0_49] : memref<8x128xf32, #tpu.memory_space<vmem>>, vector<8x128xf32>
    %cst_50 = arith.constant dense<0.000000e+00> : vector<8x512xf32>
    %110 = tpu.matmul %108, %3, %cst_50 {dimension_numbers = #tpu.dot_dimension_numbers<[1], [0], [0], [1], [0, 0, 1, 1], [], []>} : vector<8x128xf32>, vector<128x512xf32>, vector<8x512xf32> -> vector<8x512xf32>
    %111 = arith.addf %110, %6 : vector<8x512xf32>
    %112 = arith.index_cast %c1_i32 : i32 to index
    %c0_51 = arith.constant 0 : index
    %c0_52 = arith.constant 0 : index
    %113 = vector.load %arg2[%112, %c0_51, %c0_52] : memref<8x8x512xf32, #tpu.memory_space<vmem>>, vector<1x8x512xf32>
    %114 = vector.shape_cast %113 : vector<1x8x512xf32> to vector<8x512xf32>
    %cst_53 = arith.constant dense<0.000000e+00> : vector<8xf32>
    %115 = vector.multi_reduction <add>, %111, %cst_53 [1] : vector<8x512xf32> to vector<8xf32>
    %116 = vector.shape_cast %115 : vector<8xf32> to vector<8x1xf32>
    %117 = arith.mulf %111, %111 : vector<8x512xf32>
    %cst_54 = arith.constant dense<0.000000e+00> : vector<8xf32>
    %118 = vector.multi_reduction <add>, %117, %cst_54 [1] : vector<8x512xf32> to vector<8xf32>
    %119 = vector.shape_cast %118 : vector<8xf32> to vector<8x1xf32>
    %cst_55 = arith.constant 0.001953125 : f32
    %120 = vector.broadcast %cst_55 : f32 to vector<8x1xf32>
    %121 = arith.mulf %116, %120 : vector<8x1xf32>
    %cst_56 = arith.constant 0.001953125 : f32
    %122 = vector.broadcast %cst_56 : f32 to vector<8x1xf32>
    %123 = arith.mulf %119, %122 : vector<8x1xf32>
    %124 = arith.mulf %121, %121 : vector<8x1xf32>
    %125 = arith.subf %123, %124 : vector<8x1xf32>
    %cst_57 = arith.constant 0.000000e+00 : f32
    %126 = vector.broadcast %cst_57 : f32 to vector<8x1xf32>
    %127 = arith.maximumf %125, %126 : vector<8x1xf32>
    %128 = vector.broadcast %121 : vector<8x1xf32> to vector<8x512xf32>
    %129 = arith.subf %111, %128 : vector<8x512xf32>
    %cst_58 = arith.constant 9.99999974E-6 : f32
    %130 = vector.broadcast %cst_58 : f32 to vector<8x1xf32>
    %131 = arith.addf %127, %130 : vector<8x1xf32>
    %132 = math.rsqrt %131 : vector<8x1xf32>
    %133 = vector.broadcast %132 : vector<8x1xf32> to vector<8x512xf32>
    %134 = arith.mulf %129, %133 : vector<8x512xf32>
    %135 = arith.mulf %134, %9 : vector<8x512xf32>
    %136 = arith.addf %135, %12 : vector<8x512xf32>
    %137 = arith.addf %114, %136 : vector<8x512xf32>
    %138 = vector.extract_strided_slice %137 {offsets = [0, 0], sizes = [8, 128], strides = [1, 1]} : vector<8x512xf32> to vector<8x128xf32>
    %cst_59 = arith.constant 5.000000e-01 : f32
    %139 = vector.broadcast %cst_59 : f32 to vector<8x128xf32>
    %140 = arith.mulf %139, %138 : vector<8x128xf32>
    %141 = math.tanh %140 : vector<8x128xf32>
    %cst_60 = arith.constant 5.000000e-01 : f32
    %142 = vector.broadcast %cst_60 : f32 to vector<8x128xf32>
    %143 = arith.mulf %142, %141 : vector<8x128xf32>
    %cst_61 = arith.constant 5.000000e-01 : f32
    %144 = vector.broadcast %cst_61 : f32 to vector<8x128xf32>
    %145 = arith.addf %143, %144 : vector<8x128xf32>
    %146 = vector.extract_strided_slice %137 {offsets = [0, 128], sizes = [8, 128], strides = [1, 1]} : vector<8x512xf32> to vector<8x128xf32>
    %cst_62 = arith.constant 5.000000e-01 : f32
    %147 = vector.broadcast %cst_62 : f32 to vector<8x128xf32>
    %148 = arith.mulf %147, %146 : vector<8x128xf32>
    %149 = math.tanh %148 : vector<8x128xf32>
    %cst_63 = arith.constant 5.000000e-01 : f32
    %150 = vector.broadcast %cst_63 : f32 to vector<8x128xf32>
    %151 = arith.mulf %150, %149 : vector<8x128xf32>
    %cst_64 = arith.constant 5.000000e-01 : f32
    %152 = vector.broadcast %cst_64 : f32 to vector<8x128xf32>
    %153 = arith.addf %151, %152 : vector<8x128xf32>
    %154 = vector.extract_strided_slice %137 {offsets = [0, 256], sizes = [8, 128], strides = [1, 1]} : vector<8x512xf32> to vector<8x128xf32>
    %cst_65 = arith.constant 5.000000e-01 : f32
    %155 = vector.broadcast %cst_65 : f32 to vector<8x128xf32>
    %156 = arith.mulf %155, %154 : vector<8x128xf32>
    %157 = math.tanh %156 : vector<8x128xf32>
    %cst_66 = arith.constant 5.000000e-01 : f32
    %158 = vector.broadcast %cst_66 : f32 to vector<8x128xf32>
    %159 = arith.mulf %158, %157 : vector<8x128xf32>
    %cst_67 = arith.constant 5.000000e-01 : f32
    %160 = vector.broadcast %cst_67 : f32 to vector<8x128xf32>
    %161 = arith.addf %159, %160 : vector<8x128xf32>
    %162 = vector.extract_strided_slice %137 {offsets = [0, 384], sizes = [8, 128], strides = [1, 1]} : vector<8x512xf32> to vector<8x128xf32>
    %163 = math.tanh %162 : vector<8x128xf32>
    %164 = arith.mulf %153, %109 : vector<8x128xf32>
    %165 = arith.mulf %145, %163 : vector<8x128xf32>
    %166 = arith.addf %164, %165 : vector<8x128xf32>
    %cst_68 = arith.constant dense<0.000000e+00> : vector<8xf32>
    %167 = vector.multi_reduction <add>, %166, %cst_68 [1] : vector<8x128xf32> to vector<8xf32>
    %168 = vector.shape_cast %167 : vector<8xf32> to vector<8x1xf32>
    %169 = arith.mulf %166, %166 : vector<8x128xf32>
    %cst_69 = arith.constant dense<0.000000e+00> : vector<8xf32>
    %170 = vector.multi_reduction <add>, %169, %cst_69 [1] : vector<8x128xf32> to vector<8xf32>
    %171 = vector.shape_cast %170 : vector<8xf32> to vector<8x1xf32>
    %cst_70 = arith.constant 7.812500e-03 : f32
    %172 = vector.broadcast %cst_70 : f32 to vector<8x1xf32>
    %173 = arith.mulf %168, %172 : vector<8x1xf32>
    %cst_71 = arith.constant 7.812500e-03 : f32
    %174 = vector.broadcast %cst_71 : f32 to vector<8x1xf32>
    %175 = arith.mulf %171, %174 : vector<8x1xf32>
    %176 = arith.mulf %173, %173 : vector<8x1xf32>
    %177 = arith.subf %175, %176 : vector<8x1xf32>
    %cst_72 = arith.constant 0.000000e+00 : f32
    %178 = vector.broadcast %cst_72 : f32 to vector<8x1xf32>
    %179 = arith.maximumf %177, %178 : vector<8x1xf32>
    %180 = vector.broadcast %173 : vector<8x1xf32> to vector<8x128xf32>
    %181 = arith.subf %166, %180 : vector<8x128xf32>
    %cst_73 = arith.constant 9.99999974E-6 : f32
    %182 = vector.broadcast %cst_73 : f32 to vector<8x1xf32>
    %183 = arith.addf %179, %182 : vector<8x1xf32>
    %184 = math.rsqrt %183 : vector<8x1xf32>
    %185 = vector.broadcast %184 : vector<8x1xf32> to vector<8x128xf32>
    %186 = arith.mulf %181, %185 : vector<8x128xf32>
    %187 = arith.mulf %186, %15 : vector<8x128xf32>
    %188 = arith.addf %187, %18 : vector<8x128xf32>
    %189 = math.tanh %188 : vector<8x128xf32>
    %190 = arith.mulf %161, %189 : vector<8x128xf32>
    %c0_74 = arith.constant 0 : index
    %c0_75 = arith.constant 0 : index
    %191 = vector.load %arg14[%c0_74, %c0_75] : memref<8x128xf32, #tpu.memory_space<vmem>>, vector<8x128xf32>
    tpu.vector_store %arg14[%c0_74, %c0_75], %190 {strides = array<i32>} : memref<8x128xf32, #tpu.memory_space<vmem>>, vector<8x128xf32>,
    %c0_76 = arith.constant 0 : index
    %c0_77 = arith.constant 0 : index
    %192 = vector.load %arg15[%c0_76, %c0_77] : memref<8x128xf32, #tpu.memory_space<vmem>>, vector<8x128xf32>
    tpu.vector_store %arg15[%c0_76, %c0_77], %166 {strides = array<i32>} : memref<8x128xf32, #tpu.memory_space<vmem>>, vector<8x128xf32>,
    %193 = arith.index_cast %c1_i32 : i32 to index
    %c0_78 = arith.constant 0 : index
    %c0_79 = arith.constant 0 : index
    %194 = vector.load %arg11[%193, %c0_78, %c0_79] : memref<8x8x128xf32, #tpu.memory_space<vmem>>, vector<1x8x128xf32>
    %195 = vector.shape_cast %194 : vector<1x8x128xf32> to vector<8x128xf32>
    %196 = vector.shape_cast %190 : vector<8x128xf32> to vector<1x8x128xf32>
    tpu.vector_store %arg11[%193, %c0_78, %c0_79], %196 {strides = array<i32>} : memref<8x8x128xf32, #tpu.memory_space<vmem>>, vector<1x8x128xf32>,
    %c2_i32 = arith.constant 2 : i32
    %c0_80 = arith.constant 0 : index
    %c0_81 = arith.constant 0 : index
    %197 = vector.load %arg14[%c0_80, %c0_81] : memref<8x128xf32, #tpu.memory_space<vmem>>, vector<8x128xf32>
    %c0_82 = arith.constant 0 : index
    %c0_83 = arith.constant 0 : index
    %198 = vector.load %arg15[%c0_82, %c0_83] : memref<8x128xf32, #tpu.memory_space<vmem>>, vector<8x128xf32>
    %cst_84 = arith.constant dense<0.000000e+00> : vector<8x512xf32>
    %199 = tpu.matmul %197, %3, %cst_84 {dimension_numbers = #tpu.dot_dimension_numbers<[1], [0], [0], [1], [0, 0, 1, 1], [], []>} : vector<8x128xf32>, vector<128x512xf32>, vector<8x512xf32> -> vector<8x512xf32>
    %200 = arith.addf %199, %6 : vector<8x512xf32>
    %201 = arith.index_cast %c2_i32 : i32 to index
    %c0_85 = arith.constant 0 : index
    %c0_86 = arith.constant 0 : index
    %202 = vector.load %arg2[%201, %c0_85, %c0_86] : memref<8x8x512xf32, #tpu.memory_space<vmem>>, vector<1x8x512xf32>
    %203 = vector.shape_cast %202 : vector<1x8x512xf32> to vector<8x512xf32>
    %cst_87 = arith.constant dense<0.000000e+00> : vector<8xf32>
    %204 = vector.multi_reduction <add>, %200, %cst_87 [1] : vector<8x512xf32> to vector<8xf32>
    %205 = vector.shape_cast %204 : vector<8xf32> to vector<8x1xf32>
    %206 = arith.mulf %200, %200 : vector<8x512xf32>
    %cst_88 = arith.constant dense<0.000000e+00> : vector<8xf32>
    %207 = vector.multi_reduction <add>, %206, %cst_88 [1] : vector<8x512xf32> to vector<8xf32>
    %208 = vector.shape_cast %207 : vector<8xf32> to vector<8x1xf32>
    %cst_89 = arith.constant 0.001953125 : f32
    %209 = vector.broadcast %cst_89 : f32 to vector<8x1xf32>
    %210 = arith.mulf %205, %209 : vector<8x1xf32>
    %cst_90 = arith.constant 0.001953125 : f32
    %211 = vector.broadcast %cst_90 : f32 to vector<8x1xf32>
    %212 = arith.mulf %208, %211 : vector<8x1xf32>
    %213 = arith.mulf %210, %210 : vector<8x1xf32>
    %214 = arith.subf %212, %213 : vector<8x1xf32>
    %cst_91 = arith.constant 0.000000e+00 : f32
    %215 = vector.broadcast %cst_91 : f32 to vector<8x1xf32>
    %216 = arith.maximumf %214, %215 : vector<8x1xf32>
    %217 = vector.broadcast %210 : vector<8x1xf32> to vector<8x512xf32>
    %218 = arith.subf %200, %217 : vector<8x512xf32>
    %cst_92 = arith.constant 9.99999974E-6 : f32
    %219 = vector.broadcast %cst_92 : f32 to vector<8x1xf32>
    %220 = arith.addf %216, %219 : vector<8x1xf32>
    %221 = math.rsqrt %220 : vector<8x1xf32>
    %222 = vector.broadcast %221 : vector<8x1xf32> to vector<8x512xf32>
    %223 = arith.mulf %218, %222 : vector<8x512xf32>
    %224 = arith.mulf %223, %9 : vector<8x512xf32>
    %225 = arith.addf %224, %12 : vector<8x512xf32>
    %226 = arith.addf %203, %225 : vector<8x512xf32>
    %227 = vector.extract_strided_slice %226 {offsets = [0, 0], sizes = [8, 128], strides = [1, 1]} : vector<8x512xf32> to vector<8x128xf32>
    %cst_93 = arith.constant 5.000000e-01 : f32
    %228 = vector.broadcast %cst_93 : f32 to vector<8x128xf32>
    %229 = arith.mulf %228, %227 : vector<8x128xf32>
    %230 = math.tanh %229 : vector<8x128xf32>
    %cst_94 = arith.constant 5.000000e-01 : f32
    %231 = vector.broadcast %cst_94 : f32 to vector<8x128xf32>
    %232 = arith.mulf %231, %230 : vector<8x128xf32>
    %cst_95 = arith.constant 5.000000e-01 : f32
    %233 = vector.broadcast %cst_95 : f32 to vector<8x128xf32>
    %234 = arith.addf %232, %233 : vector<8x128xf32>
    %235 = vector.extract_strided_slice %226 {offsets = [0, 128], sizes = [8, 128], strides = [1, 1]} : vector<8x512xf32> to vector<8x128xf32>
    %cst_96 = arith.constant 5.000000e-01 : f32
    %236 = vector.broadcast %cst_96 : f32 to vector<8x128xf32>
    %237 = arith.mulf %236, %235 : vector<8x128xf32>
    %238 = math.tanh %237 : vector<8x128xf32>
    %cst_97 = arith.constant 5.000000e-01 : f32
    %239 = vector.broadcast %cst_97 : f32 to vector<8x128xf32>
    %240 = arith.mulf %239, %238 : vector<8x128xf32>
    %cst_98 = arith.constant 5.000000e-01 : f32
    %241 = vector.broadcast %cst_98 : f32 to vector<8x128xf32>
    %242 = arith.addf %240, %241 : vector<8x128xf32>
    %243 = vector.extract_strided_slice %226 {offsets = [0, 256], sizes = [8, 128], strides = [1, 1]} : vector<8x512xf32> to vector<8x128xf32>
    %cst_99 = arith.constant 5.000000e-01 : f32
    %244 = vector.broadcast %cst_99 : f32 to vector<8x128xf32>
    %245 = arith.mulf %244, %243 : vector<8x128xf32>
    %246 = math.tanh %245 : vector<8x128xf32>
    %cst_100 = arith.constant 5.000000e-01 : f32
    %247 = vector.broadcast %cst_100 : f32 to vector<8x128xf32>
    %248 = arith.mulf %247, %246 : vector<8x128xf32>
    %cst_101 = arith.constant 5.000000e-01 : f32
    %249 = vector.broadcast %cst_101 : f32 to vector<8x128xf32>
    %250 = arith.addf %248, %249 : vector<8x128xf32>
    %251 = vector.extract_strided_slice %226 {offsets = [0, 384], sizes = [8, 128], strides = [1, 1]} : vector<8x512xf32> to vector<8x128xf32>
    %252 = math.tanh %251 : vector<8x128xf32>
    %253 = arith.mulf %242, %198 : vector<8x128xf32>
    %254 = arith.mulf %234, %252 : vector<8x128xf32>
    %255 = arith.addf %253, %254 : vector<8x128xf32>
    %cst_102 = arith.constant dense<0.000000e+00> : vector<8xf32>
    %256 = vector.multi_reduction <add>, %255, %cst_102 [1] : vector<8x128xf32> to vector<8xf32>
    %257 = vector.shape_cast %256 : vector<8xf32> to vector<8x1xf32>
    %258 = arith.mulf %255, %255 : vector<8x128xf32>
    %cst_103 = arith.constant dense<0.000000e+00> : vector<8xf32>
    %259 = vector.multi_reduction <add>, %258, %cst_103 [1] : vector<8x128xf32> to vector<8xf32>
    %260 = vector.shape_cast %259 : vector<8xf32> to vector<8x1xf32>
    %cst_104 = arith.constant 7.812500e-03 : f32
    %261 = vector.broadcast %cst_104 : f32 to vector<8x1xf32>
    %262 = arith.mulf %257, %261 : vector<8x1xf32>
    %cst_105 = arith.constant 7.812500e-03 : f32
    %263 = vector.broadcast %cst_105 : f32 to vector<8x1xf32>
    %264 = arith.mulf %260, %263 : vector<8x1xf32>
    %265 = arith.mulf %262, %262 : vector<8x1xf32>
    %266 = arith.subf %264, %265 : vector<8x1xf32>
    %cst_106 = arith.constant 0.000000e+00 : f32
    %267 = vector.broadcast %cst_106 : f32 to vector<8x1xf32>
    %268 = arith.maximumf %266, %267 : vector<8x1xf32>
    %269 = vector.broadcast %262 : vector<8x1xf32> to vector<8x128xf32>
    %270 = arith.subf %255, %269 : vector<8x128xf32>
    %cst_107 = arith.constant 9.99999974E-6 : f32
    %271 = vector.broadcast %cst_107 : f32 to vector<8x1xf32>
    %272 = arith.addf %268, %271 : vector<8x1xf32>
    %273 = math.rsqrt %272 : vector<8x1xf32>
    %274 = vector.broadcast %273 : vector<8x1xf32> to vector<8x128xf32>
    %275 = arith.mulf %270, %274 : vector<8x128xf32>
    %276 = arith.mulf %275, %15 : vector<8x128xf32>
    %277 = arith.addf %276, %18 : vector<8x128xf32>
    %278 = math.tanh %277 : vector<8x128xf32>
    %279 = arith.mulf %250, %278 : vector<8x128xf32>
    %c0_108 = arith.constant 0 : index
    %c0_109 = arith.constant 0 : index
    %280 = vector.load %arg14[%c0_108, %c0_109] : memref<8x128xf32, #tpu.memory_space<vmem>>, vector<8x128xf32>
    tpu.vector_store %arg14[%c0_108, %c0_109], %279 {strides = array<i32>} : memref<8x128xf32, #tpu.memory_space<vmem>>, vector<8x128xf32>,
    %c0_110 = arith.constant 0 : index
    %c0_111 = arith.constant 0 : index
    %281 = vector.load %arg15[%c0_110, %c0_111] : memref<8x128xf32, #tpu.memory_space<vmem>>, vector<8x128xf32>
    tpu.vector_store %arg15[%c0_110, %c0_111], %255 {strides = array<i32>} : memref<8x128xf32, #tpu.memory_space<vmem>>, vector<8x128xf32>,
    %282 = arith.index_cast %c2_i32 : i32 to index
    %c0_112 = arith.constant 0 : index
    %c0_113 = arith.constant 0 : index
    %283 = vector.load %arg11[%282, %c0_112, %c0_113] : memref<8x8x128xf32, #tpu.memory_space<vmem>>, vector<1x8x128xf32>
    %284 = vector.shape_cast %283 : vector<1x8x128xf32> to vector<8x128xf32>
    %285 = vector.shape_cast %279 : vector<8x128xf32> to vector<1x8x128xf32>
    tpu.vector_store %arg11[%282, %c0_112, %c0_113], %285 {strides = array<i32>} : memref<8x8x128xf32, #tpu.memory_space<vmem>>, vector<1x8x128xf32>,
    %c3_i32 = arith.constant 3 : i32
    %c0_114 = arith.constant 0 : index
    %c0_115 = arith.constant 0 : index
    %286 = vector.load %arg14[%c0_114, %c0_115] : memref<8x128xf32, #tpu.memory_space<vmem>>, vector<8x128xf32>
    %c0_116 = arith.constant 0 : index
    %c0_117 = arith.constant 0 : index
    %287 = vector.load %arg15[%c0_116, %c0_117] : memref<8x128xf32, #tpu.memory_space<vmem>>, vector<8x128xf32>
    %cst_118 = arith.constant dense<0.000000e+00> : vector<8x512xf32>
    %288 = tpu.matmul %286, %3, %cst_118 {dimension_numbers = #tpu.dot_dimension_numbers<[1], [0], [0], [1], [0, 0, 1, 1], [], []>} : vector<8x128xf32>, vector<128x512xf32>, vector<8x512xf32> -> vector<8x512xf32>
    %289 = arith.addf %288, %6 : vector<8x512xf32>
    %290 = arith.index_cast %c3_i32 : i32 to index
    %c0_119 = arith.constant 0 : index
    %c0_120 = arith.constant 0 : index
    %291 = vector.load %arg2[%290, %c0_119, %c0_120] : memref<8x8x512xf32, #tpu.memory_space<vmem>>, vector<1x8x512xf32>
    %292 = vector.shape_cast %291 : vector<1x8x512xf32> to vector<8x512xf32>
    %cst_121 = arith.constant dense<0.000000e+00> : vector<8xf32>
    %293 = vector.multi_reduction <add>, %289, %cst_121 [1] : vector<8x512xf32> to vector<8xf32>
    %294 = vector.shape_cast %293 : vector<8xf32> to vector<8x1xf32>
    %295 = arith.mulf %289, %289 : vector<8x512xf32>
    %cst_122 = arith.constant dense<0.000000e+00> : vector<8xf32>
    %296 = vector.multi_reduction <add>, %295, %cst_122 [1] : vector<8x512xf32> to vector<8xf32>
    %297 = vector.shape_cast %296 : vector<8xf32> to vector<8x1xf32>
    %cst_123 = arith.constant 0.001953125 : f32
    %298 = vector.broadcast %cst_123 : f32 to vector<8x1xf32>
    %299 = arith.mulf %294, %298 : vector<8x1xf32>
    %cst_124 = arith.constant 0.001953125 : f32
    %300 = vector.broadcast %cst_124 : f32 to vector<8x1xf32>
    %301 = arith.mulf %297, %300 : vector<8x1xf32>
    %302 = arith.mulf %299, %299 : vector<8x1xf32>
    %303 = arith.subf %301, %302 : vector<8x1xf32>
    %cst_125 = arith.constant 0.000000e+00 : f32
    %304 = vector.broadcast %cst_125 : f32 to vector<8x1xf32>
    %305 = arith.maximumf %303, %304 : vector<8x1xf32>
    %306 = vector.broadcast %299 : vector<8x1xf32> to vector<8x512xf32>
    %307 = arith.subf %289, %306 : vector<8x512xf32>
    %cst_126 = arith.constant 9.99999974E-6 : f32
    %308 = vector.broadcast %cst_126 : f32 to vector<8x1xf32>
    %309 = arith.addf %305, %308 : vector<8x1xf32>
    %310 = math.rsqrt %309 : vector<8x1xf32>
    %311 = vector.broadcast %310 : vector<8x1xf32> to vector<8x512xf32>
    %312 = arith.mulf %307, %311 : vector<8x512xf32>
    %313 = arith.mulf %312, %9 : vector<8x512xf32>
    %314 = arith.addf %313, %12 : vector<8x512xf32>
    %315 = arith.addf %292, %314 : vector<8x512xf32>
    %316 = vector.extract_strided_slice %315 {offsets = [0, 0], sizes = [8, 128], strides = [1, 1]} : vector<8x512xf32> to vector<8x128xf32>
    %cst_127 = arith.constant 5.000000e-01 : f32
    %317 = vector.broadcast %cst_127 : f32 to vector<8x128xf32>
    %318 = arith.mulf %317, %316 : vector<8x128xf32>
    %319 = math.tanh %318 : vector<8x128xf32>
    %cst_128 = arith.constant 5.000000e-01 : f32
    %320 = vector.broadcast %cst_128 : f32 to vector<8x128xf32>
    %321 = arith.mulf %320, %319 : vector<8x128xf32>
    %cst_129 = arith.constant 5.000000e-01 : f32
    %322 = vector.broadcast %cst_129 : f32 to vector<8x128xf32>
    %323 = arith.addf %321, %322 : vector<8x128xf32>
    %324 = vector.extract_strided_slice %315 {offsets = [0, 128], sizes = [8, 128], strides = [1, 1]} : vector<8x512xf32> to vector<8x128xf32>
    %cst_130 = arith.constant 5.000000e-01 : f32
    %325 = vector.broadcast %cst_130 : f32 to vector<8x128xf32>
    %326 = arith.mulf %325, %324 : vector<8x128xf32>
    %327 = math.tanh %326 : vector<8x128xf32>
    %cst_131 = arith.constant 5.000000e-01 : f32
    %328 = vector.broadcast %cst_131 : f32 to vector<8x128xf32>
    %329 = arith.mulf %328, %327 : vector<8x128xf32>
    %cst_132 = arith.constant 5.000000e-01 : f32
    %330 = vector.broadcast %cst_132 : f32 to vector<8x128xf32>
    %331 = arith.addf %329, %330 : vector<8x128xf32>
    %332 = vector.extract_strided_slice %315 {offsets = [0, 256], sizes = [8, 128], strides = [1, 1]} : vector<8x512xf32> to vector<8x128xf32>
    %cst_133 = arith.constant 5.000000e-01 : f32
    %333 = vector.broadcast %cst_133 : f32 to vector<8x128xf32>
    %334 = arith.mulf %333, %332 : vector<8x128xf32>
    %335 = math.tanh %334 : vector<8x128xf32>
    %cst_134 = arith.constant 5.000000e-01 : f32
    %336 = vector.broadcast %cst_134 : f32 to vector<8x128xf32>
    %337 = arith.mulf %336, %335 : vector<8x128xf32>
    %cst_135 = arith.constant 5.000000e-01 : f32
    %338 = vector.broadcast %cst_135 : f32 to vector<8x128xf32>
    %339 = arith.addf %337, %338 : vector<8x128xf32>
    %340 = vector.extract_strided_slice %315 {offsets = [0, 384], sizes = [8, 128], strides = [1, 1]} : vector<8x512xf32> to vector<8x128xf32>
    %341 = math.tanh %340 : vector<8x128xf32>
    %342 = arith.mulf %331, %287 : vector<8x128xf32>
    %343 = arith.mulf %323, %341 : vector<8x128xf32>
    %344 = arith.addf %342, %343 : vector<8x128xf32>
    %cst_136 = arith.constant dense<0.000000e+00> : vector<8xf32>
    %345 = vector.multi_reduction <add>, %344, %cst_136 [1] : vector<8x128xf32> to vector<8xf32>
    %346 = vector.shape_cast %345 : vector<8xf32> to vector<8x1xf32>
    %347 = arith.mulf %344, %344 : vector<8x128xf32>
    %cst_137 = arith.constant dense<0.000000e+00> : vector<8xf32>
    %348 = vector.multi_reduction <add>, %347, %cst_137 [1] : vector<8x128xf32> to vector<8xf32>
    %349 = vector.shape_cast %348 : vector<8xf32> to vector<8x1xf32>
    %cst_138 = arith.constant 7.812500e-03 : f32
    %350 = vector.broadcast %cst_138 : f32 to vector<8x1xf32>
    %351 = arith.mulf %346, %350 : vector<8x1xf32>
    %cst_139 = arith.constant 7.812500e-03 : f32
    %352 = vector.broadcast %cst_139 : f32 to vector<8x1xf32>
    %353 = arith.mulf %349, %352 : vector<8x1xf32>
    %354 = arith.mulf %351, %351 : vector<8x1xf32>
    %355 = arith.subf %353, %354 : vector<8x1xf32>
    %cst_140 = arith.constant 0.000000e+00 : f32
    %356 = vector.broadcast %cst_140 : f32 to vector<8x1xf32>
    %357 = arith.maximumf %355, %356 : vector<8x1xf32>
    %358 = vector.broadcast %351 : vector<8x1xf32> to vector<8x128xf32>
    %359 = arith.subf %344, %358 : vector<8x128xf32>
    %cst_141 = arith.constant 9.99999974E-6 : f32
    %360 = vector.broadcast %cst_141 : f32 to vector<8x1xf32>
    %361 = arith.addf %357, %360 : vector<8x1xf32>
    %362 = math.rsqrt %361 : vector<8x1xf32>
    %363 = vector.broadcast %362 : vector<8x1xf32> to vector<8x128xf32>
    %364 = arith.mulf %359, %363 : vector<8x128xf32>
    %365 = arith.mulf %364, %15 : vector<8x128xf32>
    %366 = arith.addf %365, %18 : vector<8x128xf32>
    %367 = math.tanh %366 : vector<8x128xf32>
    %368 = arith.mulf %339, %367 : vector<8x128xf32>
    %c0_142 = arith.constant 0 : index
    %c0_143 = arith.constant 0 : index
    %369 = vector.load %arg14[%c0_142, %c0_143] : memref<8x128xf32, #tpu.memory_space<vmem>>, vector<8x128xf32>
    tpu.vector_store %arg14[%c0_142, %c0_143], %368 {strides = array<i32>} : memref<8x128xf32, #tpu.memory_space<vmem>>, vector<8x128xf32>,
    %c0_144 = arith.constant 0 : index
    %c0_145 = arith.constant 0 : index
    %370 = vector.load %arg15[%c0_144, %c0_145] : memref<8x128xf32, #tpu.memory_space<vmem>>, vector<8x128xf32>
    tpu.vector_store %arg15[%c0_144, %c0_145], %344 {strides = array<i32>} : memref<8x128xf32, #tpu.memory_space<vmem>>, vector<8x128xf32>,
    %371 = arith.index_cast %c3_i32 : i32 to index
    %c0_146 = arith.constant 0 : index
    %c0_147 = arith.constant 0 : index
    %372 = vector.load %arg11[%371, %c0_146, %c0_147] : memref<8x8x128xf32, #tpu.memory_space<vmem>>, vector<1x8x128xf32>
    %373 = vector.shape_cast %372 : vector<1x8x128xf32> to vector<8x128xf32>
    %374 = vector.shape_cast %368 : vector<8x128xf32> to vector<1x8x128xf32>
    tpu.vector_store %arg11[%371, %c0_146, %c0_147], %374 {strides = array<i32>} : memref<8x8x128xf32, #tpu.memory_space<vmem>>, vector<1x8x128xf32>,
    %c4_i32 = arith.constant 4 : i32
    %c0_148 = arith.constant 0 : index
    %c0_149 = arith.constant 0 : index
    %375 = vector.load %arg14[%c0_148, %c0_149] : memref<8x128xf32, #tpu.memory_space<vmem>>, vector<8x128xf32>
    %c0_150 = arith.constant 0 : index
    %c0_151 = arith.constant 0 : index
    %376 = vector.load %arg15[%c0_150, %c0_151] : memref<8x128xf32, #tpu.memory_space<vmem>>, vector<8x128xf32>
    %cst_152 = arith.constant dense<0.000000e+00> : vector<8x512xf32>
    %377 = tpu.matmul %375, %3, %cst_152 {dimension_numbers = #tpu.dot_dimension_numbers<[1], [0], [0], [1], [0, 0, 1, 1], [], []>} : vector<8x128xf32>, vector<128x512xf32>, vector<8x512xf32> -> vector<8x512xf32>
    %378 = arith.addf %377, %6 : vector<8x512xf32>
    %379 = arith.index_cast %c4_i32 : i32 to index
    %c0_153 = arith.constant 0 : index
    %c0_154 = arith.constant 0 : index
    %380 = vector.load %arg2[%379, %c0_153, %c0_154] : memref<8x8x512xf32, #tpu.memory_space<vmem>>, vector<1x8x512xf32>
    %381 = vector.shape_cast %380 : vector<1x8x512xf32> to vector<8x512xf32>
    %cst_155 = arith.constant dense<0.000000e+00> : vector<8xf32>
    %382 = vector.multi_reduction <add>, %378, %cst_155 [1] : vector<8x512xf32> to vector<8xf32>
    %383 = vector.shape_cast %382 : vector<8xf32> to vector<8x1xf32>
    %384 = arith.mulf %378, %378 : vector<8x512xf32>
    %cst_156 = arith.constant dense<0.000000e+00> : vector<8xf32>
    %385 = vector.multi_reduction <add>, %384, %cst_156 [1] : vector<8x512xf32> to vector<8xf32>
    %386 = vector.shape_cast %385 : vector<8xf32> to vector<8x1xf32>
    %cst_157 = arith.constant 0.001953125 : f32
    %387 = vector.broadcast %cst_157 : f32 to vector<8x1xf32>
    %388 = arith.mulf %383, %387 : vector<8x1xf32>
    %cst_158 = arith.constant 0.001953125 : f32
    %389 = vector.broadcast %cst_158 : f32 to vector<8x1xf32>
    %390 = arith.mulf %386, %389 : vector<8x1xf32>
    %391 = arith.mulf %388, %388 : vector<8x1xf32>
    %392 = arith.subf %390, %391 : vector<8x1xf32>
    %cst_159 = arith.constant 0.000000e+00 : f32
    %393 = vector.broadcast %cst_159 : f32 to vector<8x1xf32>
    %394 = arith.maximumf %392, %393 : vector<8x1xf32>
    %395 = vector.broadcast %388 : vector<8x1xf32> to vector<8x512xf32>
    %396 = arith.subf %378, %395 : vector<8x512xf32>
    %cst_160 = arith.constant 9.99999974E-6 : f32
    %397 = vector.broadcast %cst_160 : f32 to vector<8x1xf32>
    %398 = arith.addf %394, %397 : vector<8x1xf32>
    %399 = math.rsqrt %398 : vector<8x1xf32>
    %400 = vector.broadcast %399 : vector<8x1xf32> to vector<8x512xf32>
    %401 = arith.mulf %396, %400 : vector<8x512xf32>
    %402 = arith.mulf %401, %9 : vector<8x512xf32>
    %403 = arith.addf %402, %12 : vector<8x512xf32>
    %404 = arith.addf %381, %403 : vector<8x512xf32>
    %405 = vector.extract_strided_slice %404 {offsets = [0, 0], sizes = [8, 128], strides = [1, 1]} : vector<8x512xf32> to vector<8x128xf32>
    %cst_161 = arith.constant 5.000000e-01 : f32
    %406 = vector.broadcast %cst_161 : f32 to vector<8x128xf32>
    %407 = arith.mulf %406, %405 : vector<8x128xf32>
    %408 = math.tanh %407 : vector<8x128xf32>
    %cst_162 = arith.constant 5.000000e-01 : f32
    %409 = vector.broadcast %cst_162 : f32 to vector<8x128xf32>
    %410 = arith.mulf %409, %408 : vector<8x128xf32>
    %cst_163 = arith.constant 5.000000e-01 : f32
    %411 = vector.broadcast %cst_163 : f32 to vector<8x128xf32>
    %412 = arith.addf %410, %411 : vector<8x128xf32>
    %413 = vector.extract_strided_slice %404 {offsets = [0, 128], sizes = [8, 128], strides = [1, 1]} : vector<8x512xf32> to vector<8x128xf32>
    %cst_164 = arith.constant 5.000000e-01 : f32
    %414 = vector.broadcast %cst_164 : f32 to vector<8x128xf32>
    %415 = arith.mulf %414, %413 : vector<8x128xf32>
    %416 = math.tanh %415 : vector<8x128xf32>
    %cst_165 = arith.constant 5.000000e-01 : f32
    %417 = vector.broadcast %cst_165 : f32 to vector<8x128xf32>
    %418 = arith.mulf %417, %416 : vector<8x128xf32>
    %cst_166 = arith.constant 5.000000e-01 : f32
    %419 = vector.broadcast %cst_166 : f32 to vector<8x128xf32>
    %420 = arith.addf %418, %419 : vector<8x128xf32>
    %421 = vector.extract_strided_slice %404 {offsets = [0, 256], sizes = [8, 128], strides = [1, 1]} : vector<8x512xf32> to vector<8x128xf32>
    %cst_167 = arith.constant 5.000000e-01 : f32
    %422 = vector.broadcast %cst_167 : f32 to vector<8x128xf32>
    %423 = arith.mulf %422, %421 : vector<8x128xf32>
    %424 = math.tanh %423 : vector<8x128xf32>
    %cst_168 = arith.constant 5.000000e-01 : f32
    %425 = vector.broadcast %cst_168 : f32 to vector<8x128xf32>
    %426 = arith.mulf %425, %424 : vector<8x128xf32>
    %cst_169 = arith.constant 5.000000e-01 : f32
    %427 = vector.broadcast %cst_169 : f32 to vector<8x128xf32>
    %428 = arith.addf %426, %427 : vector<8x128xf32>
    %429 = vector.extract_strided_slice %404 {offsets = [0, 384], sizes = [8, 128], strides = [1, 1]} : vector<8x512xf32> to vector<8x128xf32>
    %430 = math.tanh %429 : vector<8x128xf32>
    %431 = arith.mulf %420, %376 : vector<8x128xf32>
    %432 = arith.mulf %412, %430 : vector<8x128xf32>
    %433 = arith.addf %431, %432 : vector<8x128xf32>
    %cst_170 = arith.constant dense<0.000000e+00> : vector<8xf32>
    %434 = vector.multi_reduction <add>, %433, %cst_170 [1] : vector<8x128xf32> to vector<8xf32>
    %435 = vector.shape_cast %434 : vector<8xf32> to vector<8x1xf32>
    %436 = arith.mulf %433, %433 : vector<8x128xf32>
    %cst_171 = arith.constant dense<0.000000e+00> : vector<8xf32>
    %437 = vector.multi_reduction <add>, %436, %cst_171 [1] : vector<8x128xf32> to vector<8xf32>
    %438 = vector.shape_cast %437 : vector<8xf32> to vector<8x1xf32>
    %cst_172 = arith.constant 7.812500e-03 : f32
    %439 = vector.broadcast %cst_172 : f32 to vector<8x1xf32>
    %440 = arith.mulf %435, %439 : vector<8x1xf32>
    %cst_173 = arith.constant 7.812500e-03 : f32
    %441 = vector.broadcast %cst_173 : f32 to vector<8x1xf32>
    %442 = arith.mulf %438, %441 : vector<8x1xf32>
    %443 = arith.mulf %440, %440 : vector<8x1xf32>
    %444 = arith.subf %442, %443 : vector<8x1xf32>
    %cst_174 = arith.constant 0.000000e+00 : f32
    %445 = vector.broadcast %cst_174 : f32 to vector<8x1xf32>
    %446 = arith.maximumf %444, %445 : vector<8x1xf32>
    %447 = vector.broadcast %440 : vector<8x1xf32> to vector<8x128xf32>
    %448 = arith.subf %433, %447 : vector<8x128xf32>
    %cst_175 = arith.constant 9.99999974E-6 : f32
    %449 = vector.broadcast %cst_175 : f32 to vector<8x1xf32>
    %450 = arith.addf %446, %449 : vector<8x1xf32>
    %451 = math.rsqrt %450 : vector<8x1xf32>
    %452 = vector.broadcast %451 : vector<8x1xf32> to vector<8x128xf32>
    %453 = arith.mulf %448, %452 : vector<8x128xf32>
    %454 = arith.mulf %453, %15 : vector<8x128xf32>
    %455 = arith.addf %454, %18 : vector<8x128xf32>
    %456 = math.tanh %455 : vector<8x128xf32>
    %457 = arith.mulf %428, %456 : vector<8x128xf32>
    %c0_176 = arith.constant 0 : index
    %c0_177 = arith.constant 0 : index
    %458 = vector.load %arg14[%c0_176, %c0_177] : memref<8x128xf32, #tpu.memory_space<vmem>>, vector<8x128xf32>
    tpu.vector_store %arg14[%c0_176, %c0_177], %457 {strides = array<i32>} : memref<8x128xf32, #tpu.memory_space<vmem>>, vector<8x128xf32>,
    %c0_178 = arith.constant 0 : index
    %c0_179 = arith.constant 0 : index
    %459 = vector.load %arg15[%c0_178, %c0_179] : memref<8x128xf32, #tpu.memory_space<vmem>>, vector<8x128xf32>
    tpu.vector_store %arg15[%c0_178, %c0_179], %433 {strides = array<i32>} : memref<8x128xf32, #tpu.memory_space<vmem>>, vector<8x128xf32>,
    %460 = arith.index_cast %c4_i32 : i32 to index
    %c0_180 = arith.constant 0 : index
    %c0_181 = arith.constant 0 : index
    %461 = vector.load %arg11[%460, %c0_180, %c0_181] : memref<8x8x128xf32, #tpu.memory_space<vmem>>, vector<1x8x128xf32>
    %462 = vector.shape_cast %461 : vector<1x8x128xf32> to vector<8x128xf32>
    %463 = vector.shape_cast %457 : vector<8x128xf32> to vector<1x8x128xf32>
    tpu.vector_store %arg11[%460, %c0_180, %c0_181], %463 {strides = array<i32>} : memref<8x8x128xf32, #tpu.memory_space<vmem>>, vector<1x8x128xf32>,
    %c5_i32 = arith.constant 5 : i32
    %c0_182 = arith.constant 0 : index
    %c0_183 = arith.constant 0 : index
    %464 = vector.load %arg14[%c0_182, %c0_183] : memref<8x128xf32, #tpu.memory_space<vmem>>, vector<8x128xf32>
    %c0_184 = arith.constant 0 : index
    %c0_185 = arith.constant 0 : index
    %465 = vector.load %arg15[%c0_184, %c0_185] : memref<8x128xf32, #tpu.memory_space<vmem>>, vector<8x128xf32>
    %cst_186 = arith.constant dense<0.000000e+00> : vector<8x512xf32>
    %466 = tpu.matmul %464, %3, %cst_186 {dimension_numbers = #tpu.dot_dimension_numbers<[1], [0], [0], [1], [0, 0, 1, 1], [], []>} : vector<8x128xf32>, vector<128x512xf32>, vector<8x512xf32> -> vector<8x512xf32>
    %467 = arith.addf %466, %6 : vector<8x512xf32>
    %468 = arith.index_cast %c5_i32 : i32 to index
    %c0_187 = arith.constant 0 : index
    %c0_188 = arith.constant 0 : index
    %469 = vector.load %arg2[%468, %c0_187, %c0_188] : memref<8x8x512xf32, #tpu.memory_space<vmem>>, vector<1x8x512xf32>
    %470 = vector.shape_cast %469 : vector<1x8x512xf32> to vector<8x512xf32>
    %cst_189 = arith.constant dense<0.000000e+00> : vector<8xf32>
    %471 = vector.multi_reduction <add>, %467, %cst_189 [1] : vector<8x512xf32> to vector<8xf32>
    %472 = vector.shape_cast %471 : vector<8xf32> to vector<8x1xf32>
    %473 = arith.mulf %467, %467 : vector<8x512xf32>
    %cst_190 = arith.constant dense<0.000000e+00> : vector<8xf32>
    %474 = vector.multi_reduction <add>, %473, %cst_190 [1] : vector<8x512xf32> to vector<8xf32>
    %475 = vector.shape_cast %474 : vector<8xf32> to vector<8x1xf32>
    %cst_191 = arith.constant 0.001953125 : f32
    %476 = vector.broadcast %cst_191 : f32 to vector<8x1xf32>
    %477 = arith.mulf %472, %476 : vector<8x1xf32>
    %cst_192 = arith.constant 0.001953125 : f32
    %478 = vector.broadcast %cst_192 : f32 to vector<8x1xf32>
    %479 = arith.mulf %475, %478 : vector<8x1xf32>
    %480 = arith.mulf %477, %477 : vector<8x1xf32>
    %481 = arith.subf %479, %480 : vector<8x1xf32>
    %cst_193 = arith.constant 0.000000e+00 : f32
    %482 = vector.broadcast %cst_193 : f32 to vector<8x1xf32>
    %483 = arith.maximumf %481, %482 : vector<8x1xf32>
    %484 = vector.broadcast %477 : vector<8x1xf32> to vector<8x512xf32>
    %485 = arith.subf %467, %484 : vector<8x512xf32>
    %cst_194 = arith.constant 9.99999974E-6 : f32
    %486 = vector.broadcast %cst_194 : f32 to vector<8x1xf32>
    %487 = arith.addf %483, %486 : vector<8x1xf32>
    %488 = math.rsqrt %487 : vector<8x1xf32>
    %489 = vector.broadcast %488 : vector<8x1xf32> to vector<8x512xf32>
    %490 = arith.mulf %485, %489 : vector<8x512xf32>
    %491 = arith.mulf %490, %9 : vector<8x512xf32>
    %492 = arith.addf %491, %12 : vector<8x512xf32>
    %493 = arith.addf %470, %492 : vector<8x512xf32>
    %494 = vector.extract_strided_slice %493 {offsets = [0, 0], sizes = [8, 128], strides = [1, 1]} : vector<8x512xf32> to vector<8x128xf32>
    %cst_195 = arith.constant 5.000000e-01 : f32
    %495 = vector.broadcast %cst_195 : f32 to vector<8x128xf32>
    %496 = arith.mulf %495, %494 : vector<8x128xf32>
    %497 = math.tanh %496 : vector<8x128xf32>
    %cst_196 = arith.constant 5.000000e-01 : f32
    %498 = vector.broadcast %cst_196 : f32 to vector<8x128xf32>
    %499 = arith.mulf %498, %497 : vector<8x128xf32>
    %cst_197 = arith.constant 5.000000e-01 : f32
    %500 = vector.broadcast %cst_197 : f32 to vector<8x128xf32>
    %501 = arith.addf %499, %500 : vector<8x128xf32>
    %502 = vector.extract_strided_slice %493 {offsets = [0, 128], sizes = [8, 128], strides = [1, 1]} : vector<8x512xf32> to vector<8x128xf32>
    %cst_198 = arith.constant 5.000000e-01 : f32
    %503 = vector.broadcast %cst_198 : f32 to vector<8x128xf32>
    %504 = arith.mulf %503, %502 : vector<8x128xf32>
    %505 = math.tanh %504 : vector<8x128xf32>
    %cst_199 = arith.constant 5.000000e-01 : f32
    %506 = vector.broadcast %cst_199 : f32 to vector<8x128xf32>
    %507 = arith.mulf %506, %505 : vector<8x128xf32>
    %cst_200 = arith.constant 5.000000e-01 : f32
    %508 = vector.broadcast %cst_200 : f32 to vector<8x128xf32>
    %509 = arith.addf %507, %508 : vector<8x128xf32>
    %510 = vector.extract_strided_slice %493 {offsets = [0, 256], sizes = [8, 128], strides = [1, 1]} : vector<8x512xf32> to vector<8x128xf32>
    %cst_201 = arith.constant 5.000000e-01 : f32
    %511 = vector.broadcast %cst_201 : f32 to vector<8x128xf32>
    %512 = arith.mulf %511, %510 : vector<8x128xf32>
    %513 = math.tanh %512 : vector<8x128xf32>
    %cst_202 = arith.constant 5.000000e-01 : f32
    %514 = vector.broadcast %cst_202 : f32 to vector<8x128xf32>
    %515 = arith.mulf %514, %513 : vector<8x128xf32>
    %cst_203 = arith.constant 5.000000e-01 : f32
    %516 = vector.broadcast %cst_203 : f32 to vector<8x128xf32>
    %517 = arith.addf %515, %516 : vector<8x128xf32>
    %518 = vector.extract_strided_slice %493 {offsets = [0, 384], sizes = [8, 128], strides = [1, 1]} : vector<8x512xf32> to vector<8x128xf32>
    %519 = math.tanh %518 : vector<8x128xf32>
    %520 = arith.mulf %509, %465 : vector<8x128xf32>
    %521 = arith.mulf %501, %519 : vector<8x128xf32>
    %522 = arith.addf %520, %521 : vector<8x128xf32>
    %cst_204 = arith.constant dense<0.000000e+00> : vector<8xf32>
    %523 = vector.multi_reduction <add>, %522, %cst_204 [1] : vector<8x128xf32> to vector<8xf32>
    %524 = vector.shape_cast %523 : vector<8xf32> to vector<8x1xf32>
    %525 = arith.mulf %522, %522 : vector<8x128xf32>
    %cst_205 = arith.constant dense<0.000000e+00> : vector<8xf32>
    %526 = vector.multi_reduction <add>, %525, %cst_205 [1] : vector<8x128xf32> to vector<8xf32>
    %527 = vector.shape_cast %526 : vector<8xf32> to vector<8x1xf32>
    %cst_206 = arith.constant 7.812500e-03 : f32
    %528 = vector.broadcast %cst_206 : f32 to vector<8x1xf32>
    %529 = arith.mulf %524, %528 : vector<8x1xf32>
    %cst_207 = arith.constant 7.812500e-03 : f32
    %530 = vector.broadcast %cst_207 : f32 to vector<8x1xf32>
    %531 = arith.mulf %527, %530 : vector<8x1xf32>
    %532 = arith.mulf %529, %529 : vector<8x1xf32>
    %533 = arith.subf %531, %532 : vector<8x1xf32>
    %cst_208 = arith.constant 0.000000e+00 : f32
    %534 = vector.broadcast %cst_208 : f32 to vector<8x1xf32>
    %535 = arith.maximumf %533, %534 : vector<8x1xf32>
    %536 = vector.broadcast %529 : vector<8x1xf32> to vector<8x128xf32>
    %537 = arith.subf %522, %536 : vector<8x128xf32>
    %cst_209 = arith.constant 9.99999974E-6 : f32
    %538 = vector.broadcast %cst_209 : f32 to vector<8x1xf32>
    %539 = arith.addf %535, %538 : vector<8x1xf32>
    %540 = math.rsqrt %539 : vector<8x1xf32>
    %541 = vector.broadcast %540 : vector<8x1xf32> to vector<8x128xf32>
    %542 = arith.mulf %537, %541 : vector<8x128xf32>
    %543 = arith.mulf %542, %15 : vector<8x128xf32>
    %544 = arith.addf %543, %18 : vector<8x128xf32>
    %545 = math.tanh %544 : vector<8x128xf32>
    %546 = arith.mulf %517, %545 : vector<8x128xf32>
    %c0_210 = arith.constant 0 : index
    %c0_211 = arith.constant 0 : index
    %547 = vector.load %arg14[%c0_210, %c0_211] : memref<8x128xf32, #tpu.memory_space<vmem>>, vector<8x128xf32>
    tpu.vector_store %arg14[%c0_210, %c0_211], %546 {strides = array<i32>} : memref<8x128xf32, #tpu.memory_space<vmem>>, vector<8x128xf32>,
    %c0_212 = arith.constant 0 : index
    %c0_213 = arith.constant 0 : index
    %548 = vector.load %arg15[%c0_212, %c0_213] : memref<8x128xf32, #tpu.memory_space<vmem>>, vector<8x128xf32>
    tpu.vector_store %arg15[%c0_212, %c0_213], %522 {strides = array<i32>} : memref<8x128xf32, #tpu.memory_space<vmem>>, vector<8x128xf32>,
    %549 = arith.index_cast %c5_i32 : i32 to index
    %c0_214 = arith.constant 0 : index
    %c0_215 = arith.constant 0 : index
    %550 = vector.load %arg11[%549, %c0_214, %c0_215] : memref<8x8x128xf32, #tpu.memory_space<vmem>>, vector<1x8x128xf32>
    %551 = vector.shape_cast %550 : vector<1x8x128xf32> to vector<8x128xf32>
    %552 = vector.shape_cast %546 : vector<8x128xf32> to vector<1x8x128xf32>
    tpu.vector_store %arg11[%549, %c0_214, %c0_215], %552 {strides = array<i32>} : memref<8x8x128xf32, #tpu.memory_space<vmem>>, vector<1x8x128xf32>,
    %c6_i32 = arith.constant 6 : i32
    %c0_216 = arith.constant 0 : index
    %c0_217 = arith.constant 0 : index
    %553 = vector.load %arg14[%c0_216, %c0_217] : memref<8x128xf32, #tpu.memory_space<vmem>>, vector<8x128xf32>
    %c0_218 = arith.constant 0 : index
    %c0_219 = arith.constant 0 : index
    %554 = vector.load %arg15[%c0_218, %c0_219] : memref<8x128xf32, #tpu.memory_space<vmem>>, vector<8x128xf32>
    %cst_220 = arith.constant dense<0.000000e+00> : vector<8x512xf32>
    %555 = tpu.matmul %553, %3, %cst_220 {dimension_numbers = #tpu.dot_dimension_numbers<[1], [0], [0], [1], [0, 0, 1, 1], [], []>} : vector<8x128xf32>, vector<128x512xf32>, vector<8x512xf32> -> vector<8x512xf32>
    %556 = arith.addf %555, %6 : vector<8x512xf32>
    %557 = arith.index_cast %c6_i32 : i32 to index
    %c0_221 = arith.constant 0 : index
    %c0_222 = arith.constant 0 : index
    %558 = vector.load %arg2[%557, %c0_221, %c0_222] : memref<8x8x512xf32, #tpu.memory_space<vmem>>, vector<1x8x512xf32>
    %559 = vector.shape_cast %558 : vector<1x8x512xf32> to vector<8x512xf32>
    %cst_223 = arith.constant dense<0.000000e+00> : vector<8xf32>
    %560 = vector.multi_reduction <add>, %556, %cst_223 [1] : vector<8x512xf32> to vector<8xf32>
    %561 = vector.shape_cast %560 : vector<8xf32> to vector<8x1xf32>
    %562 = arith.mulf %556, %556 : vector<8x512xf32>
    %cst_224 = arith.constant dense<0.000000e+00> : vector<8xf32>
    %563 = vector.multi_reduction <add>, %562, %cst_224 [1] : vector<8x512xf32> to vector<8xf32>
    %564 = vector.shape_cast %563 : vector<8xf32> to vector<8x1xf32>
    %cst_225 = arith.constant 0.001953125 : f32
    %565 = vector.broadcast %cst_225 : f32 to vector<8x1xf32>
    %566 = arith.mulf %561, %565 : vector<8x1xf32>
    %cst_226 = arith.constant 0.001953125 : f32
    %567 = vector.broadcast %cst_226 : f32 to vector<8x1xf32>
    %568 = arith.mulf %564, %567 : vector<8x1xf32>
    %569 = arith.mulf %566, %566 : vector<8x1xf32>
    %570 = arith.subf %568, %569 : vector<8x1xf32>
    %cst_227 = arith.constant 0.000000e+00 : f32
    %571 = vector.broadcast %cst_227 : f32 to vector<8x1xf32>
    %572 = arith.maximumf %570, %571 : vector<8x1xf32>
    %573 = vector.broadcast %566 : vector<8x1xf32> to vector<8x512xf32>
    %574 = arith.subf %556, %573 : vector<8x512xf32>
    %cst_228 = arith.constant 9.99999974E-6 : f32
    %575 = vector.broadcast %cst_228 : f32 to vector<8x1xf32>
    %576 = arith.addf %572, %575 : vector<8x1xf32>
    %577 = math.rsqrt %576 : vector<8x1xf32>
    %578 = vector.broadcast %577 : vector<8x1xf32> to vector<8x512xf32>
    %579 = arith.mulf %574, %578 : vector<8x512xf32>
    %580 = arith.mulf %579, %9 : vector<8x512xf32>
    %581 = arith.addf %580, %12 : vector<8x512xf32>
    %582 = arith.addf %559, %581 : vector<8x512xf32>
    %583 = vector.extract_strided_slice %582 {offsets = [0, 0], sizes = [8, 128], strides = [1, 1]} : vector<8x512xf32> to vector<8x128xf32>
    %cst_229 = arith.constant 5.000000e-01 : f32
    %584 = vector.broadcast %cst_229 : f32 to vector<8x128xf32>
    %585 = arith.mulf %584, %583 : vector<8x128xf32>
    %586 = math.tanh %585 : vector<8x128xf32>
    %cst_230 = arith.constant 5.000000e-01 : f32
    %587 = vector.broadcast %cst_230 : f32 to vector<8x128xf32>
    %588 = arith.mulf %587, %586 : vector<8x128xf32>
    %cst_231 = arith.constant 5.000000e-01 : f32
    %589 = vector.broadcast %cst_231 : f32 to vector<8x128xf32>
    %590 = arith.addf %588, %589 : vector<8x128xf32>
    %591 = vector.extract_strided_slice %582 {offsets = [0, 128], sizes = [8, 128], strides = [1, 1]} : vector<8x512xf32> to vector<8x128xf32>
    %cst_232 = arith.constant 5.000000e-01 : f32
    %592 = vector.broadcast %cst_232 : f32 to vector<8x128xf32>
    %593 = arith.mulf %592, %591 : vector<8x128xf32>
    %594 = math.tanh %593 : vector<8x128xf32>
    %cst_233 = arith.constant 5.000000e-01 : f32
    %595 = vector.broadcast %cst_233 : f32 to vector<8x128xf32>
    %596 = arith.mulf %595, %594 : vector<8x128xf32>
    %cst_234 = arith.constant 5.000000e-01 : f32
    %597 = vector.broadcast %cst_234 : f32 to vector<8x128xf32>
    %598 = arith.addf %596, %597 : vector<8x128xf32>
    %599 = vector.extract_strided_slice %582 {offsets = [0, 256], sizes = [8, 128], strides = [1, 1]} : vector<8x512xf32> to vector<8x128xf32>
    %cst_235 = arith.constant 5.000000e-01 : f32
    %600 = vector.broadcast %cst_235 : f32 to vector<8x128xf32>
    %601 = arith.mulf %600, %599 : vector<8x128xf32>
    %602 = math.tanh %601 : vector<8x128xf32>
    %cst_236 = arith.constant 5.000000e-01 : f32
    %603 = vector.broadcast %cst_236 : f32 to vector<8x128xf32>
    %604 = arith.mulf %603, %602 : vector<8x128xf32>
    %cst_237 = arith.constant 5.000000e-01 : f32
    %605 = vector.broadcast %cst_237 : f32 to vector<8x128xf32>
    %606 = arith.addf %604, %605 : vector<8x128xf32>
    %607 = vector.extract_strided_slice %582 {offsets = [0, 384], sizes = [8, 128], strides = [1, 1]} : vector<8x512xf32> to vector<8x128xf32>
    %608 = math.tanh %607 : vector<8x128xf32>
    %609 = arith.mulf %598, %554 : vector<8x128xf32>
    %610 = arith.mulf %590, %608 : vector<8x128xf32>
    %611 = arith.addf %609, %610 : vector<8x128xf32>
    %cst_238 = arith.constant dense<0.000000e+00> : vector<8xf32>
    %612 = vector.multi_reduction <add>, %611, %cst_238 [1] : vector<8x128xf32> to vector<8xf32>
    %613 = vector.shape_cast %612 : vector<8xf32> to vector<8x1xf32>
    %614 = arith.mulf %611, %611 : vector<8x128xf32>
    %cst_239 = arith.constant dense<0.000000e+00> : vector<8xf32>
    %615 = vector.multi_reduction <add>, %614, %cst_239 [1] : vector<8x128xf32> to vector<8xf32>
    %616 = vector.shape_cast %615 : vector<8xf32> to vector<8x1xf32>
    %cst_240 = arith.constant 7.812500e-03 : f32
    %617 = vector.broadcast %cst_240 : f32 to vector<8x1xf32>
    %618 = arith.mulf %613, %617 : vector<8x1xf32>
    %cst_241 = arith.constant 7.812500e-03 : f32
    %619 = vector.broadcast %cst_241 : f32 to vector<8x1xf32>
    %620 = arith.mulf %616, %619 : vector<8x1xf32>
    %621 = arith.mulf %618, %618 : vector<8x1xf32>
    %622 = arith.subf %620, %621 : vector<8x1xf32>
    %cst_242 = arith.constant 0.000000e+00 : f32
    %623 = vector.broadcast %cst_242 : f32 to vector<8x1xf32>
    %624 = arith.maximumf %622, %623 : vector<8x1xf32>
    %625 = vector.broadcast %618 : vector<8x1xf32> to vector<8x128xf32>
    %626 = arith.subf %611, %625 : vector<8x128xf32>
    %cst_243 = arith.constant 9.99999974E-6 : f32
    %627 = vector.broadcast %cst_243 : f32 to vector<8x1xf32>
    %628 = arith.addf %624, %627 : vector<8x1xf32>
    %629 = math.rsqrt %628 : vector<8x1xf32>
    %630 = vector.broadcast %629 : vector<8x1xf32> to vector<8x128xf32>
    %631 = arith.mulf %626, %630 : vector<8x128xf32>
    %632 = arith.mulf %631, %15 : vector<8x128xf32>
    %633 = arith.addf %632, %18 : vector<8x128xf32>
    %634 = math.tanh %633 : vector<8x128xf32>
    %635 = arith.mulf %606, %634 : vector<8x128xf32>
    %c0_244 = arith.constant 0 : index
    %c0_245 = arith.constant 0 : index
    %636 = vector.load %arg14[%c0_244, %c0_245] : memref<8x128xf32, #tpu.memory_space<vmem>>, vector<8x128xf32>
    tpu.vector_store %arg14[%c0_244, %c0_245], %635 {strides = array<i32>} : memref<8x128xf32, #tpu.memory_space<vmem>>, vector<8x128xf32>,
    %c0_246 = arith.constant 0 : index
    %c0_247 = arith.constant 0 : index
    %637 = vector.load %arg15[%c0_246, %c0_247] : memref<8x128xf32, #tpu.memory_space<vmem>>, vector<8x128xf32>
    tpu.vector_store %arg15[%c0_246, %c0_247], %611 {strides = array<i32>} : memref<8x128xf32, #tpu.memory_space<vmem>>, vector<8x128xf32>,
    %638 = arith.index_cast %c6_i32 : i32 to index
    %c0_248 = arith.constant 0 : index
    %c0_249 = arith.constant 0 : index
    %639 = vector.load %arg11[%638, %c0_248, %c0_249] : memref<8x8x128xf32, #tpu.memory_space<vmem>>, vector<1x8x128xf32>
    %640 = vector.shape_cast %639 : vector<1x8x128xf32> to vector<8x128xf32>
    %641 = vector.shape_cast %635 : vector<8x128xf32> to vector<1x8x128xf32>
    tpu.vector_store %arg11[%638, %c0_248, %c0_249], %641 {strides = array<i32>} : memref<8x8x128xf32, #tpu.memory_space<vmem>>, vector<1x8x128xf32>,
    %c7_i32 = arith.constant 7 : i32
    %c0_250 = arith.constant 0 : index
    %c0_251 = arith.constant 0 : index
    %642 = vector.load %arg14[%c0_250, %c0_251] : memref<8x128xf32, #tpu.memory_space<vmem>>, vector<8x128xf32>
    %c0_252 = arith.constant 0 : index
    %c0_253 = arith.constant 0 : index
    %643 = vector.load %arg15[%c0_252, %c0_253] : memref<8x128xf32, #tpu.memory_space<vmem>>, vector<8x128xf32>
    %cst_254 = arith.constant dense<0.000000e+00> : vector<8x512xf32>
    %644 = tpu.matmul %642, %3, %cst_254 {dimension_numbers = #tpu.dot_dimension_numbers<[1], [0], [0], [1], [0, 0, 1, 1], [], []>} : vector<8x128xf32>, vector<128x512xf32>, vector<8x512xf32> -> vector<8x512xf32>
    %645 = arith.addf %644, %6 : vector<8x512xf32>
    %646 = arith.index_cast %c7_i32 : i32 to index
    %c0_255 = arith.constant 0 : index
    %c0_256 = arith.constant 0 : index
    %647 = vector.load %arg2[%646, %c0_255, %c0_256] : memref<8x8x512xf32, #tpu.memory_space<vmem>>, vector<1x8x512xf32>
    %648 = vector.shape_cast %647 : vector<1x8x512xf32> to vector<8x512xf32>
    %cst_257 = arith.constant dense<0.000000e+00> : vector<8xf32>
    %649 = vector.multi_reduction <add>, %645, %cst_257 [1] : vector<8x512xf32> to vector<8xf32>
    %650 = vector.shape_cast %649 : vector<8xf32> to vector<8x1xf32>
    %651 = arith.mulf %645, %645 : vector<8x512xf32>
    %cst_258 = arith.constant dense<0.000000e+00> : vector<8xf32>
    %652 = vector.multi_reduction <add>, %651, %cst_258 [1] : vector<8x512xf32> to vector<8xf32>
    %653 = vector.shape_cast %652 : vector<8xf32> to vector<8x1xf32>
    %cst_259 = arith.constant 0.001953125 : f32
    %654 = vector.broadcast %cst_259 : f32 to vector<8x1xf32>
    %655 = arith.mulf %650, %654 : vector<8x1xf32>
    %cst_260 = arith.constant 0.001953125 : f32
    %656 = vector.broadcast %cst_260 : f32 to vector<8x1xf32>
    %657 = arith.mulf %653, %656 : vector<8x1xf32>
    %658 = arith.mulf %655, %655 : vector<8x1xf32>
    %659 = arith.subf %657, %658 : vector<8x1xf32>
    %cst_261 = arith.constant 0.000000e+00 : f32
    %660 = vector.broadcast %cst_261 : f32 to vector<8x1xf32>
    %661 = arith.maximumf %659, %660 : vector<8x1xf32>
    %662 = vector.broadcast %655 : vector<8x1xf32> to vector<8x512xf32>
    %663 = arith.subf %645, %662 : vector<8x512xf32>
    %cst_262 = arith.constant 9.99999974E-6 : f32
    %664 = vector.broadcast %cst_262 : f32 to vector<8x1xf32>
    %665 = arith.addf %661, %664 : vector<8x1xf32>
    %666 = math.rsqrt %665 : vector<8x1xf32>
    %667 = vector.broadcast %666 : vector<8x1xf32> to vector<8x512xf32>
    %668 = arith.mulf %663, %667 : vector<8x512xf32>
    %669 = arith.mulf %668, %9 : vector<8x512xf32>
    %670 = arith.addf %669, %12 : vector<8x512xf32>
    %671 = arith.addf %648, %670 : vector<8x512xf32>
    %672 = vector.extract_strided_slice %671 {offsets = [0, 0], sizes = [8, 128], strides = [1, 1]} : vector<8x512xf32> to vector<8x128xf32>
    %cst_263 = arith.constant 5.000000e-01 : f32
    %673 = vector.broadcast %cst_263 : f32 to vector<8x128xf32>
    %674 = arith.mulf %673, %672 : vector<8x128xf32>
    %675 = math.tanh %674 : vector<8x128xf32>
    %cst_264 = arith.constant 5.000000e-01 : f32
    %676 = vector.broadcast %cst_264 : f32 to vector<8x128xf32>
    %677 = arith.mulf %676, %675 : vector<8x128xf32>
    %cst_265 = arith.constant 5.000000e-01 : f32
    %678 = vector.broadcast %cst_265 : f32 to vector<8x128xf32>
    %679 = arith.addf %677, %678 : vector<8x128xf32>
    %680 = vector.extract_strided_slice %671 {offsets = [0, 128], sizes = [8, 128], strides = [1, 1]} : vector<8x512xf32> to vector<8x128xf32>
    %cst_266 = arith.constant 5.000000e-01 : f32
    %681 = vector.broadcast %cst_266 : f32 to vector<8x128xf32>
    %682 = arith.mulf %681, %680 : vector<8x128xf32>
    %683 = math.tanh %682 : vector<8x128xf32>
    %cst_267 = arith.constant 5.000000e-01 : f32
    %684 = vector.broadcast %cst_267 : f32 to vector<8x128xf32>
    %685 = arith.mulf %684, %683 : vector<8x128xf32>
    %cst_268 = arith.constant 5.000000e-01 : f32
    %686 = vector.broadcast %cst_268 : f32 to vector<8x128xf32>
    %687 = arith.addf %685, %686 : vector<8x128xf32>
    %688 = vector.extract_strided_slice %671 {offsets = [0, 256], sizes = [8, 128], strides = [1, 1]} : vector<8x512xf32> to vector<8x128xf32>
    %cst_269 = arith.constant 5.000000e-01 : f32
    %689 = vector.broadcast %cst_269 : f32 to vector<8x128xf32>
    %690 = arith.mulf %689, %688 : vector<8x128xf32>
    %691 = math.tanh %690 : vector<8x128xf32>
    %cst_270 = arith.constant 5.000000e-01 : f32
    %692 = vector.broadcast %cst_270 : f32 to vector<8x128xf32>
    %693 = arith.mulf %692, %691 : vector<8x128xf32>
    %cst_271 = arith.constant 5.000000e-01 : f32
    %694 = vector.broadcast %cst_271 : f32 to vector<8x128xf32>
    %695 = arith.addf %693, %694 : vector<8x128xf32>
    %696 = vector.extract_strided_slice %671 {offsets = [0, 384], sizes = [8, 128], strides = [1, 1]} : vector<8x512xf32> to vector<8x128xf32>
    %697 = math.tanh %696 : vector<8x128xf32>
    %698 = arith.mulf %687, %643 : vector<8x128xf32>
    %699 = arith.mulf %679, %697 : vector<8x128xf32>
    %700 = arith.addf %698, %699 : vector<8x128xf32>
    %cst_272 = arith.constant dense<0.000000e+00> : vector<8xf32>
    %701 = vector.multi_reduction <add>, %700, %cst_272 [1] : vector<8x128xf32> to vector<8xf32>
    %702 = vector.shape_cast %701 : vector<8xf32> to vector<8x1xf32>
    %703 = arith.mulf %700, %700 : vector<8x128xf32>
    %cst_273 = arith.constant dense<0.000000e+00> : vector<8xf32>
    %704 = vector.multi_reduction <add>, %703, %cst_273 [1] : vector<8x128xf32> to vector<8xf32>
    %705 = vector.shape_cast %704 : vector<8xf32> to vector<8x1xf32>
    %cst_274 = arith.constant 7.812500e-03 : f32
    %706 = vector.broadcast %cst_274 : f32 to vector<8x1xf32>
    %707 = arith.mulf %702, %706 : vector<8x1xf32>
    %cst_275 = arith.constant 7.812500e-03 : f32
    %708 = vector.broadcast %cst_275 : f32 to vector<8x1xf32>
    %709 = arith.mulf %705, %708 : vector<8x1xf32>
    %710 = arith.mulf %707, %707 : vector<8x1xf32>
    %711 = arith.subf %709, %710 : vector<8x1xf32>
    %cst_276 = arith.constant 0.000000e+00 : f32
    %712 = vector.broadcast %cst_276 : f32 to vector<8x1xf32>
    %713 = arith.maximumf %711, %712 : vector<8x1xf32>
    %714 = vector.broadcast %707 : vector<8x1xf32> to vector<8x128xf32>
    %715 = arith.subf %700, %714 : vector<8x128xf32>
    %cst_277 = arith.constant 9.99999974E-6 : f32
    %716 = vector.broadcast %cst_277 : f32 to vector<8x1xf32>
    %717 = arith.addf %713, %716 : vector<8x1xf32>
    %718 = math.rsqrt %717 : vector<8x1xf32>
    %719 = vector.broadcast %718 : vector<8x1xf32> to vector<8x128xf32>
    %720 = arith.mulf %715, %719 : vector<8x128xf32>
    %721 = arith.mulf %720, %15 : vector<8x128xf32>
    %722 = arith.addf %721, %18 : vector<8x128xf32>
    %723 = math.tanh %722 : vector<8x128xf32>
    %724 = arith.mulf %695, %723 : vector<8x128xf32>
    %c0_278 = arith.constant 0 : index
    %c0_279 = arith.constant 0 : index
    %725 = vector.load %arg14[%c0_278, %c0_279] : memref<8x128xf32, #tpu.memory_space<vmem>>, vector<8x128xf32>
    tpu.vector_store %arg14[%c0_278, %c0_279], %724 {strides = array<i32>} : memref<8x128xf32, #tpu.memory_space<vmem>>, vector<8x128xf32>,
    %c0_280 = arith.constant 0 : index
    %c0_281 = arith.constant 0 : index
    %726 = vector.load %arg15[%c0_280, %c0_281] : memref<8x128xf32, #tpu.memory_space<vmem>>, vector<8x128xf32>
    tpu.vector_store %arg15[%c0_280, %c0_281], %700 {strides = array<i32>} : memref<8x128xf32, #tpu.memory_space<vmem>>, vector<8x128xf32>,
    %727 = arith.index_cast %c7_i32 : i32 to index
    %c0_282 = arith.constant 0 : index
    %c0_283 = arith.constant 0 : index
    %728 = vector.load %arg11[%727, %c0_282, %c0_283] : memref<8x8x128xf32, #tpu.memory_space<vmem>>, vector<1x8x128xf32>
    %729 = vector.shape_cast %728 : vector<1x8x128xf32> to vector<8x128xf32>
    %730 = vector.shape_cast %724 : vector<8x128xf32> to vector<1x8x128xf32>
    tpu.vector_store %arg11[%727, %c0_282, %c0_283], %730 {strides = array<i32>} : memref<8x8x128xf32, #tpu.memory_space<vmem>>, vector<1x8x128xf32>,
    %c8_i32 = arith.constant 8 : i32
    %c0_284 = arith.constant 0 : index
    %c0_285 = arith.constant 0 : index
    %731 = vector.load %arg14[%c0_284, %c0_285] : memref<8x128xf32, #tpu.memory_space<vmem>>, vector<8x128xf32>
    %c0_286 = arith.constant 0 : index
    %c0_287 = arith.constant 0 : index
    %732 = vector.load %arg12[%c0_286, %c0_287] : memref<8x128xf32, #tpu.memory_space<vmem>>, vector<8x128xf32>
    tpu.vector_store %arg12[%c0_286, %c0_287], %731 {strides = array<i32>} : memref<8x128xf32, #tpu.memory_space<vmem>>, vector<8x128xf32>,
    %c0_288 = arith.constant 0 : index
    %c0_289 = arith.constant 0 : index
    %733 = vector.load %arg15[%c0_288, %c0_289] : memref<8x128xf32, #tpu.memory_space<vmem>>, vector<8x128xf32>
    %c0_290 = arith.constant 0 : index
    %c0_291 = arith.constant 0 : index
    %734 = vector.load %arg13[%c0_290, %c0_291] : memref<8x128xf32, #tpu.memory_space<vmem>>, vector<8x128xf32>
    tpu.vector_store %arg13[%c0_290, %c0_291], %733 {strides = array<i32>} : memref<8x128xf32, #tpu.memory_space<vmem>>, vector<8x128xf32>,
    return
  }
  func.func @transform_0(%arg0: i32, %arg1: i32) -> (i32, i32, i32) {
    %c0_i32 = arith.constant 0 : i32
    %c0_i32_0 = arith.constant 0 : i32
    return %arg1, %arg0, %c0_i32 : i32, i32, i32
  }
  func.func @transform_1(%arg0: i32, %arg1: i32) -> (i32, i32) {
    %c0_i32 = arith.constant 0 : i32
    %c0_i32_0 = arith.constant 0 : i32
    return %arg0, %c0_i32 : i32, i32
  }
  func.func @transform_2(%arg0: i32, %arg1: i32) -> (i32, i32) {
    %c0_i32 = arith.constant 0 : i32
    %c0_i32_0 = arith.constant 0 : i32
    return %arg0, %c0_i32 : i32, i32
  }
  func.func @transform_3(%arg0: i32, %arg1: i32) -> (i32, i32) {
    %c0_i32 = arith.constant 0 : i32
    %c0_i32_0 = arith.constant 0 : i32
    %c0_i32_1 = arith.constant 0 : i32
    return %c0_i32, %c0_i32_0 : i32, i32
  }
  func.func @transform_4(%arg0: i32, %arg1: i32) -> (i32, i32) {
    %c0_i32 = arith.constant 0 : i32
    %c0_i32_0 = arith.constant 0 : i32
    %c0_i32_1 = arith.constant 0 : i32
    return %c0_i32, %c0_i32_0 : i32, i32
  }
  func.func @transform_5(%arg0: i32, %arg1: i32) -> (i32, i32) {
    %c0_i32 = arith.constant 0 : i32
    %c0_i32_0 = arith.constant 0 : i32
    %c0_i32_1 = arith.constant 0 : i32
    return %c0_i32, %c0_i32_0 : i32, i32
  }
  func.func @transform_6(%arg0: i32, %arg1: i32) -> (i32, i32) {
    %c0_i32 = arith.constant 0 : i32
    %c0_i32_0 = arith.constant 0 : i32
    %c0_i32_1 = arith.constant 0 : i32
    return %c0_i32, %c0_i32_0 : i32, i32
  }
  func.func @transform_7(%arg0: i32, %arg1: i32) -> (i32, i32) {
    %c0_i32 = arith.constant 0 : i32
    %c0_i32_0 = arith.constant 0 : i32
    %c0_i32_1 = arith.constant 0 : i32
    return %c0_i32, %c0_i32_0 : i32, i32
  }
  func.func @transform_8(%arg0: i32, %arg1: i32) -> (i32, i32) {
    %c0_i32 = arith.constant 0 : i32
    %c0_i32_0 = arith.constant 0 : i32
    %c0_i32_1 = arith.constant 0 : i32
    return %c0_i32, %c0_i32_0 : i32, i32
  }
  func.func @transform_9(%arg0: i32, %arg1: i32) -> (i32, i32, i32) {
    %c0_i32 = arith.constant 0 : i32
    %c0_i32_0 = arith.constant 0 : i32
    return %arg1, %arg0, %c0_i32 : i32, i32, i32
  }
  func.func @transform_10(%arg0: i32, %arg1: i32) -> (i32, i32) {
    %c0_i32 = arith.constant 0 : i32
    %c0_i32_0 = arith.constant 0 : i32
    return %arg0, %c0_i32 : i32, i32
  }
  func.func @transform_11(%arg0: i32, %arg1: i32) -> (i32, i32) {
    %c0_i32 = arith.constant 0 : i32
    %c0_i32_0 = arith.constant 0 : i32
    return %arg0, %c0_i32 : i32, i32
  }
}

</mosaic_0001>

<bundles_post_ra>
// kernel: layernorm_lstm_forward.4
= control target key start
LH: loop header
LB: loop body
LE: loop exit
PB: predicated region body
PF: predicated region fallthrough
CT: control target
= control target key end

     0   :  { %vm94_vm0 = vcmask 523264   ;;  %s4998_s1 = inlined_call_operand.vmem [shape: f32[64,512], index: 1, kind: input, shape index: {}]   ;;  %s4999_s0 = inlined_call_operand.vmem [shape: f32[256,64], index: 0, kind: input, shape index: {}]   ;;  %s5000_s2 = inlined_call_operand.vmem [shape: f32[1,512], index: 2, kind: input, shape index: {}]   ;;  %s5001_s3 = inlined_call_operand.vmem [shape: f32[1,512], index: 3, kind: input, shape index: {}]   ;;  %s5002_s4 = inlined_call_operand.vmem [shape: f32[1,512], index: 4, kind: input, shape index: {}]   ;;  %s5003_s5 = inlined_call_operand.vmem [shape: f32[256,512], index: 5, kind: output, shape index: {}]  }
   0x1   :  { %v82_v0 = vld [vmem:[%s4998_s1 + $0xf0] sm:$0xff]  ;;  %v83_v2 = vld [vmem:[%s4998_s1 + $0xf8] sm:$0xff]  ;;  %v80_v3 = vld [vmem:[%s4998_s1 + $0xe0] sm:$0xff] }
   0x2   :  { %v78_v1 = vld [vmem:[%s4998_s1 + $0xd0] sm:$0xff]  ;;  %425 = vmatpush.msra.mxu2 %v82_v0  ;;  %538 = vmatpush.msra.mxu3 %v83_v2  ;;  %v81_v4 = vld [vmem:[%s4998_s1 + $0xe8] sm:$0xff]  ;;  %v79_v6 = vld [vmem:[%s4998_s1 + $0xd8] sm:$0xff] }
   0x3   :  { %v74_v5 = vld [vmem:[%s4998_s1 + $0xb0] sm:$0xff]  ;;  %199 = vmatpush.msra.mxu0 %v80_v3  ;;  %312 = vmatpush.msra.mxu1 %v81_v4  ;;  %v76_v7 = vld [vmem:[%s4998_s1 + $0xc0] sm:$0xff]  ;;  %v77_v8 = vld [vmem:[%s4998_s1 + $0xc8] sm:$0xff] }
   0x4   :  { %426 = vmatpush.msra.mxu2 %v78_v1  ;;  %539 = vmatpush.msra.mxu3 %v79_v6  ;;  %v75_v9 = vld [vmem:[%s4998_s1 + $0xb8] sm:$0xff]  ;;  %v72_v10 = vld [vmem:[%s4998_s1 + $0xa0] sm:$0xff]  ;;  %v70_v11 = vld [vmem:[%s4998_s1 + $0x90] sm:$0xff] }
   0x5   :  { %200 = vmatpush.msra.mxu0 %v76_v7  ;;  %313 = vmatpush.msra.mxu1 %v77_v8  ;;  %v73_v12 = vld [vmem:[%s4998_s1 + $0xa8] sm:$0xff]  ;;  %v71_v13 = vld [vmem:[%s4998_s1 + $0x98] sm:$0xff]  ;;  %v68_v14 = vld [vmem:[%s4998_s1 + $0x80] sm:$0xff] }
   0x6   :  { %427 = vmatpush.msra.mxu2 %v74_v5  ;;  %540 = vmatpush.msra.mxu3 %v75_v9  ;;  %v69_v15 = vld [vmem:[%s4998_s1 + $0x88] sm:$0xff]  ;;  %v66_v16 = vld [vmem:[%s4998_s1 + $0x70] sm:$0xff]  ;;  %v67_v17 = vld [vmem:[%s4998_s1 + $0x78] sm:$0xff] }
   0x7   :  { %201 = vmatpush.msra.mxu0 %v72_v10  ;;  %314 = vmatpush.msra.mxu1 %v73_v12  ;;  %v64_v18 = vld [vmem:[%s4998_s1 + $0x60] sm:$0xff]  ;;  %v65_v19 = vld [vmem:[%s4998_s1 + $0x68] sm:$0xff]  ;;  %v62_v20 = vld [vmem:[%s4998_s1 + $0x50] sm:$0xff] }
   0x8   :  { %428 = vmatpush.msra.mxu2 %v70_v11  ;;  %541 = vmatpush.msra.mxu3 %v71_v13  ;;  %v63_v21 = vld [vmem:[%s4998_s1 + $0x58] sm:$0xff]  ;;  %v60_v22 = vld [vmem:[%s4998_s1 + $0x40] sm:$0xff]  ;;  %v61_v23 = vld [vmem:[%s4998_s1 + $0x48] sm:$0xff] }
   0x9   :  { %202 = vmatpush.msra.mxu0 %v68_v14  ;;  %315 = vmatpush.msra.mxu1 %v69_v15  ;;  %v58_v24 = vld [vmem:[%s4998_s1 + $0x30] sm:$0xff]  ;;  %v59_v25 = vld [vmem:[%s4998_s1 + $0x38] sm:$0xff]  ;;  %v56_v26 = vld [vmem:[%s4998_s1 + $0x20] sm:$0xff] }
   0xa   :  { %429 = vmatpush.msra.mxu2 %v66_v16  ;;  %542 = vmatpush.msra.mxu3 %v67_v17  ;;  %v57_v27 = vld [vmem:[%s4998_s1 + $0x28] sm:$0xff]  ;;  %v54_v28 = vld [vmem:[%s4998_s1 + $0x10] sm:$0xff]  ;;  %v55_v29 = vld [vmem:[%s4998_s1 + $0x18] sm:$0xff] }
   0xb   :  { %203 = vmatpush.msra.mxu0 %v64_v18  ;;  %316 = vmatpush.msra.mxu1 %v65_v19  ;;  %v20_v30 = vld [vmem:[%s4999_s0] sm:$0xff]  ;;  %v53_v32 = vld [vmem:[%s4998_s1 + $0x8] sm:$0xff]  ;;  %v22_v34 = vld [vmem:[%s4999_s0 + $0x10] sm:$0xff] }
   0xc   :  { %430 = vmatpush.msra.mxu2 %v62_v20  ;;  %543 = vmatpush.msra.mxu3 %v63_v21  ;;  %v52_v31 = vld [vmem:[%s4998_s1] sm:$0xff]  ;;  %v21_v33 = vld [vmem:[%s4999_s0 + $0x8] sm:$0xff]  ;;  %v23_v35 = vld [vmem:[%s4999_s0 + $0x18] sm:$0xff] }
   0xd   :  { %204 = vmatpush.msra.mxu0 %v60_v22  ;;  %317 = vmatpush.msra.mxu1 %v61_v23  ;;  %v24_v36 = vld [vmem:[%s4999_s0 + $0x20] sm:$0xff]  ;;  %v25_v37 = vld [vmem:[%s4999_s0 + $0x28] sm:$0xff]  ;;  %v26_v38 = vld [vmem:[%s4999_s0 + $0x30] sm:$0xff] }
   0xe   :  { %431 = vmatpush.msra.mxu2 %v58_v24  ;;  %544 = vmatpush.msra.mxu3 %v59_v25  ;;  %v27_v39 = vld [vmem:[%s4999_s0 + $0x38] sm:$0xff]  ;;  %v28_v40 = vld [vmem:[%s4999_s0 + $0x40] sm:$0xff]  ;;  %v29_v41 = vld [vmem:[%s4999_s0 + $0x48] sm:$0xff] }
   0xf   :  { %205 = vmatpush.msra.mxu0 %v56_v26  ;;  %318 = vmatpush.msra.mxu1 %v57_v27  ;;  %v30_v42 = vld [vmem:[%s4999_s0 + $0x50] sm:$0xff]  ;;  %v31_v43 = vld [vmem:[%s4999_s0 + $0x58] sm:$0xff]  ;;  %v32_v44 = vld [vmem:[%s4999_s0 + $0x60] sm:$0xff] }
  0x10   :  { %432 = vmatpush.msra.mxu2 %v54_v28  ;;  %545 = vmatpush.msra.mxu3 %v55_v29  ;;  %v33_v45 = vld [vmem:[%s4999_s0 + $0x68] sm:$0xff]  ;;  %v34_v46 = vld [vmem:[%s4999_s0 + $0x70] sm:$0xff]  ;;  %v35_v47 = vld [vmem:[%s4999_s0 + $0x78] sm:$0xff] }
  0x11   :  { %2331 = vmatmul.msk.f32.vlgmr.msra.gmra.mxu2 %vm94_vm0, %v20_v30  ;;  %2363 = vmatmul.msk.f32.vlgmr.msra.gmra.mxu3 %vm94_vm0, %v20_v30  ;;  %v84_v48 = vld [vmem:[%s5000_s2] sm:$0xf]  ;;  %v37_v1 = vld [vmem:[%s4999_s0 + $0x88] sm:$0xff]  ;;  %v38_v20 = vld [vmem:[%s4999_s0 + $0x90] sm:$0xff] }
  0x12   :  { %206 = vmatpush.msra.mxu0 %v52_v31  ;;  %319 = vmatpush.msra.mxu1 %v53_v32  ;;  %v2700_v49 = vperm.slane %v84_v48, 0  ;;  %v2702_v50 = vperm.slane %v84_v48, 1  ;;  %v36_v51 = vld [vmem:[%s4999_s0 + $0x80] sm:$0xff]  ;;  %v2715_v56 = vperm.slane %v84_v48, 2  ;;  %v2717_v57 = vperm.slane %v84_v48, 3 }
  0x13   :  { %2267 = vmatmul.msk.f32.vlgmr.msra.gmra.mxu0 %vm94_vm0, %v20_v30  ;;  %2299 = vmatmul.msk.f32.vlgmr.msra.gmra.mxu1 %vm94_vm0, %v20_v30 }
  0x19   :  { %2332 = vmatmul.msk.f32.gmra.mxu2 %vm94_vm0, %v21_v33  ;;  %2364 = vmatmul.msk.f32.gmra.mxu3 %vm94_vm0, %v21_v33 }
  0x1b   :  { %2268 = vmatmul.msk.f32.gmra.mxu0 %vm94_vm0, %v21_v33  ;;  %2300 = vmatmul.msk.f32.gmra.mxu1 %vm94_vm0, %v21_v33 }
  0x21   :  { %2333 = vmatmul.msk.f32.gmra.mxu2 %vm94_vm0, %v22_v34  ;;  %2365 = vmatmul.msk.f32.gmra.mxu3 %vm94_vm0, %v22_v34 }
  0x23   :  { %2269 = vmatmul.msk.f32.gmra.mxu0 %vm94_vm0, %v22_v34  ;;  %2301 = vmatmul.msk.f32.gmra.mxu1 %vm94_vm0, %v22_v34 }
  0x29   :  { %2334 = vmatmul.msk.f32.gmra.mxu2 %vm94_vm0, %v23_v35  ;;  %2366 = vmatmul.msk.f32.gmra.mxu3 %vm94_vm0, %v23_v35 }
  0x2b   :  { %2270 = vmatmul.msk.f32.gmra.mxu0 %vm94_vm0, %v23_v35  ;;  %2302 = vmatmul.msk.f32.gmra.mxu1 %vm94_vm0, %v23_v35 }
  0x31   :  { %2335 = vmatmul.msk.f32.gmra.mxu2 %vm94_vm0, %v24_v36  ;;  %2367 = vmatmul.msk.f32.gmra.mxu3 %vm94_vm0, %v24_v36 }
  0x33   :  { %2271 = vmatmul.msk.f32.gmra.mxu0 %vm94_vm0, %v24_v36  ;;  %2303 = vmatmul.msk.f32.gmra.mxu1 %vm94_vm0, %v24_v36 }
  0x39   :  { %2336 = vmatmul.msk.f32.gmra.mxu2 %vm94_vm0, %v25_v37  ;;  %2368 = vmatmul.msk.f32.gmra.mxu3 %vm94_vm0, %v25_v37 }
  0x3b   :  { %2272 = vmatmul.msk.f32.gmra.mxu0 %vm94_vm0, %v25_v37  ;;  %2304 = vmatmul.msk.f32.gmra.mxu1 %vm94_vm0, %v25_v37 }
  0x41   :  { %2337 = vmatmul.msk.f32.gmra.mxu2 %vm94_vm0, %v26_v38  ;;  %2369 = vmatmul.msk.f32.gmra.mxu3 %vm94_vm0, %v26_v38 }
  0x43   :  { %2273 = vmatmul.msk.f32.gmra.mxu0 %vm94_vm0, %v26_v38  ;;  %2305 = vmatmul.msk.f32.gmra.mxu1 %vm94_vm0, %v26_v38  ;;  %v39_v38 = vld [vmem:[%s4999_s0 + $0x98] sm:$0xff] }
  0x49   :  { %2338 = vmatmul.msk.f32.gmra.mxu2 %vm94_vm0, %v27_v39  ;;  %2370 = vmatmul.msk.f32.gmra.mxu3 %vm94_vm0, %v27_v39 }
  0x4b   :  { %2274 = vmatmul.msk.f32.gmra.mxu0 %vm94_vm0, %v27_v39  ;;  %2306 = vmatmul.msk.f32.gmra.mxu1 %vm94_vm0, %v27_v39 }
  0x51   :  { %2339 = vmatmul.msk.f32.gmra.mxu2 %vm94_vm0, %v28_v40  ;;  %2371 = vmatmul.msk.f32.gmra.mxu3 %vm94_vm0, %v28_v40 }
  0x53   :  { %2275 = vmatmul.msk.f32.gmra.mxu0 %vm94_vm0, %v28_v40  ;;  %2307 = vmatmul.msk.f32.gmra.mxu1 %vm94_vm0, %v28_v40 }
  0x59   :  { %2340 = vmatmul.msk.f32.gmra.mxu2 %vm94_vm0, %v29_v41  ;;  %2372 = vmatmul.msk.f32.gmra.mxu3 %vm94_vm0, %v29_v41 }
  0x5b   :  { %2276 = vmatmul.msk.f32.gmra.mxu0 %vm94_vm0, %v29_v41  ;;  %2308 = vmatmul.msk.f32.gmra.mxu1 %vm94_vm0, %v29_v41 }
  0x61   :  { %2341 = vmatmul.msk.f32.gmra.mxu2 %vm94_vm0, %v30_v42  ;;  %2373 = vmatmul.msk.f32.gmra.mxu3 %vm94_vm0, %v30_v42 }
  0x63   :  { %2277 = vmatmul.msk.f32.gmra.mxu0 %vm94_vm0, %v30_v42  ;;  %2309 = vmatmul.msk.f32.gmra.mxu1 %vm94_vm0, %v30_v42 }
  0x69   :  { %2342 = vmatmul.msk.f32.gmra.mxu2 %vm94_vm0, %v31_v43  ;;  %2374 = vmatmul.msk.f32.gmra.mxu3 %vm94_vm0, %v31_v43 }
  0x6b   :  { %2278 = vmatmul.msk.f32.gmra.mxu0 %vm94_vm0, %v31_v43  ;;  %2310 = vmatmul.msk.f32.gmra.mxu1 %vm94_vm0, %v31_v43 }
  0x71   :  { %2343 = vmatmul.msk.f32.gmra.mxu2 %vm94_vm0, %v32_v44  ;;  %2375 = vmatmul.msk.f32.gmra.mxu3 %vm94_vm0, %v32_v44 }
  0x73   :  { %2279 = vmatmul.msk.f32.gmra.mxu0 %vm94_vm0, %v32_v44  ;;  %2311 = vmatmul.msk.f32.gmra.mxu1 %vm94_vm0, %v32_v44 }
  0x79   :  { %2344 = vmatmul.msk.f32.gmra.mxu2 %vm94_vm0, %v33_v45  ;;  %2376 = vmatmul.msk.f32.gmra.mxu3 %vm94_vm0, %v33_v45 }
  0x7b   :  { %2280 = vmatmul.msk.f32.gmra.mxu0 %vm94_vm0, %v33_v45  ;;  %2312 = vmatmul.msk.f32.gmra.mxu1 %vm94_vm0, %v33_v45 }
  0x81   :  { %2345 = vmatmul.msk.f32.gmra.mxu2 %vm94_vm0, %v34_v46  ;;  %2377 = vmatmul.msk.f32.gmra.mxu3 %vm94_vm0, %v34_v46 }
  0x83   :  { %2281 = vmatmul.msk.f32.gmra.mxu0 %vm94_vm0, %v34_v46  ;;  %2313 = vmatmul.msk.f32.gmra.mxu1 %vm94_vm0, %v34_v46 }
  0x89   :  { %2346 = vmatmul.msk.f32.gmra.mxu2 %vm94_vm0, %v35_v47  ;;  %2378 = vmatmul.msk.f32.gmra.mxu3 %vm94_vm0, %v35_v47 }
  0x8b   :  { %2282 = vmatmul.msk.f32.gmra.mxu0 %vm94_vm0, %v35_v47  ;;  %2314 = vmatmul.msk.f32.gmra.mxu1 %vm94_vm0, %v35_v47 }
  0x90   :  { %v208_v52 = vpop.f32.mrf.mxu0  ;;  %v321_v53 = vpop.f32.mrf.mxu1 }
  0x91   :  { %2347 = vmatmul.msk.f32.gmra.mxu2 %vm94_vm0, %v36_v51  ;;  %v2709_v54 = vadd.f32 %v208_v52, %v2700_v49  ;;  %v2712_v55 = vadd.f32 %v321_v53, %v2702_v50  ;;  %2379 = vmatmul.msk.f32.gmra.mxu3 %vm94_vm0, %v36_v51 }
  0x93   :  { %2283 = vmatmul.msk.f32.gmra.mxu0 %vm94_vm0, %v36_v51  ;;  %2315 = vmatmul.msk.f32.gmra.mxu1 %vm94_vm0, %v36_v51  ;;  %v645_v58 = vadd.f32 %v2712_v55, %v2709_v54  ;;  %v805_v59 = vmul.f32 %v2709_v54, %v2709_v54  ;;  %v806_v60 = vmul.f32 %v2712_v55, %v2712_v55 }
  0x94   :  { %v434_v61 = vpop.f32.mrf.mxu2  ;;  %v547_v62 = vpop.f32.mrf.mxu3 }
  0x95   :  { %v2728_v63 = vadd.f32 %v434_v61, %v2715_v56  ;;  %v2731_v0 = vadd.f32 %v547_v62, %v2717_v57  ;;  %v933_v2 = vadd.f32 %v806_v60, %v805_v59 }
  0x97   :  { %v646_v3 = vadd.f32 %v645_v58, %v2728_v63  ;;  %v807_v4 = vmul.f32 %v2728_v63, %v2728_v63  ;;  %v808_v7 = vmul.f32 %v2731_v0, %v2731_v0 }
  0x98   :  { %v211_v5 = vpop.f32.mrf.mxu0  ;;  %v324_v6 = vpop.f32.mrf.mxu1 }
  0x99   :  { %2348 = vmatmul.msk.f32.gmra.mxu2 %vm94_vm0, %v37_v1  ;;  %v2743_v8 = vadd.f32 %v211_v5, %v2700_v49  ;;  %v2746_v9 = vadd.f32 %v324_v6, %v2702_v50  ;;  %2380 = vmatmul.msk.f32.gmra.mxu3 %vm94_vm0, %v37_v1  ;;  %v647_v10 = vadd.f32 %v646_v3, %v2731_v0 }
  0x9a   :  { %v934_v11 = vadd.f32 %v933_v2, %v807_v4 }
  0x9b   :  { %648 = vadd.xlane.f32.xlu0 %v647_v10  ;;  %2284 = vmatmul.msk.f32.gmra.mxu0 %vm94_vm0, %v37_v1  ;;  %v650_v12 = vadd.f32 %v2746_v9, %v2743_v8  ;;  %v809_v13 = vmul.f32 %v2743_v8, %v2743_v8  ;;  %v810_v14 = vmul.f32 %v2746_v9, %v2746_v9 }
  0x9c   :  { %v437_v15 = vpop.f32.mrf.mxu2  ;;  %2316 = vmatmul.msk.f32.gmra.mxu1 %vm94_vm0, %v37_v1  ;;  %v935_v16 = vadd.f32 %v934_v11, %v808_v7  ;;  %v550_v17 = vpop.f32.mrf.mxu3  ;;  %v40_v1 = vld [vmem:[%s4999_s0 + $0xa0] sm:$0xff] }
  0x9d   :  { %v2759_v18 = vadd.f32 %v437_v15, %v2715_v56  ;;  %v2762_v19 = vadd.f32 %v550_v17, %v2717_v57  ;;  %v938_v25 = vadd.f32 %v810_v14, %v809_v13 }
  0x9e   :  { %936 = vadd.xlane.f32.xlu2 %v935_v16 }
  0x9f   :  { %v651_v21 = vadd.f32 %v650_v12, %v2759_v18  ;;  %v811_v24 = vmul.f32 %v2759_v18, %v2759_v18  ;;  %v812_v34 = vmul.f32 %v2762_v19, %v2762_v19 }
  0xa0   :  { %v214_v22 = vpop.f32.mrf.mxu0  ;;  %v327_v23 = vpop.f32.mrf.mxu1 }
  0xa1   :  { %2349 = vmatmul.msk.f32.gmra.mxu2 %vm94_vm0, %v38_v20  ;;  %v2772_v26 = vadd.f32 %v214_v22, %v2700_v49  ;;  %v2775_v27 = vadd.f32 %v327_v23, %v2702_v50  ;;  %2381 = vmatmul.msk.f32.gmra.mxu3 %vm94_vm0, %v38_v20  ;;  %v652_v28 = vadd.f32 %v651_v21, %v2762_v19 }
  0xa2   :  { %v939_v35 = vadd.f32 %v938_v25, %v811_v24  ;;  %v41_v24 = vld [vmem:[%s4999_s0 + $0xa8] sm:$0xff] }
  0xa3   :  { %653 = vadd.xlane.f32.xlu0 %v652_v28  ;;  %2285 = vmatmul.msk.f32.gmra.mxu0 %vm94_vm0, %v38_v20  ;;  %v655_v29 = vadd.f32 %v2775_v27, %v2772_v26  ;;  %v813_v30 = vmul.f32 %v2772_v26, %v2772_v26  ;;  %v814_v31 = vmul.f32 %v2775_v27, %v2775_v27 }
  0xa4   :  { %v440_v32 = vpop.f32.mrf.mxu2  ;;  %2317 = vmatmul.msk.f32.gmra.mxu1 %vm94_vm0, %v38_v20  ;;  %v553_v33 = vpop.f32.mrf.mxu3  ;;  %v940_v42 = vadd.f32 %v939_v35, %v812_v34 }
  0xa5   :  { %v2790_v36 = vadd.f32 %v440_v32, %v2715_v56  ;;  %v2793_v37 = vadd.f32 %v553_v33, %v2717_v57  ;;  %v943_v44 = vadd.f32 %v814_v31, %v813_v30 }
  0xa7   :  { %v656_v39 = vadd.f32 %v655_v29, %v2790_v36  ;;  %v815_v43 = vmul.f32 %v2790_v36, %v2790_v36  ;;  %v816_v58 = vmul.f32 %v2793_v37, %v2793_v37 }
  0xa8   :  { %v217_v40 = vpop.f32.mrf.mxu0  ;;  %v330_v41 = vpop.f32.mrf.mxu1 }
  0xa9   :  { %2350 = vmatmul.msk.f32.gmra.mxu2 %vm94_vm0, %v39_v38  ;;  %v2803_v45 = vadd.f32 %v217_v40, %v2700_v49  ;;  %v2806_v46 = vadd.f32 %v330_v41, %v2702_v50  ;;  %2382 = vmatmul.msk.f32.gmra.mxu3 %vm94_vm0, %v39_v38  ;;  %v657_v47 = vadd.f32 %v656_v39, %v2793_v37 }
  0xaa   :  { %v944_v59 = vadd.f32 %v943_v44, %v815_v43 }
  0xab   :  { %v817_v48 = vmul.f32 %v2803_v45, %v2803_v45  ;;  %v818_v51 = vmul.f32 %v2806_v46, %v2806_v46  ;;  %658 = vadd.xlane.f32.xlu1 %v657_v47  ;;  %941 = vadd.xlane.f32.xlu0 %v940_v42  ;;  %v660_v7 = vadd.f32 %v2806_v46, %v2803_v45 }
  0xac   :  { %v443_v52 = vpop.f32.mrf.mxu2  ;;  %2286 = vmatmul.msk.f32.gmra.mxu0 %vm94_vm0, %v39_v38  ;;  %2318 = vmatmul.msk.f32.gmra.mxu1 %vm94_vm0, %v39_v38  ;;  %v556_v53 = vpop.f32.mrf.mxu3  ;;  %v945_v6 = vadd.f32 %v944_v59, %v816_v58 }
  0xad   :  { %v2819_v60 = vadd.f32 %v443_v52, %v2715_v56  ;;  %v2822_v61 = vadd.f32 %v556_v53, %v2717_v57  ;;  %v948_v62 = vadd.f32 %v818_v51, %v817_v48  ;;  %v42_v53 = vld [vmem:[%s4999_s0 + $0xb0] sm:$0xff] }
  0xaf   :  { %v819_v2 = vmul.f32 %v2819_v60, %v2819_v60  ;;  %v820_v3 = vmul.f32 %v2822_v61, %v2822_v61  ;;  %v661_v23 = vadd.f32 %v660_v7, %v2819_v60 }
  0xb0   :  { %v220_v4 = vpop.f32.mrf.mxu0  ;;  %v333_v5 = vpop.f32.mrf.mxu1 }
  0xb1   :  { %2351 = vmatmul.msk.f32.gmra.mxu2 %vm94_vm0, %v40_v1  ;;  %v2835_v10 = vadd.f32 %v220_v4, %v2700_v49  ;;  %v2838_v11 = vadd.f32 %v333_v5, %v2702_v50  ;;  %2383 = vmatmul.msk.f32.gmra.mxu3 %vm94_vm0, %v40_v1  ;;  %v949_v12 = vadd.f32 %v948_v62, %v819_v2 }
  0xb2   :  { %v662_v35 = vadd.f32 %v661_v23, %v2822_v61  ;;  %v43_v23 = vld [vmem:[%s4999_s0 + $0xb8] sm:$0xff] }
  0xb3   :  { %v821_v13 = vmul.f32 %v2835_v10, %v2835_v10  ;;  %v822_v14 = vmul.f32 %v2838_v11, %v2838_v11  ;;  %946 = vadd.xlane.f32.xlu1 %v945_v6  ;;  %v950_v15 = vadd.f32 %v949_v12, %v820_v3  ;;  %v665_v16 = vadd.f32 %v2838_v11, %v2835_v10 }
  0xb4   :  { %v446_v17 = vpop.f32.mrf.mxu2  ;;  %2287 = vmatmul.msk.f32.gmra.mxu0 %vm94_vm0, %v40_v1  ;;  %2319 = vmatmul.msk.f32.gmra.mxu1 %vm94_vm0, %v40_v1  ;;  %v559_v20 = vpop.f32.mrf.mxu3 }
  0xb5   :  { %v2850_v21 = vadd.f32 %v446_v17, %v2715_v56  ;;  %951 = vadd.xlane.f32.xlu2 %v950_v15  ;;  %v2853_v22 = vadd.f32 %v559_v20, %v2717_v57  ;;  %v953_v25 = vadd.f32 %v822_v14, %v821_v13 }
  0xb7   :  { %v666_v28 = vadd.f32 %v665_v16, %v2850_v21  ;;  %v823_v29 = vmul.f32 %v2850_v21, %v2850_v21  ;;  %v824_v32 = vmul.f32 %v2853_v22, %v2853_v22 }
  0xb8   :  { %v223_v30 = vpop.f32.mrf.mxu0  ;;  %v336_v31 = vpop.f32.mrf.mxu1 }
  0xb9   :  { %2352 = vmatmul.msk.f32.gmra.mxu2 %vm94_vm0, %v41_v24  ;;  %v2866_v33 = vadd.f32 %v223_v30, %v2700_v49  ;;  %v2869_v34 = vadd.f32 %v336_v31, %v2702_v50  ;;  %2384 = vmatmul.msk.f32.gmra.mxu3 %vm94_vm0, %v41_v24  ;;  %v954_v38 = vadd.f32 %v953_v25, %v823_v29 }
  0xba   :  { %v667_v41 = vadd.f32 %v666_v28, %v2853_v22 }
  0xbb   :  { %v825_v39 = vmul.f32 %v2866_v33, %v2866_v33  ;;  %v826_v40 = vmul.f32 %v2869_v34, %v2869_v34  ;;  %663 = vadd.xlane.f32.xlu1 %v662_v35  ;;  %v670_v42 = vadd.f32 %v2869_v34, %v2866_v33  ;;  %v955_v44 = vadd.f32 %v954_v38, %v824_v32 }
  0xbc   :  { %v449_v43 = vpop.f32.mrf.mxu2  ;;  %2288 = vmatmul.msk.f32.gmra.mxu0 %vm94_vm0, %v41_v24  ;;  %2320 = vmatmul.msk.f32.gmra.mxu1 %vm94_vm0, %v41_v24  ;;  %v562_v47 = vpop.f32.mrf.mxu3 }
  0xbd   :  { %v2883_v48 = vadd.f32 %v449_v43, %v2715_v56  ;;  %668 = vadd.xlane.f32.xlu2 %v667_v41  ;;  %v2886_v51 = vadd.f32 %v562_v47, %v2717_v57  ;;  %v958_v52 = vadd.f32 %v826_v40, %v825_v39  ;;  %956 = vadd.xlane.f32.xlu0 %v955_v44 }
  0xbf   :  { %v827_v58 = vmul.f32 %v2883_v48, %v2883_v48  ;;  %v828_v59 = vmul.f32 %v2886_v51, %v2886_v51  ;;  %v671_v62 = vadd.f32 %v670_v42, %v2883_v48 }
  0xc0   :  { %v226_v1 = vpop.f32.mrf.mxu0  ;;  %v339_v2 = vpop.f32.mrf.mxu1 }
  0xc1   :  { %2353 = vmatmul.msk.f32.gmra.mxu2 %vm94_vm0, %v42_v53  ;;  %v2898_v3 = vadd.f32 %v226_v1, %v2700_v49  ;;  %v2901_v4 = vadd.f32 %v339_v2, %v2702_v50  ;;  %2385 = vmatmul.msk.f32.gmra.mxu3 %vm94_vm0, %v42_v53  ;;  %v959_v5 = vadd.f32 %v958_v52, %v827_v58  ;;  %v44_v58 = vld [vmem:[%s4999_s0 + $0xc0] sm:$0xff] }
  0xc2   :  { %v672_v6 = vadd.f32 %v671_v62, %v2886_v51 }
  0xc3   :  { %5090 = vst [vmem:[#allocation2_spill] sm:$0xff] %v2901_v4  ;;  %v829_v7 = vmul.f32 %v2898_v3, %v2898_v3  ;;  %v830_v12 = vmul.f32 %v2901_v4, %v2901_v4  ;;  %v960_v13 = vadd.f32 %v959_v5, %v828_v59  ;;  %v675_v14 = vadd.f32 %v2901_v4, %v2898_v3 }
  0xc4   :  { %v452_v15 = vpop.f32.mrf.mxu2  ;;  %2289 = vmatmul.msk.f32.gmra.mxu0 %vm94_vm0, %v42_v53  ;;  %2321 = vmatmul.msk.f32.gmra.mxu1 %vm94_vm0, %v42_v53  ;;  %v565_v16 = vpop.f32.mrf.mxu3 }
  0xc5   :  { %v2914_v17 = vadd.f32 %v452_v15, %v2715_v56  ;;  %961 = vadd.xlane.f32.xlu1 %v960_v13  ;;  %673 = vadd.xlane.f32.xlu2 %v672_v6  ;;  %v2917_v20 = vadd.f32 %v565_v16, %v2717_v57  ;;  %v963_v24 = vadd.f32 %v830_v12, %v829_v7 }
  0xc7   :  { %5091 = vst [vmem:[#allocation3_spill] sm:$0xff] %v2914_v17  ;;  %v676_v25 = vadd.f32 %v675_v14, %v2914_v17  ;;  %v831_v28 = vmul.f32 %v2914_v17, %v2914_v17  ;;  %v832_v31 = vmul.f32 %v2917_v20, %v2917_v20 }
  0xc8   :  { %5092 = vst [vmem:[#allocation4_spill] sm:$0xff] %v2917_v20  ;;  %v229_v29 = vpop.f32.mrf.mxu0  ;;  %v342_v30 = vpop.f32.mrf.mxu1 }
  0xc9   :  { %2354 = vmatmul.msk.f32.gmra.mxu2 %vm94_vm0, %v43_v23  ;;  %v2929_v32 = vadd.f32 %v229_v29, %v2700_v49  ;;  %v2932_v35 = vadd.f32 %v342_v30, %v2702_v50  ;;  %2386 = vmatmul.msk.f32.gmra.mxu3 %vm94_vm0, %v43_v23  ;;  %v677_v38 = vadd.f32 %v676_v25, %v2917_v20 }
  0xca   :  { %v964_v39 = vadd.f32 %v963_v24, %v831_v28 }
  0xcb   :  { %5093 = vst [vmem:[#allocation5_spill] sm:$0xff] %v2929_v32  ;;  %v833_v40 = vmul.f32 %v2929_v32, %v2929_v32  ;;  %v834_v41 = vmul.f32 %v2932_v35, %v2932_v35  ;;  %678 = vadd.xlane.f32.xlu0 %v677_v38  ;;  %v680_v42 = vadd.f32 %v2932_v35, %v2929_v32 }
  0xcc   :  { %5094 = vst [vmem:[#allocation6_spill] sm:$0xff] %v2932_v35  ;;  %v455_v43 = vpop.f32.mrf.mxu2  ;;  %2290 = vmatmul.msk.f32.gmra.mxu0 %vm94_vm0, %v43_v23  ;;  %2322 = vmatmul.msk.f32.gmra.mxu1 %vm94_vm0, %v43_v23  ;;  %v965_v44 = vadd.f32 %v964_v39, %v832_v31  ;;  %v568_v47 = vpop.f32.mrf.mxu3  ;;  %v45_v31 = vld [vmem:[%s4999_s0 + $0xc8] sm:$0xff] }
  0xcd   :  { %v2945_v52 = vadd.f32 %v455_v43, %v2715_v56  ;;  %v2948_v53 = vadd.f32 %v568_v47, %v2717_v57  ;;  %v968_v59 = vadd.f32 %v834_v41, %v833_v40 }
  0xce   :  { %966 = vadd.xlane.f32.xlu2 %v965_v44 }
  0xcf   :  { %5095 = vst [vmem:[#allocation7_spill] sm:$0xff] %v2945_v52  ;;  %v681_v62 = vadd.f32 %v680_v42, %v2945_v52  ;;  %v835_v1 = vmul.f32 %v2945_v52, %v2945_v52  ;;  %v836_v6 = vmul.f32 %v2948_v53, %v2948_v53 }
  0xd0   :  { %5096 = vst [vmem:[#allocation8_spill] sm:$0xff] %v2948_v53  ;;  %v232_v2 = vpop.f32.mrf.mxu0  ;;  %v345_v5 = vpop.f32.mrf.mxu1 }
  0xd1   :  { %2355 = vmatmul.msk.f32.gmra.mxu2 %vm94_vm0, %v44_v58  ;;  %v2960_v7 = vadd.f32 %v232_v2, %v2700_v49  ;;  %v2963_v12 = vadd.f32 %v345_v5, %v2702_v50  ;;  %2387 = vmatmul.msk.f32.gmra.mxu3 %vm94_vm0, %v44_v58  ;;  %v682_v13 = vadd.f32 %v681_v62, %v2948_v53 }
  0xd2   :  { %v969_v14 = vadd.f32 %v968_v59, %v835_v1 }
  0xd3   :  { %5097 = vst [vmem:[#allocation9_spill] sm:$0xff] %v2960_v7  ;;  %v837_v15 = vmul.f32 %v2960_v7, %v2960_v7  ;;  %v685_v16 = vadd.f32 %v2963_v12, %v2960_v7  ;;  %v838_v23 = vmul.f32 %v2963_v12, %v2963_v12  ;;  %683 = vadd.xlane.f32.xlu1 %v682_v13 }
  0xd4   :  { %5098 = vst [vmem:[#allocation10_spill] sm:$0xff] %v2963_v12  ;;  %v458_v24 = vpop.f32.mrf.mxu2  ;;  %2291 = vmatmul.msk.f32.gmra.mxu0 %vm94_vm0, %v44_v58  ;;  %2323 = vmatmul.msk.f32.gmra.mxu1 %vm94_vm0, %v44_v58  ;;  %v970_v25 = vadd.f32 %v969_v14, %v836_v6  ;;  %v571_v28 = vpop.f32.mrf.mxu3 }
  0xd5   :  { %v2976_v29 = vadd.f32 %v458_v24, %v2715_v56  ;;  %v2979_v30 = vadd.f32 %v571_v28, %v2717_v57  ;;  %v973_v38 = vadd.f32 %v838_v23, %v837_v15 }
  0xd6   :  { %971 = vadd.xlane.f32.xlu0 %v970_v25 }
  0xd7   :  { %5099 = vst [vmem:[#allocation11_spill] sm:$0xff] %v2976_v29  ;;  %v839_v39 = vmul.f32 %v2976_v29, %v2976_v29  ;;  %v686_v40 = vadd.f32 %v685_v16, %v2976_v29  ;;  %v840_v43 = vmul.f32 %v2979_v30, %v2979_v30  ;;  %v46_v16 = vld [vmem:[%s4999_s0 + $0xd0] sm:$0xff] }
  0xd8   :  { %5100 = vst [vmem:[#allocation12_spill] sm:$0xff] %v2979_v30  ;;  %v235_v41 = vpop.f32.mrf.mxu0  ;;  %v348_v42 = vpop.f32.mrf.mxu1 }
  0xd9   :  { %2356 = vmatmul.msk.f32.gmra.mxu2 %vm94_vm0, %v45_v31  ;;  %v2991_v44 = vadd.f32 %v235_v41, %v2700_v49  ;;  %v2994_v47 = vadd.f32 %v348_v42, %v2702_v50  ;;  %2388 = vmatmul.msk.f32.gmra.mxu3 %vm94_vm0, %v45_v31  ;;  %v687_v58 = vadd.f32 %v686_v40, %v2979_v30 }
  0xda   :  { %v974_v59 = vadd.f32 %v973_v38, %v839_v39 }
  0xdb   :  { %5101 = vst [vmem:[#allocation13_spill] sm:$0xff] %v2991_v44  ;;  %v841_v62 = vmul.f32 %v2991_v44, %v2991_v44  ;;  %v690_v1 = vadd.f32 %v2994_v47, %v2991_v44  ;;  %v842_v2 = vmul.f32 %v2994_v47, %v2994_v47  ;;  %688 = vadd.xlane.f32.xlu2 %v687_v58 }
  0xdc   :  { %5102 = vst [vmem:[#allocation14_spill] sm:$0xff] %v2994_v47  ;;  %v461_v5 = vpop.f32.mrf.mxu2  ;;  %2292 = vmatmul.msk.f32.gmra.mxu0 %vm94_vm0, %v45_v31  ;;  %2324 = vmatmul.msk.f32.gmra.mxu1 %vm94_vm0, %v45_v31  ;;  %v975_v6 = vadd.f32 %v974_v59, %v840_v43  ;;  %v574_v13 = vpop.f32.mrf.mxu3 }
  0xdd   :  { %v3007_v14 = vadd.f32 %v461_v5, %v2715_v56  ;;  %v3010_v15 = vadd.f32 %v574_v13, %v2717_v57  ;;  %v978_v23 = vadd.f32 %v842_v2, %v841_v62  ;;  %v47_v13 = vld [vmem:[%s4999_s0 + $0xd8] sm:$0xff] }
  0xde   :  { %976 = vadd.xlane.f32.xlu1 %v975_v6 }
  0xdf   :  { %5103 = vst [vmem:[#allocation15_spill] sm:$0xff] %v3007_v14  ;;  %v843_v24 = vmul.f32 %v3007_v14, %v3007_v14  ;;  %v691_v25 = vadd.f32 %v690_v1, %v3007_v14  ;;  %v844_v38 = vmul.f32 %v3010_v15, %v3010_v15 }
  0xe0   :  { %5104 = vst [vmem:[#allocation16_spill] sm:$0xff] %v3010_v15  ;;  %v238_v28 = vpop.f32.mrf.mxu0  ;;  %v351_v31 = vpop.f32.mrf.mxu1 }
  0xe1   :  { %2357 = vmatmul.msk.f32.gmra.mxu2 %vm94_vm0, %v46_v16  ;;  %v3022_v39 = vadd.f32 %v238_v28, %v2700_v49  ;;  %v3025_v40 = vadd.f32 %v351_v31, %v2702_v50  ;;  %2389 = vmatmul.msk.f32.gmra.mxu3 %vm94_vm0, %v46_v16  ;;  %v692_v41 = vadd.f32 %v691_v25, %v3010_v15 }
  0xe2   :  { %v979_v42 = vadd.f32 %v978_v23, %v843_v24 }
  0xe3   :  { %5105 = vst [vmem:[#allocation17_spill] sm:$0xff] %v3022_v39  ;;  %v845_v43 = vmul.f32 %v3022_v39, %v3022_v39  ;;  %v695_v58 = vadd.f32 %v3025_v40, %v3022_v39  ;;  %v846_v59 = vmul.f32 %v3025_v40, %v3025_v40  ;;  %693 = vadd.xlane.f32.xlu0 %v692_v41 }
  0xe4   :  { %5106 = vst [vmem:[#allocation18_spill] sm:$0xff] %v3025_v40  ;;  %v464_v62 = vpop.f32.mrf.mxu2  ;;  %2293 = vmatmul.msk.f32.gmra.mxu0 %vm94_vm0, %v46_v16  ;;  %2325 = vmatmul.msk.f32.gmra.mxu1 %vm94_vm0, %v46_v16  ;;  %v980_v1 = vadd.f32 %v979_v42, %v844_v38  ;;  %v577_v2 = vpop.f32.mrf.mxu3 }
  0xe5   :  { %v3038_v5 = vadd.f32 %v464_v62, %v2715_v56  ;;  %v3041_v6 = vadd.f32 %v577_v2, %v2717_v57  ;;  %v983_v23 = vadd.f32 %v846_v59, %v845_v43 }
  0xe6   :  { %981 = vadd.xlane.f32.xlu2 %v980_v1 }
  0xe7   :  { %5107 = vst [vmem:[#allocation19_spill] sm:$0xff] %v3038_v5  ;;  %v847_v24 = vmul.f32 %v3038_v5, %v3038_v5  ;;  %v696_v25 = vadd.f32 %v695_v58, %v3038_v5  ;;  %v848_v31 = vmul.f32 %v3041_v6, %v3041_v6 }
  0xe8   :  { %5108 = vst [vmem:[#allocation20_spill] sm:$0xff] %v3041_v6  ;;  %v241_v16 = vpop.f32.mrf.mxu0  ;;  %v354_v28 = vpop.f32.mrf.mxu1 }
  0xe9   :  { %2358 = vmatmul.msk.f32.gmra.mxu2 %vm94_vm0, %v47_v13  ;;  %v3053_v38 = vadd.f32 %v241_v16, %v2700_v49  ;;  %v3056_v41 = vadd.f32 %v354_v28, %v2702_v50  ;;  %2390 = vmatmul.msk.f32.gmra.mxu3 %vm94_vm0, %v47_v13  ;;  %v697_v42 = vadd.f32 %v696_v25, %v3041_v6 }
  0xea   :  { %v984_v43 = vadd.f32 %v983_v23, %v847_v24  ;;  %v48_v24 = vld [vmem:[%s4999_s0 + $0xe0] sm:$0xff] }
  0xeb   :  { %5109 = vst [vmem:[#allocation21_spill] sm:$0xff] %v3053_v38  ;;  %v849_v58 = vmul.f32 %v3053_v38, %v3053_v38  ;;  %v700_v59 = vadd.f32 %v3056_v41, %v3053_v38  ;;  %v850_v62 = vmul.f32 %v3056_v41, %v3056_v41  ;;  %698 = vadd.xlane.f32.xlu1 %v697_v42 }
  0xec   :  { %5110 = vst [vmem:[#allocation22_spill] sm:$0xff] %v3056_v41  ;;  %v467_v1 = vpop.f32.mrf.mxu2  ;;  %2294 = vmatmul.msk.f32.gmra.mxu0 %vm94_vm0, %v47_v13  ;;  %2326 = vmatmul.msk.f32.gmra.mxu1 %vm94_vm0, %v47_v13  ;;  %v985_v2 = vadd.f32 %v984_v43, %v848_v31  ;;  %v580_v16 = vpop.f32.mrf.mxu3 }
  0xed   :  { %v3069_v25 = vadd.f32 %v467_v1, %v2715_v56  ;;  %v3072_v23 = vadd.f32 %v580_v16, %v2717_v57  ;;  %v988_v28 = vadd.f32 %v850_v62, %v849_v58 }
  0xee   :  { %986 = vadd.xlane.f32.xlu0 %v985_v2 }
  0xef   :  { %5111 = vst [vmem:[#allocation23_spill] sm:$0xff] %v3069_v25  ;;  %v851_v42 = vmul.f32 %v3069_v25, %v3069_v25  ;;  %v701_v41 = vadd.f32 %v700_v59, %v3069_v25  ;;  %v852_v43 = vmul.f32 %v3072_v23, %v3072_v23 }
  0xf0   :  { %5112 = vst [vmem:[#allocation24_spill] sm:$0xff] %v3072_v23  ;;  %v244_v13 = vpop.f32.mrf.mxu0  ;;  %v357_v31 = vpop.f32.mrf.mxu1 }
  0xf1   :  { %2359 = vmatmul.msk.f32.gmra.mxu2 %vm94_vm0, %v48_v24  ;;  %v3084_v1 = vadd.f32 %v244_v13, %v2700_v49  ;;  %v3087_v2 = vadd.f32 %v357_v31, %v2702_v50  ;;  %2391 = vmatmul.msk.f32.gmra.mxu3 %vm94_vm0, %v48_v24  ;;  %v702_v58 = vadd.f32 %v701_v41, %v3072_v23 }
  0xf2   :  { %v989_v62 = vadd.f32 %v988_v28, %v851_v42  ;;  %v49_v42 = vld [vmem:[%s4999_s0 + $0xe8] sm:$0xff] }
  0xf3   :  { %5113 = vst [vmem:[#allocation25_spill] sm:$0xff] %v3084_v1  ;;  %v853_v59 = vmul.f32 %v3084_v1, %v3084_v1  ;;  %v705_v16 = vadd.f32 %v3087_v2, %v3084_v1  ;;  %v854_v25 = vmul.f32 %v3087_v2, %v3087_v2  ;;  %703 = vadd.xlane.f32.xlu2 %v702_v58 }
  0xf4   :  { %5114 = vst [vmem:[#allocation26_spill] sm:$0xff] %v3087_v2  ;;  %v470_v13 = vpop.f32.mrf.mxu2  ;;  %2295 = vmatmul.msk.f32.gmra.mxu0 %vm94_vm0, %v48_v24  ;;  %2327 = vmatmul.msk.f32.gmra.mxu1 %vm94_vm0, %v48_v24  ;;  %v990_v31 = vadd.f32 %v989_v62, %v852_v43  ;;  %v583_v38 = vpop.f32.mrf.mxu3 }
  0xf5   :  { %v3100_v41 = vadd.f32 %v470_v13, %v2715_v56  ;;  %v3103_v28 = vadd.f32 %v583_v38, %v2717_v57  ;;  %v993_v2 = vadd.f32 %v854_v25, %v853_v59 }
  0xf6   :  { %991 = vadd.xlane.f32.xlu1 %v990_v31 }
  0xf7   :  { %5115 = vst [vmem:[#allocation27_spill] sm:$0xff] %v3100_v41  ;;  %v855_v58 = vmul.f32 %v3100_v41, %v3100_v41  ;;  %v706_v1 = vadd.f32 %v705_v16, %v3100_v41  ;;  %v856_v62 = vmul.f32 %v3103_v28, %v3103_v28 }
  0xf8   :  { %5116 = vst [vmem:[#allocation28_spill] sm:$0xff] %v3103_v28  ;;  %v247_v24 = vpop.f32.mrf.mxu0  ;;  %v360_v43 = vpop.f32.mrf.mxu1 }
  0xf9   :  { %2360 = vmatmul.msk.f32.gmra.mxu2 %vm94_vm0, %v49_v42  ;;  %v3115_v38 = vadd.f32 %v247_v24, %v2700_v49  ;;  %v3118_v13 = vadd.f32 %v360_v43, %v2702_v50  ;;  %2392 = vmatmul.msk.f32.gmra.mxu3 %vm94_vm0, %v49_v42  ;;  %v707_v25 = vadd.f32 %v706_v1, %v3103_v28 }
  0xfa   :  { %v994_v59 = vadd.f32 %v993_v2, %v855_v58  ;;  %v50_v58 = vld [vmem:[%s4999_s0 + $0xf0] sm:$0xff] }
  0xfb   :  { %5117 = vst [vmem:[#allocation29_spill] sm:$0xff] %v3115_v38  ;;  %v857_v16 = vmul.f32 %v3115_v38, %v3115_v38  ;;  %v710_v31 = vadd.f32 %v3118_v13, %v3115_v38  ;;  %v858_v41 = vmul.f32 %v3118_v13, %v3118_v13  ;;  %708 = vadd.xlane.f32.xlu0 %v707_v25 }
  0xfc   :  { %5118 = vst [vmem:[#allocation30_spill] sm:$0xff] %v3118_v13  ;;  %v473_v24 = vpop.f32.mrf.mxu2  ;;  %2296 = vmatmul.msk.f32.gmra.mxu0 %vm94_vm0, %v49_v42  ;;  %2328 = vmatmul.msk.f32.gmra.mxu1 %vm94_vm0, %v49_v42  ;;  %v995_v43 = vadd.f32 %v994_v59, %v856_v62  ;;  %v586_v23 = vpop.f32.mrf.mxu3 }
  0xfd   :  { %v3131_v1 = vadd.f32 %v473_v24, %v2715_v56  ;;  %v3134_v2 = vadd.f32 %v586_v23, %v2717_v57  ;;  %v998_v13 = vadd.f32 %v858_v41, %v857_v16 }
  0xfe   :  { %996 = vadd.xlane.f32.xlu2 %v995_v43 }
  0xff   :  { %5119 = vst [vmem:[#allocation31_spill] sm:$0xff] %v3131_v1  ;;  %v859_v25 = vmul.f32 %v3131_v1, %v3131_v1  ;;  %v711_v38 = vadd.f32 %v710_v31, %v3131_v1  ;;  %v860_v59 = vmul.f32 %v3134_v2, %v3134_v2 }
 0x100   :  { %5120 = vst [vmem:[#allocation32_spill] sm:$0xff] %v3134_v2  ;;  %v250_v42 = vpop.f32.mrf.mxu0  ;;  %v363_v62 = vpop.f32.mrf.mxu1 }
 0x101   :  { %2361 = vmatmul.msk.f32.gmra.mxu2 %vm94_vm0, %v50_v58  ;;  %v3146_v23 = vadd.f32 %v250_v42, %v2700_v49  ;;  %v3149_v24 = vadd.f32 %v363_v62, %v2702_v50  ;;  %2393 = vmatmul.msk.f32.gmra.mxu3 %vm94_vm0, %v50_v58  ;;  %v712_v41 = vadd.f32 %v711_v38, %v3134_v2 }
 0x102   :  { %v999_v16 = vadd.f32 %v998_v13, %v859_v25  ;;  %v51_v25 = vld [vmem:[%s4999_s0 + $0xf8] sm:$0xff] }
 0x103   :  { %5121 = vst [vmem:[#allocation33_spill] sm:$0xff] %v3146_v23  ;;  %v861_v31 = vmul.f32 %v3146_v23, %v3146_v23  ;;  %v715_v43 = vadd.f32 %v3149_v24, %v3146_v23  ;;  %v862_v1 = vmul.f32 %v3149_v24, %v3149_v24  ;;  %713 = vadd.xlane.f32.xlu1 %v712_v41 }
 0x104   :  { %5122 = vst [vmem:[#allocation34_spill] sm:$0xff] %v3149_v24  ;;  %v476_v42 = vpop.f32.mrf.mxu2  ;;  %2297 = vmatmul.msk.f32.gmra.mxu0 %vm94_vm0, %v50_v58  ;;  %2329 = vmatmul.msk.f32.gmra.mxu1 %vm94_vm0, %v50_v58  ;;  %v1000_v62 = vadd.f32 %v999_v16, %v860_v59  ;;  %v589_v28 = vpop.f32.mrf.mxu3 }
 0x105   :  { %v3162_v38 = vadd.f32 %v476_v42, %v2715_v56  ;;  %v3165_v13 = vadd.f32 %v589_v28, %v2717_v57  ;;  %v1003_v24 = vadd.f32 %v862_v1, %v861_v31 }
 0x106   :  { %1001 = vadd.xlane.f32.xlu0 %v1000_v62 }
 0x107   :  { %5123 = vst [vmem:[#allocation35_spill] sm:$0xff] %v3162_v38  ;;  %v863_v41 = vmul.f32 %v3162_v38, %v3162_v38  ;;  %v716_v23 = vadd.f32 %v715_v43, %v3162_v38  ;;  %v864_v16 = vmul.f32 %v3165_v13, %v3165_v13 }
 0x108   :  { %5124 = vst [vmem:[#allocation36_spill] sm:$0xff] %v3165_v13  ;;  %v253_v58 = vpop.f32.mrf.mxu0  ;;  %v366_v59 = vpop.f32.mrf.mxu1 }
 0x109   :  { %2362 = vmatmul.msk.f32.gmra.mxu2 %vm94_vm0, %v51_v25  ;;  %v3177_v28 = vadd.f32 %v253_v58, %v2700_v49  ;;  %v3180_v42 = vadd.f32 %v366_v59, %v2702_v50  ;;  %2394 = vmatmul.msk.f32.gmra.mxu3 %vm94_vm0, %v51_v25  ;;  %v717_v1 = vadd.f32 %v716_v23, %v3165_v13 }
 0x10a   :  { %v1004_v31 = vadd.f32 %v1003_v24, %v863_v41 }
 0x10b   :  { %5125 = vst [vmem:[#allocation37_spill] sm:$0xff] %v3177_v28  ;;  %v865_v43 = vmul.f32 %v3177_v28, %v3177_v28  ;;  %v720_v62 = vadd.f32 %v3180_v42, %v3177_v28  ;;  %v866_v38 = vmul.f32 %v3180_v42, %v3180_v42  ;;  %718 = vadd.xlane.f32.xlu2 %v717_v1 }
 0x10c   :  { %5126 = vst [vmem:[#allocation38_spill] sm:$0xff] %v3180_v42  ;;  %v479_v58 = vpop.f32.mrf.mxu2  ;;  %2298 = vmatmul.msk.f32.gmra.mxu0 %vm94_vm0, %v51_v25  ;;  %2330 = vmatmul.msk.f32.gmra.mxu1 %vm94_vm0, %v51_v25  ;;  %v1005_v59 = vadd.f32 %v1004_v31, %v864_v16  ;;  %v592_v2 = vpop.f32.mrf.mxu3 }
 0x10d   :  { %v3193_v23 = vadd.f32 %v479_v58, %v2715_v56  ;;  %v3196_v24 = vadd.f32 %v592_v2, %v2717_v57  ;;  %v1008_v13 = vadd.f32 %v866_v38, %v865_v43 }
 0x10e   :  { %1006 = vadd.xlane.f32.xlu1 %v1005_v59  ;;  %v649_v41 = vpop.xlane.xlu0 %648 }
 0x10f   :  { %5127 = vst [vmem:[#allocation39_spill] sm:$0xff] %v3193_v23  ;;  %v867_v28 = vmul.f32 %v3193_v23, %v3193_v23  ;;  %v3200_v42 = vmul.f32 0.001953125, %v649_v41  ;;  %v721_v1 = vadd.f32 %v720_v62, %v3193_v23  ;;  %v868_v31 = vmul.f32 %v3196_v24, %v3196_v24 }
 0x110   :  { %5128 = vst [vmem:[#allocation40_spill] sm:$0xff] %v3196_v24  ;;  %v256_v6 = vpop.f32.mrf.mxu0  ;;  %v369_v25 = vpop.f32.mrf.mxu1 }
 0x111   :  { %v937_v16 = vpop.xlane.xlu2 %936  ;;  %v1157_v2 = vmul.f32 %v3200_v42, %v3200_v42  ;;  %v3208_v59 = vadd.f32 %v256_v6, %v2700_v49  ;;  %v3211_v5 = vadd.f32 %v369_v25, %v2702_v50  ;;  %v722_v41 = vadd.f32 %v721_v1, %v3196_v24 }
 0x112   :  { %v1125_v58 = vmul.f32 0.001953125, %v937_v16  ;;  %v1009_v62 = vadd.f32 %v1008_v13, %v867_v28  ;;  %v1255_v17 = vsub.f32 %v2728_v63, %v3200_v42 }
 0x113   :  { %5129 = vst [vmem:[#allocation41_spill] sm:$0xff] %v3208_v59  ;;  %v869_v43 = vmul.f32 %v3208_v59, %v3208_v59  ;;  %v725_v23 = vadd.f32 %v3211_v5, %v3208_v59  ;;  %v870_v16 = vmul.f32 %v3211_v5, %v3211_v5  ;;  %723 = vadd.xlane.f32.xlu0 %v722_v41 }
 0x114   :  { %5130 = vst [vmem:[#allocation42_spill] sm:$0xff] %v3211_v5  ;;  %v1189_v38 = vsub.f32 %v1125_v58, %v1157_v2  ;;  %v482_v40 = vpop.f32.mrf.mxu2  ;;  %v595_v39 = vpop.f32.mrf.mxu3  ;;  %v1010_v25 = vadd.f32 %v1009_v62, %v868_v31 }
 0x115   :  { %v3221_v6 = vadd.f32 %v482_v40, %v2715_v56  ;;  %v3224_v1 = vadd.f32 %v595_v39, %v2717_v57  ;;  %v1013_v59 = vadd.f32 %v870_v16, %v869_v43 }
 0x116   :  { %v1221_v13 = vmax.f32 %v1189_v38, 0.0  ;;  %v654_v28 = vpop.xlane.xlu0 %653  ;;  %1011 = vadd.xlane.f32.xlu2 %v1010_v25 }
 0x117   :  { %5131 = vst [vmem:[#allocation43_spill] sm:$0xff] %v3221_v6  ;;  %v871_v58 = vmul.f32 %v3221_v6, %v3221_v6  ;;  %v726_v2 = vadd.f32 %v725_v23, %v3221_v6  ;;  %v872_v40 = vmul.f32 %v3224_v1, %v3224_v1  ;;  %v3241_v23 = vmul.f32 0.001953125, %v654_v28 }
 0x118   :  { %5132 = vst [vmem:[#allocation44_spill] sm:$0xff] %v3224_v1  ;;  %v3229_v5 = vadd.f32 1e-05, %v1221_v13  ;;  %v259_v24 = vpop.f32.mrf.mxu0 }
 0x119   :  { %v372_v41 = vpop.f32.mrf.mxu1  ;;  %v3235_v39 = vadd.f32 %v259_v24, %v2700_v49  ;;  %v727_v62 = vadd.f32 %v726_v2, %v3224_v1  ;;  %v1014_v38 = vadd.f32 %v1013_v59, %v871_v58  ;;  %v644_v58 = vld [vmem:[%s5002_s4] sm:$0xf] }
 0x11a   :  { %2395 = vrsqrt.f32 %v3229_v5  ;;  %v3238_v31 = vadd.f32 %v372_v41, %v2702_v50  ;;  %v643_v41 = vld [vmem:[%s5001_s3] sm:$0xf]  ;;  %v3274_v30 = vperm.slane %v644_v58, 0  ;;  %v3288_v53 = vperm.slane %v644_v58, 1 }
 0x11b   :  { %5133 = vst [vmem:[#allocation45_spill] sm:$0xff] %v3235_v39  ;;  %v873_v43 = vmul.f32 %v3235_v39, %v3235_v39  ;;  %728 = vadd.xlane.f32.xlu1 %v727_v62  ;;  %v1015_v28 = vadd.f32 %v1014_v38, %v872_v40  ;;  %v3264_v14 = vperm.slane %v643_v41, 0  ;;  %v3266_v40 = vperm.slane %v643_v41, 1 }
 0x11c   :  { %5134 = vst [vmem:[#allocation46_spill] sm:$0xff] %v3238_v31  ;;  %v730_v16 = vadd.f32 %v3238_v31, %v3235_v39  ;;  %v874_v25 = vmul.f32 %v3238_v31, %v3238_v31  ;;  %v485_v13 = vpop.f32.mrf.mxu2  ;;  %v598_v24 = vpop.f32.mrf.mxu3  ;;  %v1158_v38 = vmul.f32 %v3241_v23, %v3241_v23  ;;  %v3270_v47 = vperm.slane %v643_v41, 2 }
 0x11d   :  { %v3253_v59 = vadd.f32 %v485_v13, %v2715_v56  ;;  %v3259_v2 = vadd.f32 %v598_v24, %v2717_v57  ;;  %1016 = vadd.xlane.f32.xlu0 %v1015_v28  ;;  %v3272_v44 = vperm.slane %v643_v41, 3  ;;  %v3290_v52 = vperm.slane %v644_v58, 2 }
 0x11e   :  { %v659_v39 = vpop.xlane.xlu1 %658  ;;  %v942_v31 = vpop.xlane.xlu0 %941  ;;  %v1018_v15 = vadd.f32 %v874_v25, %v873_v43  ;;  %vm1419_vm2 = vweird.f32 %v3229_v5 }
 0x11f   :  { %5135 = vst [vmem:[#allocation47_spill] sm:$0xff] %v3253_v59  ;;  %v875_v1 = vmul.f32 %v3253_v59, %v3253_v59  ;;  %v1126_v6 = vmul.f32 0.001953125, %v942_v31  ;;  %v731_v62 = vadd.f32 %v730_v16, %v3253_v59  ;;  %v3277_v16 = vmul.f32 0.001953125, %v659_v39 }
 0x120   :  { %5136 = vst [vmem:[#allocation48_spill] sm:$0xff] %v3259_v2  ;;  %v2396_v13 = vpop.eup %2395  ;;  %v262_v24 = vpop.f32.mrf.mxu0  ;;  %v876_v59 = vmul.f32 %v3259_v2, %v3259_v2 }
 0x121   :  { %v1414_v31 = vmul.f32 %v2396_v13, %v3229_v5  ;;  %v375_v28 = vpop.f32.mrf.mxu1  ;;  %v1190_v43 = vsub.f32 %v1126_v6, %v1158_v38  ;;  %v3280_v25 = vadd.f32 %v262_v24, %v2700_v49  ;;  %v732_v41 = vadd.f32 %v731_v62, %v3259_v2 }
 0x122   :  { %v3285_v12 = vadd.f32 %v375_v28, %v2702_v50  ;;  %v1019_v7 = vadd.f32 %v1018_v15, %v875_v1  ;;  %vm1420_vm1 = vweird.f32 %v2396_v13 }
 0x123   :  { %5137 = vst [vmem:[#allocation49_spill] sm:$0xff] %v3280_v25  ;;  %v1415_v29 = vmul.f32 %v2396_v13, %v1414_v31  ;;  %v1222_v39 = vmax.f32 %v1190_v43, 0.0  ;;  %v877_v6 = vmul.f32 %v3280_v25, %v3280_v25  ;;  %733 = vadd.xlane.f32.xlu2 %v732_v41  ;;  %vm1421_vm3 = vmor %vm1419_vm2, %vm1420_vm1 }
 0x124   :  { %5138 = vst [vmem:[#allocation50_spill] sm:$0xff] %v3285_v12  ;;  %v488_v38 = vpop.f32.mrf.mxu2  ;;  %v601_v24 = vpop.f32.mrf.mxu3  ;;  %v735_v31 = vadd.f32 %v3285_v12, %v3280_v25  ;;  %v878_v28 = vmul.f32 %v3285_v12, %v3285_v12  ;;  %v1020_v62 = vadd.f32 %v1019_v7, %v876_v59  ;;  %v3309_v12 = vperm.slane %v644_v58, 3 }
 0x125   :  { %v1416_v35 = vmul.f32 0.5, %v1415_v29  ;;  %v3299_v15 = vadd.f32 %v488_v38, %v2715_v56  ;;  %v3301_v1 = vadd.f32 1e-05, %v1222_v39  ;;  %v3304_v43 = vadd.f32 %v601_v24, %v2717_v57 }
 0x126   :  { %v947_v2 = vpop.xlane.xlu1 %946  ;;  %v1159_v29 = vmul.f32 %v3277_v16, %v3277_v16  ;;  %1021 = vadd.xlane.f32.xlu1 %v1020_v62  ;;  %v1253_v58 = vsub.f32 %v2709_v54, %v3200_v42  ;;  %v1256_v62 = vsub.f32 %v2731_v0, %v3200_v42 }
 0x127   :  { %5139 = vst [vmem:[#allocation51_spill] sm:$0xff] %v3299_v15  ;;  %v1417_v32 = vsub.f32 1.5, %v1416_v35  ;;  %v1127_v25 = vmul.f32 0.001953125, %v947_v2  ;;  %v736_v20 = vadd.f32 %v735_v31, %v3299_v15  ;;  %2397 = vrsqrt.f32 %v3301_v1 }
 0x128   :  { %5140 = vst [vmem:[#allocation52_spill] sm:$0xff] %v3304_v43  ;;  %v879_v7 = vmul.f32 %v3299_v15, %v3299_v15  ;;  %v952_v59 = vpop.xlane.xlu2 %951  ;;  %v1023_v2 = vadd.f32 %v878_v28, %v877_v6  ;;  %v1254_v31 = vsub.f32 %v2712_v55, %v3200_v42  ;;  %v880_v5 = vmul.f32 %v3304_v43, %v3304_v43 }
 0x129   :  { %v1418_v41 = vmul.f32 %v2396_v13, %v1417_v32  ;;  %v1191_v39 = vsub.f32 %v1127_v25, %v1159_v29  ;;  %v265_v35 = vpop.f32.mrf.mxu0  ;;  %v378_v38 = vpop.f32.mrf.mxu1  ;;  %v737_v24 = vadd.f32 %v736_v20, %v3304_v43  ;;  %vm1429_vm4 = vweird.f32 %v3301_v1 }
 0x12a   :  { %v3328_v20 = vadd.f32 %v265_v35, %v2700_v49  ;;  %v3331_v54 = vadd.f32 %v378_v38, %v2702_v50 }
 0x12b   :  { %v1422_v32 = vsel %vm1421_vm3, %v2396_v13, %v1418_v41  ;;  %v1223_v25 = vmax.f32 %v1191_v39, 0.0  ;;  %738 = vadd.xlane.f32.xlu0 %v737_v24  ;;  %v1024_v13 = vadd.f32 %v1023_v2, %v879_v7  ;;  %v1258_v24 = vsub.f32 %v2746_v9, %v3241_v23 }
 0x12c   :  { %5141 = vst [vmem:[#allocation53_spill] sm:$0xff] %v3328_v20  ;;  %v1733_v55 = vmul.f32 %v1422_v32, %v1253_v58  ;;  %v1734_v6 = vmul.f32 %v1422_v32, %v1254_v31  ;;  %v1735_v28 = vmul.f32 %v1422_v32, %v1255_v17  ;;  %v1736_v63 = vmul.f32 %v1422_v32, %v1256_v62  ;;  %v491_v17 = vpop.f32.mrf.mxu2 }
 0x12d   :  { %5142 = vst [vmem:[#allocation54_spill] sm:$0xff] %v3331_v54  ;;  %v3335_v42 = vadd.f32 1e-05, %v1223_v25  ;;  %v2398_v29 = vpop.eup %2397  ;;  %v1259_v58 = vsub.f32 %v2759_v18, %v3241_v23  ;;  %v740_v25 = vadd.f32 %v3331_v54, %v3328_v20  ;;  %v3356_v18 = vadd.f32 %v491_v17, %v2715_v56 }
 0x12e   :  { %v1870_v41 = vmul.f32 %v3264_v14, %v1733_v55  ;;  %v1871_v39 = vmul.f32 %v3266_v40, %v1734_v6  ;;  %v1872_v35 = vmul.f32 %v3270_v47, %v1735_v28  ;;  %v1873_v38 = vmul.f32 %v3272_v44, %v1736_v63  ;;  %v664_v7 = vpop.xlane.xlu1 %663 }
 0x12f   :  { %v1424_v31 = vmul.f32 %v2398_v29, %v3301_v1  ;;  %2399 = vrsqrt.f32 %v3335_v42  ;;  %5143 = vst [vmem:[#allocation55_spill] sm:$0xff] %v3356_v18  ;;  %v1025_v28 = vadd.f32 %v1024_v13, %v880_v5  ;;  %v1260_v63 = vsub.f32 %v2762_v19, %v3241_v23 }
 0x130   :  { %v2007_v2 = vadd.f32 %v3274_v30, %v1870_v41  ;;  %v2008_v62 = vadd.f32 %v3288_v53, %v1871_v39  ;;  %v2009_v32 = vadd.f32 %v3290_v52, %v1872_v35  ;;  %v669_v55 = vpop.xlane.xlu2 %668  ;;  %v2010_v9 = vadd.f32 %v3309_v12, %v1873_v38  ;;  %v604_v35 = vpop.f32.mrf.mxu3 }
 0x131   :  { %v1425_v6 = vmul.f32 %v2398_v29, %v1424_v31  ;;  %v3367_v38 = vmul.f32 0.001953125, %v664_v7  ;;  %1026 = vadd.xlane.f32.xlu2 %v1025_v28  ;;  %v3376_v17 = vmul.f32 0.001953125, %v669_v55  ;;  %v957_v31 = vpop.xlane.xlu0 %956  ;;  %v1128_v7 = vmul.f32 0.001953125, %v952_v59  ;;  %v268_v5 = vpop.f32.mrf.mxu0 }
 0x132   :  { %2135 = vst [vmem:[%s5003_s5] sm:$0xff] %v2007_v2  ;;  %v881_v2 = vmul.f32 %v3328_v20, %v3328_v20  ;;  %vm1430_vm5 = vweird.f32 %v2398_v29  ;;  %v741_v59 = vadd.f32 %v740_v25, %v3356_v18  ;;  %v882_v39 = vmul.f32 %v3331_v54, %v3331_v54 }
 0x133   :  { %2136 = vst [vmem:[%s5003_s5 + $0x8] sm:$0xff] %v2008_v62  ;;  %v1426_v19 = vmul.f32 0.5, %v1425_v6  ;;  %v1160_v62 = vmul.f32 %v3367_v38, %v3367_v38  ;;  %v3390_v6 = vadd.f32 %v604_v35, %v2717_v57  ;;  %v1129_v0 = vmul.f32 0.001953125, %v957_v31  ;;  %vm1431_vm7 = vmor %vm1429_vm4, %vm1430_vm5 }
 0x134   :  { %2137 = vst [vmem:[%s5003_s5 + $0x10] sm:$0xff] %v2009_v32  ;;  %v381_v32 = vpop.f32.mrf.mxu1  ;;  %vm1439_vm6 = vweird.f32 %v3335_v42  ;;  %v1161_v35 = vmul.f32 %v3376_v17, %v3376_v17  ;;  %v1267_v31 = vsub.f32 %v2819_v60, %v3367_v38 }
 0x135   :  { %v2400_v13 = vpop.eup %2399  ;;  %2138 = vst [vmem:[%s5003_s5 + $0x18] sm:$0xff] %v2010_v9  ;;  %v1427_v55 = vsub.f32 1.5, %v1426_v19  ;;  %v1192_v41 = vsub.f32 %v1128_v7, %v1160_v62  ;;  %v883_v9 = vmul.f32 %v3356_v18, %v3356_v18  ;;  %v3402_v19 = vadd.f32 %v268_v5, %v2700_v49 }
 0x136   :  { %v1434_v28 = vmul.f32 %v2400_v13, %v3335_v42  ;;  %v3409_v7 = vadd.f32 %v381_v32, %v2702_v50  ;;  %v1193_v18 = vsub.f32 %v1129_v0, %v1161_v35  ;;  %v742_v54 = vadd.f32 %v741_v59, %v3390_v6 }
 0x137   :  { %v1428_v20 = vmul.f32 %v2398_v29, %v1427_v55  ;;  %v1224_v43 = vmax.f32 %v1192_v41, 0.0  ;;  %v1266_v55 = vsub.f32 %v2806_v46, %v3367_v38  ;;  %v5144_v5 = vsub.f32 %v2743_v8, %v3241_v23 }
 0x138   :  { %v1435_v25 = vmul.f32 %v2400_v13, %v1434_v28  ;;  %743 = vadd.xlane.f32.xlu1 %v742_v54  ;;  %vm1440_vm8 = vweird.f32 %v2400_v13 }
 0x139   :  { %v1432_v62 = vsel %vm1431_vm7, %v2398_v29, %v1428_v20  ;;  %v3419_v32 = vadd.f32 1e-05, %v1224_v43  ;;  %v1225_v20 = vmax.f32 %v1193_v18, 0.0  ;;  %vm1441_vm9 = vmor %vm1439_vm6, %vm1440_vm8 }
 0x13a   :  { %v1737_v1 = vmul.f32 %v1432_v62, %v5144_v5  ;;  %v1738_v15 = vmul.f32 %v1432_v62, %v1258_v24  ;;  %v1739_v28 = vmul.f32 %v1432_v62, %v1259_v58  ;;  %v1740_v41 = vmul.f32 %v1432_v62, %v1260_v63  ;;  %v674_v58 = vpop.xlane.xlu2 %673  ;;  %v494_v63 = vpop.f32.mrf.mxu2 }
 0x13b   :  { %v1436_v4 = vmul.f32 0.5, %v1435_v25  ;;  %2401 = vrsqrt.f32 %v3419_v32  ;;  %v3426_v24 = vadd.f32 1e-05, %v1225_v20  ;;  %v885_v5 = vmul.f32 %v3402_v19, %v3402_v19 }
 0x13c   :  { %v1874_v29 = vmul.f32 %v3264_v14, %v1737_v1  ;;  %v1875_v0 = vmul.f32 %v3266_v40, %v1738_v15  ;;  %v1876_v59 = vmul.f32 %v3270_v47, %v1739_v28  ;;  %v1877_v8 = vmul.f32 %v3272_v44, %v1740_v41  ;;  %v962_v28 = vpop.xlane.xlu1 %961 }
 0x13d   :  { %v1437_v23 = vsub.f32 1.5, %v1436_v4  ;;  %v1268_v15 = vsub.f32 %v2822_v61, %v3367_v38  ;;  %2403 = vrsqrt.f32 %v3426_v24  ;;  %v1028_v1 = vadd.f32 %v882_v39, %v881_v2 }
 0x13e   :  { %v2011_v43 = vadd.f32 %v3274_v30, %v1874_v29  ;;  %v2012_v18 = vadd.f32 %v3288_v53, %v1875_v0  ;;  %v2013_v54 = vadd.f32 %v3290_v52, %v1876_v59  ;;  %v2014_v35 = vadd.f32 %v3309_v12, %v1877_v8 }
 0x13f   :  { %v1438_v25 = vmul.f32 %v2400_v13, %v1437_v23  ;;  %v3446_v41 = vmul.f32 0.001953125, %v674_v58  ;;  %v745_v29 = vadd.f32 %v3409_v7, %v3402_v19  ;;  %v3454_v42 = vadd.f32 %v494_v63, %v2715_v56 }
 0x140   :  { %2139 = vst [vmem:[%s5003_s5 + $0x20] sm:$0xff] %v2011_v43  ;;  %v884_v0 = vmul.f32 %v3390_v6, %v3390_v6  ;;  %v5145_v39 = vsub.f32 %v2772_v26, %v3277_v16  ;;  %v5147_v8 = vsub.f32 %v2790_v36, %v3277_v16  ;;  %v5148_v58 = vsub.f32 %v2793_v37, %v3277_v16 }
 0x141   :  { %2140 = vst [vmem:[%s5003_s5 + $0x28] sm:$0xff] %v2012_v18  ;;  %v1442_v20 = vsel %vm1441_vm9, %v2400_v13, %v1438_v25  ;;  %v5146_v13 = vsub.f32 %v2775_v27, %v3277_v16  ;;  %v607_v18 = vpop.f32.mrf.mxu3  ;;  %v3473_v63 = vpop.eup %2401  ;;  %v886_v26 = vmul.f32 %v3409_v7, %v3409_v7  ;;  %v1029_v27 = vadd.f32 %v1028_v1, %v883_v9 }
 0x142   :  { %2141 = vst [vmem:[%s5003_s5 + $0x30] sm:$0xff] %v2013_v54  ;;  %v1741_v2 = vmul.f32 %v1442_v20, %v5145_v39  ;;  %v1743_v23 = vmul.f32 %v1442_v20, %v5147_v8  ;;  %v1744_v43 = vmul.f32 %v1442_v20, %v5148_v58  ;;  %v1130_v54 = vmul.f32 0.001953125, %v962_v28  ;;  %v271_v39 = vpop.f32.mrf.mxu0 }
 0x143   :  { %v1742_v59 = vmul.f32 %v1442_v20, %v5146_v13  ;;  %2142 = vst [vmem:[%s5003_s5 + $0x38] sm:$0xff] %v2014_v35  ;;  %v1162_v36 = vmul.f32 %v3446_v41, %v3446_v41  ;;  %v384_v13 = vpop.f32.mrf.mxu1  ;;  %v3486_v8 = vpop.eup %2403  ;;  %v1444_v35 = vmul.f32 %v3473_v63, %v3419_v32  ;;  %v1030_v9 = vadd.f32 %v1029_v27, %v884_v0 }
 0x144   :  { %v1878_v25 = vmul.f32 %v3264_v14, %v1741_v2  ;;  %v1880_v16 = vmul.f32 %v3270_v47, %v1743_v23  ;;  %v1881_v20 = vmul.f32 %v3272_v44, %v1744_v43  ;;  %v3491_v1 = vadd.f32 %v607_v18, %v2717_v57 }
 0x145   :  { %v1879_v37 = vmul.f32 %v3266_v40, %v1742_v59  ;;  %v1194_v28 = vsub.f32 %v1130_v54, %v1162_v36  ;;  %v746_v58 = vadd.f32 %v745_v29, %v3454_v42  ;;  %v1445_v62 = vmul.f32 %v3473_v63, %v1444_v35  ;;  %1031 = vadd.xlane.f32.xlu0 %v1030_v9  ;;  %v967_v35 = vpop.xlane.xlu2 %966 }
 0x146   :  { %v2015_v2 = vadd.f32 %v3274_v30, %v1878_v25  ;;  %v2017_v23 = vadd.f32 %v3290_v52, %v1880_v16  ;;  %v2018_v43 = vadd.f32 %v3309_v12, %v1881_v20  ;;  %v1454_v4 = vmul.f32 %v3486_v8, %v3426_v24  ;;  %v497_v20 = vpop.f32.mrf.mxu2 }
 0x147   :  { %v2016_v59 = vadd.f32 %v3288_v53, %v1879_v37  ;;  %v1226_v0 = vmax.f32 %v1194_v28, 0.0  ;;  %v1271_v18 = vsub.f32 %v2850_v21, %v3376_v17  ;;  %v1272_v27 = vsub.f32 %v2853_v22, %v3376_v17  ;;  %v679_v21 = vpop.xlane.xlu0 %678 }
 0x148   :  { %2143 = vst [vmem:[%s5003_s5 + $0x40] sm:$0xff] %v2015_v2  ;;  %v887_v29 = vmul.f32 %v3454_v42, %v3454_v42  ;;  %v3511_v54 = vadd.f32 %v271_v39, %v2700_v49  ;;  %v1446_v36 = vmul.f32 0.5, %v1445_v62  ;;  %vm1449_vm10 = vweird.f32 %v3419_v32 }
 0x149   :  { %2144 = vst [vmem:[%s5003_s5 + $0x48] sm:$0xff] %v2016_v59  ;;  %v1455_v25 = vmul.f32 %v3486_v8, %v1454_v4  ;;  %v3518_v37 = vadd.f32 1e-05, %v1226_v0  ;;  %v3524_v22 = vadd.f32 %v384_v13, %v2702_v50  ;;  %v747_v16 = vadd.f32 %v746_v58, %v3491_v1 }
 0x14a   :  { %2145 = vst [vmem:[%s5003_s5 + $0x50] sm:$0xff] %v2017_v23  ;;  %v888_v62 = vmul.f32 %v3491_v1, %v3491_v1  ;;  %v1033_v39 = vadd.f32 %v886_v26, %v885_v5  ;;  %v1447_v4 = vsub.f32 1.5, %v1446_v36  ;;  %vm1450_vm11 = vweird.f32 %v3473_v63  ;;  %v610_v5 = vpop.f32.mrf.mxu3  ;;  %v274_v36 = vpop.f32.mrf.mxu0 }
 0x14b   :  { %2146 = vst [vmem:[%s5003_s5 + $0x58] sm:$0xff] %v2018_v43  ;;  %v1456_v9 = vmul.f32 0.5, %v1455_v25  ;;  %vm1459_vm12 = vweird.f32 %v3426_v24  ;;  %vm1460_vm13 = vweird.f32 %v3486_v8  ;;  %v3537_v13 = vmul.f32 %v3511_v54, %v3511_v54  ;;  %748 = vadd.xlane.f32.xlu2 %v747_v16  ;;  %vm1451_vm14 = vmor %vm1449_vm10, %vm1450_vm11  ;;  %v387_v25 = vpop.f32.mrf.mxu1 }
 0x14c   :  { %v1034_v28 = vadd.f32 %v1033_v39, %v887_v29  ;;  %v3539_v26 = vmul.f32 0.001953125, %v679_v21  ;;  %v1448_v2 = vmul.f32 %v3473_v63, %v1447_v4  ;;  %2405 = vrsqrt.f32 %v3518_v37  ;;  %vm1461_vm15 = vmor %vm1459_vm12, %vm1460_vm13 }
 0x14d   :  { %v1457_v59 = vsub.f32 1.5, %v1456_v9  ;;  %v1131_v23 = vmul.f32 0.001953125, %v967_v35  ;;  %v750_v58 = vadd.f32 %v3524_v22, %v3511_v54  ;;  %v890_v43 = vmul.f32 %v3524_v22, %v3524_v22 }
 0x14e   :  { %v3550_v0 = vadd.f32 %v497_v20, %v2715_v56  ;;  %v1035_v29 = vadd.f32 %v1034_v28, %v888_v62  ;;  %v1452_v21 = vsel %vm1451_vm14, %v3473_v63, %v1448_v2  ;;  %v3555_v39 = vadd.f32 %v610_v5, %v2717_v57 }
 0x14f   :  { %v1458_v16 = vmul.f32 %v3486_v8, %v1457_v59  ;;  %v1163_v32 = vmul.f32 %v3539_v26, %v3539_v26  ;;  %v5149_v35 = vsub.f32 %v2803_v45, %v3367_v38  ;;  %v1746_v20 = vmul.f32 %v1452_v21, %v1266_v55 }
 0x150   :  { %v1747_v63 = vmul.f32 %v1452_v21, %v1267_v31  ;;  %v1748_v62 = vmul.f32 %v1452_v21, %v1268_v15  ;;  %1036 = vadd.xlane.f32.xlu1 %v1035_v29  ;;  %v3577_v46 = vadd.f32 %v274_v36, %v2700_v49  ;;  %v3580_v55 = vadd.f32 %v387_v25, %v2702_v50 }
 0x151   :  { %v1745_v4 = vmul.f32 %v1452_v21, %v5149_v35  ;;  %v1462_v45 = vsel %vm1461_vm15, %v3486_v8, %v1458_v16  ;;  %v1195_v9 = vsub.f32 %v1131_v23, %v1163_v32  ;;  %v1883_v61 = vmul.f32 %v3266_v40, %v1746_v20  ;;  %v500_v21 = vpop.f32.mrf.mxu2 }
 0x152   :  { %v1884_v38 = vmul.f32 %v3270_v47, %v1747_v63  ;;  %v1885_v31 = vmul.f32 %v3272_v44, %v1748_v62  ;;  %v3586_v24 = vpop.eup %2405  ;;  %v5150_v15 = vsub.f32 %v2835_v10, %v3376_v17  ;;  %v5151_v28 = vsub.f32 %v2838_v11, %v3376_v17 }
 0x153   :  { %v1882_v60 = vmul.f32 %v3264_v14, %v1745_v4  ;;  %v1751_v2 = vmul.f32 %v1462_v45, %v1271_v18  ;;  %v1752_v59 = vmul.f32 %v1462_v45, %v1272_v27  ;;  %v2020_v29 = vadd.f32 %v3288_v53, %v1883_v61  ;;  %v684_v61 = vpop.xlane.xlu1 %683 }
 0x154   :  { %v1749_v8 = vmul.f32 %v1462_v45, %v5150_v15  ;;  %v1750_v5 = vmul.f32 %v1462_v45, %v5151_v28  ;;  %v2021_v36 = vadd.f32 %v3290_v52, %v1884_v38  ;;  %v2022_v25 = vadd.f32 %v3309_v12, %v1885_v31  ;;  %v972_v28 = vpop.xlane.xlu0 %971 }
 0x155   :  { %v2019_v23 = vadd.f32 %v3274_v30, %v1882_v60  ;;  %v1888_v32 = vmul.f32 %v3270_v47, %v1751_v2  ;;  %v1889_v11 = vmul.f32 %v3272_v44, %v1752_v59  ;;  %v1464_v17 = vmul.f32 %v3586_v24, %v3518_v37  ;;  %2148 = vst [vmem:[%s5003_s5 + $0x68] sm:$0xff] %v2020_v29  ;;  %v613_v60 = vpop.f32.mrf.mxu3  ;;  %v390_v29 = vpop.f32.mrf.mxu1 }
 0x156   :  { %v1886_v16 = vmul.f32 %v3264_v14, %v1749_v8  ;;  %v1887_v10 = vmul.f32 %v3266_v40, %v1750_v5  ;;  %v1227_v18 = vmax.f32 %v1195_v9, 0.0  ;;  %v891_v4 = vmul.f32 %v3550_v0, %v3550_v0  ;;  %2149 = vst [vmem:[%s5003_s5 + $0x70] sm:$0xff] %v2021_v36 }
 0x157   :  { %2147 = vst [vmem:[%s5003_s5 + $0x60] sm:$0xff] %v2019_v23  ;;  %v755_v20 = vadd.f32 %v3580_v55, %v3577_v46  ;;  %v2025_v63 = vadd.f32 %v3290_v52, %v1888_v32  ;;  %v1465_v62 = vmul.f32 %v3586_v24, %v1464_v17  ;;  %v751_v9 = vadd.f32 %v750_v58, %v3550_v0  ;;  %v277_v23 = vpop.f32.mrf.mxu0 }
 0x158   :  { %v2023_v27 = vadd.f32 %v3274_v30, %v1886_v16  ;;  %v2024_v35 = vadd.f32 %v3288_v53, %v1887_v10  ;;  %v3621_v45 = vadd.f32 1e-05, %v1227_v18  ;;  %2150 = vst [vmem:[%s5003_s5 + $0x78] sm:$0xff] %v2022_v25  ;;  %v2026_v38 = vadd.f32 %v3309_v12, %v1889_v11 }
 0x159   :  { %v3629_v31 = vadd.f32 %v500_v21, %v2715_v56  ;;  %v892_v15 = vmul.f32 %v3555_v39, %v3555_v39  ;;  %v1038_v8 = vadd.f32 %v890_v43, %v3537_v13  ;;  %v1466_v58 = vmul.f32 0.5, %v1465_v62  ;;  %2153 = vst [vmem:[%s5003_s5 + $0x90] sm:$0xff] %v2025_v63 }
 0x15a   :  { %2151 = vst [vmem:[%s5003_s5 + $0x80] sm:$0xff] %v2023_v27  ;;  %2407 = vrsqrt.f32 %v3621_v45  ;;  %v893_v5 = vmul.f32 %v3577_v46, %v3577_v46  ;;  %v752_v2 = vadd.f32 %v751_v9, %v3555_v39  ;;  %vm1470_vm0 = vweird.f32 %v3586_v24 }
 0x15b   :  { %2152 = vst [vmem:[%s5003_s5 + $0x88] sm:$0xff] %v2024_v35  ;;  %v1039_v13 = vadd.f32 %v1038_v8, %v891_v4  ;;  %v3646_v43 = vadd.f32 %v613_v60, %v2717_v57  ;;  %v3648_v59 = vmul.f32 0.001953125, %v684_v61  ;;  %v1467_v36 = vsub.f32 1.5, %v1466_v58  ;;  %v503_v35 = vpop.f32.mrf.mxu2 }
 0x15c   :  { %v894_v25 = vmul.f32 %v3580_v55, %v3580_v55  ;;  %753 = vadd.xlane.f32.xlu0 %v752_v2  ;;  %v1132_v21 = vmul.f32 0.001953125, %v972_v28  ;;  %v756_v16 = vadd.f32 %v755_v20, %v3629_v31  ;;  %2154 = vst [vmem:[%s5003_s5 + $0x98] sm:$0xff] %v2026_v38  ;;  %v1273_v10 = vsub.f32 %v2866_v33, %v3446_v41 }
 0x15d   :  { %vm1469_vm1 = vweird.f32 %v3518_v37  ;;  %v1040_v32 = vadd.f32 %v1039_v13, %v892_v15  ;;  %v1468_v11 = vmul.f32 %v3586_v24, %v1467_v36  ;;  %v1164_v17 = vmul.f32 %v3648_v59, %v3648_v59 }
 0x15e   :  { %v3666_v18 = vadd.f32 %v277_v23, %v2700_v49  ;;  %v3669_v27 = vadd.f32 %v390_v29, %v2702_v50  ;;  %v1274_v4 = vsub.f32 %v2869_v34, %v3446_v41  ;;  %v1275_v33 = vsub.f32 %v2883_v48, %v3446_v41  ;;  %vm1471_vm2 = vmor %vm1469_vm1, %vm1470_vm0 }
 0x15f   :  { %v1276_v37 = vsub.f32 %v2886_v51, %v3446_v41  ;;  %1041 = vadd.xlane.f32.xlu2 %v1040_v32  ;;  %v757_v20 = vadd.f32 %v756_v16, %v3646_v43  ;;  %v1472_v62 = vsel %vm1471_vm2, %v3586_v24, %v1468_v11  ;;  %v895_v9 = vmul.f32 %v3629_v31, %v3629_v31 }
 0x160   :  { %v3680_v63 = vpop.eup %2407  ;;  %v1196_v34 = vsub.f32 %v1132_v21, %v1164_v17  ;;  %v1043_v60 = vadd.f32 %v894_v25, %v893_v5  ;;  %v1753_v61 = vmul.f32 %v1472_v62, %v1273_v10  ;;  %v1754_v48 = vmul.f32 %v1472_v62, %v1274_v4  ;;  %v616_v25 = vpop.f32.mrf.mxu3 }
 0x161   :  { %v1755_v38 = vmul.f32 %v1472_v62, %v1275_v33  ;;  %v1756_v15 = vmul.f32 %v1472_v62, %v1276_v37  ;;  %758 = vadd.xlane.f32.xlu1 %v757_v20  ;;  %v1474_v51 = vmul.f32 %v3680_v63, %v3621_v45  ;;  %v760_v8 = vadd.f32 %v3669_v27, %v3666_v18  ;;  %v689_v21 = vpop.xlane.xlu2 %688  ;;  %v977_v17 = vpop.xlane.xlu1 %976 }
 0x162   :  { %v1228_v41 = vmax.f32 %v1196_v34, 0.0  ;;  %v896_v24 = vmul.f32 %v3646_v43, %v3646_v43  ;;  %v1890_v28 = vmul.f32 %v3264_v14, %v1753_v61  ;;  %v1891_v58 = vmul.f32 %v3266_v40, %v1754_v48  ;;  %v280_v4 = vpop.f32.mrf.mxu0  ;;  %v393_v34 = vpop.f32.mrf.mxu1 }
 0x163   :  { %v1892_v5 = vmul.f32 %v3270_v47, %v1755_v38  ;;  %v1893_v2 = vmul.f32 %v3272_v44, %v1756_v15  ;;  %v1475_v13 = vmul.f32 %v3680_v63, %v1474_v51  ;;  %v3699_v29 = vadd.f32 %v503_v35, %v2715_v56  ;;  %v506_v15 = vpop.f32.mrf.mxu2 }
 0x164   :  { %v3696_v23 = vadd.f32 1e-05, %v1228_v41  ;;  %v1044_v36 = vadd.f32 %v1043_v60, %v895_v9  ;;  %v2027_v16 = vadd.f32 %v3274_v30, %v1890_v28  ;;  %v2028_v10 = vadd.f32 %v3288_v53, %v1891_v58  ;;  %v5154_v41 = vld [vmem:[#allocation2_spill] sm:$0xff]  ;;  %v5155_v28 = vld [vmem:[#allocation3_spill] sm:$0xff] }
 0x165   :  { %v2029_v32 = vadd.f32 %v3290_v52, %v1892_v5  ;;  %v897_v11 = vmul.f32 %v3666_v18, %v3666_v18  ;;  %v2030_v33 = vadd.f32 %v3309_v12, %v1893_v2  ;;  %v1476_v37 = vmul.f32 0.5, %v1475_v13  ;;  %v5156_v5 = vld [vmem:[#allocation4_spill] sm:$0xff] }
 0x166   :  { %2409 = vrsqrt.f32 %v3696_v23  ;;  %v1045_v35 = vadd.f32 %v1044_v36, %v896_v24  ;;  %2155 = vst [vmem:[%s5003_s5 + $0xa0] sm:$0xff] %v2027_v16  ;;  %vm1480_vm3 = vweird.f32 %v3680_v63  ;;  %v898_v20 = vmul.f32 %v3669_v27, %v3669_v27  ;;  %v694_v16 = vpop.xlane.xlu0 %693 }
 0x167   :  { %v3715_v62 = vadd.f32 %v616_v25, %v2717_v57  ;;  %v3717_v9 = vmul.f32 0.001953125, %v689_v21  ;;  %2156 = vst [vmem:[%s5003_s5 + $0xa8] sm:$0xff] %v2028_v10  ;;  %v1477_v60 = vsub.f32 1.5, %v1476_v37  ;;  %v1133_v61 = vmul.f32 0.001953125, %v977_v17 }
 0x168   :  { %1046 = vadd.xlane.f32.xlu0 %v1045_v35  ;;  %v3723_v48 = vadd.f32 %v280_v4, %v2700_v49  ;;  %v761_v38 = vadd.f32 %v760_v8, %v3699_v29  ;;  %2157 = vst [vmem:[%s5003_s5 + $0xb0] sm:$0xff] %v2029_v32  ;;  %v1277_v51 = vsub.f32 %v2898_v3, %v3539_v26  ;;  %vm1479_vm4 = vweird.f32 %v3621_v45 }
 0x169   :  { %5152 = vst [vmem:[#allocation56_spill] sm:$0xff] %v3715_v62  ;;  %v1278_v24 = vsub.f32 %v5154_v41, %v3539_v26  ;;  %v1279_v58 = vsub.f32 %v5155_v28, %v3539_v26  ;;  %v1280_v2 = vsub.f32 %v5156_v5, %v3539_v26  ;;  %v1478_v8 = vmul.f32 %v3680_v63, %v1477_v60  ;;  %vm1481_vm5 = vmor %vm1479_vm4, %vm1480_vm3 }
 0x16a   :  { %5153 = vst [vmem:[#allocation57_spill] sm:$0xff] %v3723_v48  ;;  %v899_v3 = vmul.f32 %v3699_v29, %v3699_v29  ;;  %v1165_v13 = vmul.f32 %v3717_v9, %v3717_v9  ;;  %v3749_v36 = vadd.f32 %v393_v34, %v2702_v50  ;;  %v762_v26 = vadd.f32 %v761_v38, %v3715_v62 }
 0x16b   :  { %2158 = vst [vmem:[%s5003_s5 + $0xb8] sm:$0xff] %v2030_v33  ;;  %v3753_v25 = vadd.f32 %v506_v15, %v2715_v56  ;;  %v1048_v21 = vadd.f32 %v898_v20, %v897_v11  ;;  %v1482_v10 = vsel %vm1481_vm5, %v3680_v63, %v1478_v8  ;;  %v901_v17 = vmul.f32 %v3723_v48, %v3723_v48 }
 0x16c   :  { %5157 = vst [vmem:[#allocation2_spill] sm:$0xff] %v3749_v36  ;;  %v3755_v45 = vpop.eup %2409  ;;  %v1197_v32 = vsub.f32 %v1133_v61, %v1165_v13  ;;  %v900_v4 = vmul.f32 %v3715_v62, %v3715_v62  ;;  %v1757_v33 = vmul.f32 %v1482_v10, %v1277_v51  ;;  %v1758_v37 = vmul.f32 %v1482_v10, %v1278_v24  ;;  %v619_v51 = vpop.f32.mrf.mxu3 }
 0x16d   :  { %5158 = vst [vmem:[#allocation3_spill] sm:$0xff] %v3753_v25  ;;  %v1759_v35 = vmul.f32 %v1482_v10, %v1279_v58  ;;  %v1760_v34 = vmul.f32 %v1482_v10, %v1280_v2  ;;  %763 = vadd.xlane.f32.xlu2 %v762_v26  ;;  %v1484_v11 = vmul.f32 %v3755_v45, %v3696_v23  ;;  %v3764_v38 = vmul.f32 0.001953125, %v694_v16  ;;  %v982_v2 = vpop.xlane.xlu2 %981  ;;  %v396_v16 = vpop.f32.mrf.mxu1 }
 0x16e   :  { %v1229_v20 = vmax.f32 %v1197_v32, 0.0  ;;  %v1049_v60 = vadd.f32 %v1048_v21, %v899_v3  ;;  %v1894_v63 = vmul.f32 %v3264_v14, %v1757_v33  ;;  %v1895_v61 = vmul.f32 %v3266_v40, %v1758_v37  ;;  %v283_v21 = vpop.f32.mrf.mxu0 }
 0x16f   :  { %v1896_v15 = vmul.f32 %v3270_v47, %v1759_v35  ;;  %v1897_v41 = vmul.f32 %v3272_v44, %v1760_v34  ;;  %v1485_v24 = vmul.f32 %v3755_v45, %v1484_v11  ;;  %v765_v58 = vadd.f32 %v3749_v36, %v3723_v48 }
 0x170   :  { %v3771_v28 = vadd.f32 1e-05, %v1229_v20  ;;  %v1050_v5 = vadd.f32 %v1049_v60, %v900_v4  ;;  %v2031_v8 = vadd.f32 %v3274_v30, %v1894_v63  ;;  %v2032_v3 = vadd.f32 %v3288_v53, %v1895_v61  ;;  %v5162_v63 = vld [vmem:[#allocation5_spill] sm:$0xff] }
 0x171   :  { %v2033_v13 = vadd.f32 %v3290_v52, %v1896_v15  ;;  %v902_v26 = vmul.f32 %v3749_v36, %v3749_v36  ;;  %v2034_v10 = vadd.f32 %v3309_v12, %v1897_v41  ;;  %v1486_v32 = vmul.f32 0.5, %v1485_v24  ;;  %v5163_v15 = vld [vmem:[#allocation6_spill] sm:$0xff]  ;;  %v509_v24 = vpop.f32.mrf.mxu2 }
 0x172   :  { %2411 = vrsqrt.f32 %v3771_v28  ;;  %1051 = vadd.xlane.f32.xlu1 %v1050_v5  ;;  %v3783_v4 = vadd.f32 %v619_v51, %v2717_v57  ;;  %2159 = vst [vmem:[%s5003_s5 + $0xc0] sm:$0xff] %v2031_v8  ;;  %vm1490_vm6 = vweird.f32 %v3755_v45  ;;  %v903_v33 = vmul.f32 %v3753_v25, %v3753_v25 }
 0x173   :  { %v1134_v37 = vmul.f32 0.001953125, %v982_v2  ;;  %v1166_v35 = vmul.f32 %v3764_v38, %v3764_v38  ;;  %2160 = vst [vmem:[%s5003_s5 + $0xc8] sm:$0xff] %v2032_v3  ;;  %v1487_v34 = vsub.f32 1.5, %v1486_v32  ;;  %v3797_v11 = vadd.f32 %v283_v21, %v2700_v49  ;;  %v5164_v2 = vld [vmem:[#allocation7_spill] sm:$0xff] }
 0x174   :  { %5159 = vst [vmem:[#allocation4_spill] sm:$0xff] %v3783_v4  ;;  %v3800_v20 = vadd.f32 %v396_v16, %v2702_v50  ;;  %v766_v60 = vadd.f32 %v765_v58, %v3753_v25  ;;  %v1281_v61 = vsub.f32 %v5162_v63, %v3648_v59  ;;  %v1282_v41 = vsub.f32 %v5163_v15, %v3648_v59 }
 0x175   :  { %5160 = vst [vmem:[#allocation58_spill] sm:$0xff] %v3797_v11  ;;  %v1198_v51 = vsub.f32 %v1134_v37, %v1166_v35  ;;  %v1053_v5 = vadd.f32 %v902_v26, %v901_v17  ;;  %v1283_v58 = vsub.f32 %v5164_v2, %v3648_v59  ;;  %v1488_v8 = vmul.f32 %v3755_v45, %v1487_v34 }
 0x176   :  { %5161 = vst [vmem:[#allocation59_spill] sm:$0xff] %v3800_v20  ;;  %vm1489_vm7 = vweird.f32 %v3696_v23  ;;  %v904_v3 = vmul.f32 %v3783_v4, %v3783_v4  ;;  %v767_v26 = vadd.f32 %v766_v60, %v3783_v4  ;;  %v905_v23 = vmul.f32 %v3797_v11, %v3797_v11 }
 0x177   :  { %2161 = vst [vmem:[%s5003_s5 + $0xd0] sm:$0xff] %v2033_v13  ;;  %v5165_v13 = vld [vmem:[#allocation8_spill] sm:$0xff]  ;;  %vm1491_vm8 = vmor %vm1489_vm7, %vm1490_vm6  ;;  %v1230_v17 = vmax.f32 %v1198_v51, 0.0  ;;  %v1054_v16 = vadd.f32 %v1053_v5, %v903_v33  ;;  %v770_v35 = vadd.f32 %v3800_v20, %v3797_v11  ;;  %v622_v33 = vpop.f32.mrf.mxu3  ;;  %vm1499_vm10 = vweird.f32 %v3771_v28 }
 0x178   :  { %2162 = vst [vmem:[%s5003_s5 + $0xd8] sm:$0xff] %v2034_v10  ;;  %v1284_v21 = vsub.f32 %v5165_v13, %v3648_v59  ;;  %v699_v10 = vpop.xlane.xlu1 %698  ;;  %v3824_v32 = vpop.eup %2411  ;;  %v1492_v37 = vsel %vm1491_vm8, %v3755_v45, %v1488_v8  ;;  %v3832_v59 = vadd.f32 %v509_v24, %v2715_v56  ;;  %768 = vadd.xlane.f32.xlu0 %v767_v26 }
 0x179   :  { %v1761_v34 = vmul.f32 %v1492_v37, %v1281_v61  ;;  %v1762_v63 = vmul.f32 %v1492_v37, %v1282_v41  ;;  %v1763_v15 = vmul.f32 %v1492_v37, %v1283_v58  ;;  %v1494_v60 = vmul.f32 %v3824_v32, %v3771_v28  ;;  %v987_v8 = vpop.xlane.xlu0 %986 }
 0x17a   :  { %5166 = vst [vmem:[#allocation5_spill] sm:$0xff] %v3832_v59  ;;  %v1764_v51 = vmul.f32 %v1492_v37, %v1284_v21  ;;  %v3836_v5 = vadd.f32 1e-05, %v1230_v17  ;;  %v1055_v45 = vadd.f32 %v1054_v16, %v904_v3  ;;  %v3838_v2 = vmul.f32 0.001953125, %v699_v10  ;;  %v286_v17 = vpop.f32.mrf.mxu0 }
 0x17b   :  { %v1898_v13 = vmul.f32 %v3264_v14, %v1761_v34  ;;  %v1899_v24 = vmul.f32 %v3266_v40, %v1762_v63  ;;  %v1900_v61 = vmul.f32 %v3270_v47, %v1763_v15  ;;  %v1495_v58 = vmul.f32 %v3824_v32, %v1494_v60  ;;  %v399_v34 = vpop.f32.mrf.mxu1  ;;  %v5168_v15 = vld [vmem:[#allocation9_spill] sm:$0xff] }
 0x17c   :  { %v1901_v41 = vmul.f32 %v3272_v44, %v1764_v51  ;;  %2413 = vrsqrt.f32 %v3836_v5  ;;  %v906_v21 = vmul.f32 %v3800_v20, %v3800_v20  ;;  %1056 = vadd.xlane.f32.xlu2 %v1055_v45  ;;  %v3849_v3 = vadd.f32 %v622_v33, %v2717_v57 }
 0x17d   :  { %v2035_v26 = vadd.f32 %v3274_v30, %v1898_v13  ;;  %v2036_v16 = vadd.f32 %v3288_v53, %v1899_v24  ;;  %v2037_v10 = vadd.f32 %v3290_v52, %v1900_v61  ;;  %v1135_v37 = vmul.f32 0.001953125, %v987_v8 }
 0x17e   :  { %5167 = vst [vmem:[#allocation6_spill] sm:$0xff] %v3849_v3  ;;  %v2038_v63 = vadd.f32 %v3309_v12, %v1901_v41  ;;  %v1285_v51 = vsub.f32 %v5168_v15, %v3717_v9  ;;  %v1496_v60 = vmul.f32 0.5, %v1495_v58  ;;  %v907_v45 = vmul.f32 %v3832_v59, %v3832_v59  ;;  %v512_v41 = vpop.f32.mrf.mxu2  ;;  %v5172_v15 = vld [vmem:[#allocation11_spill] sm:$0xff] }
 0x17f   :  { %2163 = vst [vmem:[%s5003_s5 + $0xe0] sm:$0xff] %v2035_v26  ;;  %vm1500_vm9 = vweird.f32 %v3824_v32  ;;  %v1167_v33 = vmul.f32 %v3838_v2, %v3838_v2  ;;  %v3866_v8 = vadd.f32 %v286_v17, %v2700_v49  ;;  %v771_v13 = vadd.f32 %v770_v35, %v3832_v59  ;;  %v5171_v17 = vld [vmem:[#allocation10_spill] sm:$0xff] }
 0x180   :  { %2164 = vst [vmem:[%s5003_s5 + $0xe8] sm:$0xff] %v2036_v16  ;;  %v1497_v24 = vsub.f32 1.5, %v1496_v60  ;;  %v3873_v61 = vadd.f32 %v399_v34, %v2702_v50  ;;  %v908_v58 = vmul.f32 %v3849_v3, %v3849_v3  ;;  %v1058_v26 = vadd.f32 %v906_v21, %v905_v23  ;;  %v5173_v16 = vld [vmem:[#allocation12_spill] sm:$0xff]  ;;  %vm1501_vm11 = vmor %vm1499_vm10, %vm1500_vm9 }
 0x181   :  { %5169 = vst [vmem:[#allocation7_spill] sm:$0xff] %v3866_v8  ;;  %v1286_v35 = vsub.f32 %v5171_v17, %v3717_v9  ;;  %v1287_v59 = vsub.f32 %v5172_v15, %v3717_v9  ;;  %v1288_v60 = vsub.f32 %v5173_v16, %v3717_v9  ;;  %v1199_v34 = vsub.f32 %v1135_v37, %v1167_v33  ;;  %v5174_v17 = vld [vmem:[#allocation13_spill] sm:$0xff] }
 0x182   :  { %5170 = vst [vmem:[#allocation8_spill] sm:$0xff] %v3873_v61  ;;  %v3886_v20 = vpop.eup %2413  ;;  %v1498_v23 = vmul.f32 %v3824_v32, %v1497_v24  ;;  %v772_v21 = vadd.f32 %v771_v13, %v3849_v3  ;;  %v3901_v15 = vadd.f32 %v512_v41, %v2715_v56  ;;  %v909_v28 = vmul.f32 %v3866_v8, %v3866_v8 }
 0x183   :  { %2165 = vst [vmem:[%s5003_s5 + $0xf0] sm:$0xff] %v2037_v10  ;;  %v1059_v10 = vadd.f32 %v1058_v26, %v907_v45  ;;  %v1504_v37 = vmul.f32 %v3886_v20, %v3836_v5  ;;  %v1231_v33 = vmax.f32 %v1199_v34, 0.0  ;;  %v775_v45 = vadd.f32 %v3873_v61, %v3866_v8  ;;  %v625_v26 = vpop.f32.mrf.mxu3  ;;  %v992_v34 = vpop.xlane.xlu1 %991 }
 0x184   :  { %2166 = vst [vmem:[%s5003_s5 + $0xf8] sm:$0xff] %v2038_v63  ;;  %v704_v63 = vpop.xlane.xlu2 %703  ;;  %v1502_v24 = vsel %vm1501_vm11, %v3824_v32, %v1498_v23  ;;  %773 = vadd.xlane.f32.xlu1 %v772_v21  ;;  %v910_v32 = vmul.f32 %v3873_v61, %v3873_v61  ;;  %v1136_v21 = vmul.f32 0.001953125, %v992_v34  ;;  %vm1510_vm12 = vweird.f32 %v3886_v20 }
 0x185   :  { %5175 = vst [vmem:[#allocation9_spill] sm:$0xff] %v3901_v15  ;;  %v1060_v13 = vadd.f32 %v1059_v10, %v908_v58  ;;  %v1765_v16 = vmul.f32 %v1502_v24, %v1285_v51  ;;  %v1766_v9 = vmul.f32 %v1502_v24, %v1286_v35  ;;  %v1767_v3 = vmul.f32 %v1502_v24, %v1287_v59  ;;  %v289_v10 = vpop.f32.mrf.mxu0 }
 0x186   :  { %v1768_v11 = vmul.f32 %v1502_v24, %v1288_v60  ;;  %v1505_v41 = vmul.f32 %v3886_v20, %v1504_v37  ;;  %v3909_v4 = vadd.f32 1e-05, %v1231_v33  ;;  %v3913_v23 = vmul.f32 0.001953125, %v704_v63 }
 0x187   :  { %1061 = vadd.xlane.f32.xlu0 %v1060_v13  ;;  %v1902_v8 = vmul.f32 %v3264_v14, %v1765_v16  ;;  %v1903_v58 = vmul.f32 %v3266_v40, %v1766_v9  ;;  %v1904_v51 = vmul.f32 %v3270_v47, %v1767_v3  ;;  %v3921_v60 = vadd.f32 %v625_v26, %v2717_v57  ;;  %v402_v3 = vpop.f32.mrf.mxu1 }
 0x188   :  { %v1905_v59 = vmul.f32 %v3272_v44, %v1768_v11  ;;  %v1506_v35 = vmul.f32 0.5, %v1505_v41  ;;  %2415 = vrsqrt.f32 %v3909_v4  ;;  %v911_v9 = vmul.f32 %v3901_v15, %v3901_v15  ;;  %v515_v41 = vpop.f32.mrf.mxu2 }
 0x189   :  { %5176 = vst [vmem:[#allocation10_spill] sm:$0xff] %v3921_v60  ;;  %v2039_v37 = vadd.f32 %v3274_v30, %v1902_v8  ;;  %v2040_v33 = vadd.f32 %v3288_v53, %v1903_v58  ;;  %v2041_v63 = vadd.f32 %v3290_v52, %v1904_v51  ;;  %v1168_v13 = vmul.f32 %v3913_v23, %v3913_v23  ;;  %v5177_v8 = vld [vmem:[#allocation14_spill] sm:$0xff] }
 0x18a   :  { %v2042_v11 = vadd.f32 %v3309_v12, %v1905_v59  ;;  %v1507_v24 = vsub.f32 1.5, %v1506_v35  ;;  %v1290_v26 = vsub.f32 %v5177_v8, %v3764_v38  ;;  %vm1509_vm13 = vweird.f32 %v3836_v5  ;;  %v5179_v5 = vld [vmem:[#allocation15_spill] sm:$0xff] }
 0x18b   :  { %2167 = vst [vmem:[%s5003_s5 + $0x100] sm:$0xff] %v2039_v37  ;;  %v3939_v16 = vadd.f32 %v289_v10, %v2700_v49  ;;  %v776_v34 = vadd.f32 %v775_v45, %v3901_v15  ;;  %v1200_v51 = vsub.f32 %v1136_v21, %v1168_v13  ;;  %v912_v59 = vmul.f32 %v3921_v60, %v3921_v60  ;;  %v5180_v45 = vld [vmem:[#allocation16_spill] sm:$0xff]  ;;  %vm1511_vm14 = vmor %vm1509_vm13, %vm1510_vm12  ;;  %v628_v8 = vpop.f32.mrf.mxu3  ;;  %v709_v15 = vpop.xlane.xlu0 %708 }
 0x18c   :  { %2168 = vst [vmem:[%s5003_s5 + $0x108] sm:$0xff] %v2040_v33  ;;  %v1508_v58 = vmul.f32 %v3886_v20, %v1507_v24  ;;  %v1063_v35 = vadd.f32 %v910_v32, %v909_v28  ;;  %v1291_v10 = vsub.f32 %v5179_v5, %v3764_v38  ;;  %v1292_v37 = vsub.f32 %v5180_v45, %v3764_v38 }
 0x18d   :  { %5178 = vst [vmem:[#allocation11_spill] sm:$0xff] %v3939_v16  ;;  %v3958_v33 = vadd.f32 %v402_v3, %v2702_v50  ;;  %v777_v21 = vadd.f32 %v776_v34, %v3921_v60  ;;  %v1232_v32 = vmax.f32 %v1200_v51, 0.0  ;;  %v5183_v3 = vsub.f32 %v5174_v17, %v3764_v38 }
 0x18e   :  { %2169 = vst [vmem:[%s5003_s5 + $0x110] sm:$0xff] %v2041_v63  ;;  %v3961_v24 = vpop.eup %2415  ;;  %v1512_v28 = vsel %vm1511_vm14, %v3886_v20, %v1508_v58  ;;  %v3968_v63 = vadd.f32 %v515_v41, %v2715_v56  ;;  %v1064_v13 = vadd.f32 %v1063_v35, %v911_v9  ;;  %v913_v20 = vmul.f32 %v3939_v16, %v3939_v16 }
 0x18f   :  { %5181 = vst [vmem:[#allocation12_spill] sm:$0xff] %v3958_v33  ;;  %v1769_v5 = vmul.f32 %v1512_v28, %v5183_v3  ;;  %v1770_v45 = vmul.f32 %v1512_v28, %v1290_v26  ;;  %v1771_v34 = vmul.f32 %v1512_v28, %v1291_v10  ;;  %v1772_v60 = vmul.f32 %v1512_v28, %v1292_v37  ;;  %v997_v10 = vpop.xlane.xlu2 %996  ;;  %v292_v28 = vpop.f32.mrf.mxu0  ;;  %v5184_v3 = vld [vmem:[#allocation17_spill] sm:$0xff] }
 0x190   :  { %2170 = vst [vmem:[%s5003_s5 + $0x118] sm:$0xff] %v2042_v11  ;;  %778 = vadd.xlane.f32.xlu2 %v777_v21  ;;  %v1514_v11 = vmul.f32 %v3961_v24, %v3909_v4  ;;  %v3975_v61 = vadd.f32 1e-05, %v1232_v32  ;;  %v1065_v41 = vadd.f32 %v1064_v13, %v912_v59  ;;  %v780_v51 = vadd.f32 %v3958_v33, %v3939_v16  ;;  %v405_v32 = vpop.f32.mrf.mxu1 }
 0x191   :  { %5182 = vst [vmem:[#allocation13_spill] sm:$0xff] %v3968_v63  ;;  %v1906_v9 = vmul.f32 %v3264_v14, %v1769_v5  ;;  %v1907_v58 = vmul.f32 %v3266_v40, %v1770_v45  ;;  %v1908_v38 = vmul.f32 %v3270_v47, %v1771_v34  ;;  %v1909_v17 = vmul.f32 %v3272_v44, %v1772_v60 }
 0x192   :  { %v1515_v26 = vmul.f32 %v3961_v24, %v1514_v11  ;;  %2417 = vrsqrt.f32 %v3975_v61  ;;  %1066 = vadd.xlane.f32.xlu1 %v1065_v41  ;;  %v3987_v35 = vmul.f32 0.001953125, %v709_v15  ;;  %v914_v60 = vmul.f32 %v3958_v33, %v3958_v33 }
 0x193   :  { %v2043_v59 = vadd.f32 %v3274_v30, %v1906_v9  ;;  %v2044_v37 = vadd.f32 %v3288_v53, %v1907_v58  ;;  %v2045_v21 = vadd.f32 %v3290_v52, %v1908_v38  ;;  %v2046_v13 = vadd.f32 %v3309_v12, %v1909_v17  ;;  %v518_v17 = vpop.f32.mrf.mxu2 }
 0x194   :  { %v1293_v5 = vsub.f32 %v5184_v3, %v3838_v2  ;;  %v1516_v45 = vmul.f32 0.5, %v1515_v26  ;;  %v3998_v15 = vadd.f32 %v628_v8, %v2717_v57  ;;  %vm1520_vm15 = vweird.f32 %v3961_v24  ;;  %v5188_v26 = vld [vmem:[#allocation18_spill] sm:$0xff] }
 0x195   :  { %2171 = vst [vmem:[%s5003_s5 + $0x120] sm:$0xff] %v2043_v59  ;;  %v915_v34 = vmul.f32 %v3968_v63, %v3968_v63  ;;  %v1137_v11 = vmul.f32 0.001953125, %v997_v10  ;;  %v1169_v41 = vmul.f32 %v3987_v35, %v3987_v35  ;;  %v4012_v8 = vadd.f32 %v292_v28, %v2700_v49  ;;  %v5189_v59 = vld [vmem:[#allocation19_spill] sm:$0xff] }
 0x196   :  { %5185 = vst [vmem:[#allocation14_spill] sm:$0xff] %v3998_v15  ;;  %v1517_v9 = vsub.f32 1.5, %v1516_v45  ;;  %v4015_v58 = vadd.f32 %v405_v32, %v2702_v50  ;;  %v781_v38 = vadd.f32 %v780_v51, %v3968_v63  ;;  %v1294_v10 = vsub.f32 %v5188_v26, %v3838_v2  ;;  %v631_v26 = vpop.f32.mrf.mxu3 }
 0x197   :  { %2172 = vst [vmem:[%s5003_s5 + $0x128] sm:$0xff] %v2044_v37  ;;  %v1295_v37 = vsub.f32 %v5189_v59, %v3838_v2  ;;  %v1201_v3 = vsub.f32 %v1137_v11, %v1169_v41  ;;  %v1068_v45 = vadd.f32 %v914_v60, %v913_v20  ;;  %vm1519_vm0 = vweird.f32 %v3909_v4  ;;  %v5190_v59 = vld [vmem:[#allocation20_spill] sm:$0xff]  ;;  %v714_v4 = vpop.xlane.xlu1 %713 }
 0x198   :  { %5186 = vst [vmem:[#allocation15_spill] sm:$0xff] %v4012_v8  ;;  %v4025_v28 = vpop.eup %2417  ;;  %v1518_v51 = vmul.f32 %v3961_v24, %v1517_v9  ;;  %v916_v32 = vmul.f32 %v3998_v15, %v3998_v15  ;;  %v1296_v11 = vsub.f32 %v5190_v59, %v3838_v2  ;;  %vm1521_vm1 = vmor %vm1519_vm0, %vm1520_vm15  ;;  %v917_v9 = vmul.f32 %v4012_v8, %v4012_v8 }
 0x199   :  { %5187 = vst [vmem:[#allocation16_spill] sm:$0xff] %v4015_v58  ;;  %v1524_v20 = vmul.f32 %v4025_v28, %v3975_v61  ;;  %v1233_v60 = vmax.f32 %v1201_v3, 0.0  ;;  %v1069_v2 = vadd.f32 %v1068_v45, %v915_v34  ;;  %v4052_v25 = vmul.f32 0.001953125, %v714_v4  ;;  %v5193_v4 = vld [vmem:[#allocation21_spill] sm:$0xff] }
 0x19a   :  { %2173 = vst [vmem:[%s5003_s5 + $0x130] sm:$0xff] %v2045_v21  ;;  %v782_v21 = vadd.f32 %v781_v38, %v3998_v15  ;;  %v1522_v41 = vsel %vm1521_vm1, %v3961_v24, %v1518_v51  ;;  %v785_v38 = vadd.f32 %v4015_v58, %v4012_v8  ;;  %vm1530_vm2 = vweird.f32 %v4025_v28 }
 0x19b   :  { %2174 = vst [vmem:[%s5003_s5 + $0x138] sm:$0xff] %v2046_v13  ;;  %v4042_v13 = vadd.f32 %v518_v17, %v2715_v56  ;;  %v1773_v59 = vmul.f32 %v1522_v41, %v1293_v5  ;;  %v1774_v15 = vmul.f32 %v1522_v41, %v1294_v10  ;;  %v1775_v63 = vmul.f32 %v1522_v41, %v1295_v37  ;;  %v1002_v37 = vpop.xlane.xlu0 %1001 }
 0x19c   :  { %783 = vadd.xlane.f32.xlu0 %v782_v21  ;;  %v1776_v33 = vmul.f32 %v1522_v41, %v1296_v11  ;;  %v1525_v3 = vmul.f32 %v4025_v28, %v1524_v20  ;;  %v4050_v16 = vadd.f32 1e-05, %v1233_v60  ;;  %v1070_v17 = vadd.f32 %v1069_v2, %v916_v32  ;;  %v408_v60 = vpop.f32.mrf.mxu1  ;;  %v5194_v41 = vld [vmem:[#allocation22_spill] sm:$0xff] }
 0x19d   :  { %5191 = vst [vmem:[#allocation17_spill] sm:$0xff] %v4042_v13  ;;  %v1910_v24 = vmul.f32 %v3264_v14, %v1773_v59  ;;  %v1911_v51 = vmul.f32 %v3266_v40, %v1774_v15  ;;  %v1912_v36 = vmul.f32 %v3270_v47, %v1775_v63  ;;  %v918_v5 = vmul.f32 %v4015_v58, %v4015_v58 }
 0x19e   :  { %v1913_v21 = vmul.f32 %v3272_v44, %v1776_v33  ;;  %v1526_v34 = vmul.f32 0.5, %v1525_v3  ;;  %2419 = vrsqrt.f32 %v4050_v16  ;;  %1071 = vadd.xlane.f32.xlu2 %v1070_v17  ;;  %v4062_v10 = vadd.f32 %v631_v26, %v2717_v57  ;;  %v295_v33 = vpop.f32.mrf.mxu0 }
 0x19f   :  { %v2047_v45 = vadd.f32 %v3274_v30, %v1910_v24  ;;  %v2048_v32 = vadd.f32 %v3288_v53, %v1911_v51  ;;  %v2049_v15 = vadd.f32 %v3290_v52, %v1912_v36  ;;  %v919_v20 = vmul.f32 %v4042_v13, %v4042_v13  ;;  %v521_v24 = vpop.f32.mrf.mxu2 }
 0x1a0   :  { %5192 = vst [vmem:[#allocation18_spill] sm:$0xff] %v4062_v10  ;;  %v2050_v63 = vadd.f32 %v3309_v12, %v1913_v21  ;;  %v1527_v11 = vsub.f32 1.5, %v1526_v34  ;;  %v1170_v26 = vmul.f32 %v4052_v25, %v4052_v25  ;;  %v1297_v36 = vsub.f32 %v5193_v4, %v3913_v23  ;;  %v634_v34 = vpop.f32.mrf.mxu3 }
 0x1a1   :  { %2175 = vst [vmem:[%s5003_s5 + $0x140] sm:$0xff] %v2047_v45  ;;  %v1298_v2 = vsub.f32 %v5194_v41, %v3913_v23  ;;  %v1138_v59 = vmul.f32 0.001953125, %v1002_v37  ;;  %v786_v3 = vadd.f32 %v785_v38, %v4042_v13  ;;  %vm1529_vm3 = vweird.f32 %v3975_v61  ;;  %v5195_v38 = vld [vmem:[#allocation23_spill] sm:$0xff]  ;;  %v5196_v45 = vld [vmem:[#allocation24_spill] sm:$0xff] }
 0x1a2   :  { %2176 = vst [vmem:[%s5003_s5 + $0x148] sm:$0xff] %v2048_v32  ;;  %v1528_v17 = vmul.f32 %v4025_v28, %v1527_v11  ;;  %v920_v51 = vmul.f32 %v4062_v10, %v4062_v10  ;;  %v1073_v21 = vadd.f32 %v918_v5, %v917_v9  ;;  %v1299_v37 = vsub.f32 %v5195_v38, %v3913_v23  ;;  %vm1531_vm4 = vmor %vm1529_vm3, %vm1530_vm2 }
 0x1a3   :  { %2177 = vst [vmem:[%s5003_s5 + $0x150] sm:$0xff] %v2049_v15  ;;  %v1300_v32 = vsub.f32 %v5196_v45, %v3913_v23  ;;  %v1202_v61 = vsub.f32 %v1138_v59, %v1170_v26  ;;  %v4098_v11 = vadd.f32 %v295_v33, %v2700_v49  ;;  %v4107_v5 = vadd.f32 %v408_v60, %v2702_v50  ;;  %v719_v33 = vpop.xlane.xlu2 %718 }
 0x1a4   :  { %v4100_v4 = vpop.eup %2419  ;;  %2178 = vst [vmem:[%s5003_s5 + $0x158] sm:$0xff] %v2050_v63  ;;  %v1532_v9 = vsel %vm1531_vm4, %v4025_v28, %v1528_v17  ;;  %v787_v23 = vadd.f32 %v786_v3, %v4062_v10  ;;  %v1074_v15 = vadd.f32 %v1073_v21, %v919_v20  ;;  %v4122_v17 = vmul.f32 0.001953125, %v719_v33  ;;  %v1007_v21 = vpop.xlane.xlu1 %1006 }
 0x1a5   :  { %5197 = vst [vmem:[#allocation19_spill] sm:$0xff] %v4107_v5  ;;  %v1777_v41 = vmul.f32 %v1532_v9, %v1297_v36  ;;  %v1778_v38 = vmul.f32 %v1532_v9, %v1298_v2  ;;  %v1779_v26 = vmul.f32 %v1532_v9, %v1299_v37  ;;  %v1780_v59 = vmul.f32 %v1532_v9, %v1300_v32 }
 0x1a6   :  { %v1534_v45 = vmul.f32 %v4100_v4, %v4050_v16  ;;  %v1234_v13 = vmax.f32 %v1202_v61, 0.0  ;;  %788 = vadd.xlane.f32.xlu1 %v787_v23  ;;  %v1075_v58 = vadd.f32 %v1074_v15, %v920_v51  ;;  %v4120_v2 = vadd.f32 %v521_v24, %v2715_v56  ;;  %v298_v9 = vpop.f32.mrf.mxu0  ;;  %v5199_v23 = vld [vmem:[#allocation25_spill] sm:$0xff] }
 0x1a7   :  { %v1914_v63 = vmul.f32 %v3264_v14, %v1777_v41  ;;  %v1915_v28 = vmul.f32 %v3266_v40, %v1778_v38  ;;  %v1916_v60 = vmul.f32 %v3270_v47, %v1779_v26  ;;  %v1917_v3 = vmul.f32 %v3272_v44, %v1780_v59  ;;  %v5200_v41 = vld [vmem:[#allocation26_spill] sm:$0xff]  ;;  %v5201_v26 = vld [vmem:[#allocation27_spill] sm:$0xff] }
 0x1a8   :  { %v1535_v20 = vmul.f32 %v4100_v4, %v1534_v45  ;;  %v4117_v36 = vadd.f32 1e-05, %v1234_v13  ;;  %5198 = vst [vmem:[#allocation20_spill] sm:$0xff] %v4120_v2  ;;  %1076 = vadd.xlane.f32.xlu0 %v1075_v58  ;;  %v790_v61 = vadd.f32 %v4107_v5, %v4098_v11  ;;  %v1301_v24 = vsub.f32 %v5199_v23, %v3987_v35  ;;  %v411_v58 = vpop.f32.mrf.mxu1 }
 0x1a9   :  { %v2051_v51 = vadd.f32 %v3274_v30, %v1914_v63  ;;  %v2052_v37 = vadd.f32 %v3288_v53, %v1915_v28  ;;  %v2053_v32 = vadd.f32 %v3290_v52, %v1916_v60  ;;  %v2054_v13 = vadd.f32 %v3309_v12, %v1917_v3  ;;  %v524_v3 = vpop.f32.mrf.mxu2 }
 0x1aa   :  { %v1536_v15 = vmul.f32 0.5, %v1535_v20  ;;  %2421 = vrsqrt.f32 %v4117_v36  ;;  %v1302_v38 = vsub.f32 %v5200_v41, %v3987_v35  ;;  %v1303_v59 = vsub.f32 %v5201_v26, %v3987_v35  ;;  %v637_v20 = vpop.f32.mrf.mxu3  ;;  %v5205_v41 = vld [vmem:[#allocation30_spill] sm:$0xff] }
 0x1ab   :  { %2179 = vst [vmem:[%s5003_s5 + $0x160] sm:$0xff] %v2051_v51  ;;  %v4141_v33 = vadd.f32 %v634_v34, %v2717_v57  ;;  %v1139_v45 = vmul.f32 0.001953125, %v1007_v21  ;;  %vm1540_vm5 = vweird.f32 %v4100_v4  ;;  %v1171_v28 = vmul.f32 %v4122_v17, %v4122_v17  ;;  %v5203_v34 = vld [vmem:[#allocation28_spill] sm:$0xff]  ;;  %v5204_v51 = vld [vmem:[#allocation29_spill] sm:$0xff] }
 0x1ac   :  { %2180 = vst [vmem:[%s5003_s5 + $0x168] sm:$0xff] %v2052_v37  ;;  %v1537_v63 = vsub.f32 1.5, %v1536_v15  ;;  %v4150_v60 = vadd.f32 %v298_v9, %v2700_v49  ;;  %v1304_v21 = vsub.f32 %v5203_v34, %v3987_v35  ;;  %vm1539_vm6 = vweird.f32 %v4050_v16  ;;  %v724_v15 = vpop.xlane.xlu0 %723  ;;  %v5207_v16 = vld [vmem:[#allocation31_spill] sm:$0xff] }
 0x1ad   :  { %2181 = vst [vmem:[%s5003_s5 + $0x170] sm:$0xff] %v2053_v32  ;;  %v791_v23 = vadd.f32 %v790_v61, %v4120_v2  ;;  %v1203_v26 = vsub.f32 %v1139_v45, %v1171_v28  ;;  %v4168_v35 = vadd.f32 %v411_v58, %v2702_v50  ;;  %vm1541_vm7 = vmor %vm1539_vm6, %vm1540_vm5  ;;  %v4176_v37 = vadd.f32 %v524_v3, %v2715_v56  ;;  %v1012_v3 = vpop.xlane.xlu2 %1011 }
 0x1ae   :  { %5202 = vst [vmem:[#allocation21_spill] sm:$0xff] %v4150_v60  ;;  %v1538_v9 = vmul.f32 %v4100_v4, %v1537_v63  ;;  %v925_v28 = vmul.f32 %v4150_v60, %v4150_v60  ;;  %v4186_v32 = vmul.f32 0.001953125, %v724_v15  ;;  %vm1549_vm9 = vweird.f32 %v4117_v36 }
 0x1af   :  { %2182 = vst [vmem:[%s5003_s5 + $0x178] sm:$0xff] %v2054_v13  ;;  %v792_v34 = vadd.f32 %v791_v23, %v4141_v33  ;;  %v4179_v13 = vadd.f32 %v637_v20, %v2717_v57  ;;  %v1235_v58 = vmax.f32 %v1203_v26, 0.0  ;;  %v5208_v26 = vld [vmem:[#allocation32_spill] sm:$0xff] }
 0x1b0   :  { %5206 = vst [vmem:[#allocation22_spill] sm:$0xff] %v4168_v35  ;;  %v4181_v63 = vpop.eup %2421  ;;  %v1542_v45 = vsel %vm1541_vm7, %v4100_v4, %v1538_v9  ;;  %v795_v4 = vadd.f32 %v4168_v35, %v4150_v60  ;;  %v926_v9 = vmul.f32 %v4168_v35, %v4168_v35  ;;  %v414_v60 = vpop.f32.mrf.mxu1 }
 0x1b1   :  { %v1781_v10 = vmul.f32 %v1542_v45, %v1301_v24  ;;  %v1782_v61 = vmul.f32 %v1542_v45, %v1302_v38  ;;  %v1783_v8 = vmul.f32 %v1542_v45, %v1303_v59  ;;  %v1784_v23 = vmul.f32 %v1542_v45, %v1304_v21  ;;  %793 = vadd.xlane.f32.xlu2 %v792_v34  ;;  %v301_v21 = vpop.f32.mrf.mxu0 }
 0x1b2   :  { %v1544_v20 = vmul.f32 %v4181_v63, %v4117_v36  ;;  %v4190_v48 = vadd.f32 1e-05, %v1235_v58  ;;  %v1308_v34 = vsub.f32 %v5208_v26, %v4052_v25  ;;  %v1140_v58 = vmul.f32 0.001953125, %v1012_v3 }
 0x1b3   :  { %v1918_v15 = vmul.f32 %v3264_v14, %v1781_v10  ;;  %v1919_v24 = vmul.f32 %v3266_v40, %v1782_v61  ;;  %v1920_v38 = vmul.f32 %v3270_v47, %v1783_v8  ;;  %v1921_v59 = vmul.f32 %v3272_v44, %v1784_v23 }
 0x1b4   :  { %v1545_v45 = vmul.f32 %v4181_v63, %v1544_v20  ;;  %2423 = vrsqrt.f32 %v4190_v48  ;;  %v927_v8 = vmul.f32 %v4176_v37, %v4176_v37  ;;  %v1172_v26 = vmul.f32 %v4186_v32, %v4186_v32  ;;  %v1017_v36 = vpop.xlane.xlu0 %1016 }
 0x1b5   :  { %v2055_v35 = vadd.f32 %v3274_v30, %v1918_v15  ;;  %v2056_v10 = vadd.f32 %v3288_v53, %v1919_v24  ;;  %v2057_v61 = vadd.f32 %v3290_v52, %v1920_v38  ;;  %v2058_v23 = vadd.f32 %v3309_v12, %v1921_v59  ;;  %v527_v24 = vpop.f32.mrf.mxu2 }
 0x1b6   :  { %v1546_v62 = vmul.f32 0.5, %v1545_v45  ;;  %v4213_v20 = vadd.f32 %v301_v21, %v2700_v49  ;;  %v4219_v3 = vadd.f32 %v414_v60, %v2702_v50  ;;  %v796_v15 = vadd.f32 %v795_v4, %v4176_v37 }
 0x1b7   :  { %2183 = vst [vmem:[%s5003_s5 + $0x180] sm:$0xff] %v2055_v35  ;;  %v928_v38 = vmul.f32 %v4179_v13, %v4179_v13  ;;  %v1083_v59 = vadd.f32 %v926_v9, %v925_v28  ;;  %vm1550_vm8 = vweird.f32 %v4181_v63  ;;  %v4230_v35 = vmul.f32 %v4098_v11, %v4098_v11  ;;  %v729_v9 = vpop.xlane.xlu1 %728 }
 0x1b8   :  { %2184 = vst [vmem:[%s5003_s5 + $0x188] sm:$0xff] %v2056_v10  ;;  %v1547_v49 = vsub.f32 1.5, %v1546_v62  ;;  %v1204_v50 = vsub.f32 %v1140_v58, %v1172_v26  ;;  %v4237_v60 = vmul.f32 %v4107_v5, %v4107_v5  ;;  %v4241_v28 = vmul.f32 %v4120_v2, %v4120_v2  ;;  %vm1551_vm10 = vmor %vm1549_vm9, %vm1550_vm8 }
 0x1b9   :  { %2185 = vst [vmem:[%s5003_s5 + $0x190] sm:$0xff] %v2057_v61  ;;  %v797_v62 = vadd.f32 %v796_v15, %v4179_v13  ;;  %v1084_v4 = vadd.f32 %v1083_v59, %v927_v8  ;;  %v4252_v10 = vadd.f32 %v527_v24, %v2715_v56  ;;  %v929_v8 = vmul.f32 %v4213_v20, %v4213_v20  ;;  %v640_v15 = vpop.f32.mrf.mxu3 }
 0x1ba   :  { %v4244_v21 = vpop.eup %2423  ;;  %2186 = vst [vmem:[%s5003_s5 + $0x198] sm:$0xff] %v2058_v23  ;;  %v1548_v45 = vmul.f32 %v4181_v63, %v1547_v49  ;;  %v1236_v58 = vmax.f32 %v1204_v50, 0.0  ;;  %v800_v23 = vadd.f32 %v4219_v3, %v4213_v20  ;;  %v930_v24 = vmul.f32 %v4219_v3, %v4219_v3 }
 0x1bb   :  { %v1554_v61 = vmul.f32 %v4244_v21, %v4190_v48  ;;  %798 = vadd.xlane.f32.xlu0 %v797_v62  ;;  %v1085_v26 = vadd.f32 %v1084_v4, %v928_v38  ;;  %v4267_v49 = vmul.f32 0.001953125, %v729_v9  ;;  %v5209_v50 = vsub.f32 %v5204_v51, %v4052_v25 }
 0x1bc   :  { %v1552_v59 = vsel %vm1551_vm10, %v4181_v63, %v1548_v45  ;;  %v4263_v56 = vadd.f32 1e-05, %v1236_v58  ;;  %v5210_v5 = vsub.f32 %v5205_v41, %v4052_v25  ;;  %v5211_v38 = vsub.f32 %v5207_v16, %v4052_v25 }
 0x1bd   :  { %v1785_v2 = vmul.f32 %v1552_v59, %v5209_v50  ;;  %v1788_v63 = vmul.f32 %v1552_v59, %v1308_v34  ;;  %1086 = vadd.xlane.f32.xlu2 %v1085_v26  ;;  %v1555_v45 = vmul.f32 %v4244_v21, %v1554_v61  ;;  %v4281_v9 = vadd.f32 %v640_v15, %v2717_v57 }
 0x1be   :  { %v1786_v62 = vmul.f32 %v1552_v59, %v5210_v5  ;;  %v1787_v4 = vmul.f32 %v1552_v59, %v5211_v38  ;;  %2425 = vrsqrt.f32 %v4263_v56  ;;  %v1141_v58 = vmul.f32 0.001953125, %v1017_v36  ;;  %v734_v38 = vpop.xlane.xlu2 %733 }
 0x1bf   :  { %v1922_v51 = vmul.f32 %v3264_v14, %v1785_v2  ;;  %v1925_v41 = vmul.f32 %v3272_v44, %v1788_v63  ;;  %v1556_v25 = vmul.f32 0.5, %v1555_v45  ;;  %v931_v16 = vmul.f32 %v4252_v10, %v4252_v10  ;;  %v5213_v63 = vld [vmem:[#allocation34_spill] sm:$0xff] }
 0x1c0   :  { %v1923_v50 = vmul.f32 %v3266_v40, %v1786_v62  ;;  %v1924_v5 = vmul.f32 %v3270_v47, %v1787_v4  ;;  %v1173_v34 = vmul.f32 %v4267_v49, %v4267_v49  ;;  %v801_v61 = vadd.f32 %v800_v23, %v4252_v10  ;;  %v5212_v23 = vld [vmem:[#allocation33_spill] sm:$0xff] }
 0x1c1   :  { %v2059_v57 = vadd.f32 %v3274_v30, %v1922_v51  ;;  %vm1560_vm11 = vweird.f32 %v4244_v21  ;;  %v2062_v15 = vadd.f32 %v3309_v12, %v1925_v41  ;;  %v1557_v36 = vsub.f32 1.5, %v1556_v25  ;;  %v5214_v51 = vld [vmem:[#allocation35_spill] sm:$0xff]  ;;  %v1022_v41 = vpop.xlane.xlu1 %1021 }
 0x1c2   :  { %v2060_v26 = vadd.f32 %v3288_v53, %v1923_v50  ;;  %v2061_v2 = vadd.f32 %v3290_v52, %v1924_v5  ;;  %v1205_v59 = vsub.f32 %v1141_v58, %v1173_v34  ;;  %v802_v62 = vadd.f32 %v801_v61, %v4281_v9 }
 0x1c3   :  { %2187 = vst [vmem:[%s5003_s5 + $0x1a0] sm:$0xff] %v2059_v57  ;;  %v1309_v4 = vsub.f32 %v5212_v23, %v4122_v17  ;;  %v1310_v45 = vsub.f32 %v5213_v63, %v4122_v17  ;;  %v1311_v50 = vsub.f32 %v5214_v51, %v4122_v17  ;;  %v1088_v5 = vadd.f32 %v930_v24, %v929_v8  ;;  %v5215_v8 = vld [vmem:[#allocation36_spill] sm:$0xff] }
 0x1c4   :  { %v4307_v25 = vpop.eup %2425  ;;  %2188 = vst [vmem:[%s5003_s5 + $0x1a8] sm:$0xff] %v2060_v26  ;;  %v1558_v58 = vmul.f32 %v4244_v21, %v1557_v36  ;;  %vm1559_vm12 = vweird.f32 %v4190_v48  ;;  %v1237_v34 = vmax.f32 %v1205_v59, 0.0  ;;  %803 = vadd.xlane.f32.xlu1 %v802_v62  ;;  %v932_v61 = vmul.f32 %v4281_v9, %v4281_v9 }
 0x1c5   :  { %2189 = vst [vmem:[%s5003_s5 + $0x1b0] sm:$0xff] %v2061_v2  ;;  %v1312_v24 = vsub.f32 %v5215_v8, %v4122_v17  ;;  %vm1561_vm13 = vmor %vm1559_vm12, %vm1560_vm11  ;;  %v1564_v57 = vmul.f32 %v4307_v25, %v4263_v56  ;;  %v1089_v26 = vadd.f32 %v1088_v5, %v931_v16  ;;  %v4325_v48 = vmul.f32 0.001953125, %v734_v38 }
 0x1c6   :  { %2190 = vst [vmem:[%s5003_s5 + $0x1b8] sm:$0xff] %v2062_v15  ;;  %v1562_v36 = vsel %vm1561_vm13, %v4244_v21, %v1558_v58  ;;  %v4331_v59 = vadd.f32 1e-05, %v1237_v34  ;;  %v1142_v2 = vmul.f32 0.001953125, %v1022_v41  ;;  %v1078_v17 = vadd.f32 %v4237_v60, %v4230_v35  ;;  %v739_v60 = vpop.xlane.xlu0 %738 }
 0x1c7   :  { %v1789_v62 = vmul.f32 %v1562_v36, %v1309_v4  ;;  %v1790_v23 = vmul.f32 %v1562_v36, %v1310_v45  ;;  %v1791_v63 = vmul.f32 %v1562_v36, %v1311_v50  ;;  %v1792_v51 = vmul.f32 %v1562_v36, %v1312_v24  ;;  %v1027_v24 = vpop.xlane.xlu2 %1026 }
 0x1c8   :  { %v1565_v16 = vmul.f32 %v4307_v25, %v1564_v57  ;;  %2427 = vrsqrt.f32 %v4331_v59  ;;  %v1090_v38 = vadd.f32 %v1089_v26, %v932_v61  ;;  %v924_v15 = vmul.f32 %v4141_v33, %v4141_v33 }
 0x1c9   :  { %v1926_v21 = vmul.f32 %v3264_v14, %v1789_v62  ;;  %v1927_v5 = vmul.f32 %v3266_v40, %v1790_v23  ;;  %v1928_v41 = vmul.f32 %v3270_v47, %v1791_v63  ;;  %v1929_v35 = vmul.f32 %v3272_v44, %v1792_v51 }
 0x1ca   :  { %v1566_v4 = vmul.f32 0.5, %v1565_v16  ;;  %vm1570_vm14 = vweird.f32 %v4307_v25  ;;  %1091 = vadd.xlane.f32.xlu0 %v1090_v38  ;;  %v1174_v45 = vmul.f32 %v4325_v48, %v4325_v48  ;;  %v1079_v50 = vadd.f32 %v1078_v17, %v4241_v28  ;;  %v5216_v28 = vld [vmem:[#allocation37_spill] sm:$0xff]  ;;  %v5217_v16 = vld [vmem:[#allocation38_spill] sm:$0xff] }
 0x1cb   :  { %v2063_v58 = vadd.f32 %v3274_v30, %v1926_v21  ;;  %v2064_v34 = vadd.f32 %v3288_v53, %v1927_v5  ;;  %v2065_v61 = vadd.f32 %v3290_v52, %v1928_v41  ;;  %v2066_v8 = vadd.f32 %v3309_v12, %v1929_v35  ;;  %v5219_v5 = vld [vmem:[#allocation40_spill] sm:$0xff]  ;;  %v744_v35 = vpop.xlane.xlu1 %743 }
 0x1cc   :  { %v1567_v57 = vsub.f32 1.5, %v1566_v4  ;;  %v1206_v26 = vsub.f32 %v1142_v2, %v1174_v45  ;;  %v1080_v36 = vadd.f32 %v1079_v50, %v924_v15  ;;  %v4351_v62 = vmul.f32 0.001953125, %v739_v60  ;;  %v5218_v15 = vld [vmem:[#allocation39_spill] sm:$0xff] }
 0x1cd   :  { %2191 = vst [vmem:[%s5003_s5 + $0x1c0] sm:$0xff] %v2063_v58  ;;  %v1313_v17 = vsub.f32 %v5216_v28, %v4186_v32  ;;  %vm1569_vm15 = vweird.f32 %v4263_v56  ;;  %v1143_v51 = vmul.f32 0.001953125, %v1027_v24  ;;  %v1314_v38 = vsub.f32 %v5217_v16, %v4186_v32 }
 0x1ce   :  { %v2428_v23 = vpop.eup %2427  ;;  %2192 = vst [vmem:[%s5003_s5 + $0x1c8] sm:$0xff] %v2064_v34  ;;  %v1568_v63 = vmul.f32 %v4307_v25, %v1567_v57  ;;  %v1238_v2 = vmax.f32 %v1206_v26, 0.0  ;;  %1081 = vadd.xlane.f32.xlu1 %v1080_v36  ;;  %v1315_v21 = vsub.f32 %v5218_v15, %v4186_v32  ;;  %v1316_v41 = vsub.f32 %v5219_v5, %v4186_v32  ;;  %vm1571_vm0 = vmor %vm1569_vm15, %vm1570_vm14  ;;  %v5220_v5 = vld [vmem:[#allocation41_spill] sm:$0xff] }
 0x1cf   :  { %2193 = vst [vmem:[%s5003_s5 + $0x1d0] sm:$0xff] %v2065_v61  ;;  %v1574_v56 = vmul.f32 %v2428_v23, %v4331_v59  ;;  %v1175_v45 = vmul.f32 %v4351_v62, %v4351_v62  ;;  %v4384_v57 = vmul.f32 0.001953125, %v744_v35  ;;  %vm1580_vm1 = vweird.f32 %v2428_v23 }
 0x1d0   :  { %2194 = vst [vmem:[%s5003_s5 + $0x1d8] sm:$0xff] %v2066_v8  ;;  %v1572_v60 = vsel %vm1571_vm0, %v4307_v25, %v1568_v63  ;;  %v4379_v4 = vadd.f32 1e-05, %v1238_v2  ;;  %vm1579_vm2 = vweird.f32 %v4331_v59 }
 0x1d1   :  { %v1793_v50 = vmul.f32 %v1572_v60, %v1313_v17  ;;  %v1794_v58 = vmul.f32 %v1572_v60, %v1314_v38  ;;  %v1795_v32 = vmul.f32 %v1572_v60, %v1315_v21  ;;  %v1796_v34 = vmul.f32 %v1572_v60, %v1316_v41  ;;  %v1032_v17 = vpop.xlane.xlu0 %1031  ;;  %v749_v60 = vpop.xlane.xlu2 %748  ;;  %vm1581_vm3 = vmor %vm1579_vm2, %vm1580_vm1 }
 0x1d2   :  { %v1575_v61 = vmul.f32 %v2428_v23, %v1574_v56  ;;  %2429 = vrsqrt.f32 %v4379_v4  ;;  %v1207_v24 = vsub.f32 %v1143_v51, %v1175_v45  ;;  %v1317_v41 = vsub.f32 %v5220_v5, %v4267_v49 }
 0x1d3   :  { %v1930_v26 = vmul.f32 %v3264_v14, %v1793_v50  ;;  %v1931_v8 = vmul.f32 %v3266_v40, %v1794_v58  ;;  %v1932_v25 = vmul.f32 %v3270_v47, %v1795_v32  ;;  %v1933_v36 = vmul.f32 %v3272_v44, %v1796_v34  ;;  %v5221_v50 = vld [vmem:[#allocation42_spill] sm:$0xff]  ;;  %v5222_v34 = vld [vmem:[#allocation43_spill] sm:$0xff] }
 0x1d4   :  { %v1576_v28 = vmul.f32 0.5, %v1575_v61  ;;  %v1239_v63 = vmax.f32 %v1207_v24, 0.0  ;;  %v1176_v56 = vmul.f32 %v4384_v57, %v4384_v57  ;;  %v1144_v35 = vmul.f32 0.001953125, %v1032_v17  ;;  %v5223_v24 = vld [vmem:[#allocation44_spill] sm:$0xff] }
 0x1d5   :  { %v2067_v2 = vadd.f32 %v3274_v30, %v1930_v26  ;;  %v2068_v16 = vadd.f32 %v3288_v53, %v1931_v8  ;;  %v2069_v38 = vadd.f32 %v3290_v52, %v1932_v25  ;;  %v2070_v51 = vadd.f32 %v3309_v12, %v1933_v36  ;;  %v1037_v36 = vpop.xlane.xlu1 %1036 }
 0x1d6   :  { %v1577_v15 = vsub.f32 1.5, %v1576_v28  ;;  %v4394_v21 = vadd.f32 1e-05, %v1239_v63  ;;  %v1318_v58 = vsub.f32 %v5221_v50, %v4267_v49  ;;  %v1319_v61 = vsub.f32 %v5222_v34, %v4267_v49 }
 0x1d7   :  { %2195 = vst [vmem:[%s5003_s5 + $0x1e0] sm:$0xff] %v2067_v2  ;;  %v1320_v26 = vsub.f32 %v5223_v24, %v4267_v49  ;;  %v1208_v25 = vsub.f32 %v1144_v35, %v1176_v56  ;;  %v4422_v28 = vmul.f32 0.001953125, %v749_v60  ;;  %v1145_v49 = vmul.f32 0.001953125, %v1037_v36 }
 0x1d8   :  { %v2430_v45 = vpop.eup %2429  ;;  %2196 = vst [vmem:[%s5003_s5 + $0x1e8] sm:$0xff] %v2068_v16  ;;  %v1578_v32 = vmul.f32 %v2428_v23, %v1577_v15  ;;  %2431 = vrsqrt.f32 %v4394_v21  ;;  %vm1589_vm5 = vweird.f32 %v4379_v4  ;;  %vm1599_vm8 = vweird.f32 %v4394_v21 }
 0x1d9   :  { %2197 = vst [vmem:[%s5003_s5 + $0x1f0] sm:$0xff] %v2069_v38  ;;  %v1584_v8 = vmul.f32 %v2430_v45, %v4379_v4  ;;  %v1240_v15 = vmax.f32 %v1208_v25, 0.0  ;;  %vm1590_vm4 = vweird.f32 %v2430_v45 }
 0x1da   :  { %2198 = vst [vmem:[%s5003_s5 + $0x1f8] sm:$0xff] %v2070_v51  ;;  %v1582_v59 = vsel %vm1581_vm3, %v2428_v23, %v1578_v32  ;;  %v5224_v23 = vld [vmem:[#allocation45_spill] sm:$0xff]  ;;  %vm1591_vm6 = vmor %vm1589_vm5, %vm1590_vm4 }
 0x1db   :  { %v1797_v63 = vmul.f32 %v1582_v59, %v1317_v41  ;;  %v1798_v17 = vmul.f32 %v1582_v59, %v1318_v58  ;;  %v1799_v2 = vmul.f32 %v1582_v59, %v1319_v61  ;;  %v1800_v16 = vmul.f32 %v1582_v59, %v1320_v26  ;;  %v754_v26 = vpop.xlane.xlu0 %753  ;;  %v5225_v59 = vld [vmem:[#allocation46_spill] sm:$0xff] }
 0x1dc   :  { %v1585_v38 = vmul.f32 %v2430_v45, %v1584_v8  ;;  %v1321_v51 = vsub.f32 %v5224_v23, %v4325_v48  ;;  %v4430_v41 = vadd.f32 1e-05, %v1240_v15  ;;  %v1177_v58 = vmul.f32 %v4422_v28, %v4422_v28  ;;  %v1042_v15 = vpop.xlane.xlu2 %1041 }
 0x1dd   :  { %v1934_v5 = vmul.f32 %v3264_v14, %v1797_v63  ;;  %v1935_v50 = vmul.f32 %v3266_v40, %v1798_v17  ;;  %v1936_v56 = vmul.f32 %v3270_v47, %v1799_v2  ;;  %v1937_v35 = vmul.f32 %v3272_v44, %v1800_v16  ;;  %v5226_v17 = vld [vmem:[#allocation47_spill] sm:$0xff] }
 0x1de   :  { %v2432_v34 = vpop.eup %2431  ;;  %v1586_v60 = vmul.f32 0.5, %v1585_v38  ;;  %2433 = vrsqrt.f32 %v4430_v41  ;;  %v1322_v63 = vsub.f32 %v5225_v59, %v4325_v48  ;;  %v1323_v2 = vsub.f32 %v5226_v17, %v4325_v48 }
 0x1df   :  { %v2071_v32 = vadd.f32 %v3274_v30, %v1934_v5  ;;  %v2072_v61 = vadd.f32 %v3288_v53, %v1935_v50  ;;  %v2073_v24 = vadd.f32 %v3290_v52, %v1936_v56  ;;  %v2074_v8 = vadd.f32 %v3309_v12, %v1937_v35  ;;  %v5227_v35 = vld [vmem:[#allocation48_spill] sm:$0xff] }
 0x1e0   :  { %v1587_v25 = vsub.f32 1.5, %v1586_v60  ;;  %v1594_v36 = vmul.f32 %v2432_v34, %v4394_v21  ;;  %v1209_v16 = vsub.f32 %v1145_v49, %v1177_v58  ;;  %v4447_v38 = vmul.f32 0.001953125, %v754_v26  ;;  %v5228_v49 = vld [vmem:[#allocation49_spill] sm:$0xff]  ;;  %v5229_v58 = vld [vmem:[#allocation50_spill] sm:$0xff]  ;;  %v5230_v26 = vld [vmem:[#allocation51_spill] sm:$0xff] }
 0x1e1   :  { %2199 = vst [vmem:[%s5003_s5 + $0x200] sm:$0xff] %v2071_v32  ;;  %v1146_v56 = vmul.f32 0.001953125, %v1042_v15  ;;  %v1324_v23 = vsub.f32 %v5227_v35, %v4325_v48  ;;  %v1325_v60 = vsub.f32 %v5228_v49, %v4351_v62  ;;  %v1326_v32 = vsub.f32 %v5229_v58, %v4351_v62 }
 0x1e2   :  { %2200 = vst [vmem:[%s5003_s5 + $0x208] sm:$0xff] %v2072_v61  ;;  %v1588_v5 = vmul.f32 %v2430_v45, %v1587_v25  ;;  %v1595_v50 = vmul.f32 %v2432_v34, %v1594_v36  ;;  %v1241_v61 = vmax.f32 %v1209_v16, 0.0  ;;  %v1178_v48 = vmul.f32 %v4447_v38, %v4447_v38 }
 0x1e3   :  { %2201 = vst [vmem:[%s5003_s5 + $0x210] sm:$0xff] %v2073_v24  ;;  %v1327_v24 = vsub.f32 %v5230_v26, %v4351_v62  ;;  %vm1600_vm7 = vweird.f32 %v2432_v34  ;;  %vm1609_vm11 = vweird.f32 %v4430_v41 }
 0x1e4   :  { %2202 = vst [vmem:[%s5003_s5 + $0x218] sm:$0xff] %v2074_v8  ;;  %v1592_v4 = vsel %vm1591_vm6, %v2430_v45, %v1588_v5  ;;  %v1596_v25 = vmul.f32 0.5, %v1595_v50  ;;  %v2434_v35 = vpop.eup %2433  ;;  %v4470_v16 = vadd.f32 1e-05, %v1241_v61  ;;  %v1210_v58 = vsub.f32 %v1146_v56, %v1178_v48  ;;  %vm1601_vm9 = vmor %vm1599_vm8, %vm1600_vm7 }
 0x1e5   :  { %v1801_v36 = vmul.f32 %v1592_v4, %v1321_v51  ;;  %v1802_v59 = vmul.f32 %v1592_v4, %v1322_v63  ;;  %v1803_v17 = vmul.f32 %v1592_v4, %v1323_v2  ;;  %v1804_v15 = vmul.f32 %v1592_v4, %v1324_v23  ;;  %v5231_v23 = vld [vmem:[#allocation52_spill] sm:$0xff]  ;;  %v759_v4 = vpop.xlane.xlu1 %758 }
 0x1e6   :  { %v1597_v49 = vsub.f32 1.5, %v1596_v25  ;;  %v1604_v51 = vmul.f32 %v2434_v35, %v4430_v41  ;;  %2435 = vrsqrt.f32 %v4470_v16  ;;  %v1328_v61 = vsub.f32 %v5231_v23, %v4351_v62  ;;  %v5232_v62 = vld [vmem:[#allocation53_spill] sm:$0xff] }
 0x1e7   :  { %v1938_v8 = vmul.f32 %v3264_v14, %v1801_v36  ;;  %v1939_v45 = vmul.f32 %v3266_v40, %v1802_v59  ;;  %v1940_v5 = vmul.f32 %v3270_v47, %v1803_v17  ;;  %v1941_v50 = vmul.f32 %v3272_v44, %v1804_v15 }
 0x1e8   :  { %v1598_v26 = vmul.f32 %v2432_v34, %v1597_v49  ;;  %v1605_v21 = vmul.f32 %v2434_v35, %v1604_v51  ;;  %v1242_v36 = vmax.f32 %v1210_v58, 0.0  ;;  %v5233_v51 = vld [vmem:[#allocation54_spill] sm:$0xff]  ;;  %vm1610_vm10 = vweird.f32 %v2434_v35 }
 0x1e9   :  { %v2075_v63 = vadd.f32 %v3274_v30, %v1938_v8  ;;  %v2076_v2 = vadd.f32 %v3288_v53, %v1939_v45  ;;  %v2077_v56 = vadd.f32 %v3290_v52, %v1940_v5  ;;  %v2078_v25 = vadd.f32 %v3309_v12, %v1941_v50  ;;  %v1047_v50 = vpop.xlane.xlu0 %1046  ;;  %vm1611_vm12 = vmor %vm1609_vm11, %vm1610_vm10 }
 0x1ea   :  { %v1602_v48 = vsel %vm1601_vm9, %v2432_v34, %v1598_v26  ;;  %v1329_v8 = vsub.f32 %v5232_v62, %v4384_v57  ;;  %v1606_v45 = vmul.f32 0.5, %v1605_v21  ;;  %v4494_v5 = vadd.f32 1e-05, %v1242_v36  ;;  %v5234_v36 = vld [vmem:[#allocation55_spill] sm:$0xff] }
 0x1eb   :  { %2203 = vst [vmem:[%s5003_s5 + $0x220] sm:$0xff] %v2075_v63  ;;  %v1805_v59 = vmul.f32 %v1602_v48, %v1325_v60  ;;  %v1806_v17 = vmul.f32 %v1602_v48, %v1326_v32  ;;  %v1807_v15 = vmul.f32 %v1602_v48, %v1327_v24  ;;  %v1808_v49 = vmul.f32 %v1602_v48, %v1328_v61 }
 0x1ec   :  { %2204 = vst [vmem:[%s5003_s5 + $0x228] sm:$0xff] %v2076_v2  ;;  %v4496_v34 = vmul.f32 0.001953125, %v759_v4  ;;  %v4505_v26 = vpop.eup %2435  ;;  %v1330_v63 = vsub.f32 %v5233_v51, %v4384_v57  ;;  %v1607_v2 = vsub.f32 1.5, %v1606_v45  ;;  %2437 = vrsqrt.f32 %v4494_v5 }
 0x1ed   :  { %2205 = vst [vmem:[%s5003_s5 + $0x230] sm:$0xff] %v2077_v56  ;;  %v1942_v60 = vmul.f32 %v3264_v14, %v1805_v59  ;;  %v1943_v32 = vmul.f32 %v3266_v40, %v1806_v17  ;;  %v1944_v24 = vmul.f32 %v3270_v47, %v1807_v15  ;;  %v1945_v58 = vmul.f32 %v3272_v44, %v1808_v49  ;;  %v764_v49 = vpop.xlane.xlu2 %763 }
 0x1ee   :  { %2206 = vst [vmem:[%s5003_s5 + $0x238] sm:$0xff] %v2078_v25  ;;  %v1608_v48 = vmul.f32 %v2434_v35, %v1607_v2  ;;  %v1614_v25 = vmul.f32 %v4505_v26, %v4470_v16  ;;  %v1147_v21 = vmul.f32 0.001953125, %v1047_v50  ;;  %v1331_v59 = vsub.f32 %v5234_v36, %v4384_v57  ;;  %v1052_v50 = vpop.xlane.xlu1 %1051 }
 0x1ef   :  { %v2079_v56 = vadd.f32 %v3274_v30, %v1942_v60  ;;  %v2080_v23 = vadd.f32 %v3288_v53, %v1943_v32  ;;  %v2081_v61 = vadd.f32 %v3290_v52, %v1944_v24  ;;  %v2082_v4 = vadd.f32 %v3309_v12, %v1945_v58 }
 0x1f0   :  { %v1332_v17 = vsub.f32 %v3390_v6, %v4384_v57  ;;  %v1333_v41 = vsub.f32 %v3402_v19, %v4422_v28  ;;  %v1179_v15 = vmul.f32 %v4496_v34, %v4496_v34  ;;  %v1612_v62 = vsel %vm1611_vm12, %v2434_v35, %v1608_v48 }
 0x1f1   :  { %2207 = vst [vmem:[%s5003_s5 + $0x240] sm:$0xff] %v2079_v56  ;;  %v1334_v45 = vsub.f32 %v3409_v7, %v4422_v28  ;;  %v1335_v60 = vsub.f32 %v3454_v42, %v4422_v28  ;;  %v1615_v6 = vmul.f32 %v4505_v26, %v1614_v25  ;;  %v1809_v19 = vmul.f32 %v1612_v62, %v1329_v8 }
 0x1f2   :  { %2208 = vst [vmem:[%s5003_s5 + $0x248] sm:$0xff] %v2080_v23  ;;  %v1810_v57 = vmul.f32 %v1612_v62, %v1330_v63  ;;  %v1811_v32 = vmul.f32 %v1612_v62, %v1331_v59  ;;  %v1812_v24 = vmul.f32 %v1612_v62, %v1332_v17  ;;  %v2438_v58 = vpop.eup %2437  ;;  %vm1619_vm13 = vweird.f32 %v4470_v16 }
 0x1f3   :  { %2209 = vst [vmem:[%s5003_s5 + $0x250] sm:$0xff] %v2081_v61  ;;  %v1616_v35 = vmul.f32 0.5, %v1615_v6  ;;  %v1211_v7 = vsub.f32 %v1147_v21, %v1179_v15  ;;  %v4546_v42 = vmul.f32 0.001953125, %v764_v49  ;;  %v1946_v51 = vmul.f32 %v3264_v14, %v1809_v19 }
 0x1f4   :  { %2210 = vst [vmem:[%s5003_s5 + $0x258] sm:$0xff] %v2082_v4  ;;  %v1947_v2 = vmul.f32 %v3266_v40, %v1810_v57  ;;  %v1948_v8 = vmul.f32 %v3270_v47, %v1811_v32  ;;  %v1949_v63 = vmul.f32 %v3272_v44, %v1812_v24  ;;  %vm1620_vm14 = vweird.f32 %v4505_v26  ;;  %v769_v57 = vpop.xlane.xlu0 %768 }
 0x1f5   :  { %v1617_v56 = vsub.f32 1.5, %v1616_v35  ;;  %v1624_v23 = vmul.f32 %v2438_v58, %v4494_v5  ;;  %v1243_v61 = vmax.f32 %v1211_v7, 0.0  ;;  %v2083_v4 = vadd.f32 %v3274_v30, %v1946_v51  ;;  %vm1621_vm15 = vmor %vm1619_vm13, %vm1620_vm14 }
 0x1f6   :  { %v2084_v48 = vadd.f32 %v3288_v53, %v1947_v2  ;;  %v2085_v25 = vadd.f32 %v3290_v52, %v1948_v8  ;;  %v1148_v21 = vmul.f32 0.001953125, %v1052_v50  ;;  %v2086_v36 = vadd.f32 %v3309_v12, %v1949_v63 }
 0x1f7   :  { %v1618_v59 = vmul.f32 %v4505_v26, %v1617_v56  ;;  %v1625_v17 = vmul.f32 %v2438_v58, %v1624_v23  ;;  %v4559_v15 = vadd.f32 1e-05, %v1243_v61  ;;  %2211 = vst [vmem:[%s5003_s5 + $0x260] sm:$0xff] %v2083_v4  ;;  %v1336_v49 = vsub.f32 %v3491_v1, %v4422_v28 }
 0x1f8   :  { %v1337_v62 = vsub.f32 %v3511_v54, %v4447_v38  ;;  %v1338_v6 = vsub.f32 %v3524_v22, %v4447_v38  ;;  %v1180_v19 = vmul.f32 %v4546_v42, %v4546_v42  ;;  %2212 = vst [vmem:[%s5003_s5 + $0x268] sm:$0xff] %v2084_v48  ;;  %v1339_v1 = vsub.f32 %v3550_v0, %v4447_v38 }
 0x1f9   :  { %v1622_v32 = vsel %vm1621_vm15, %v4505_v26, %v1618_v59  ;;  %v1626_v28 = vmul.f32 0.5, %v1625_v17  ;;  %2439 = vrsqrt.f32 %v4559_v15  ;;  %2213 = vst [vmem:[%s5003_s5 + $0x270] sm:$0xff] %v2085_v25  ;;  %vm1630_vm0 = vweird.f32 %v2438_v58  ;;  %v774_v17 = vpop.xlane.xlu1 %773 }
 0x1fa   :  { %v1813_v54 = vmul.f32 %v1622_v32, %v1333_v41  ;;  %v1814_v22 = vmul.f32 %v1622_v32, %v1334_v45  ;;  %v1815_v16 = vmul.f32 %v1622_v32, %v1335_v60  ;;  %v1816_v24 = vmul.f32 %v1622_v32, %v1336_v49  ;;  %2214 = vst [vmem:[%s5003_s5 + $0x278] sm:$0xff] %v2086_v36  ;;  %v1057_v45 = vpop.xlane.xlu2 %1056 }
 0x1fb   :  { %v1627_v35 = vsub.f32 1.5, %v1626_v28  ;;  %v1212_v26 = vsub.f32 %v1148_v21, %v1180_v19  ;;  %v4587_v7 = vmul.f32 0.001953125, %v769_v57  ;;  %v1340_v60 = vsub.f32 %v3555_v39, %v4447_v38 }
 0x1fc   :  { %v1950_v0 = vmul.f32 %v3264_v14, %v1813_v54  ;;  %v1951_v50 = vmul.f32 %v3266_v40, %v1814_v22  ;;  %v1952_v51 = vmul.f32 %v3270_v47, %v1815_v16  ;;  %v1953_v41 = vmul.f32 %v3272_v44, %v1816_v24  ;;  %v1062_v49 = vpop.xlane.xlu0 %1061 }
 0x1fd   :  { %v1628_v2 = vmul.f32 %v2438_v58, %v1627_v35  ;;  %vm1629_vm1 = vweird.f32 %v4494_v5  ;;  %v1244_v8 = vmax.f32 %v1212_v26, 0.0  ;;  %v1149_v21 = vmul.f32 0.001953125, %v1057_v45 }
 0x1fe   :  { %v2087_v63 = vadd.f32 %v3274_v30, %v1950_v0  ;;  %v2088_v56 = vadd.f32 %v3288_v53, %v1951_v50  ;;  %v2089_v23 = vadd.f32 %v3290_v52, %v1952_v51  ;;  %v2090_v61 = vadd.f32 %v3309_v12, %v1953_v41  ;;  %vm1631_vm2 = vmor %vm1629_vm1, %vm1630_vm0 }
 0x1ff   :  { %v2440_v4 = vpop.eup %2439  ;;  %v1632_v48 = vsel %vm1631_vm2, %v2438_v58, %v1628_v2  ;;  %v4601_v25 = vadd.f32 1e-05, %v1244_v8  ;;  %v1181_v39 = vmul.f32 %v4587_v7, %v4587_v7  ;;  %v4623_v28 = vmul.f32 0.001953125, %v774_v17 }
 0x200   :  { %2215 = vst [vmem:[%s5003_s5 + $0x280] sm:$0xff] %v2087_v63  ;;  %v1817_v38 = vmul.f32 %v1632_v48, %v1337_v62  ;;  %v1818_v5 = vmul.f32 %v1632_v48, %v1338_v6  ;;  %v1819_v36 = vmul.f32 %v1632_v48, %v1339_v1  ;;  %v1820_v59 = vmul.f32 %v1632_v48, %v1340_v60 }
 0x201   :  { %2216 = vst [vmem:[%s5003_s5 + $0x288] sm:$0xff] %v2088_v56  ;;  %v1634_v58 = vmul.f32 %v2440_v4, %v4559_v15  ;;  %2441 = vrsqrt.f32 %v4601_v25  ;;  %v1213_v1 = vsub.f32 %v1149_v21, %v1181_v39  ;;  %v1150_v24 = vmul.f32 0.001953125, %v1062_v49  ;;  %v5235_v49 = vld [vmem:[#allocation56_spill] sm:$0xff] }
 0x202   :  { %2217 = vst [vmem:[%s5003_s5 + $0x290] sm:$0xff] %v2089_v23  ;;  %v1954_v19 = vmul.f32 %v3264_v14, %v1817_v38  ;;  %v1955_v62 = vmul.f32 %v3266_v40, %v1818_v5  ;;  %v1956_v6 = vmul.f32 %v3270_v47, %v1819_v36  ;;  %v1957_v57 = vmul.f32 %v3272_v44, %v1820_v59 }
 0x203   :  { %2218 = vst [vmem:[%s5003_s5 + $0x298] sm:$0xff] %v2090_v61  ;;  %v1635_v32 = vmul.f32 %v2440_v4, %v1634_v58  ;;  %v1245_v0 = vmax.f32 %v1213_v1, 0.0  ;;  %v1341_v50 = vsub.f32 %v3577_v46, %v4496_v34  ;;  %v1182_v51 = vmul.f32 %v4623_v28, %v4623_v28  ;;  %v779_v41 = vpop.xlane.xlu2 %778 }
 0x204   :  { %v2091_v54 = vadd.f32 %v3274_v30, %v1954_v19  ;;  %v2092_v22 = vadd.f32 %v3288_v53, %v1955_v62  ;;  %v2093_v16 = vadd.f32 %v3290_v52, %v1956_v6  ;;  %v2094_v35 = vadd.f32 %v3309_v12, %v1957_v57 }
 0x205   :  { %v1636_v26 = vmul.f32 0.5, %v1635_v32  ;;  %vm1640_vm3 = vweird.f32 %v2440_v4  ;;  %v4639_v2 = vadd.f32 1e-05, %v1245_v0  ;;  %v4641_v8 = vmul.f32 0.001953125, %v779_v41  ;;  %v1067_v61 = vpop.xlane.xlu1 %1066  ;;  %v5237_v41 = vld [vmem:[#allocation2_spill] sm:$0xff] }
 0x206   :  { %2219 = vst [vmem:[%s5003_s5 + $0x2a0] sm:$0xff] %v2091_v54  ;;  %v1342_v46 = vsub.f32 %v3580_v55, %v4496_v34  ;;  %v1343_v63 = vsub.f32 %v3629_v31, %v4496_v34  ;;  %v1214_v23 = vsub.f32 %v1150_v24, %v1182_v51  ;;  %v1344_v48 = vsub.f32 %v3646_v43, %v4496_v34 }
 0x207   :  { %v2442_v45 = vpop.eup %2441  ;;  %2220 = vst [vmem:[%s5003_s5 + $0x2a8] sm:$0xff] %v2092_v22  ;;  %v1637_v60 = vsub.f32 1.5, %v1636_v26  ;;  %vm1639_vm4 = vweird.f32 %v4559_v15  ;;  %2443 = vrsqrt.f32 %v4639_v2  ;;  %v1345_v55 = vsub.f32 %v3666_v18, %v4546_v42 }
 0x208   :  { %2221 = vst [vmem:[%s5003_s5 + $0x2b0] sm:$0xff] %v2093_v16  ;;  %v1644_v56 = vmul.f32 %v2442_v45, %v4601_v25  ;;  %vm1641_vm5 = vmor %vm1639_vm4, %vm1640_vm3  ;;  %v1346_v31 = vsub.f32 %v3669_v27, %v4546_v42  ;;  %v1246_v38 = vmax.f32 %v1214_v23, 0.0  ;;  %v1347_v36 = vsub.f32 %v3699_v29, %v4546_v42 }
 0x209   :  { %2222 = vst [vmem:[%s5003_s5 + $0x2b8] sm:$0xff] %v2094_v35  ;;  %v1638_v21 = vmul.f32 %v2440_v4, %v1637_v60  ;;  %v1151_v59 = vmul.f32 0.001953125, %v1067_v61  ;;  %v1183_v43 = vmul.f32 %v4641_v8, %v4641_v8  ;;  %v1348_v18 = vsub.f32 %v5235_v49, %v4546_v42 }
 0x20a   :  { %v1645_v39 = vmul.f32 %v2442_v45, %v1644_v56  ;;  %v4668_v62 = vadd.f32 1e-05, %v1246_v38  ;;  %vm1650_vm6 = vweird.f32 %v2442_v45  ;;  %vm1649_vm7 = vweird.f32 %v4601_v25  ;;  %v5238_v25 = vld [vmem:[#allocation3_spill] sm:$0xff] }
 0x20b   :  { %v1642_v5 = vsel %vm1641_vm5, %v2440_v4, %v1638_v21  ;;  %v1215_v27 = vsub.f32 %v1151_v59, %v1183_v43  ;;  %vm1651_vm8 = vmor %vm1649_vm7, %vm1650_vm6  ;;  %v1350_v60 = vsub.f32 %v5237_v41, %v4587_v7  ;;  %v5240_v21 = vld [vmem:[#allocation58_spill] sm:$0xff]  ;;  %vm1659_vm10 = vweird.f32 %v4639_v2  ;;  %v5245_v41 = vld [vmem:[#allocation8_spill] sm:$0xff] }
 0x20c   :  { %v1821_v34 = vmul.f32 %v1642_v5, %v1341_v50  ;;  %v1822_v15 = vmul.f32 %v1642_v5, %v1342_v46  ;;  %v1823_v17 = vmul.f32 %v1642_v5, %v1343_v63  ;;  %v1824_v58 = vmul.f32 %v1642_v5, %v1344_v48  ;;  %v5236_v50 = vld [vmem:[#allocation57_spill] sm:$0xff]  ;;  %v5239_v63 = vld [vmem:[#allocation4_spill] sm:$0xff] }
 0x20d   :  { %v1646_v19 = vmul.f32 0.5, %v1645_v39  ;;  %v2444_v32 = vpop.eup %2443  ;;  %2445 = vrsqrt.f32 %v4668_v62  ;;  %v1247_v54 = vmax.f32 %v1215_v27, 0.0  ;;  %v1349_v51 = vsub.f32 %v5236_v50, %v4587_v7  ;;  %v5244_v50 = vld [vmem:[#allocation7_spill] sm:$0xff] }
 0x20e   :  { %v1958_v4 = vmul.f32 %v3264_v14, %v1821_v34  ;;  %v1959_v6 = vmul.f32 %v3266_v40, %v1822_v15  ;;  %v1960_v29 = vmul.f32 %v3270_v47, %v1823_v17  ;;  %v1961_v57 = vmul.f32 %v3272_v44, %v1824_v58  ;;  %v5241_v15 = vld [vmem:[#allocation59_spill] sm:$0xff]  ;;  %v5242_v58 = vld [vmem:[#allocation5_spill] sm:$0xff] }
 0x20f   :  { %v1647_v1 = vsub.f32 1.5, %v1646_v19  ;;  %v1654_v26 = vmul.f32 %v2444_v32, %v4639_v2  ;;  %v4681_v0 = vadd.f32 1e-05, %v1247_v54  ;;  %v1351_v46 = vsub.f32 %v5238_v25, %v4587_v7  ;;  %v784_v23 = vpop.xlane.xlu0 %783 }
 0x210   :  { %v2095_v42 = vadd.f32 %v3274_v30, %v1958_v4  ;;  %v2096_v22 = vadd.f32 %v3288_v53, %v1959_v6  ;;  %v2097_v16 = vadd.f32 %v3290_v52, %v1960_v29  ;;  %v2098_v24 = vadd.f32 %v3309_v12, %v1961_v57 }
 0x211   :  { %v1648_v35 = vmul.f32 %v2442_v45, %v1647_v1  ;;  %v1352_v56 = vsub.f32 %v5239_v63, %v4587_v7  ;;  %v1655_v48 = vmul.f32 %v2444_v32, %v1654_v26  ;;  %v1353_v39 = vsub.f32 %v5240_v21, %v4623_v28  ;;  %v1072_v43 = vpop.xlane.xlu2 %1071 }
 0x212   :  { %2223 = vst [vmem:[%s5003_s5 + $0x2c0] sm:$0xff] %v2095_v42  ;;  %2447 = vrsqrt.f32 %v4681_v0  ;;  %v1354_v17 = vsub.f32 %v5241_v15, %v4623_v28  ;;  %v1355_v49 = vsub.f32 %v5242_v58, %v4623_v28  ;;  %v4710_v19 = vmul.f32 0.001953125, %v784_v23 }
 0x213   :  { %2224 = vst [vmem:[%s5003_s5 + $0x2c8] sm:$0xff] %v2096_v22  ;;  %v1652_v61 = vsel %vm1651_vm8, %v2442_v45, %v1648_v35  ;;  %v2446_v34 = vpop.eup %2445  ;;  %v1656_v45 = vmul.f32 0.5, %v1655_v48  ;;  %vm1660_vm9 = vweird.f32 %v2444_v32  ;;  %v1152_v6 = vmul.f32 0.001953125, %v1072_v43  ;;  %v5243_v35 = vld [vmem:[#allocation6_spill] sm:$0xff] }
 0x214   :  { %2225 = vst [vmem:[%s5003_s5 + $0x2d0] sm:$0xff] %v2097_v16  ;;  %v1825_v38 = vmul.f32 %v1652_v61, %v1345_v55  ;;  %v1826_v5 = vmul.f32 %v1652_v61, %v1346_v31  ;;  %v1827_v59 = vmul.f32 %v1652_v61, %v1347_v36  ;;  %v1828_v7 = vmul.f32 %v1652_v61, %v1348_v18  ;;  %vm1661_vm11 = vmor %vm1659_vm10, %vm1660_vm9 }
 0x215   :  { %2226 = vst [vmem:[%s5003_s5 + $0x2d8] sm:$0xff] %v2098_v24  ;;  %v1657_v27 = vsub.f32 1.5, %v1656_v45  ;;  %v1664_v4 = vmul.f32 %v2446_v34, %v4668_v62  ;;  %v1184_v24 = vmul.f32 %v4710_v19, %v4710_v19  ;;  %v1356_v26 = vsub.f32 %v5243_v35, %v4623_v28 }
 0x216   :  { %v1962_v55 = vmul.f32 %v3264_v14, %v1825_v38  ;;  %v1963_v31 = vmul.f32 %v3266_v40, %v1826_v5  ;;  %v1964_v36 = vmul.f32 %v3270_v47, %v1827_v59  ;;  %v1965_v18 = vmul.f32 %v3272_v44, %v1828_v7 }
 0x217   :  { %v1658_v22 = vmul.f32 %v2444_v32, %v1657_v27  ;;  %v1665_v16 = vmul.f32 %v2446_v34, %v1664_v4  ;;  %v1357_v2 = vsub.f32 %v5244_v50, %v4641_v8  ;;  %v1358_v25 = vsub.f32 %v5245_v41, %v4641_v8 }
 0x218   :  { %v2099_v29 = vadd.f32 %v3274_v30, %v1962_v55  ;;  %v2100_v57 = vadd.f32 %v3288_v53, %v1963_v31  ;;  %v2101_v1 = vadd.f32 %v3290_v52, %v1964_v36  ;;  %v4721_v54 = vpop.eup %2447  ;;  %v2102_v42 = vadd.f32 %v3309_v12, %v1965_v18 }
 0x219   :  { %v1674_v63 = vmul.f32 %v4721_v54, %v4681_v0  ;;  %v1662_v23 = vsel %vm1661_vm11, %v2444_v32, %v1658_v22  ;;  %v1666_v61 = vmul.f32 0.5, %v1665_v16  ;;  %vm1669_vm12 = vweird.f32 %v4668_v62  ;;  %v789_v43 = vpop.xlane.xlu1 %788 }
 0x21a   :  { %2227 = vst [vmem:[%s5003_s5 + $0x2e0] sm:$0xff] %v2099_v29  ;;  %v1216_v48 = vsub.f32 %v1152_v6, %v1184_v24  ;;  %v1829_v38 = vmul.f32 %v1662_v23, %v1349_v51  ;;  %v1830_v5 = vmul.f32 %v1662_v23, %v1350_v60  ;;  %v1831_v59 = vmul.f32 %v1662_v23, %v1351_v46 }
 0x21b   :  { %2228 = vst [vmem:[%s5003_s5 + $0x2e8] sm:$0xff] %v2100_v57  ;;  %v1832_v7 = vmul.f32 %v1662_v23, %v1352_v56  ;;  %v1667_v45 = vsub.f32 1.5, %v1666_v61  ;;  %vm1670_vm13 = vweird.f32 %v2446_v34  ;;  %v1675_v32 = vmul.f32 %v4721_v54, %v1674_v63  ;;  %v1077_v6 = vpop.xlane.xlu0 %1076 }
 0x21c   :  { %2229 = vst [vmem:[%s5003_s5 + $0x2f0] sm:$0xff] %v2101_v1  ;;  %v1248_v15 = vmax.f32 %v1216_v48, 0.0  ;;  %v1966_v58 = vmul.f32 %v3264_v14, %v1829_v38  ;;  %v1967_v55 = vmul.f32 %v3266_v40, %v1830_v5  ;;  %v1968_v31 = vmul.f32 %v3270_v47, %v1831_v59  ;;  %vm1671_vm14 = vmor %vm1669_vm12, %vm1670_vm13 }
 0x21d   :  { %2230 = vst [vmem:[%s5003_s5 + $0x2f8] sm:$0xff] %v2102_v42  ;;  %v1969_v51 = vmul.f32 %v3272_v44, %v1832_v7  ;;  %v1668_v60 = vmul.f32 %v2446_v34, %v1667_v45  ;;  %v1676_v46 = vmul.f32 0.5, %v1675_v32  ;;  %v4754_v36 = vmul.f32 0.001953125, %v789_v43 }
 0x21e   :  { %v4752_v56 = vadd.f32 1e-05, %v1248_v15  ;;  %v2103_v18 = vadd.f32 %v3274_v30, %v1966_v58  ;;  %v2104_v27 = vadd.f32 %v3288_v53, %v1967_v55  ;;  %v2105_v4 = vadd.f32 %v3290_v52, %v1968_v31 }
 0x21f   :  { %vm1680_vm15 = vweird.f32 %v4721_v54  ;;  %v2106_v29 = vadd.f32 %v3309_v12, %v1969_v51  ;;  %v1672_v57 = vsel %vm1671_vm14, %v2446_v34, %v1668_v60  ;;  %v1677_v1 = vsub.f32 1.5, %v1676_v46 }
 0x220   :  { %2449 = vrsqrt.f32 %v4752_v56  ;;  %2231 = vst [vmem:[%s5003_s5 + $0x300] sm:$0xff] %v2103_v18  ;;  %v1833_v42 = vmul.f32 %v1672_v57, %v1353_v39  ;;  %v1834_v22 = vmul.f32 %v1672_v57, %v1354_v17  ;;  %v1835_v62 = vmul.f32 %v1672_v57, %v1355_v49 }
 0x221   :  { %v1836_v16 = vmul.f32 %v1672_v57, %v1356_v26  ;;  %2232 = vst [vmem:[%s5003_s5 + $0x308] sm:$0xff] %v2104_v27  ;;  %v1678_v34 = vmul.f32 %v4721_v54, %v1677_v1  ;;  %vm1679_vm0 = vweird.f32 %v4681_v0  ;;  %v1185_v24 = vmul.f32 %v4754_v36, %v4754_v36  ;;  %v5246_v0 = vld [vmem:[#allocation9_spill] sm:$0xff]  ;;  %v5247_v26 = vld [vmem:[#allocation10_spill] sm:$0xff]  ;;  %v5248_v1 = vld [vmem:[#allocation11_spill] sm:$0xff] }
 0x222   :  { %v1153_v35 = vmul.f32 0.001953125, %v1077_v6  ;;  %2233 = vst [vmem:[%s5003_s5 + $0x310] sm:$0xff] %v2105_v4  ;;  %v1970_v28 = vmul.f32 %v3264_v14, %v1833_v42  ;;  %v1971_v21 = vmul.f32 %v3266_v40, %v1834_v22  ;;  %v1972_v39 = vmul.f32 %v3270_v47, %v1835_v62  ;;  %vm1681_vm1 = vmor %vm1679_vm0, %vm1680_vm15  ;;  %v5249_v22 = vld [vmem:[#allocation12_spill] sm:$0xff] }
 0x223   :  { %v1973_v17 = vmul.f32 %v3272_v44, %v1836_v16  ;;  %2234 = vst [vmem:[%s5003_s5 + $0x318] sm:$0xff] %v2106_v29  ;;  %v1359_v49 = vsub.f32 %v5246_v0, %v4641_v8  ;;  %v1360_v63 = vsub.f32 %v5247_v26, %v4641_v8  ;;  %v1682_v23 = vsel %vm1681_vm1, %v4721_v54, %v1678_v34  ;;  %v5250_v34 = vld [vmem:[#allocation13_spill] sm:$0xff] }
 0x224   :  { %v1217_v61 = vsub.f32 %v1153_v35, %v1185_v24  ;;  %v2107_v48 = vadd.f32 %v3274_v30, %v1970_v28  ;;  %v2108_v38 = vadd.f32 %v3288_v53, %v1971_v21  ;;  %v2109_v5 = vadd.f32 %v3290_v52, %v1972_v39  ;;  %v4804_v15 = vpop.xlane.xlu2 %793  ;;  %v5251_v35 = vld [vmem:[#allocation14_spill] sm:$0xff] }
 0x225   :  { %v2110_v59 = vadd.f32 %v3309_v12, %v1973_v17  ;;  %v1837_v43 = vmul.f32 %v1682_v23, %v1357_v2  ;;  %v1838_v45 = vmul.f32 %v1682_v23, %v1358_v25  ;;  %v1839_v32 = vmul.f32 %v1682_v23, %v1359_v49 }
 0x226   :  { %v2450_v7 = vpop.eup %2449  ;;  %v1840_v54 = vmul.f32 %v1682_v23, %v1360_v63  ;;  %2235 = vst [vmem:[%s5003_s5 + $0x320] sm:$0xff] %v2107_v48  ;;  %v1249_v55 = vmax.f32 %v1217_v61, 0.0  ;;  %v1361_v42 = vsub.f32 %v5248_v1, %v4710_v19  ;;  %v1362_v62 = vsub.f32 %v5249_v22, %v4710_v19 }
 0x227   :  { %v1684_v58 = vmul.f32 %v2450_v7, %v4752_v56  ;;  %2236 = vst [vmem:[%s5003_s5 + $0x328] sm:$0xff] %v2108_v38  ;;  %v1974_v50 = vmul.f32 %v3264_v14, %v1837_v43  ;;  %v1975_v8 = vmul.f32 %v3266_v40, %v1838_v45  ;;  %v1976_v2 = vmul.f32 %v3270_v47, %v1839_v32 }
 0x228   :  { %v1977_v41 = vmul.f32 %v3272_v44, %v1840_v54  ;;  %2237 = vst [vmem:[%s5003_s5 + $0x330] sm:$0xff] %v2109_v5  ;;  %v4820_v31 = vadd.f32 1e-05, %v1249_v55  ;;  %vm1690_vm2 = vweird.f32 %v2450_v7  ;;  %vm1689_vm3 = vweird.f32 %v4752_v56 }
 0x229   :  { %v1685_v25 = vmul.f32 %v2450_v7, %v1684_v58  ;;  %2238 = vst [vmem:[%s5003_s5 + $0x338] sm:$0xff] %v2110_v59  ;;  %v2111_v51 = vadd.f32 %v3274_v30, %v1974_v50  ;;  %v2112_v60 = vadd.f32 %v3288_v53, %v1975_v8  ;;  %v2113_v46 = vadd.f32 %v3290_v52, %v1976_v2  ;;  %vm1691_vm4 = vmor %vm1689_vm3, %vm1690_vm2 }
 0x22a   :  { %v2114_v18 = vadd.f32 %v3309_v12, %v1977_v41  ;;  %2451 = vrsqrt.f32 %v4820_v31  ;;  %v1363_v24 = vsub.f32 %v5250_v34, %v4710_v19  ;;  %v1364_v28 = vsub.f32 %v5251_v35, %v4710_v19  ;;  %v5252_v41 = vld [vmem:[#allocation15_spill] sm:$0xff] }
 0x22b   :  { %v1686_v27 = vmul.f32 0.5, %v1685_v25  ;;  %2239 = vst [vmem:[%s5003_s5 + $0x340] sm:$0xff] %v2111_v51  ;;  %v1365_v25 = vsub.f32 %v5252_v41, %v4754_v36  ;;  %vm1699_vm6 = vweird.f32 %v4820_v31 }
 0x22c   :  { %2240 = vst [vmem:[%s5003_s5 + $0x348] sm:$0xff] %v2112_v60 }
 0x22d   :  { %v1687_v6 = vsub.f32 1.5, %v1686_v27  ;;  %2241 = vst [vmem:[%s5003_s5 + $0x350] sm:$0xff] %v2113_v46 }
 0x22e   :  { %v799_v4 = vpop.xlane.xlu0 %798  ;;  %2242 = vst [vmem:[%s5003_s5 + $0x358] sm:$0xff] %v2114_v18  ;;  %v5253_v18 = vld [vmem:[#allocation16_spill] sm:$0xff] }
 0x22f   :  { %v4836_v29 = vmul.f32 0.001953125, %v799_v4  ;;  %v1688_v16 = vmul.f32 %v2450_v7, %v1687_v6  ;;  %v1366_v27 = vsub.f32 %v5253_v18, %v4754_v36  ;;  %v5254_v4 = vld [vmem:[#allocation17_spill] sm:$0xff] }
 0x230   :  { %v1087_v57 = vpop.xlane.xlu2 %1086  ;;  %v2452_v17 = vpop.eup %2451  ;;  %v1367_v6 = vsub.f32 %v5254_v4, %v4754_v36 }
 0x231   :  { %v1155_v21 = vmul.f32 0.001953125, %v1087_v57  ;;  %v1187_v39 = vmul.f32 %v4836_v29, %v4836_v29  ;;  %v1692_v0 = vsel %vm1691_vm4, %v2450_v7, %v1688_v16  ;;  %v1694_v61 = vmul.f32 %v2452_v17, %v4820_v31  ;;  %v5255_v57 = vld [vmem:[#allocation18_spill] sm:$0xff] }
 0x232   :  { %v1841_v49 = vmul.f32 %v1692_v0, %v1361_v42  ;;  %v1842_v26 = vmul.f32 %v1692_v0, %v1362_v62  ;;  %v1843_v63 = vmul.f32 %v1692_v0, %v1363_v24  ;;  %v1844_v23 = vmul.f32 %v1692_v0, %v1364_v28 }
 0x233   :  { %v1219_v56 = vsub.f32 %v1155_v21, %v1187_v39  ;;  %v1695_v59 = vmul.f32 %v2452_v17, %v1694_v61  ;;  %vm1700_vm5 = vweird.f32 %v2452_v17  ;;  %v1368_v1 = vsub.f32 %v5255_v57, %v4754_v36 }
 0x234   :  { %v1978_v48 = vmul.f32 %v3264_v14, %v1841_v49  ;;  %v1979_v38 = vmul.f32 %v3266_v40, %v1842_v26  ;;  %v1980_v19 = vmul.f32 %v3270_v47, %v1843_v63  ;;  %v1981_v5 = vmul.f32 %v3272_v44, %v1844_v23  ;;  %vm1701_vm7 = vmor %vm1699_vm6, %vm1700_vm5 }
 0x235   :  { %v1251_v43 = vmax.f32 %v1219_v56, 0.0  ;;  %v1696_v55 = vmul.f32 0.5, %v1695_v59  ;;  %v4890_v62 = vmul.f32 0.001953125, %v4804_v15  ;;  %v1375_v41 = vsub.f32 %v4176_v37, %v4836_v29 }
 0x236   :  { %v2115_v7 = vadd.f32 %v3274_v30, %v1978_v48  ;;  %v2116_v32 = vadd.f32 %v3288_v53, %v1979_v38  ;;  %v2117_v54 = vadd.f32 %v3290_v52, %v1980_v19  ;;  %v2118_v58 = vadd.f32 %v3309_v12, %v1981_v5 }
 0x237   :  { %v804_v45 = vpop.xlane.xlu1 %803  ;;  %v1411_v50 = vadd.f32 1e-05, %v1251_v43  ;;  %v1697_v2 = vsub.f32 1.5, %v1696_v55  ;;  %v1186_v15 = vmul.f32 %v4890_v62, %v4890_v62  ;;  %v5257_v55 = vld [vmem:[#allocation22_spill] sm:$0xff] }
 0x238   :  { %v4864_v8 = vmul.f32 0.001953125, %v804_v45  ;;  %2243 = vst [vmem:[%s5003_s5 + $0x360] sm:$0xff] %v2115_v7 }
 0x239   :  { %2244 = vst [vmem:[%s5003_s5 + $0x368] sm:$0xff] %v2116_v32  ;;  %2453 = vrsqrt.f32 %v1411_v50  ;;  %v1698_v51 = vmul.f32 %v2452_v17, %v1697_v2  ;;  %vm1719_vm9 = vweird.f32 %v1411_v50  ;;  %v1374_v2 = vsub.f32 %v5257_v55, %v4836_v29 }
 0x23a   :  { %2245 = vst [vmem:[%s5003_s5 + $0x370] sm:$0xff] %v2117_v54  ;;  %v1188_v60 = vmul.f32 %v4864_v8, %v4864_v8  ;;  %v5256_v54 = vld [vmem:[#allocation21_spill] sm:$0xff] }
 0x23b   :  { %2246 = vst [vmem:[%s5003_s5 + $0x378] sm:$0xff] %v2118_v58  ;;  %v1702_v22 = vsel %vm1701_vm7, %v2452_v17, %v1698_v51  ;;  %v1373_v58 = vsub.f32 %v5256_v54, %v4836_v29 }
 0x23c   :  { %v1845_v31 = vmul.f32 %v1702_v22, %v1365_v25  ;;  %v1846_v16 = vmul.f32 %v1702_v22, %v1366_v27  ;;  %v1847_v34 = vmul.f32 %v1702_v22, %v1367_v6  ;;  %v1848_v24 = vmul.f32 %v1702_v22, %v1368_v1 }
 0x23d   :  { %v1092_v46 = vpop.xlane.xlu0 %1091  ;;  %v1376_v25 = vsub.f32 %v4179_v13, %v4836_v29 }
 0x23e   :  { %v1156_v42 = vmul.f32 0.001953125, %v1092_v46  ;;  %v1982_v39 = vmul.f32 %v3264_v14, %v1845_v31  ;;  %v1983_v0 = vmul.f32 %v3266_v40, %v1846_v16  ;;  %v1984_v49 = vmul.f32 %v3270_v47, %v1847_v34 }
 0x23f   :  { %v2454_v35 = vpop.eup %2453  ;;  %v1985_v36 = vmul.f32 %v3272_v44, %v1848_v24 }
 0x240   :  { %v1220_v28 = vsub.f32 %v1156_v42, %v1188_v60  ;;  %v1714_v26 = vmul.f32 %v2454_v35, %v1411_v50  ;;  %v2119_v23 = vadd.f32 %v3274_v30, %v1982_v39  ;;  %v2120_v61 = vadd.f32 %v3288_v53, %v1983_v0 }
 0x241   :  { %v1082_v21 = vpop.xlane.xlu1 %1081  ;;  %v2121_v56 = vadd.f32 %v3290_v52, %v1984_v49  ;;  %v2122_v48 = vadd.f32 %v3309_v12, %v1985_v36  ;;  %vm1720_vm8 = vweird.f32 %v2454_v35  ;;  %v1377_v0 = vsub.f32 %v4213_v20, %v4864_v8 }
 0x242   :  { %v1252_v17 = vmax.f32 %v1220_v28, 0.0  ;;  %v1154_v63 = vmul.f32 0.001953125, %v1082_v21  ;;  %v1715_v38 = vmul.f32 %v2454_v35, %v1714_v26  ;;  %2247 = vst [vmem:[%s5003_s5 + $0x380] sm:$0xff] %v2119_v23  ;;  %vm1721_vm10 = vmor %vm1719_vm9, %vm1720_vm8  ;;  %v1378_v49 = vsub.f32 %v4219_v3, %v4864_v8 }
 0x243   :  { %2248 = vst [vmem:[%s5003_s5 + $0x388] sm:$0xff] %v2120_v61  ;;  %v1379_v36 = vsub.f32 %v4252_v10, %v4864_v8  ;;  %v1380_v26 = vsub.f32 %v4281_v9, %v4864_v8  ;;  %v1369_v20 = vsub.f32 %v4098_v11, %v4890_v62  ;;  %v5258_v8 = vld [vmem:[#allocation19_spill] sm:$0xff]  ;;  %v1372_v11 = vsub.f32 %v4141_v33, %v4890_v62 }
 0x244   :  { %v1412_v19 = vadd.f32 1e-05, %v1252_v17  ;;  %v1218_v5 = vsub.f32 %v1154_v63, %v1186_v15  ;;  %v1716_v59 = vmul.f32 0.5, %v1715_v38  ;;  %2249 = vst [vmem:[%s5003_s5 + $0x390] sm:$0xff] %v2121_v56 }
 0x245   :  { %2250 = vst [vmem:[%s5003_s5 + $0x398] sm:$0xff] %v2122_v48 }
 0x246   :  { %2455 = vrsqrt.f32 %v1412_v19  ;;  %v1250_v43 = vmax.f32 %v1218_v5, 0.0  ;;  %v1717_v45 = vsub.f32 1.5, %v1716_v59  ;;  %vm1729_vm12 = vweird.f32 %v1412_v19  ;;  %v5259_v5 = vld [vmem:[#allocation20_spill] sm:$0xff] }
 0x247   :  { %v1371_v59 = vsub.f32 %v5259_v5, %v4890_v62 }
 0x248   :  { %v1410_v7 = vadd.f32 1e-05, %v1250_v43  ;;  %v1718_v32 = vmul.f32 %v2454_v35, %v1717_v45 }
 0x24a   :  { %2457 = vrsqrt.f32 %v1410_v7  ;;  %v1722_v60 = vsel %vm1721_vm10, %v2454_v35, %v1718_v32  ;;  %vm1709_vm15 = vweird.f32 %v1410_v7 }
 0x24b   :  { %v1853_v46 = vmul.f32 %v1722_v60, %v1373_v58  ;;  %v1854_v18 = vmul.f32 %v1722_v60, %v1374_v2  ;;  %v1855_v27 = vmul.f32 %v1722_v60, %v1375_v41  ;;  %v1856_v50 = vmul.f32 %v1722_v60, %v1376_v25 }
 0x24c   :  { %v2456_v51 = vpop.eup %2455 }
 0x24d   :  { %v1724_v4 = vmul.f32 %v2456_v51, %v1412_v19  ;;  %v1990_v6 = vmul.f32 %v3264_v14, %v1853_v46  ;;  %v1991_v57 = vmul.f32 %v3266_v40, %v1854_v18  ;;  %v1992_v1 = vmul.f32 %v3270_v47, %v1855_v27 }
 0x24e   :  { %v1993_v42 = vmul.f32 %v3272_v44, %v1856_v50  ;;  %vm1730_vm11 = vweird.f32 %v2456_v51  ;;  %v1370_v19 = vsub.f32 %v5258_v8, %v4890_v62 }
 0x24f   :  { %v1725_v22 = vmul.f32 %v2456_v51, %v1724_v4  ;;  %v2127_v13 = vadd.f32 %v3274_v30, %v1990_v6  ;;  %v2128_v29 = vadd.f32 %v3288_v53, %v1991_v57  ;;  %v2129_v31 = vadd.f32 %v3290_v52, %v1992_v1  ;;  %vm1731_vm13 = vmor %vm1729_vm12, %vm1730_vm11 }
 0x250   :  { %v2458_v37 = vpop.eup %2457  ;;  %v2130_v16 = vadd.f32 %v3309_v12, %v1993_v42 }
 0x251   :  { %v1726_v34 = vmul.f32 0.5, %v1725_v22  ;;  %v1704_v24 = vmul.f32 %v2458_v37, %v1410_v7  ;;  %2255 = vst [vmem:[%s5003_s5 + $0x3c0] sm:$0xff] %v2127_v13  ;;  %vm1710_vm14 = vweird.f32 %v2458_v37 }
 0x252   :  { %2256 = vst [vmem:[%s5003_s5 + $0x3c8] sm:$0xff] %v2128_v29  ;;  %vm1711_vm0 = vmor %vm1709_vm15, %vm1710_vm14 }
 0x253   :  { %v1727_v35 = vsub.f32 1.5, %v1726_v34  ;;  %v1705_v28 = vmul.f32 %v2458_v37, %v1704_v24  ;;  %2257 = vst [vmem:[%s5003_s5 + $0x3d0] sm:$0xff] %v2129_v31 }
 0x254   :  { %2258 = vst [vmem:[%s5003_s5 + $0x3d8] sm:$0xff] %v2130_v16 }
 0x255   :  { %v1728_v21 = vmul.f32 %v2456_v51, %v1727_v35  ;;  %v1706_v39 = vmul.f32 0.5, %v1705_v28 }
 0x257   :  { %v1732_v17 = vsel %vm1731_vm13, %v2456_v51, %v1728_v21  ;;  %v1707_v63 = vsub.f32 1.5, %v1706_v39 }
 0x258   :  { %v1857_v15 = vmul.f32 %v1732_v17, %v1377_v0  ;;  %v1858_v23 = vmul.f32 %v1732_v17, %v1378_v49  ;;  %v1859_v61 = vmul.f32 %v1732_v17, %v1379_v36  ;;  %v1860_v56 = vmul.f32 %v1732_v17, %v1380_v26 }
 0x259   :  { %v1708_v48 = vmul.f32 %v2458_v37, %v1707_v63 }
 0x25a   :  { %v1994_v3 = vmul.f32 %v3264_v14, %v1857_v15  ;;  %v1995_v10 = vmul.f32 %v3266_v40, %v1858_v23  ;;  %v1996_v38 = vmul.f32 %v3270_v47, %v1859_v61  ;;  %v1997_v9 = vmul.f32 %v3272_v44, %v1860_v56 }
 0x25b   :  { %v1712_v43 = vsel %vm1711_vm0, %v2458_v37, %v1708_v48 }
 0x25c   :  { %v2131_v45 = vadd.f32 %v3274_v30, %v1994_v3  ;;  %v2132_v7 = vadd.f32 %v3288_v53, %v1995_v10  ;;  %v2133_v32 = vadd.f32 %v3290_v52, %v1996_v38  ;;  %v2134_v54 = vadd.f32 %v3309_v12, %v1997_v9 }
 0x25d   :  { %v1849_v58 = vmul.f32 %v1712_v43, %v1369_v20  ;;  %v1850_v55 = vmul.f32 %v1712_v43, %v1370_v19  ;;  %v1851_v2 = vmul.f32 %v1712_v43, %v1371_v59  ;;  %v1852_v41 = vmul.f32 %v1712_v43, %v1372_v11 }
 0x25e   :  { %2259 = vst [vmem:[%s5003_s5 + $0x3e0] sm:$0xff] %v2131_v45 }
 0x25f   :  { %2260 = vst [vmem:[%s5003_s5 + $0x3e8] sm:$0xff] %v2132_v7  ;;  %v1986_v33 = vmul.f32 %v3264_v14, %v1849_v58  ;;  %v1987_v62 = vmul.f32 %v3266_v40, %v1850_v55  ;;  %v1988_v25 = vmul.f32 %v3270_v47, %v1851_v2  ;;  %v1989_v51 = vmul.f32 %v3272_v44, %v1852_v41 }
 0x260   :  { %2261 = vst [vmem:[%s5003_s5 + $0x3f0] sm:$0xff] %v2133_v32 }
 0x261   :  { %2262 = vst [vmem:[%s5003_s5 + $0x3f8] sm:$0xff] %v2134_v54  ;;  %v2123_v60 = vadd.f32 %v3274_v30, %v1986_v33  ;;  %v2124_v46 = vadd.f32 %v3288_v53, %v1987_v62  ;;  %v2125_v14 = vadd.f32 %v3290_v52, %v1988_v25  ;;  %v2126_v40 = vadd.f32 %v3309_v12, %v1989_v51 }
 0x263   :  { %2251 = vst [vmem:[%s5003_s5 + $0x3a0] sm:$0xff] %v2123_v60 }
 0x264   :  { %2252 = vst [vmem:[%s5003_s5 + $0x3a8] sm:$0xff] %v2124_v46 }
 0x265   :  { %2253 = vst [vmem:[%s5003_s5 + $0x3b0] sm:$0xff] %v2125_v14 }
 0x266   :  { %2254 = vst [vmem:[%s5003_s5 + $0x3b8] sm:$0xff] %v2126_v40 }

// kernel: layernorm_lstm_forward.6
= control target key start
LH: loop header
LB: loop body
LE: loop exit
PB: predicated region body
PF: predicated region fallthrough
CT: control target
= control target key end

     0   :  { %s4773_s1 = inlined_call_operand.vmem [shape: f32[128,512], index: 1, kind: input, shape index: {}]   ;;  %s4774_s0 = inlined_call_operand.vmem [shape: f32[256,128], index: 0, kind: input, shape index: {}]   ;;  %s4775_s2 = inlined_call_operand.vmem [shape: f32[1,512], index: 2, kind: input, shape index: {}]   ;;  %s4776_s3 = inlined_call_operand.vmem [shape: f32[1,512], index: 3, kind: input, shape index: {}]   ;;  %s4777_s4 = inlined_call_operand.vmem [shape: f32[1,512], index: 4, kind: input, shape index: {}]   ;;  %s4778_s5 = inlined_call_operand.vmem [shape: f32[256,512], index: 5, kind: output, shape index: {}]  }
   0x1   :  { %v114_v0 = vld [vmem:[%s4773_s1 + $0x1f0] sm:$0xff]  ;;  %v115_v2 = vld [vmem:[%s4773_s1 + $0x1f8] sm:$0xff]  ;;  %v112_v3 = vld [vmem:[%s4773_s1 + $0x1e0] sm:$0xff] }
   0x2   :  { %v110_v1 = vld [vmem:[%s4773_s1 + $0x1d0] sm:$0xff]  ;;  %352 = vmatpush.msra.mxu2 %v114_v0  ;;  %465 = vmatpush.msra.mxu3 %v115_v2  ;;  %v113_v4 = vld [vmem:[%s4773_s1 + $0x1e8] sm:$0xff]  ;;  %v111_v6 = vld [vmem:[%s4773_s1 + $0x1d8] sm:$0xff] }
   0x3   :  { %v106_v5 = vld [vmem:[%s4773_s1 + $0x1b0] sm:$0xff]  ;;  %126 = vmatpush.msra.mxu0 %v112_v3  ;;  %239 = vmatpush.msra.mxu1 %v113_v4  ;;  %v108_v7 = vld [vmem:[%s4773_s1 + $0x1c0] sm:$0xff]  ;;  %v109_v8 = vld [vmem:[%s4773_s1 + $0x1c8] sm:$0xff] }
   0x4   :  { %353 = vmatpush.msra.mxu2 %v110_v1  ;;  %466 = vmatpush.msra.mxu3 %v111_v6  ;;  %v107_v9 = vld [vmem:[%s4773_s1 + $0x1b8] sm:$0xff]  ;;  %v104_v10 = vld [vmem:[%s4773_s1 + $0x1a0] sm:$0xff]  ;;  %v102_v11 = vld [vmem:[%s4773_s1 + $0x190] sm:$0xff] }
   0x5   :  { %127 = vmatpush.msra.mxu0 %v108_v7  ;;  %240 = vmatpush.msra.mxu1 %v109_v8  ;;  %v105_v12 = vld [vmem:[%s4773_s1 + $0x1a8] sm:$0xff]  ;;  %v103_v13 = vld [vmem:[%s4773_s1 + $0x198] sm:$0xff]  ;;  %v100_v14 = vld [vmem:[%s4773_s1 + $0x180] sm:$0xff] }
   0x6   :  { %354 = vmatpush.msra.mxu2 %v106_v5  ;;  %467 = vmatpush.msra.mxu3 %v107_v9  ;;  %v101_v15 = vld [vmem:[%s4773_s1 + $0x188] sm:$0xff]  ;;  %v98_v16 = vld [vmem:[%s4773_s1 + $0x170] sm:$0xff]  ;;  %v99_v17 = vld [vmem:[%s4773_s1 + $0x178] sm:$0xff] }
   0x7   :  { %128 = vmatpush.msra.mxu0 %v104_v10  ;;  %241 = vmatpush.msra.mxu1 %v105_v12  ;;  %v96_v18 = vld [vmem:[%s4773_s1 + $0x160] sm:$0xff]  ;;  %v97_v19 = vld [vmem:[%s4773_s1 + $0x168] sm:$0xff]  ;;  %v94_v20 = vld [vmem:[%s4773_s1 + $0x150] sm:$0xff] }
   0x8   :  { %355 = vmatpush.msra.mxu2 %v102_v11  ;;  %468 = vmatpush.msra.mxu3 %v103_v13  ;;  %v95_v21 = vld [vmem:[%s4773_s1 + $0x158] sm:$0xff]  ;;  %v92_v22 = vld [vmem:[%s4773_s1 + $0x140] sm:$0xff]  ;;  %v93_v23 = vld [vmem:[%s4773_s1 + $0x148] sm:$0xff] }
   0x9   :  { %129 = vmatpush.msra.mxu0 %v100_v14  ;;  %242 = vmatpush.msra.mxu1 %v101_v15  ;;  %v90_v24 = vld [vmem:[%s4773_s1 + $0x130] sm:$0xff]  ;;  %v91_v25 = vld [vmem:[%s4773_s1 + $0x138] sm:$0xff]  ;;  %v88_v26 = vld [vmem:[%s4773_s1 + $0x120] sm:$0xff] }
   0xa   :  { %356 = vmatpush.msra.mxu2 %v98_v16  ;;  %469 = vmatpush.msra.mxu3 %v99_v17  ;;  %v89_v27 = vld [vmem:[%s4773_s1 + $0x128] sm:$0xff]  ;;  %v86_v28 = vld [vmem:[%s4773_s1 + $0x110] sm:$0xff]  ;;  %v87_v29 = vld [vmem:[%s4773_s1 + $0x118] sm:$0xff] }
   0xb   :  { %130 = vmatpush.msra.mxu0 %v96_v18  ;;  %243 = vmatpush.msra.mxu1 %v97_v19  ;;  %v84_v30 = vld [vmem:[%s4773_s1 + $0x100] sm:$0xff]  ;;  %v85_v31 = vld [vmem:[%s4773_s1 + $0x108] sm:$0xff]  ;;  %v82_v32 = vld [vmem:[%s4773_s1 + $0xf0] sm:$0xff] }
   0xc   :  { %357 = vmatpush.msra.mxu2 %v94_v20  ;;  %470 = vmatpush.msra.mxu3 %v95_v21  ;;  %v83_v33 = vld [vmem:[%s4773_s1 + $0xf8] sm:$0xff]  ;;  %v80_v34 = vld [vmem:[%s4773_s1 + $0xe0] sm:$0xff]  ;;  %v81_v35 = vld [vmem:[%s4773_s1 + $0xe8] sm:$0xff] }
   0xd   :  { %131 = vmatpush.msra.mxu0 %v92_v22  ;;  %244 = vmatpush.msra.mxu1 %v93_v23  ;;  %v78_v36 = vld [vmem:[%s4773_s1 + $0xd0] sm:$0xff]  ;;  %v79_v37 = vld [vmem:[%s4773_s1 + $0xd8] sm:$0xff]  ;;  %v76_v38 = vld [vmem:[%s4773_s1 + $0xc0] sm:$0xff] }
   0xe   :  { %358 = vmatpush.msra.mxu2 %v90_v24  ;;  %471 = vmatpush.msra.mxu3 %v91_v25  ;;  %v77_v39 = vld [vmem:[%s4773_s1 + $0xc8] sm:$0xff]  ;;  %v74_v40 = vld [vmem:[%s4773_s1 + $0xb0] sm:$0xff]  ;;  %v75_v41 = vld [vmem:[%s4773_s1 + $0xb8] sm:$0xff] }
   0xf   :  { %132 = vmatpush.msra.mxu0 %v88_v26  ;;  %245 = vmatpush.msra.mxu1 %v89_v27  ;;  %v72_v42 = vld [vmem:[%s4773_s1 + $0xa0] sm:$0xff]  ;;  %v73_v43 = vld [vmem:[%s4773_s1 + $0xa8] sm:$0xff]  ;;  %v70_v44 = vld [vmem:[%s4773_s1 + $0x90] sm:$0xff] }
  0x10   :  { %359 = vmatpush.msra.mxu2 %v86_v28  ;;  %472 = vmatpush.msra.mxu3 %v87_v29  ;;  %v71_v45 = vld [vmem:[%s4773_s1 + $0x98] sm:$0xff]  ;;  %v68_v46 = vld [vmem:[%s4773_s1 + $0x80] sm:$0xff]  ;;  %v69_v47 = vld [vmem:[%s4773_s1 + $0x88] sm:$0xff] }
  0x11   :  { %133 = vmatpush.msra.mxu0 %v84_v30  ;;  %246 = vmatpush.msra.mxu1 %v85_v31  ;;  %v66_v48 = vld [vmem:[%s4773_s1 + $0x70] sm:$0xff]  ;;  %v67_v49 = vld [vmem:[%s4773_s1 + $0x78] sm:$0xff]  ;;  %v64_v50 = vld [vmem:[%s4773_s1 + $0x60] sm:$0xff] }
  0x12   :  { %360 = vmatpush.msra.mxu2 %v82_v32  ;;  %473 = vmatpush.msra.mxu3 %v83_v33  ;;  %v65_v51 = vld [vmem:[%s4773_s1 + $0x68] sm:$0xff]  ;;  %v62_v52 = vld [vmem:[%s4773_s1 + $0x50] sm:$0xff]  ;;  %v63_v53 = vld [vmem:[%s4773_s1 + $0x58] sm:$0xff] }
  0x13   :  { %134 = vmatpush.msra.mxu0 %v80_v34  ;;  %247 = vmatpush.msra.mxu1 %v81_v35  ;;  %v60_v54 = vld [vmem:[%s4773_s1 + $0x40] sm:$0xff]  ;;  %v61_v55 = vld [vmem:[%s4773_s1 + $0x48] sm:$0xff]  ;;  %v58_v56 = vld [vmem:[%s4773_s1 + $0x30] sm:$0xff] }
  0x14   :  { %361 = vmatpush.msra.mxu2 %v78_v36  ;;  %474 = vmatpush.msra.mxu3 %v79_v37  ;;  %v59_v57 = vld [vmem:[%s4773_s1 + $0x38] sm:$0xff]  ;;  %v56_v58 = vld [vmem:[%s4773_s1 + $0x20] sm:$0xff]  ;;  %v57_v59 = vld [vmem:[%s4773_s1 + $0x28] sm:$0xff] }
  0x15   :  { %135 = vmatpush.msra.mxu0 %v76_v38  ;;  %248 = vmatpush.msra.mxu1 %v77_v39  ;;  %v54_v60 = vld [vmem:[%s4773_s1 + $0x10] sm:$0xff]  ;;  %v55_v61 = vld [vmem:[%s4773_s1 + $0x18] sm:$0xff]  ;;  %v20_v62 = vld [vmem:[%s4774_s0] sm:$0xff] }
  0x16   :  { %362 = vmatpush.msra.mxu2 %v74_v40  ;;  %475 = vmatpush.msra.mxu3 %v75_v41  ;;  %v52_v63 = vld [vmem:[%s4773_s1] sm:$0xff]  ;;  %v53_v0 = vld [vmem:[%s4773_s1 + $0x8] sm:$0xff]  ;;  %v22_v2 = vld [vmem:[%s4774_s0 + $0x10] sm:$0xff] }
  0x17   :  { %136 = vmatpush.msra.mxu0 %v72_v42  ;;  %249 = vmatpush.msra.mxu1 %v73_v43  ;;  %v21_v1 = vld [vmem:[%s4774_s0 + $0x8] sm:$0xff]  ;;  %v23_v3 = vld [vmem:[%s4774_s0 + $0x18] sm:$0xff]  ;;  %v24_v4 = vld [vmem:[%s4774_s0 + $0x20] sm:$0xff] }
  0x18   :  { %363 = vmatpush.msra.mxu2 %v70_v44  ;;  %476 = vmatpush.msra.mxu3 %v71_v45  ;;  %v25_v5 = vld [vmem:[%s4774_s0 + $0x28] sm:$0xff]  ;;  %v26_v6 = vld [vmem:[%s4774_s0 + $0x30] sm:$0xff]  ;;  %v27_v7 = vld [vmem:[%s4774_s0 + $0x38] sm:$0xff] }
  0x19   :  { %137 = vmatpush.msra.mxu0 %v68_v46  ;;  %250 = vmatpush.msra.mxu1 %v69_v47  ;;  %v28_v8 = vld [vmem:[%s4774_s0 + $0x40] sm:$0xff]  ;;  %v29_v9 = vld [vmem:[%s4774_s0 + $0x48] sm:$0xff]  ;;  %v30_v10 = vld [vmem:[%s4774_s0 + $0x50] sm:$0xff] }
  0x1a   :  { %364 = vmatpush.msra.mxu2 %v66_v48  ;;  %477 = vmatpush.msra.mxu3 %v67_v49  ;;  %v31_v11 = vld [vmem:[%s4774_s0 + $0x58] sm:$0xff]  ;;  %v32_v12 = vld [vmem:[%s4774_s0 + $0x60] sm:$0xff]  ;;  %v33_v13 = vld [vmem:[%s4774_s0 + $0x68] sm:$0xff] }
  0x1b   :  { %138 = vmatpush.msra.mxu0 %v64_v50  ;;  %251 = vmatpush.msra.mxu1 %v65_v51  ;;  %v34_v14 = vld [vmem:[%s4774_s0 + $0x70] sm:$0xff]  ;;  %v35_v15 = vld [vmem:[%s4774_s0 + $0x78] sm:$0xff]  ;;  %v116_v16 = vld [vmem:[%s4775_s2] sm:$0xf] }
  0x1c   :  { %365 = vmatpush.msra.mxu2 %v62_v52  ;;  %478 = vmatpush.msra.mxu3 %v63_v53  ;;  %v2539_v17 = vperm.slane %v116_v16, 0  ;;  %v2541_v18 = vperm.slane %v116_v16, 1  ;;  %v36_v19 = vld [vmem:[%s4774_s0 + $0x80] sm:$0xff]  ;;  %v2552_v24 = vperm.slane %v116_v16, 2  ;;  %v2554_v25 = vperm.slane %v116_v16, 3  ;;  %v37_v33 = vld [vmem:[%s4774_s0 + $0x88] sm:$0xff] }
  0x1d   :  { %139 = vmatpush.msra.mxu0 %v60_v54  ;;  %252 = vmatpush.msra.mxu1 %v61_v55  ;;  %v38_v52 = vld [vmem:[%s4774_s0 + $0x90] sm:$0xff] }
  0x1e   :  { %366 = vmatpush.msra.mxu2 %v58_v56  ;;  %479 = vmatpush.msra.mxu3 %v59_v57 }
  0x1f   :  { %140 = vmatpush.msra.mxu0 %v56_v58  ;;  %253 = vmatpush.msra.mxu1 %v57_v59 }
  0x20   :  { %367 = vmatpush.msra.mxu2 %v54_v60  ;;  %480 = vmatpush.msra.mxu3 %v55_v61 }
  0x21   :  { %368 = vmatmul.f32.vlgmr.msra.gmra.mxu2 %v20_v62  ;;  %481 = vmatmul.f32.vlgmr.msra.gmra.mxu3 %v20_v62 }
  0x22   :  { %141 = vmatpush.msra.mxu0 %v52_v63  ;;  %254 = vmatpush.msra.mxu1 %v53_v0 }
  0x23   :  { %142 = vmatmul.f32.vlgmr.msra.gmra.mxu0 %v20_v62  ;;  %255 = vmatmul.f32.vlgmr.msra.gmra.mxu1 %v20_v62 }
  0x29   :  { %371 = vmatmul.f32.gmra.mxu2 %v21_v1  ;;  %484 = vmatmul.f32.gmra.mxu3 %v21_v1 }
  0x2b   :  { %145 = vmatmul.f32.gmra.mxu0 %v21_v1  ;;  %258 = vmatmul.f32.gmra.mxu1 %v21_v1 }
  0x31   :  { %374 = vmatmul.f32.gmra.mxu2 %v22_v2  ;;  %487 = vmatmul.f32.gmra.mxu3 %v22_v2 }
  0x33   :  { %148 = vmatmul.f32.gmra.mxu0 %v22_v2  ;;  %261 = vmatmul.f32.gmra.mxu1 %v22_v2 }
  0x39   :  { %377 = vmatmul.f32.gmra.mxu2 %v23_v3  ;;  %490 = vmatmul.f32.gmra.mxu3 %v23_v3 }
  0x3b   :  { %151 = vmatmul.f32.gmra.mxu0 %v23_v3  ;;  %264 = vmatmul.f32.gmra.mxu1 %v23_v3 }
  0x41   :  { %380 = vmatmul.f32.gmra.mxu2 %v24_v4  ;;  %493 = vmatmul.f32.gmra.mxu3 %v24_v4 }
  0x43   :  { %154 = vmatmul.f32.gmra.mxu0 %v24_v4  ;;  %267 = vmatmul.f32.gmra.mxu1 %v24_v4 }
  0x49   :  { %383 = vmatmul.f32.gmra.mxu2 %v25_v5  ;;  %496 = vmatmul.f32.gmra.mxu3 %v25_v5 }
  0x4b   :  { %157 = vmatmul.f32.gmra.mxu0 %v25_v5  ;;  %270 = vmatmul.f32.gmra.mxu1 %v25_v5 }
  0x51   :  { %386 = vmatmul.f32.gmra.mxu2 %v26_v6  ;;  %499 = vmatmul.f32.gmra.mxu3 %v26_v6 }
  0x53   :  { %160 = vmatmul.f32.gmra.mxu0 %v26_v6  ;;  %273 = vmatmul.f32.gmra.mxu1 %v26_v6  ;;  %v39_v6 = vld [vmem:[%s4774_s0 + $0x98] sm:$0xff] }
  0x59   :  { %389 = vmatmul.f32.gmra.mxu2 %v27_v7  ;;  %502 = vmatmul.f32.gmra.mxu3 %v27_v7 }
  0x5b   :  { %163 = vmatmul.f32.gmra.mxu0 %v27_v7  ;;  %276 = vmatmul.f32.gmra.mxu1 %v27_v7 }
  0x61   :  { %392 = vmatmul.f32.gmra.mxu2 %v28_v8  ;;  %505 = vmatmul.f32.gmra.mxu3 %v28_v8 }
  0x63   :  { %166 = vmatmul.f32.gmra.mxu0 %v28_v8  ;;  %279 = vmatmul.f32.gmra.mxu1 %v28_v8 }
  0x69   :  { %395 = vmatmul.f32.gmra.mxu2 %v29_v9  ;;  %508 = vmatmul.f32.gmra.mxu3 %v29_v9 }
  0x6b   :  { %169 = vmatmul.f32.gmra.mxu0 %v29_v9  ;;  %282 = vmatmul.f32.gmra.mxu1 %v29_v9 }
  0x71   :  { %398 = vmatmul.f32.gmra.mxu2 %v30_v10  ;;  %511 = vmatmul.f32.gmra.mxu3 %v30_v10 }
  0x73   :  { %172 = vmatmul.f32.gmra.mxu0 %v30_v10  ;;  %285 = vmatmul.f32.gmra.mxu1 %v30_v10 }
  0x79   :  { %401 = vmatmul.f32.gmra.mxu2 %v31_v11  ;;  %514 = vmatmul.f32.gmra.mxu3 %v31_v11 }
  0x7b   :  { %175 = vmatmul.f32.gmra.mxu0 %v31_v11  ;;  %288 = vmatmul.f32.gmra.mxu1 %v31_v11 }
  0x81   :  { %404 = vmatmul.f32.gmra.mxu2 %v32_v12  ;;  %517 = vmatmul.f32.gmra.mxu3 %v32_v12 }
  0x83   :  { %178 = vmatmul.f32.gmra.mxu0 %v32_v12  ;;  %291 = vmatmul.f32.gmra.mxu1 %v32_v12 }
  0x89   :  { %407 = vmatmul.f32.gmra.mxu2 %v33_v13  ;;  %520 = vmatmul.f32.gmra.mxu3 %v33_v13 }
  0x8b   :  { %181 = vmatmul.f32.gmra.mxu0 %v33_v13  ;;  %294 = vmatmul.f32.gmra.mxu1 %v33_v13 }
  0x91   :  { %410 = vmatmul.f32.gmra.mxu2 %v34_v14  ;;  %523 = vmatmul.f32.gmra.mxu3 %v34_v14 }
  0x93   :  { %184 = vmatmul.f32.gmra.mxu0 %v34_v14  ;;  %297 = vmatmul.f32.gmra.mxu1 %v34_v14 }
  0x99   :  { %413 = vmatmul.f32.gmra.mxu2 %v35_v15  ;;  %526 = vmatmul.f32.gmra.mxu3 %v35_v15 }
  0x9b   :  { %187 = vmatmul.f32.gmra.mxu0 %v35_v15  ;;  %300 = vmatmul.f32.gmra.mxu1 %v35_v15 }
  0xa0   :  { %v143_v20 = vpop.f32.mrf.mxu0  ;;  %v256_v21 = vpop.f32.mrf.mxu1 }
  0xa1   :  { %416 = vmatmul.f32.gmra.mxu2 %v36_v19  ;;  %v2547_v22 = vadd.f32 %v143_v20, %v2539_v17  ;;  %v2550_v23 = vadd.f32 %v256_v21, %v2541_v18  ;;  %529 = vmatmul.f32.gmra.mxu3 %v36_v19 }
  0xa3   :  { %190 = vmatmul.f32.gmra.mxu0 %v36_v19  ;;  %303 = vmatmul.f32.gmra.mxu1 %v36_v19  ;;  %v580_v26 = vadd.f32 %v2550_v23, %v2547_v22  ;;  %v740_v27 = vmul.f32 %v2547_v22, %v2547_v22  ;;  %v741_v28 = vmul.f32 %v2550_v23, %v2550_v23 }
  0xa4   :  { %v369_v29 = vpop.f32.mrf.mxu2  ;;  %v482_v30 = vpop.f32.mrf.mxu3 }
  0xa5   :  { %v2563_v31 = vadd.f32 %v369_v29, %v2552_v24  ;;  %v2566_v32 = vadd.f32 %v482_v30, %v2554_v25  ;;  %v868_v34 = vadd.f32 %v741_v28, %v740_v27 }
  0xa7   :  { %v581_v35 = vadd.f32 %v580_v26, %v2563_v31  ;;  %v742_v36 = vmul.f32 %v2563_v31, %v2563_v31  ;;  %v743_v39 = vmul.f32 %v2566_v32, %v2566_v32 }
  0xa8   :  { %v146_v37 = vpop.f32.mrf.mxu0  ;;  %v259_v38 = vpop.f32.mrf.mxu1 }
  0xa9   :  { %419 = vmatmul.f32.gmra.mxu2 %v37_v33  ;;  %v2577_v40 = vadd.f32 %v146_v37, %v2539_v17  ;;  %v2580_v41 = vadd.f32 %v259_v38, %v2541_v18  ;;  %532 = vmatmul.f32.gmra.mxu3 %v37_v33  ;;  %v582_v42 = vadd.f32 %v581_v35, %v2566_v32 }
  0xaa   :  { %v869_v43 = vadd.f32 %v868_v34, %v742_v36 }
  0xab   :  { %583 = vadd.xlane.f32.xlu0 %v582_v42  ;;  %193 = vmatmul.f32.gmra.mxu0 %v37_v33  ;;  %v585_v44 = vadd.f32 %v2580_v41, %v2577_v40  ;;  %v744_v45 = vmul.f32 %v2577_v40, %v2577_v40  ;;  %v745_v46 = vmul.f32 %v2580_v41, %v2580_v41 }
  0xac   :  { %v372_v47 = vpop.f32.mrf.mxu2  ;;  %306 = vmatmul.f32.gmra.mxu1 %v37_v33  ;;  %v870_v48 = vadd.f32 %v869_v43, %v743_v39  ;;  %v485_v49 = vpop.f32.mrf.mxu3  ;;  %v40_v33 = vld [vmem:[%s4774_s0 + $0xa0] sm:$0xff] }
  0xad   :  { %v2590_v50 = vadd.f32 %v372_v47, %v2552_v24  ;;  %v2593_v51 = vadd.f32 %v485_v49, %v2554_v25  ;;  %v873_v57 = vadd.f32 %v745_v46, %v744_v45 }
  0xae   :  { %871 = vadd.xlane.f32.xlu2 %v870_v48 }
  0xaf   :  { %v586_v53 = vadd.f32 %v585_v44, %v2590_v50  ;;  %v746_v56 = vmul.f32 %v2590_v50, %v2590_v50  ;;  %v747_v2 = vmul.f32 %v2593_v51, %v2593_v51 }
  0xb0   :  { %v149_v54 = vpop.f32.mrf.mxu0  ;;  %v262_v55 = vpop.f32.mrf.mxu1 }
  0xb1   :  { %422 = vmatmul.f32.gmra.mxu2 %v38_v52  ;;  %v2602_v58 = vadd.f32 %v149_v54, %v2539_v17  ;;  %v2605_v59 = vadd.f32 %v262_v55, %v2541_v18  ;;  %535 = vmatmul.f32.gmra.mxu3 %v38_v52  ;;  %v587_v60 = vadd.f32 %v586_v53, %v2593_v51 }
  0xb2   :  { %v874_v3 = vadd.f32 %v873_v57, %v746_v56  ;;  %v41_v56 = vld [vmem:[%s4774_s0 + $0xa8] sm:$0xff] }
  0xb3   :  { %588 = vadd.xlane.f32.xlu0 %v587_v60  ;;  %196 = vmatmul.f32.gmra.mxu0 %v38_v52  ;;  %v590_v61 = vadd.f32 %v2605_v59, %v2602_v58  ;;  %v748_v62 = vmul.f32 %v2602_v58, %v2602_v58  ;;  %v749_v63 = vmul.f32 %v2605_v59, %v2605_v59 }
  0xb4   :  { %v375_v0 = vpop.f32.mrf.mxu2  ;;  %309 = vmatmul.f32.gmra.mxu1 %v38_v52  ;;  %v488_v1 = vpop.f32.mrf.mxu3  ;;  %v875_v10 = vadd.f32 %v874_v3, %v747_v2 }
  0xb5   :  { %v2617_v4 = vadd.f32 %v375_v0, %v2552_v24  ;;  %v2620_v5 = vadd.f32 %v488_v1, %v2554_v25  ;;  %v878_v12 = vadd.f32 %v749_v63, %v748_v62 }
  0xb7   :  { %v591_v7 = vadd.f32 %v590_v61, %v2617_v4  ;;  %v750_v11 = vmul.f32 %v2617_v4, %v2617_v4  ;;  %v751_v26 = vmul.f32 %v2620_v5, %v2620_v5 }
  0xb8   :  { %v152_v8 = vpop.f32.mrf.mxu0  ;;  %v265_v9 = vpop.f32.mrf.mxu1 }
  0xb9   :  { %425 = vmatmul.f32.gmra.mxu2 %v39_v6  ;;  %v2629_v13 = vadd.f32 %v152_v8, %v2539_v17  ;;  %v2632_v14 = vadd.f32 %v265_v9, %v2541_v18  ;;  %538 = vmatmul.f32.gmra.mxu3 %v39_v6  ;;  %v592_v15 = vadd.f32 %v591_v7, %v2620_v5 }
  0xba   :  { %v879_v27 = vadd.f32 %v878_v12, %v750_v11 }
  0xbb   :  { %v752_v16 = vmul.f32 %v2629_v13, %v2629_v13  ;;  %v753_v19 = vmul.f32 %v2632_v14, %v2632_v14  ;;  %593 = vadd.xlane.f32.xlu1 %v592_v15  ;;  %876 = vadd.xlane.f32.xlu0 %v875_v10  ;;  %v595_v39 = vadd.f32 %v2632_v14, %v2629_v13 }
  0xbc   :  { %v378_v20 = vpop.f32.mrf.mxu2  ;;  %199 = vmatmul.f32.gmra.mxu0 %v39_v6  ;;  %312 = vmatmul.f32.gmra.mxu1 %v39_v6  ;;  %v491_v21 = vpop.f32.mrf.mxu3  ;;  %v880_v38 = vadd.f32 %v879_v27, %v751_v26 }
  0xbd   :  { %v2642_v28 = vadd.f32 %v378_v20, %v2552_v24  ;;  %v2645_v29 = vadd.f32 %v491_v21, %v2554_v25  ;;  %v883_v30 = vadd.f32 %v753_v19, %v752_v16  ;;  %v42_v21 = vld [vmem:[%s4774_s0 + $0xb0] sm:$0xff] }
  0xbf   :  { %v754_v34 = vmul.f32 %v2642_v28, %v2642_v28  ;;  %v755_v35 = vmul.f32 %v2645_v29, %v2645_v29  ;;  %v596_v55 = vadd.f32 %v595_v39, %v2642_v28 }
  0xc0   :  { %v155_v36 = vpop.f32.mrf.mxu0  ;;  %v268_v37 = vpop.f32.mrf.mxu1 }
  0xc1   :  { %428 = vmatmul.f32.gmra.mxu2 %v40_v33  ;;  %v2657_v42 = vadd.f32 %v155_v36, %v2539_v17  ;;  %v2660_v43 = vadd.f32 %v268_v37, %v2541_v18  ;;  %541 = vmatmul.f32.gmra.mxu3 %v40_v33  ;;  %v884_v44 = vadd.f32 %v883_v30, %v754_v34 }
  0xc2   :  { %v597_v3 = vadd.f32 %v596_v55, %v2645_v29  ;;  %v43_v55 = vld [vmem:[%s4774_s0 + $0xb8] sm:$0xff] }
  0xc3   :  { %v756_v45 = vmul.f32 %v2657_v42, %v2657_v42  ;;  %v757_v46 = vmul.f32 %v2660_v43, %v2660_v43  ;;  %881 = vadd.xlane.f32.xlu1 %v880_v38  ;;  %v885_v47 = vadd.f32 %v884_v44, %v755_v35  ;;  %v600_v48 = vadd.f32 %v2660_v43, %v2657_v42 }
  0xc4   :  { %v381_v49 = vpop.f32.mrf.mxu2  ;;  %202 = vmatmul.f32.gmra.mxu0 %v40_v33  ;;  %315 = vmatmul.f32.gmra.mxu1 %v40_v33  ;;  %v494_v52 = vpop.f32.mrf.mxu3 }
  0xc5   :  { %v2669_v53 = vadd.f32 %v381_v49, %v2552_v24  ;;  %886 = vadd.xlane.f32.xlu2 %v885_v47  ;;  %v2672_v54 = vadd.f32 %v494_v52, %v2554_v25  ;;  %v888_v57 = vadd.f32 %v757_v46, %v756_v45 }
  0xc7   :  { %v601_v60 = vadd.f32 %v600_v48, %v2669_v53  ;;  %v758_v61 = vmul.f32 %v2669_v53, %v2669_v53  ;;  %v759_v0 = vmul.f32 %v2672_v54, %v2672_v54 }
  0xc8   :  { %v158_v62 = vpop.f32.mrf.mxu0  ;;  %v271_v63 = vpop.f32.mrf.mxu1 }
  0xc9   :  { %431 = vmatmul.f32.gmra.mxu2 %v41_v56  ;;  %v2684_v1 = vadd.f32 %v158_v62, %v2539_v17  ;;  %v2687_v2 = vadd.f32 %v271_v63, %v2541_v18  ;;  %544 = vmatmul.f32.gmra.mxu3 %v41_v56  ;;  %v889_v6 = vadd.f32 %v888_v57, %v758_v61 }
  0xca   :  { %v602_v9 = vadd.f32 %v601_v60, %v2672_v54 }
  0xcb   :  { %v760_v7 = vmul.f32 %v2684_v1, %v2684_v1  ;;  %v761_v8 = vmul.f32 %v2687_v2, %v2687_v2  ;;  %598 = vadd.xlane.f32.xlu1 %v597_v3  ;;  %v605_v10 = vadd.f32 %v2687_v2, %v2684_v1  ;;  %v890_v12 = vadd.f32 %v889_v6, %v759_v0 }
  0xcc   :  { %v384_v11 = vpop.f32.mrf.mxu2  ;;  %205 = vmatmul.f32.gmra.mxu0 %v41_v56  ;;  %318 = vmatmul.f32.gmra.mxu1 %v41_v56  ;;  %v497_v15 = vpop.f32.mrf.mxu3 }
  0xcd   :  { %v2698_v16 = vadd.f32 %v384_v11, %v2552_v24  ;;  %603 = vadd.xlane.f32.xlu2 %v602_v9  ;;  %v2701_v19 = vadd.f32 %v497_v15, %v2554_v25  ;;  %v893_v20 = vadd.f32 %v761_v8, %v760_v7  ;;  %891 = vadd.xlane.f32.xlu0 %v890_v12 }
  0xcf   :  { %v762_v26 = vmul.f32 %v2698_v16, %v2698_v16  ;;  %v763_v27 = vmul.f32 %v2701_v19, %v2701_v19  ;;  %v606_v30 = vadd.f32 %v605_v10, %v2698_v16 }
  0xd0   :  { %v161_v33 = vpop.f32.mrf.mxu0  ;;  %v274_v34 = vpop.f32.mrf.mxu1 }
  0xd1   :  { %434 = vmatmul.f32.gmra.mxu2 %v42_v21  ;;  %v2712_v35 = vadd.f32 %v161_v33, %v2539_v17  ;;  %v2715_v36 = vadd.f32 %v274_v34, %v2541_v18  ;;  %547 = vmatmul.f32.gmra.mxu3 %v42_v21  ;;  %v894_v37 = vadd.f32 %v893_v20, %v762_v26  ;;  %v44_v26 = vld [vmem:[%s4774_s0 + $0xc0] sm:$0xff] }
  0xd2   :  { %v607_v38 = vadd.f32 %v606_v30, %v2701_v19 }
  0xd3   :  { %4865 = vst [vmem:[#allocation2_spill] sm:$0xff] %v2715_v36  ;;  %v764_v39 = vmul.f32 %v2712_v35, %v2712_v35  ;;  %v765_v44 = vmul.f32 %v2715_v36, %v2715_v36  ;;  %v895_v45 = vadd.f32 %v894_v37, %v763_v27  ;;  %v610_v46 = vadd.f32 %v2715_v36, %v2712_v35 }
  0xd4   :  { %v387_v47 = vpop.f32.mrf.mxu2  ;;  %208 = vmatmul.f32.gmra.mxu0 %v42_v21  ;;  %321 = vmatmul.f32.gmra.mxu1 %v42_v21  ;;  %v500_v48 = vpop.f32.mrf.mxu3 }
  0xd5   :  { %v2725_v49 = vadd.f32 %v387_v47, %v2552_v24  ;;  %896 = vadd.xlane.f32.xlu1 %v895_v45  ;;  %608 = vadd.xlane.f32.xlu2 %v607_v38  ;;  %v2728_v52 = vadd.f32 %v500_v48, %v2554_v25  ;;  %v898_v56 = vadd.f32 %v765_v44, %v764_v39 }
  0xd7   :  { %4866 = vst [vmem:[#allocation3_spill] sm:$0xff] %v2725_v49  ;;  %v611_v57 = vadd.f32 %v610_v46, %v2725_v49  ;;  %v766_v60 = vmul.f32 %v2725_v49, %v2725_v49  ;;  %v767_v63 = vmul.f32 %v2728_v52, %v2728_v52 }
  0xd8   :  { %4867 = vst [vmem:[#allocation4_spill] sm:$0xff] %v2728_v52  ;;  %v164_v61 = vpop.f32.mrf.mxu0  ;;  %v277_v62 = vpop.f32.mrf.mxu1 }
  0xd9   :  { %437 = vmatmul.f32.gmra.mxu2 %v43_v55  ;;  %v2739_v0 = vadd.f32 %v164_v61, %v2539_v17  ;;  %v2742_v3 = vadd.f32 %v277_v62, %v2541_v18  ;;  %550 = vmatmul.f32.gmra.mxu3 %v43_v55  ;;  %v612_v6 = vadd.f32 %v611_v57, %v2728_v52 }
  0xda   :  { %v899_v7 = vadd.f32 %v898_v56, %v766_v60 }
  0xdb   :  { %4868 = vst [vmem:[#allocation5_spill] sm:$0xff] %v2739_v0  ;;  %v768_v8 = vmul.f32 %v2739_v0, %v2739_v0  ;;  %v769_v9 = vmul.f32 %v2742_v3, %v2742_v3  ;;  %613 = vadd.xlane.f32.xlu0 %v612_v6  ;;  %v615_v10 = vadd.f32 %v2742_v3, %v2739_v0 }
  0xdc   :  { %4869 = vst [vmem:[#allocation6_spill] sm:$0xff] %v2742_v3  ;;  %v390_v11 = vpop.f32.mrf.mxu2  ;;  %211 = vmatmul.f32.gmra.mxu0 %v43_v55  ;;  %324 = vmatmul.f32.gmra.mxu1 %v43_v55  ;;  %v900_v12 = vadd.f32 %v899_v7, %v767_v63  ;;  %v503_v15 = vpop.f32.mrf.mxu3  ;;  %v45_v63 = vld [vmem:[%s4774_s0 + $0xc8] sm:$0xff] }
  0xdd   :  { %v2752_v20 = vadd.f32 %v390_v11, %v2552_v24  ;;  %v2755_v21 = vadd.f32 %v503_v15, %v2554_v25  ;;  %v903_v27 = vadd.f32 %v769_v9, %v768_v8 }
  0xde   :  { %901 = vadd.xlane.f32.xlu2 %v900_v12 }
  0xdf   :  { %4870 = vst [vmem:[#allocation7_spill] sm:$0xff] %v2752_v20  ;;  %v616_v30 = vadd.f32 %v615_v10, %v2752_v20  ;;  %v770_v33 = vmul.f32 %v2752_v20, %v2752_v20  ;;  %v771_v38 = vmul.f32 %v2755_v21, %v2755_v21 }
  0xe0   :  { %4871 = vst [vmem:[#allocation8_spill] sm:$0xff] %v2755_v21  ;;  %v167_v34 = vpop.f32.mrf.mxu0  ;;  %v280_v37 = vpop.f32.mrf.mxu1 }
  0xe1   :  { %440 = vmatmul.f32.gmra.mxu2 %v44_v26  ;;  %v2766_v39 = vadd.f32 %v167_v34, %v2539_v17  ;;  %v2769_v44 = vadd.f32 %v280_v37, %v2541_v18  ;;  %553 = vmatmul.f32.gmra.mxu3 %v44_v26  ;;  %v617_v45 = vadd.f32 %v616_v30, %v2755_v21 }
  0xe2   :  { %v904_v46 = vadd.f32 %v903_v27, %v770_v33 }
  0xe3   :  { %4872 = vst [vmem:[#allocation9_spill] sm:$0xff] %v2766_v39  ;;  %v772_v47 = vmul.f32 %v2766_v39, %v2766_v39  ;;  %v620_v48 = vadd.f32 %v2769_v44, %v2766_v39  ;;  %v773_v55 = vmul.f32 %v2769_v44, %v2769_v44  ;;  %618 = vadd.xlane.f32.xlu1 %v617_v45 }
  0xe4   :  { %4873 = vst [vmem:[#allocation10_spill] sm:$0xff] %v2769_v44  ;;  %v393_v56 = vpop.f32.mrf.mxu2  ;;  %214 = vmatmul.f32.gmra.mxu0 %v44_v26  ;;  %327 = vmatmul.f32.gmra.mxu1 %v44_v26  ;;  %v905_v57 = vadd.f32 %v904_v46, %v771_v38  ;;  %v506_v60 = vpop.f32.mrf.mxu3 }
  0xe5   :  { %v2779_v61 = vadd.f32 %v393_v56, %v2552_v24  ;;  %v2782_v62 = vadd.f32 %v506_v60, %v2554_v25  ;;  %v908_v6 = vadd.f32 %v773_v55, %v772_v47 }
  0xe6   :  { %906 = vadd.xlane.f32.xlu0 %v905_v57 }
  0xe7   :  { %4874 = vst [vmem:[#allocation11_spill] sm:$0xff] %v2779_v61  ;;  %v774_v7 = vmul.f32 %v2779_v61, %v2779_v61  ;;  %v621_v8 = vadd.f32 %v620_v48, %v2779_v61  ;;  %v775_v11 = vmul.f32 %v2782_v62, %v2782_v62  ;;  %v46_v48 = vld [vmem:[%s4774_s0 + $0xd0] sm:$0xff] }
  0xe8   :  { %4875 = vst [vmem:[#allocation12_spill] sm:$0xff] %v2782_v62  ;;  %v170_v9 = vpop.f32.mrf.mxu0  ;;  %v283_v10 = vpop.f32.mrf.mxu1 }
  0xe9   :  { %443 = vmatmul.f32.gmra.mxu2 %v45_v63  ;;  %v2793_v12 = vadd.f32 %v170_v9, %v2539_v17  ;;  %v2796_v15 = vadd.f32 %v283_v10, %v2541_v18  ;;  %556 = vmatmul.f32.gmra.mxu3 %v45_v63  ;;  %v622_v26 = vadd.f32 %v621_v8, %v2782_v62 }
  0xea   :  { %v909_v27 = vadd.f32 %v908_v6, %v774_v7 }
  0xeb   :  { %4876 = vst [vmem:[#allocation13_spill] sm:$0xff] %v2793_v12  ;;  %v776_v30 = vmul.f32 %v2793_v12, %v2793_v12  ;;  %v625_v33 = vadd.f32 %v2796_v15, %v2793_v12  ;;  %v777_v34 = vmul.f32 %v2796_v15, %v2796_v15  ;;  %623 = vadd.xlane.f32.xlu2 %v622_v26 }
  0xec   :  { %4877 = vst [vmem:[#allocation14_spill] sm:$0xff] %v2796_v15  ;;  %v396_v37 = vpop.f32.mrf.mxu2  ;;  %217 = vmatmul.f32.gmra.mxu0 %v45_v63  ;;  %330 = vmatmul.f32.gmra.mxu1 %v45_v63  ;;  %v910_v38 = vadd.f32 %v909_v27, %v775_v11  ;;  %v509_v45 = vpop.f32.mrf.mxu3 }
  0xed   :  { %v2806_v46 = vadd.f32 %v396_v37, %v2552_v24  ;;  %v2809_v47 = vadd.f32 %v509_v45, %v2554_v25  ;;  %v913_v55 = vadd.f32 %v777_v34, %v776_v30  ;;  %v47_v45 = vld [vmem:[%s4774_s0 + $0xd8] sm:$0xff] }
  0xee   :  { %911 = vadd.xlane.f32.xlu1 %v910_v38 }
  0xef   :  { %4878 = vst [vmem:[#allocation15_spill] sm:$0xff] %v2806_v46  ;;  %v778_v56 = vmul.f32 %v2806_v46, %v2806_v46  ;;  %v626_v57 = vadd.f32 %v625_v33, %v2806_v46  ;;  %v779_v6 = vmul.f32 %v2809_v47, %v2809_v47 }
  0xf0   :  { %4879 = vst [vmem:[#allocation16_spill] sm:$0xff] %v2809_v47  ;;  %v173_v60 = vpop.f32.mrf.mxu0  ;;  %v286_v63 = vpop.f32.mrf.mxu1 }
  0xf1   :  { %446 = vmatmul.f32.gmra.mxu2 %v46_v48  ;;  %v2820_v7 = vadd.f32 %v173_v60, %v2539_v17  ;;  %v2823_v8 = vadd.f32 %v286_v63, %v2541_v18  ;;  %559 = vmatmul.f32.gmra.mxu3 %v46_v48  ;;  %v627_v9 = vadd.f32 %v626_v57, %v2809_v47 }
  0xf2   :  { %v914_v10 = vadd.f32 %v913_v55, %v778_v56 }
  0xf3   :  { %4880 = vst [vmem:[#allocation17_spill] sm:$0xff] %v2820_v7  ;;  %v780_v11 = vmul.f32 %v2820_v7, %v2820_v7  ;;  %v630_v26 = vadd.f32 %v2823_v8, %v2820_v7  ;;  %v781_v27 = vmul.f32 %v2823_v8, %v2823_v8  ;;  %628 = vadd.xlane.f32.xlu0 %v627_v9 }
  0xf4   :  { %4881 = vst [vmem:[#allocation18_spill] sm:$0xff] %v2823_v8  ;;  %v399_v30 = vpop.f32.mrf.mxu2  ;;  %220 = vmatmul.f32.gmra.mxu0 %v46_v48  ;;  %333 = vmatmul.f32.gmra.mxu1 %v46_v48  ;;  %v915_v33 = vadd.f32 %v914_v10, %v779_v6  ;;  %v512_v34 = vpop.f32.mrf.mxu3 }
  0xf5   :  { %v2833_v37 = vadd.f32 %v399_v30, %v2552_v24  ;;  %v2836_v38 = vadd.f32 %v512_v34, %v2554_v25  ;;  %v918_v55 = vadd.f32 %v781_v27, %v780_v11 }
  0xf6   :  { %916 = vadd.xlane.f32.xlu2 %v915_v33 }
  0xf7   :  { %4882 = vst [vmem:[#allocation19_spill] sm:$0xff] %v2833_v37  ;;  %v782_v56 = vmul.f32 %v2833_v37, %v2833_v37  ;;  %v631_v57 = vadd.f32 %v630_v26, %v2833_v37  ;;  %v783_v63 = vmul.f32 %v2836_v38, %v2836_v38 }
  0xf8   :  { %4883 = vst [vmem:[#allocation20_spill] sm:$0xff] %v2836_v38  ;;  %v176_v48 = vpop.f32.mrf.mxu0  ;;  %v289_v60 = vpop.f32.mrf.mxu1 }
  0xf9   :  { %449 = vmatmul.f32.gmra.mxu2 %v47_v45  ;;  %v2847_v6 = vadd.f32 %v176_v48, %v2539_v17  ;;  %v2850_v9 = vadd.f32 %v289_v60, %v2541_v18  ;;  %562 = vmatmul.f32.gmra.mxu3 %v47_v45  ;;  %v632_v10 = vadd.f32 %v631_v57, %v2836_v38 }
  0xfa   :  { %v919_v11 = vadd.f32 %v918_v55, %v782_v56  ;;  %v48_v56 = vld [vmem:[%s4774_s0 + $0xe0] sm:$0xff] }
  0xfb   :  { %4884 = vst [vmem:[#allocation21_spill] sm:$0xff] %v2847_v6  ;;  %v784_v27 = vmul.f32 %v2847_v6, %v2847_v6  ;;  %v635_v26 = vadd.f32 %v2850_v9, %v2847_v6  ;;  %v785_v30 = vmul.f32 %v2850_v9, %v2850_v9  ;;  %633 = vadd.xlane.f32.xlu1 %v632_v10 }
  0xfc   :  { %4885 = vst [vmem:[#allocation22_spill] sm:$0xff] %v2850_v9  ;;  %v402_v33 = vpop.f32.mrf.mxu2  ;;  %223 = vmatmul.f32.gmra.mxu0 %v47_v45  ;;  %336 = vmatmul.f32.gmra.mxu1 %v47_v45  ;;  %v920_v34 = vadd.f32 %v919_v11, %v783_v63  ;;  %v515_v48 = vpop.f32.mrf.mxu3 }
  0xfd   :  { %v2860_v60 = vadd.f32 %v402_v33, %v2552_v24  ;;  %v2863_v55 = vadd.f32 %v515_v48, %v2554_v25  ;;  %v923_v57 = vadd.f32 %v785_v30, %v784_v27 }
  0xfe   :  { %921 = vadd.xlane.f32.xlu0 %v920_v34 }
  0xff   :  { %4886 = vst [vmem:[#allocation23_spill] sm:$0xff] %v2860_v60  ;;  %v786_v10 = vmul.f32 %v2860_v60, %v2860_v60  ;;  %v636_v9 = vadd.f32 %v635_v26, %v2860_v60  ;;  %v787_v11 = vmul.f32 %v2863_v55, %v2863_v55 }
 0x100   :  { %4887 = vst [vmem:[#allocation24_spill] sm:$0xff] %v2863_v55  ;;  %v179_v45 = vpop.f32.mrf.mxu0  ;;  %v292_v63 = vpop.f32.mrf.mxu1 }
 0x101   :  { %452 = vmatmul.f32.gmra.mxu2 %v48_v56  ;;  %v2874_v33 = vadd.f32 %v179_v45, %v2539_v17  ;;  %v2877_v34 = vadd.f32 %v292_v63, %v2541_v18  ;;  %565 = vmatmul.f32.gmra.mxu3 %v48_v56  ;;  %v637_v27 = vadd.f32 %v636_v9, %v2863_v55 }
 0x102   :  { %v924_v30 = vadd.f32 %v923_v57, %v786_v10  ;;  %v49_v57 = vld [vmem:[%s4774_s0 + $0xe8] sm:$0xff] }
 0x103   :  { %4888 = vst [vmem:[#allocation25_spill] sm:$0xff] %v2874_v33  ;;  %v788_v48 = vmul.f32 %v2874_v33, %v2874_v33  ;;  %v640_v26 = vadd.f32 %v2877_v34, %v2874_v33  ;;  %v789_v60 = vmul.f32 %v2877_v34, %v2877_v34  ;;  %638 = vadd.xlane.f32.xlu2 %v637_v27 }
 0x104   :  { %4889 = vst [vmem:[#allocation26_spill] sm:$0xff] %v2877_v34  ;;  %v405_v6 = vpop.f32.mrf.mxu2  ;;  %226 = vmatmul.f32.gmra.mxu0 %v48_v56  ;;  %339 = vmatmul.f32.gmra.mxu1 %v48_v56  ;;  %v925_v45 = vadd.f32 %v924_v30, %v787_v11  ;;  %v518_v63 = vpop.f32.mrf.mxu3 }
 0x105   :  { %v2887_v38 = vadd.f32 %v405_v6, %v2552_v24  ;;  %v2890_v9 = vadd.f32 %v518_v63, %v2554_v25  ;;  %v928_v10 = vadd.f32 %v789_v60, %v788_v48 }
 0x106   :  { %926 = vadd.xlane.f32.xlu1 %v925_v45 }
 0x107   :  { %4890 = vst [vmem:[#allocation27_spill] sm:$0xff] %v2887_v38  ;;  %v790_v27 = vmul.f32 %v2887_v38, %v2887_v38  ;;  %v641_v34 = vadd.f32 %v640_v26, %v2887_v38  ;;  %v791_v6 = vmul.f32 %v2890_v9, %v2890_v9 }
 0x108   :  { %4891 = vst [vmem:[#allocation28_spill] sm:$0xff] %v2890_v9  ;;  %v182_v56 = vpop.f32.mrf.mxu0  ;;  %v295_v11 = vpop.f32.mrf.mxu1 }
 0x109   :  { %455 = vmatmul.f32.gmra.mxu2 %v49_v57  ;;  %v2901_v30 = vadd.f32 %v182_v56, %v2539_v17  ;;  %v2904_v45 = vadd.f32 %v295_v11, %v2541_v18  ;;  %568 = vmatmul.f32.gmra.mxu3 %v49_v57  ;;  %v642_v60 = vadd.f32 %v641_v34, %v2890_v9 }
 0x10a   :  { %v929_v48 = vadd.f32 %v928_v10, %v790_v27  ;;  %v50_v10 = vld [vmem:[%s4774_s0 + $0xf0] sm:$0xff] }
 0x10b   :  { %4892 = vst [vmem:[#allocation29_spill] sm:$0xff] %v2901_v30  ;;  %v792_v63 = vmul.f32 %v2901_v30, %v2901_v30  ;;  %v645_v26 = vadd.f32 %v2904_v45, %v2901_v30  ;;  %v793_v38 = vmul.f32 %v2904_v45, %v2904_v45  ;;  %643 = vadd.xlane.f32.xlu0 %v642_v60 }
 0x10c   :  { %4893 = vst [vmem:[#allocation30_spill] sm:$0xff] %v2904_v45  ;;  %v408_v33 = vpop.f32.mrf.mxu2  ;;  %229 = vmatmul.f32.gmra.mxu0 %v49_v57  ;;  %342 = vmatmul.f32.gmra.mxu1 %v49_v57  ;;  %v930_v56 = vadd.f32 %v929_v48, %v791_v6  ;;  %v521_v11 = vpop.f32.mrf.mxu3 }
 0x10d   :  { %v2914_v55 = vadd.f32 %v408_v33, %v2552_v24  ;;  %v2917_v34 = vadd.f32 %v521_v11, %v2554_v25  ;;  %v933_v27 = vadd.f32 %v793_v38, %v792_v63 }
 0x10e   :  { %931 = vadd.xlane.f32.xlu2 %v930_v56 }
 0x10f   :  { %4894 = vst [vmem:[#allocation31_spill] sm:$0xff] %v2914_v55  ;;  %v794_v60 = vmul.f32 %v2914_v55, %v2914_v55  ;;  %v646_v45 = vadd.f32 %v645_v26, %v2914_v55  ;;  %v795_v33 = vmul.f32 %v2917_v34, %v2917_v34 }
 0x110   :  { %4895 = vst [vmem:[#allocation32_spill] sm:$0xff] %v2917_v34  ;;  %v185_v57 = vpop.f32.mrf.mxu0  ;;  %v298_v6 = vpop.f32.mrf.mxu1 }
 0x111   :  { %458 = vmatmul.f32.gmra.mxu2 %v50_v10  ;;  %v2928_v48 = vadd.f32 %v185_v57, %v2539_v17  ;;  %v2931_v56 = vadd.f32 %v298_v6, %v2541_v18  ;;  %571 = vmatmul.f32.gmra.mxu3 %v50_v10  ;;  %v647_v38 = vadd.f32 %v646_v45, %v2917_v34 }
 0x112   :  { %v934_v63 = vadd.f32 %v933_v27, %v794_v60  ;;  %v51_v27 = vld [vmem:[%s4774_s0 + $0xf8] sm:$0xff] }
 0x113   :  { %4896 = vst [vmem:[#allocation33_spill] sm:$0xff] %v2928_v48  ;;  %v796_v11 = vmul.f32 %v2928_v48, %v2928_v48  ;;  %v650_v26 = vadd.f32 %v2931_v56, %v2928_v48  ;;  %v797_v55 = vmul.f32 %v2931_v56, %v2931_v56  ;;  %648 = vadd.xlane.f32.xlu1 %v647_v38 }
 0x114   :  { %4897 = vst [vmem:[#allocation34_spill] sm:$0xff] %v2931_v56  ;;  %v411_v30 = vpop.f32.mrf.mxu2  ;;  %232 = vmatmul.f32.gmra.mxu0 %v50_v10  ;;  %345 = vmatmul.f32.gmra.mxu1 %v50_v10  ;;  %v935_v57 = vadd.f32 %v934_v63, %v795_v33  ;;  %v524_v6 = vpop.f32.mrf.mxu3 }
 0x115   :  { %v2941_v9 = vadd.f32 %v411_v30, %v2552_v24  ;;  %v2944_v45 = vadd.f32 %v524_v6, %v2554_v25  ;;  %v938_v60 = vadd.f32 %v797_v55, %v796_v11 }
 0x116   :  { %936 = vadd.xlane.f32.xlu0 %v935_v57 }
 0x117   :  { %4898 = vst [vmem:[#allocation35_spill] sm:$0xff] %v2941_v9  ;;  %v798_v38 = vmul.f32 %v2941_v9, %v2941_v9  ;;  %v651_v56 = vadd.f32 %v650_v26, %v2941_v9  ;;  %v799_v30 = vmul.f32 %v2944_v45, %v2944_v45 }
 0x118   :  { %4899 = vst [vmem:[#allocation36_spill] sm:$0xff] %v2944_v45  ;;  %v188_v10 = vpop.f32.mrf.mxu0  ;;  %v301_v33 = vpop.f32.mrf.mxu1 }
 0x119   :  { %461 = vmatmul.f32.gmra.mxu2 %v51_v27  ;;  %v2955_v63 = vadd.f32 %v188_v10, %v2539_v17  ;;  %v2958_v57 = vadd.f32 %v301_v33, %v2541_v18  ;;  %574 = vmatmul.f32.gmra.mxu3 %v51_v27  ;;  %v652_v55 = vadd.f32 %v651_v56, %v2944_v45 }
 0x11a   :  { %v939_v11 = vadd.f32 %v938_v60, %v798_v38 }
 0x11b   :  { %4900 = vst [vmem:[#allocation37_spill] sm:$0xff] %v2955_v63  ;;  %v800_v6 = vmul.f32 %v2955_v63, %v2955_v63  ;;  %v655_v26 = vadd.f32 %v2958_v57, %v2955_v63  ;;  %v801_v9 = vmul.f32 %v2958_v57, %v2958_v57  ;;  %653 = vadd.xlane.f32.xlu2 %v652_v55 }
 0x11c   :  { %4901 = vst [vmem:[#allocation38_spill] sm:$0xff] %v2958_v57  ;;  %v414_v48 = vpop.f32.mrf.mxu2  ;;  %235 = vmatmul.f32.gmra.mxu0 %v51_v27  ;;  %348 = vmatmul.f32.gmra.mxu1 %v51_v27  ;;  %v940_v10 = vadd.f32 %v939_v11, %v799_v30  ;;  %v527_v33 = vpop.f32.mrf.mxu3 }
 0x11d   :  { %v2968_v34 = vadd.f32 %v414_v48, %v2552_v24  ;;  %v2971_v56 = vadd.f32 %v527_v33, %v2554_v25  ;;  %v943_v57 = vadd.f32 %v801_v9, %v800_v6 }
 0x11e   :  { %941 = vadd.xlane.f32.xlu1 %v940_v10  ;;  %v584_v60 = vpop.xlane.xlu0 %583 }
 0x11f   :  { %4902 = vst [vmem:[#allocation39_spill] sm:$0xff] %v2968_v34  ;;  %v802_v38 = vmul.f32 %v2968_v34, %v2968_v34  ;;  %v2975_v63 = vmul.f32 0.001953125, %v584_v60  ;;  %v656_v55 = vadd.f32 %v655_v26, %v2968_v34  ;;  %v803_v48 = vmul.f32 %v2971_v56, %v2971_v56 }
 0x120   :  { %4903 = vst [vmem:[#allocation40_spill] sm:$0xff] %v2971_v56  ;;  %v191_v45 = vpop.f32.mrf.mxu0  ;;  %v304_v27 = vpop.f32.mrf.mxu1 }
 0x121   :  { %v872_v30 = vpop.xlane.xlu2 %871  ;;  %v1092_v33 = vmul.f32 %v2975_v63, %v2975_v63  ;;  %v2983_v10 = vadd.f32 %v191_v45, %v2539_v17  ;;  %v2986_v37 = vadd.f32 %v304_v27, %v2541_v18  ;;  %v657_v60 = vadd.f32 %v656_v55, %v2971_v56 }
 0x122   :  { %v1060_v11 = vmul.f32 0.001953125, %v872_v30  ;;  %v944_v26 = vadd.f32 %v943_v57, %v802_v38  ;;  %v1190_v49 = vsub.f32 %v2563_v31, %v2975_v63 }
 0x123   :  { %4904 = vst [vmem:[#allocation41_spill] sm:$0xff] %v2983_v10  ;;  %v804_v6 = vmul.f32 %v2983_v10, %v2983_v10  ;;  %v660_v34 = vadd.f32 %v2986_v37, %v2983_v10  ;;  %v805_v30 = vmul.f32 %v2986_v37, %v2986_v37  ;;  %658 = vadd.xlane.f32.xlu0 %v657_v60 }
 0x124   :  { %4905 = vst [vmem:[#allocation42_spill] sm:$0xff] %v2986_v37  ;;  %v1124_v9 = vsub.f32 %v1060_v11, %v1092_v33  ;;  %v417_v8 = vpop.f32.mrf.mxu2  ;;  %v530_v7 = vpop.f32.mrf.mxu3  ;;  %v945_v27 = vadd.f32 %v944_v26, %v803_v48 }
 0x125   :  { %v2996_v45 = vadd.f32 %v417_v8, %v2552_v24  ;;  %v2999_v55 = vadd.f32 %v530_v7, %v2554_v25  ;;  %v948_v10 = vadd.f32 %v805_v30, %v804_v6 }
 0x126   :  { %v1156_v57 = vmax.f32 %v1124_v9, 0.0  ;;  %v589_v38 = vpop.xlane.xlu0 %588  ;;  %946 = vadd.xlane.f32.xlu2 %v945_v27 }
 0x127   :  { %4906 = vst [vmem:[#allocation43_spill] sm:$0xff] %v2996_v45  ;;  %v806_v11 = vmul.f32 %v2996_v45, %v2996_v45  ;;  %v661_v33 = vadd.f32 %v660_v34, %v2996_v45  ;;  %v807_v8 = vmul.f32 %v2999_v55, %v2999_v55  ;;  %v3016_v34 = vmul.f32 0.001953125, %v589_v38 }
 0x128   :  { %4907 = vst [vmem:[#allocation44_spill] sm:$0xff] %v2999_v55  ;;  %v3004_v37 = vadd.f32 1e-05, %v1156_v57  ;;  %v194_v56 = vpop.f32.mrf.mxu0 }
 0x129   :  { %v307_v60 = vpop.f32.mrf.mxu1  ;;  %v3010_v7 = vadd.f32 %v194_v56, %v2539_v17  ;;  %v662_v26 = vadd.f32 %v661_v33, %v2999_v55  ;;  %v949_v9 = vadd.f32 %v948_v10, %v806_v11  ;;  %v579_v11 = vld [vmem:[%s4777_s4] sm:$0xf] }
 0x12a   :  { %2202 = vrsqrt.f32 %v3004_v37  ;;  %v3013_v48 = vadd.f32 %v307_v60, %v2541_v18  ;;  %v578_v60 = vld [vmem:[%s4776_s3] sm:$0xf]  ;;  %v3049_v62 = vperm.slane %v579_v11, 0  ;;  %v3063_v21 = vperm.slane %v579_v11, 1 }
 0x12b   :  { %4908 = vst [vmem:[#allocation45_spill] sm:$0xff] %v3010_v7  ;;  %v808_v6 = vmul.f32 %v3010_v7, %v3010_v7  ;;  %663 = vadd.xlane.f32.xlu1 %v662_v26  ;;  %v950_v38 = vadd.f32 %v949_v9, %v807_v8  ;;  %v3039_v46 = vperm.slane %v578_v60, 0  ;;  %v3041_v8 = vperm.slane %v578_v60, 1 }
 0x12c   :  { %4909 = vst [vmem:[#allocation46_spill] sm:$0xff] %v3013_v48  ;;  %v665_v30 = vadd.f32 %v3013_v48, %v3010_v7  ;;  %v809_v27 = vmul.f32 %v3013_v48, %v3013_v48  ;;  %v420_v57 = vpop.f32.mrf.mxu2  ;;  %v533_v56 = vpop.f32.mrf.mxu3  ;;  %v1093_v9 = vmul.f32 %v3016_v34, %v3016_v34  ;;  %v3045_v15 = vperm.slane %v578_v60, 2 }
 0x12d   :  { %v3028_v10 = vadd.f32 %v420_v57, %v2552_v24  ;;  %v3034_v33 = vadd.f32 %v533_v56, %v2554_v25  ;;  %951 = vadd.xlane.f32.xlu0 %v950_v38  ;;  %v3047_v12 = vperm.slane %v578_v60, 3  ;;  %v3065_v20 = vperm.slane %v579_v11, 2 }
 0x12e   :  { %v594_v7 = vpop.xlane.xlu1 %593  ;;  %v877_v48 = vpop.xlane.xlu0 %876  ;;  %v953_v47 = vadd.f32 %v809_v27, %v808_v6  ;;  %vm1354_vm1 = vweird.f32 %v3004_v37 }
 0x12f   :  { %4910 = vst [vmem:[#allocation47_spill] sm:$0xff] %v3028_v10  ;;  %v810_v55 = vmul.f32 %v3028_v10, %v3028_v10  ;;  %v1061_v45 = vmul.f32 0.001953125, %v877_v48  ;;  %v666_v26 = vadd.f32 %v665_v30, %v3028_v10  ;;  %v3052_v30 = vmul.f32 0.001953125, %v594_v7 }
 0x130   :  { %4911 = vst [vmem:[#allocation48_spill] sm:$0xff] %v3034_v33  ;;  %v2203_v57 = vpop.eup %2202  ;;  %v197_v56 = vpop.f32.mrf.mxu0  ;;  %v811_v10 = vmul.f32 %v3034_v33, %v3034_v33 }
 0x131   :  { %v1349_v48 = vmul.f32 %v2203_v57, %v3004_v37  ;;  %v310_v38 = vpop.f32.mrf.mxu1  ;;  %v1125_v6 = vsub.f32 %v1061_v45, %v1093_v9  ;;  %v3055_v27 = vadd.f32 %v197_v56, %v2539_v17  ;;  %v667_v60 = vadd.f32 %v666_v26, %v3034_v33 }
 0x132   :  { %v3060_v44 = vadd.f32 %v310_v38, %v2541_v18  ;;  %v954_v39 = vadd.f32 %v953_v47, %v810_v55  ;;  %vm1355_vm0 = vweird.f32 %v2203_v57 }
 0x133   :  { %4912 = vst [vmem:[#allocation49_spill] sm:$0xff] %v3055_v27  ;;  %v1350_v61 = vmul.f32 %v2203_v57, %v1349_v48  ;;  %v1157_v7 = vmax.f32 %v1125_v6, 0.0  ;;  %v812_v45 = vmul.f32 %v3055_v27, %v3055_v27  ;;  %668 = vadd.xlane.f32.xlu2 %v667_v60  ;;  %vm1356_vm2 = vmor %vm1354_vm1, %vm1355_vm0 }
 0x134   :  { %4913 = vst [vmem:[#allocation50_spill] sm:$0xff] %v3060_v44  ;;  %v423_v9 = vpop.f32.mrf.mxu2  ;;  %v536_v56 = vpop.f32.mrf.mxu3  ;;  %v670_v48 = vadd.f32 %v3060_v44, %v3055_v27  ;;  %v813_v38 = vmul.f32 %v3060_v44, %v3060_v44  ;;  %v955_v26 = vadd.f32 %v954_v39, %v811_v10  ;;  %v3084_v44 = vperm.slane %v579_v11, 3 }
 0x135   :  { %v1351_v3 = vmul.f32 0.5, %v1350_v61  ;;  %v3074_v47 = vadd.f32 %v423_v9, %v2552_v24  ;;  %v3076_v55 = vadd.f32 1e-05, %v1157_v7  ;;  %v3079_v6 = vadd.f32 %v536_v56, %v2554_v25 }
 0x136   :  { %v882_v33 = vpop.xlane.xlu1 %881  ;;  %v1094_v61 = vmul.f32 %v3052_v30, %v3052_v30  ;;  %956 = vadd.xlane.f32.xlu1 %v955_v26  ;;  %v1188_v11 = vsub.f32 %v2547_v22, %v2975_v63  ;;  %v1191_v26 = vsub.f32 %v2566_v32, %v2975_v63 }
 0x137   :  { %4914 = vst [vmem:[#allocation51_spill] sm:$0xff] %v3074_v47  ;;  %v1352_v0 = vsub.f32 1.5, %v1351_v3  ;;  %v1062_v27 = vmul.f32 0.001953125, %v882_v33  ;;  %v671_v52 = vadd.f32 %v670_v48, %v3074_v47  ;;  %2204 = vrsqrt.f32 %v3076_v55 }
 0x138   :  { %4915 = vst [vmem:[#allocation52_spill] sm:$0xff] %v3079_v6  ;;  %v814_v39 = vmul.f32 %v3074_v47, %v3074_v47  ;;  %v887_v10 = vpop.xlane.xlu2 %886  ;;  %v958_v33 = vadd.f32 %v813_v38, %v812_v45  ;;  %v1189_v48 = vsub.f32 %v2550_v23, %v2975_v63  ;;  %v815_v37 = vmul.f32 %v3079_v6, %v3079_v6 }
 0x139   :  { %v1353_v60 = vmul.f32 %v2203_v57, %v1352_v0  ;;  %v1126_v7 = vsub.f32 %v1062_v27, %v1094_v61  ;;  %v200_v3 = vpop.f32.mrf.mxu0  ;;  %v313_v9 = vpop.f32.mrf.mxu1  ;;  %v672_v56 = vadd.f32 %v671_v52, %v3079_v6  ;;  %vm1364_vm3 = vweird.f32 %v3076_v55 }
 0x13a   :  { %v3103_v52 = vadd.f32 %v200_v3, %v2539_v17  ;;  %v3106_v22 = vadd.f32 %v313_v9, %v2541_v18 }
 0x13b   :  { %v1357_v0 = vsel %vm1356_vm2, %v2203_v57, %v1353_v60  ;;  %v1158_v27 = vmax.f32 %v1126_v7, 0.0  ;;  %673 = vadd.xlane.f32.xlu0 %v672_v56  ;;  %v959_v57 = vadd.f32 %v958_v33, %v814_v39  ;;  %v1193_v56 = vsub.f32 %v2580_v41, %v3016_v34 }
 0x13c   :  { %4916 = vst [vmem:[#allocation53_spill] sm:$0xff] %v3103_v52  ;;  %v1668_v23 = vmul.f32 %v1357_v0, %v1188_v11  ;;  %v1669_v45 = vmul.f32 %v1357_v0, %v1189_v48  ;;  %v1670_v38 = vmul.f32 %v1357_v0, %v1190_v49  ;;  %v1671_v31 = vmul.f32 %v1357_v0, %v1191_v26  ;;  %v426_v49 = vpop.f32.mrf.mxu2 }
 0x13d   :  { %4917 = vst [vmem:[#allocation54_spill] sm:$0xff] %v3106_v22  ;;  %v3110_v63 = vadd.f32 1e-05, %v1158_v27  ;;  %v2205_v61 = vpop.eup %2204  ;;  %v1194_v11 = vsub.f32 %v2590_v50, %v3016_v34  ;;  %v675_v27 = vadd.f32 %v3106_v22, %v3103_v52  ;;  %v3131_v50 = vadd.f32 %v426_v49, %v2552_v24 }
 0x13e   :  { %v1805_v60 = vmul.f32 %v3039_v46, %v1668_v23  ;;  %v1806_v7 = vmul.f32 %v3041_v8, %v1669_v45  ;;  %v1807_v3 = vmul.f32 %v3045_v15, %v1670_v38  ;;  %v1808_v9 = vmul.f32 %v3047_v12, %v1671_v31  ;;  %v599_v39 = vpop.xlane.xlu1 %598 }
 0x13f   :  { %v1359_v48 = vmul.f32 %v2205_v61, %v3076_v55  ;;  %2206 = vrsqrt.f32 %v3110_v63  ;;  %4918 = vst [vmem:[#allocation55_spill] sm:$0xff] %v3131_v50  ;;  %v960_v38 = vadd.f32 %v959_v57, %v815_v37  ;;  %v1195_v31 = vsub.f32 %v2593_v51, %v3016_v34 }
 0x140   :  { %v1942_v33 = vadd.f32 %v3049_v62, %v1805_v60  ;;  %v1943_v26 = vadd.f32 %v3063_v21, %v1806_v7  ;;  %v1944_v0 = vadd.f32 %v3065_v20, %v1807_v3  ;;  %v604_v23 = vpop.xlane.xlu2 %603  ;;  %v1945_v41 = vadd.f32 %v3084_v44, %v1808_v9  ;;  %v539_v3 = vpop.f32.mrf.mxu3 }
 0x141   :  { %v1360_v45 = vmul.f32 %v2205_v61, %v1359_v48  ;;  %v3142_v9 = vmul.f32 0.001953125, %v599_v39  ;;  %961 = vadd.xlane.f32.xlu2 %v960_v38  ;;  %v3151_v49 = vmul.f32 0.001953125, %v604_v23  ;;  %v892_v48 = vpop.xlane.xlu0 %891  ;;  %v1063_v39 = vmul.f32 0.001953125, %v887_v10  ;;  %v203_v37 = vpop.f32.mrf.mxu0 }
 0x142   :  { %2070 = vst [vmem:[%s4778_s5] sm:$0xff] %v1942_v33  ;;  %v816_v33 = vmul.f32 %v3103_v52, %v3103_v52  ;;  %vm1365_vm4 = vweird.f32 %v2205_v61  ;;  %v676_v10 = vadd.f32 %v675_v27, %v3131_v50  ;;  %v817_v7 = vmul.f32 %v3106_v22, %v3106_v22 }
 0x143   :  { %2071 = vst [vmem:[%s4778_s5 + $0x8] sm:$0xff] %v1943_v26  ;;  %v1361_v51 = vmul.f32 0.5, %v1360_v45  ;;  %v1095_v26 = vmul.f32 %v3142_v9, %v3142_v9  ;;  %v3165_v45 = vadd.f32 %v539_v3, %v2554_v25  ;;  %v1064_v32 = vmul.f32 0.001953125, %v892_v48  ;;  %vm1366_vm6 = vmor %vm1364_vm3, %vm1365_vm4 }
 0x144   :  { %2072 = vst [vmem:[%s4778_s5 + $0x10] sm:$0xff] %v1944_v0  ;;  %v316_v0 = vpop.f32.mrf.mxu1  ;;  %vm1374_vm5 = vweird.f32 %v3110_v63  ;;  %v1096_v3 = vmul.f32 %v3151_v49, %v3151_v49  ;;  %v1202_v48 = vsub.f32 %v2642_v28, %v3142_v9 }
 0x145   :  { %v2207_v57 = vpop.eup %2206  ;;  %2073 = vst [vmem:[%s4778_s5 + $0x18] sm:$0xff] %v1945_v41  ;;  %v1362_v23 = vsub.f32 1.5, %v1361_v51  ;;  %v1127_v60 = vsub.f32 %v1063_v39, %v1095_v26  ;;  %v818_v41 = vmul.f32 %v3131_v50, %v3131_v50  ;;  %v3177_v51 = vadd.f32 %v203_v37, %v2539_v17 }
 0x146   :  { %v1369_v38 = vmul.f32 %v2207_v57, %v3110_v63  ;;  %v3184_v39 = vadd.f32 %v316_v0, %v2541_v18  ;;  %v1128_v50 = vsub.f32 %v1064_v32, %v1096_v3  ;;  %v677_v22 = vadd.f32 %v676_v10, %v3165_v45 }
 0x147   :  { %v1363_v52 = vmul.f32 %v2205_v61, %v1362_v23  ;;  %v1159_v6 = vmax.f32 %v1127_v60, 0.0  ;;  %v1201_v23 = vsub.f32 %v2632_v14, %v3142_v9  ;;  %v4919_v37 = vsub.f32 %v2577_v40, %v3016_v34 }
 0x148   :  { %v1370_v27 = vmul.f32 %v2207_v57, %v1369_v38  ;;  %678 = vadd.xlane.f32.xlu1 %v677_v22  ;;  %vm1375_vm7 = vweird.f32 %v2207_v57 }
 0x149   :  { %v1367_v26 = vsel %vm1366_vm6, %v2205_v61, %v1363_v52  ;;  %v3194_v0 = vadd.f32 1e-05, %v1159_v6  ;;  %v1160_v52 = vmax.f32 %v1128_v50, 0.0  ;;  %vm1376_vm8 = vmor %vm1374_vm5, %vm1375_vm7 }
 0x14a   :  { %v1672_v55 = vmul.f32 %v1367_v26, %v4919_v37  ;;  %v1673_v47 = vmul.f32 %v1367_v26, %v1193_v56  ;;  %v1674_v38 = vmul.f32 %v1367_v26, %v1194_v11  ;;  %v1675_v60 = vmul.f32 %v1367_v26, %v1195_v31  ;;  %v609_v11 = vpop.xlane.xlu2 %608  ;;  %v429_v31 = vpop.f32.mrf.mxu2 }
 0x14b   :  { %v1371_v36 = vmul.f32 0.5, %v1370_v27  ;;  %2208 = vrsqrt.f32 %v3194_v0  ;;  %v3201_v56 = vadd.f32 1e-05, %v1160_v52  ;;  %v820_v37 = vmul.f32 %v3177_v51, %v3177_v51 }
 0x14c   :  { %v1809_v61 = vmul.f32 %v3039_v46, %v1672_v55  ;;  %v1810_v32 = vmul.f32 %v3041_v8, %v1673_v47  ;;  %v1811_v10 = vmul.f32 %v3045_v15, %v1674_v38  ;;  %v1812_v40 = vmul.f32 %v3047_v12, %v1675_v60  ;;  %v897_v38 = vpop.xlane.xlu1 %896 }
 0x14d   :  { %v1372_v34 = vsub.f32 1.5, %v1371_v36  ;;  %v1203_v47 = vsub.f32 %v2645_v29, %v3142_v9  ;;  %2210 = vrsqrt.f32 %v3201_v56  ;;  %v963_v55 = vadd.f32 %v817_v7, %v816_v33 }
 0x14e   :  { %v1946_v6 = vadd.f32 %v3049_v62, %v1809_v61  ;;  %v1947_v50 = vadd.f32 %v3063_v21, %v1810_v32  ;;  %v1948_v22 = vadd.f32 %v3065_v20, %v1811_v10  ;;  %v1949_v3 = vadd.f32 %v3084_v44, %v1812_v40 }
 0x14f   :  { %v1373_v27 = vmul.f32 %v2207_v57, %v1372_v34  ;;  %v3221_v60 = vmul.f32 0.001953125, %v609_v11  ;;  %v680_v61 = vadd.f32 %v3184_v39, %v3177_v51  ;;  %v3229_v63 = vadd.f32 %v429_v31, %v2552_v24 }
 0x150   :  { %2074 = vst [vmem:[%s4778_s5 + $0x20] sm:$0xff] %v1946_v6  ;;  %v819_v32 = vmul.f32 %v3165_v45, %v3165_v45  ;;  %v4920_v7 = vsub.f32 %v2602_v58, %v3052_v30  ;;  %v4922_v40 = vsub.f32 %v2617_v4, %v3052_v30  ;;  %v4923_v11 = vsub.f32 %v2620_v5, %v3052_v30 }
 0x151   :  { %2075 = vst [vmem:[%s4778_s5 + $0x28] sm:$0xff] %v1947_v50  ;;  %v1377_v52 = vsel %vm1376_vm8, %v2207_v57, %v1373_v27  ;;  %v4921_v57 = vsub.f32 %v2605_v59, %v3052_v30  ;;  %v542_v50 = vpop.f32.mrf.mxu3  ;;  %v3248_v31 = vpop.eup %2208  ;;  %v821_v58 = vmul.f32 %v3184_v39, %v3184_v39  ;;  %v964_v59 = vadd.f32 %v963_v55, %v818_v41 }
 0x152   :  { %2076 = vst [vmem:[%s4778_s5 + $0x30] sm:$0xff] %v1948_v22  ;;  %v1676_v33 = vmul.f32 %v1377_v52, %v4920_v7  ;;  %v1678_v34 = vmul.f32 %v1377_v52, %v4922_v40  ;;  %v1679_v6 = vmul.f32 %v1377_v52, %v4923_v11  ;;  %v1065_v22 = vmul.f32 0.001953125, %v897_v38  ;;  %v206_v7 = vpop.f32.mrf.mxu0 }
 0x153   :  { %v1677_v10 = vmul.f32 %v1377_v52, %v4921_v57  ;;  %2077 = vst [vmem:[%s4778_s5 + $0x38] sm:$0xff] %v1949_v3  ;;  %v1097_v4 = vmul.f32 %v3221_v60, %v3221_v60  ;;  %v319_v57 = vpop.f32.mrf.mxu1  ;;  %v3261_v40 = vpop.eup %2210  ;;  %v1379_v3 = vmul.f32 %v3248_v31, %v3194_v0  ;;  %v965_v41 = vadd.f32 %v964_v59, %v819_v32 }
 0x154   :  { %v1813_v27 = vmul.f32 %v3039_v46, %v1676_v33  ;;  %v1815_v30 = vmul.f32 %v3045_v15, %v1678_v34  ;;  %v1816_v52 = vmul.f32 %v3047_v12, %v1679_v6  ;;  %v3266_v55 = vadd.f32 %v542_v50, %v2554_v25 }
 0x155   :  { %v1814_v5 = vmul.f32 %v3041_v8, %v1677_v10  ;;  %v1129_v38 = vsub.f32 %v1065_v22, %v1097_v4  ;;  %v681_v11 = vadd.f32 %v680_v61, %v3229_v63  ;;  %v1380_v26 = vmul.f32 %v3248_v31, %v1379_v3  ;;  %966 = vadd.xlane.f32.xlu0 %v965_v41  ;;  %v902_v3 = vpop.xlane.xlu2 %901 }
 0x156   :  { %v1950_v33 = vadd.f32 %v3049_v62, %v1813_v27  ;;  %v1952_v34 = vadd.f32 %v3065_v20, %v1815_v30  ;;  %v1953_v6 = vadd.f32 %v3084_v44, %v1816_v52  ;;  %v1389_v36 = vmul.f32 %v3261_v40, %v3201_v56  ;;  %v432_v52 = vpop.f32.mrf.mxu2 }
 0x157   :  { %v1951_v10 = vadd.f32 %v3063_v21, %v1814_v5  ;;  %v1161_v32 = vmax.f32 %v1129_v38, 0.0  ;;  %v1206_v50 = vsub.f32 %v2669_v53, %v3151_v49  ;;  %v1207_v59 = vsub.f32 %v2672_v54, %v3151_v49  ;;  %v614_v53 = vpop.xlane.xlu0 %613 }
 0x158   :  { %2078 = vst [vmem:[%s4778_s5 + $0x40] sm:$0xff] %v1950_v33  ;;  %v822_v61 = vmul.f32 %v3229_v63, %v3229_v63  ;;  %v3286_v22 = vadd.f32 %v206_v7, %v2539_v17  ;;  %v1381_v4 = vmul.f32 0.5, %v1380_v26  ;;  %vm1384_vm9 = vweird.f32 %v3194_v0 }
 0x159   :  { %2079 = vst [vmem:[%s4778_s5 + $0x48] sm:$0xff] %v1951_v10  ;;  %v1390_v27 = vmul.f32 %v3261_v40, %v1389_v36  ;;  %v3293_v5 = vadd.f32 1e-05, %v1161_v32  ;;  %v3299_v54 = vadd.f32 %v319_v57, %v2541_v18  ;;  %v682_v30 = vadd.f32 %v681_v11, %v3266_v55 }
 0x15a   :  { %2080 = vst [vmem:[%s4778_s5 + $0x50] sm:$0xff] %v1952_v34  ;;  %v823_v26 = vmul.f32 %v3266_v55, %v3266_v55  ;;  %v968_v7 = vadd.f32 %v821_v58, %v820_v37  ;;  %v1382_v36 = vsub.f32 1.5, %v1381_v4  ;;  %vm1385_vm10 = vweird.f32 %v3248_v31  ;;  %v545_v37 = vpop.f32.mrf.mxu3  ;;  %v209_v4 = vpop.f32.mrf.mxu0 }
 0x15b   :  { %2081 = vst [vmem:[%s4778_s5 + $0x58] sm:$0xff] %v1953_v6  ;;  %v1391_v41 = vmul.f32 0.5, %v1390_v27  ;;  %vm1394_vm11 = vweird.f32 %v3201_v56  ;;  %vm1395_vm12 = vweird.f32 %v3261_v40  ;;  %v3312_v57 = vmul.f32 %v3286_v22, %v3286_v22  ;;  %683 = vadd.xlane.f32.xlu2 %v682_v30  ;;  %vm1386_vm13 = vmor %vm1384_vm9, %vm1385_vm10  ;;  %v322_v27 = vpop.f32.mrf.mxu1 }
 0x15c   :  { %v969_v38 = vadd.f32 %v968_v7, %v822_v61  ;;  %v3314_v58 = vmul.f32 0.001953125, %v614_v53  ;;  %v1383_v33 = vmul.f32 %v3248_v31, %v1382_v36  ;;  %2212 = vrsqrt.f32 %v3293_v5  ;;  %vm1396_vm14 = vmor %vm1394_vm11, %vm1395_vm12 }
 0x15d   :  { %v1392_v10 = vsub.f32 1.5, %v1391_v41  ;;  %v1066_v34 = vmul.f32 0.001953125, %v902_v3  ;;  %v685_v11 = vadd.f32 %v3299_v54, %v3286_v22  ;;  %v825_v6 = vmul.f32 %v3299_v54, %v3299_v54 }
 0x15e   :  { %v3325_v32 = vadd.f32 %v432_v52, %v2552_v24  ;;  %v970_v61 = vadd.f32 %v969_v38, %v823_v26  ;;  %v1387_v53 = vsel %vm1386_vm13, %v3248_v31, %v1383_v33  ;;  %v3330_v7 = vadd.f32 %v545_v37, %v2554_v25 }
 0x15f   :  { %v1393_v30 = vmul.f32 %v3261_v40, %v1392_v10  ;;  %v1098_v0 = vmul.f32 %v3314_v58, %v3314_v58  ;;  %v4924_v3 = vsub.f32 %v2629_v13, %v3142_v9  ;;  %v1681_v52 = vmul.f32 %v1387_v53, %v1201_v23 }
 0x160   :  { %v1682_v31 = vmul.f32 %v1387_v53, %v1202_v48  ;;  %v1683_v26 = vmul.f32 %v1387_v53, %v1203_v47  ;;  %971 = vadd.xlane.f32.xlu1 %v970_v61  ;;  %v3352_v14 = vadd.f32 %v209_v4, %v2539_v17  ;;  %v3355_v23 = vadd.f32 %v322_v27, %v2541_v18 }
 0x161   :  { %v1680_v36 = vmul.f32 %v1387_v53, %v4924_v3  ;;  %v1397_v13 = vsel %vm1396_vm14, %v3261_v40, %v1393_v30  ;;  %v1130_v41 = vsub.f32 %v1066_v34, %v1098_v0  ;;  %v1818_v29 = vmul.f32 %v3041_v8, %v1681_v52  ;;  %v435_v53 = vpop.f32.mrf.mxu2 }
 0x162   :  { %v1819_v9 = vmul.f32 %v3045_v15, %v1682_v31  ;;  %v1820_v48 = vmul.f32 %v3047_v12, %v1683_v26  ;;  %v3361_v56 = vpop.eup %2212  ;;  %v4925_v47 = vsub.f32 %v2657_v42, %v3151_v49  ;;  %v4926_v38 = vsub.f32 %v2660_v43, %v3151_v49 }
 0x163   :  { %v1817_v28 = vmul.f32 %v3039_v46, %v1680_v36  ;;  %v1686_v33 = vmul.f32 %v1397_v13, %v1206_v50  ;;  %v1687_v10 = vmul.f32 %v1397_v13, %v1207_v59  ;;  %v1955_v61 = vadd.f32 %v3063_v21, %v1818_v29  ;;  %v619_v29 = vpop.xlane.xlu1 %618 }
 0x164   :  { %v1684_v40 = vmul.f32 %v1397_v13, %v4925_v47  ;;  %v1685_v37 = vmul.f32 %v1397_v13, %v4926_v38  ;;  %v1956_v4 = vadd.f32 %v3065_v20, %v1819_v9  ;;  %v1957_v27 = vadd.f32 %v3084_v44, %v1820_v48  ;;  %v907_v38 = vpop.xlane.xlu0 %906 }
 0x165   :  { %v1954_v34 = vadd.f32 %v3049_v62, %v1817_v28  ;;  %v1823_v0 = vmul.f32 %v3045_v15, %v1686_v33  ;;  %v1824_v43 = vmul.f32 %v3047_v12, %v1687_v10  ;;  %v1399_v49 = vmul.f32 %v3361_v56, %v3293_v5  ;;  %2083 = vst [vmem:[%s4778_s5 + $0x68] sm:$0xff] %v1955_v61  ;;  %v548_v28 = vpop.f32.mrf.mxu3  ;;  %v325_v61 = vpop.f32.mrf.mxu1 }
 0x166   :  { %v1821_v30 = vmul.f32 %v3039_v46, %v1684_v40  ;;  %v1822_v42 = vmul.f32 %v3041_v8, %v1685_v37  ;;  %v1162_v50 = vmax.f32 %v1130_v41, 0.0  ;;  %v826_v36 = vmul.f32 %v3325_v32, %v3325_v32  ;;  %2084 = vst [vmem:[%s4778_s5 + $0x70] sm:$0xff] %v1956_v4 }
 0x167   :  { %2082 = vst [vmem:[%s4778_s5 + $0x60] sm:$0xff] %v1954_v34  ;;  %v690_v52 = vadd.f32 %v3355_v23, %v3352_v14  ;;  %v1960_v31 = vadd.f32 %v3065_v20, %v1823_v0  ;;  %v1400_v26 = vmul.f32 %v3361_v56, %v1399_v49  ;;  %v686_v41 = vadd.f32 %v685_v11, %v3325_v32  ;;  %v212_v34 = vpop.f32.mrf.mxu0 }
 0x168   :  { %v1958_v59 = vadd.f32 %v3049_v62, %v1821_v30  ;;  %v1959_v3 = vadd.f32 %v3063_v21, %v1822_v42  ;;  %v3396_v13 = vadd.f32 1e-05, %v1162_v50  ;;  %2085 = vst [vmem:[%s4778_s5 + $0x78] sm:$0xff] %v1957_v27  ;;  %v1961_v9 = vadd.f32 %v3084_v44, %v1824_v43 }
 0x169   :  { %v3404_v48 = vadd.f32 %v435_v53, %v2552_v24  ;;  %v827_v47 = vmul.f32 %v3330_v7, %v3330_v7  ;;  %v973_v40 = vadd.f32 %v825_v6, %v3312_v57  ;;  %v1401_v11 = vmul.f32 0.5, %v1400_v26  ;;  %2088 = vst [vmem:[%s4778_s5 + $0x90] sm:$0xff] %v1960_v31 }
 0x16a   :  { %2086 = vst [vmem:[%s4778_s5 + $0x80] sm:$0xff] %v1958_v59  ;;  %2214 = vrsqrt.f32 %v3396_v13  ;;  %v828_v37 = vmul.f32 %v3352_v14, %v3352_v14  ;;  %v687_v33 = vadd.f32 %v686_v41, %v3330_v7  ;;  %vm1405_vm15 = vweird.f32 %v3361_v56 }
 0x16b   :  { %2087 = vst [vmem:[%s4778_s5 + $0x88] sm:$0xff] %v1959_v3  ;;  %v974_v57 = vadd.f32 %v973_v40, %v826_v36  ;;  %v3421_v6 = vadd.f32 %v548_v28, %v2554_v25  ;;  %v3423_v10 = vmul.f32 0.001953125, %v619_v29  ;;  %v1402_v4 = vsub.f32 1.5, %v1401_v11  ;;  %v438_v3 = vpop.f32.mrf.mxu2 }
 0x16c   :  { %v829_v27 = vmul.f32 %v3355_v23, %v3355_v23  ;;  %688 = vadd.xlane.f32.xlu0 %v687_v33  ;;  %v1067_v53 = vmul.f32 0.001953125, %v907_v38  ;;  %v691_v30 = vadd.f32 %v690_v52, %v3404_v48  ;;  %2089 = vst [vmem:[%s4778_s5 + $0x98] sm:$0xff] %v1961_v9  ;;  %v1208_v42 = vsub.f32 %v2684_v1, %v3221_v60 }
 0x16d   :  { %vm1404_vm0 = vweird.f32 %v3293_v5  ;;  %v975_v0 = vadd.f32 %v974_v57, %v827_v47  ;;  %v1403_v43 = vmul.f32 %v3361_v56, %v1402_v4  ;;  %v1099_v49 = vmul.f32 %v3423_v10, %v3423_v10 }
 0x16e   :  { %v3441_v50 = vadd.f32 %v212_v34, %v2539_v17  ;;  %v3444_v59 = vadd.f32 %v325_v61, %v2541_v18  ;;  %v1209_v36 = vsub.f32 %v2687_v2, %v3221_v60  ;;  %v1210_v1 = vsub.f32 %v2698_v16, %v3221_v60  ;;  %vm1406_vm1 = vmor %vm1404_vm0, %vm1405_vm15 }
 0x16f   :  { %v1211_v5 = vsub.f32 %v2701_v19, %v3221_v60  ;;  %976 = vadd.xlane.f32.xlu2 %v975_v0  ;;  %v692_v52 = vadd.f32 %v691_v30, %v3421_v6  ;;  %v1407_v26 = vsel %vm1406_vm1, %v3361_v56, %v1403_v43  ;;  %v830_v41 = vmul.f32 %v3404_v48, %v3404_v48 }
 0x170   :  { %v3455_v31 = vpop.eup %2214  ;;  %v1131_v2 = vsub.f32 %v1067_v53, %v1099_v49  ;;  %v978_v28 = vadd.f32 %v829_v27, %v828_v37  ;;  %v1688_v29 = vmul.f32 %v1407_v26, %v1208_v42  ;;  %v1689_v16 = vmul.f32 %v1407_v26, %v1209_v36  ;;  %v551_v27 = vpop.f32.mrf.mxu3 }
 0x171   :  { %v1690_v9 = vmul.f32 %v1407_v26, %v1210_v1  ;;  %v1691_v47 = vmul.f32 %v1407_v26, %v1211_v5  ;;  %693 = vadd.xlane.f32.xlu1 %v692_v52  ;;  %v1409_v19 = vmul.f32 %v3455_v31, %v3396_v13  ;;  %v695_v40 = vadd.f32 %v3444_v59, %v3441_v50  ;;  %v624_v53 = vpop.xlane.xlu2 %623  ;;  %v912_v49 = vpop.xlane.xlu1 %911 }
 0x172   :  { %v1163_v60 = vmax.f32 %v1131_v2, 0.0  ;;  %v831_v56 = vmul.f32 %v3421_v6, %v3421_v6  ;;  %v1825_v38 = vmul.f32 %v3039_v46, %v1688_v29  ;;  %v1826_v11 = vmul.f32 %v3041_v8, %v1689_v16  ;;  %v215_v36 = vpop.f32.mrf.mxu0  ;;  %v328_v2 = vpop.f32.mrf.mxu1 }
 0x173   :  { %v1827_v37 = vmul.f32 %v3045_v15, %v1690_v9  ;;  %v1828_v33 = vmul.f32 %v3047_v12, %v1691_v47  ;;  %v1410_v57 = vmul.f32 %v3455_v31, %v1409_v19  ;;  %v3474_v61 = vadd.f32 %v438_v3, %v2552_v24  ;;  %v441_v47 = vpop.f32.mrf.mxu2 }
 0x174   :  { %v3471_v34 = vadd.f32 1e-05, %v1163_v60  ;;  %v979_v4 = vadd.f32 %v978_v28, %v830_v41  ;;  %v1962_v30 = vadd.f32 %v3049_v62, %v1825_v38  ;;  %v1963_v42 = vadd.f32 %v3063_v21, %v1826_v11  ;;  %v4929_v60 = vld [vmem:[#allocation2_spill] sm:$0xff]  ;;  %v4930_v38 = vld [vmem:[#allocation3_spill] sm:$0xff] }
 0x175   :  { %v1964_v0 = vadd.f32 %v3065_v20, %v1827_v37  ;;  %v832_v43 = vmul.f32 %v3441_v50, %v3441_v50  ;;  %v1965_v1 = vadd.f32 %v3084_v44, %v1828_v33  ;;  %v1411_v5 = vmul.f32 0.5, %v1410_v57  ;;  %v4931_v37 = vld [vmem:[#allocation4_spill] sm:$0xff] }
 0x176   :  { %2216 = vrsqrt.f32 %v3471_v34  ;;  %v980_v3 = vadd.f32 %v979_v4, %v831_v56  ;;  %2090 = vst [vmem:[%s4778_s5 + $0xa0] sm:$0xff] %v1962_v30  ;;  %vm1415_vm2 = vweird.f32 %v3455_v31  ;;  %v833_v52 = vmul.f32 %v3444_v59, %v3444_v59  ;;  %v629_v30 = vpop.xlane.xlu0 %628 }
 0x177   :  { %v3490_v26 = vadd.f32 %v551_v27, %v2554_v25  ;;  %v3492_v41 = vmul.f32 0.001953125, %v624_v53  ;;  %2091 = vst [vmem:[%s4778_s5 + $0xa8] sm:$0xff] %v1963_v42  ;;  %v1412_v28 = vsub.f32 1.5, %v1411_v5  ;;  %v1068_v29 = vmul.f32 0.001953125, %v912_v49 }
 0x178   :  { %981 = vadd.xlane.f32.xlu0 %v980_v3  ;;  %v3498_v16 = vadd.f32 %v215_v36, %v2539_v17  ;;  %v696_v9 = vadd.f32 %v695_v40, %v3474_v61  ;;  %2092 = vst [vmem:[%s4778_s5 + $0xb0] sm:$0xff] %v1964_v0  ;;  %v1212_v19 = vsub.f32 %v2712_v35, %v3314_v58  ;;  %vm1414_vm3 = vweird.f32 %v3396_v13 }
 0x179   :  { %4927 = vst [vmem:[#allocation56_spill] sm:$0xff] %v3490_v26  ;;  %v1213_v56 = vsub.f32 %v4929_v60, %v3314_v58  ;;  %v1214_v11 = vsub.f32 %v4930_v38, %v3314_v58  ;;  %v1215_v33 = vsub.f32 %v4931_v37, %v3314_v58  ;;  %v1413_v40 = vmul.f32 %v3455_v31, %v1412_v28  ;;  %vm1416_vm4 = vmor %vm1414_vm3, %vm1415_vm2 }
 0x17a   :  { %4928 = vst [vmem:[#allocation57_spill] sm:$0xff] %v3498_v16  ;;  %v834_v35 = vmul.f32 %v3474_v61, %v3474_v61  ;;  %v1100_v57 = vmul.f32 %v3492_v41, %v3492_v41  ;;  %v3524_v4 = vadd.f32 %v328_v2, %v2541_v18  ;;  %v697_v58 = vadd.f32 %v696_v9, %v3490_v26 }
 0x17b   :  { %2093 = vst [vmem:[%s4778_s5 + $0xb8] sm:$0xff] %v1965_v1  ;;  %v3528_v27 = vadd.f32 %v441_v47, %v2552_v24  ;;  %v983_v53 = vadd.f32 %v833_v52, %v832_v43  ;;  %v1417_v42 = vsel %vm1416_vm4, %v3455_v31, %v1413_v40  ;;  %v836_v49 = vmul.f32 %v3498_v16, %v3498_v16 }
 0x17c   :  { %4932 = vst [vmem:[#allocation2_spill] sm:$0xff] %v3524_v4  ;;  %v3530_v13 = vpop.eup %2216  ;;  %v1132_v0 = vsub.f32 %v1068_v29, %v1100_v57  ;;  %v835_v36 = vmul.f32 %v3490_v26, %v3490_v26  ;;  %v1692_v1 = vmul.f32 %v1417_v42, %v1212_v19  ;;  %v1693_v5 = vmul.f32 %v1417_v42, %v1213_v56  ;;  %v554_v19 = vpop.f32.mrf.mxu3 }
 0x17d   :  { %4933 = vst [vmem:[#allocation3_spill] sm:$0xff] %v3528_v27  ;;  %v1694_v3 = vmul.f32 %v1417_v42, %v1214_v11  ;;  %v1695_v2 = vmul.f32 %v1417_v42, %v1215_v33  ;;  %698 = vadd.xlane.f32.xlu2 %v697_v58  ;;  %v1419_v43 = vmul.f32 %v3530_v13, %v3471_v34  ;;  %v3539_v9 = vmul.f32 0.001953125, %v629_v30  ;;  %v917_v33 = vpop.xlane.xlu2 %916  ;;  %v331_v30 = vpop.f32.mrf.mxu1 }
 0x17e   :  { %v1164_v52 = vmax.f32 %v1132_v0, 0.0  ;;  %v984_v28 = vadd.f32 %v983_v53, %v834_v35  ;;  %v1829_v31 = vmul.f32 %v3039_v46, %v1692_v1  ;;  %v1830_v29 = vmul.f32 %v3041_v8, %v1693_v5  ;;  %v218_v53 = vpop.f32.mrf.mxu0 }
 0x17f   :  { %v1831_v47 = vmul.f32 %v3045_v15, %v1694_v3  ;;  %v1832_v60 = vmul.f32 %v3047_v12, %v1695_v2  ;;  %v1420_v56 = vmul.f32 %v3530_v13, %v1419_v43  ;;  %v700_v11 = vadd.f32 %v3524_v4, %v3498_v16 }
 0x180   :  { %v3546_v38 = vadd.f32 1e-05, %v1164_v52  ;;  %v985_v37 = vadd.f32 %v984_v28, %v835_v36  ;;  %v1966_v40 = vadd.f32 %v3049_v62, %v1829_v31  ;;  %v1967_v35 = vadd.f32 %v3063_v21, %v1830_v29  ;;  %v4937_v31 = vld [vmem:[#allocation5_spill] sm:$0xff] }
 0x181   :  { %v1968_v57 = vadd.f32 %v3065_v20, %v1831_v47  ;;  %v837_v58 = vmul.f32 %v3524_v4, %v3524_v4  ;;  %v1969_v42 = vadd.f32 %v3084_v44, %v1832_v60  ;;  %v1421_v0 = vmul.f32 0.5, %v1420_v56  ;;  %v4938_v47 = vld [vmem:[#allocation6_spill] sm:$0xff]  ;;  %v444_v56 = vpop.f32.mrf.mxu2 }
 0x182   :  { %2218 = vrsqrt.f32 %v3546_v38  ;;  %986 = vadd.xlane.f32.xlu1 %v985_v37  ;;  %v3558_v36 = vadd.f32 %v554_v19, %v2554_v25  ;;  %2094 = vst [vmem:[%s4778_s5 + $0xc0] sm:$0xff] %v1966_v40  ;;  %vm1425_vm5 = vweird.f32 %v3530_v13  ;;  %v838_v1 = vmul.f32 %v3528_v27, %v3528_v27 }
 0x183   :  { %v1069_v5 = vmul.f32 0.001953125, %v917_v33  ;;  %v1101_v3 = vmul.f32 %v3539_v9, %v3539_v9  ;;  %2095 = vst [vmem:[%s4778_s5 + $0xc8] sm:$0xff] %v1967_v35  ;;  %v1422_v2 = vsub.f32 1.5, %v1421_v0  ;;  %v3572_v43 = vadd.f32 %v218_v53, %v2539_v17  ;;  %v4939_v33 = vld [vmem:[#allocation7_spill] sm:$0xff] }
 0x184   :  { %4934 = vst [vmem:[#allocation4_spill] sm:$0xff] %v3558_v36  ;;  %v3575_v52 = vadd.f32 %v331_v30, %v2541_v18  ;;  %v701_v28 = vadd.f32 %v700_v11, %v3528_v27  ;;  %v1216_v29 = vsub.f32 %v4937_v31, %v3423_v10  ;;  %v1217_v60 = vsub.f32 %v4938_v47, %v3423_v10 }
 0x185   :  { %4935 = vst [vmem:[#allocation58_spill] sm:$0xff] %v3572_v43  ;;  %v1133_v19 = vsub.f32 %v1069_v5, %v1101_v3  ;;  %v988_v37 = vadd.f32 %v837_v58, %v836_v49  ;;  %v1218_v11 = vsub.f32 %v4939_v33, %v3423_v10  ;;  %v1423_v40 = vmul.f32 %v3530_v13, %v1422_v2 }
 0x186   :  { %4936 = vst [vmem:[#allocation59_spill] sm:$0xff] %v3575_v52  ;;  %vm1424_vm6 = vweird.f32 %v3471_v34  ;;  %v839_v35 = vmul.f32 %v3558_v36, %v3558_v36  ;;  %v702_v58 = vadd.f32 %v701_v28, %v3558_v36  ;;  %v840_v34 = vmul.f32 %v3572_v43, %v3572_v43 }
 0x187   :  { %2096 = vst [vmem:[%s4778_s5 + $0xd0] sm:$0xff] %v1968_v57  ;;  %v4940_v57 = vld [vmem:[#allocation8_spill] sm:$0xff]  ;;  %vm1426_vm7 = vmor %vm1424_vm6, %vm1425_vm5  ;;  %v1165_v49 = vmax.f32 %v1133_v19, 0.0  ;;  %v989_v30 = vadd.f32 %v988_v37, %v838_v1  ;;  %v705_v3 = vadd.f32 %v3575_v52, %v3572_v43  ;;  %v557_v1 = vpop.f32.mrf.mxu3  ;;  %vm1434_vm9 = vweird.f32 %v3546_v38 }
 0x188   :  { %2097 = vst [vmem:[%s4778_s5 + $0xd8] sm:$0xff] %v1969_v42  ;;  %v1219_v53 = vsub.f32 %v4940_v57, %v3423_v10  ;;  %v634_v42 = vpop.xlane.xlu1 %633  ;;  %v3599_v0 = vpop.eup %2218  ;;  %v1427_v5 = vsel %vm1426_vm7, %v3530_v13, %v1423_v40  ;;  %v3607_v10 = vadd.f32 %v444_v56, %v2552_v24  ;;  %703 = vadd.xlane.f32.xlu0 %v702_v58 }
 0x189   :  { %v1696_v2 = vmul.f32 %v1427_v5, %v1216_v29  ;;  %v1697_v31 = vmul.f32 %v1427_v5, %v1217_v60  ;;  %v1698_v47 = vmul.f32 %v1427_v5, %v1218_v11  ;;  %v1429_v28 = vmul.f32 %v3599_v0, %v3546_v38  ;;  %v922_v40 = vpop.xlane.xlu0 %921 }
 0x18a   :  { %4941 = vst [vmem:[#allocation5_spill] sm:$0xff] %v3607_v10  ;;  %v1699_v19 = vmul.f32 %v1427_v5, %v1219_v53  ;;  %v3611_v37 = vadd.f32 1e-05, %v1165_v49  ;;  %v990_v13 = vadd.f32 %v989_v30, %v839_v35  ;;  %v3613_v33 = vmul.f32 0.001953125, %v634_v42  ;;  %v221_v49 = vpop.f32.mrf.mxu0 }
 0x18b   :  { %v1833_v57 = vmul.f32 %v3039_v46, %v1696_v2  ;;  %v1834_v56 = vmul.f32 %v3041_v8, %v1697_v31  ;;  %v1835_v29 = vmul.f32 %v3045_v15, %v1698_v47  ;;  %v1430_v11 = vmul.f32 %v3599_v0, %v1429_v28  ;;  %v334_v2 = vpop.f32.mrf.mxu1  ;;  %v4943_v47 = vld [vmem:[#allocation9_spill] sm:$0xff] }
 0x18c   :  { %v1836_v60 = vmul.f32 %v3047_v12, %v1699_v19  ;;  %2220 = vrsqrt.f32 %v3611_v37  ;;  %v841_v53 = vmul.f32 %v3575_v52, %v3575_v52  ;;  %991 = vadd.xlane.f32.xlu2 %v990_v13  ;;  %v3624_v35 = vadd.f32 %v557_v1, %v2554_v25 }
 0x18d   :  { %v1970_v58 = vadd.f32 %v3049_v62, %v1833_v57  ;;  %v1971_v30 = vadd.f32 %v3063_v21, %v1834_v56  ;;  %v1972_v42 = vadd.f32 %v3065_v20, %v1835_v29  ;;  %v1070_v5 = vmul.f32 0.001953125, %v922_v40 }
 0x18e   :  { %4942 = vst [vmem:[#allocation6_spill] sm:$0xff] %v3624_v35  ;;  %v1973_v31 = vadd.f32 %v3084_v44, %v1836_v60  ;;  %v1220_v19 = vsub.f32 %v4943_v47, %v3492_v41  ;;  %v1431_v28 = vmul.f32 0.5, %v1430_v11  ;;  %v842_v13 = vmul.f32 %v3607_v10, %v3607_v10  ;;  %v447_v60 = vpop.f32.mrf.mxu2  ;;  %v4947_v47 = vld [vmem:[#allocation11_spill] sm:$0xff] }
 0x18f   :  { %2098 = vst [vmem:[%s4778_s5 + $0xe0] sm:$0xff] %v1970_v58  ;;  %vm1435_vm8 = vweird.f32 %v3599_v0  ;;  %v1102_v1 = vmul.f32 %v3613_v33, %v3613_v33  ;;  %v3641_v40 = vadd.f32 %v221_v49, %v2539_v17  ;;  %v706_v57 = vadd.f32 %v705_v3, %v3607_v10  ;;  %v4946_v49 = vld [vmem:[#allocation10_spill] sm:$0xff] }
 0x190   :  { %2099 = vst [vmem:[%s4778_s5 + $0xe8] sm:$0xff] %v1971_v30  ;;  %v1432_v56 = vsub.f32 1.5, %v1431_v28  ;;  %v3648_v29 = vadd.f32 %v334_v2, %v2541_v18  ;;  %v843_v11 = vmul.f32 %v3624_v35, %v3624_v35  ;;  %v993_v58 = vadd.f32 %v841_v53, %v840_v34  ;;  %v4948_v30 = vld [vmem:[#allocation12_spill] sm:$0xff]  ;;  %vm1436_vm10 = vmor %vm1434_vm9, %vm1435_vm8 }
 0x191   :  { %4944 = vst [vmem:[#allocation7_spill] sm:$0xff] %v3641_v40  ;;  %v1221_v3 = vsub.f32 %v4946_v49, %v3492_v41  ;;  %v1222_v10 = vsub.f32 %v4947_v47, %v3492_v41  ;;  %v1223_v28 = vsub.f32 %v4948_v30, %v3492_v41  ;;  %v1134_v2 = vsub.f32 %v1070_v5, %v1102_v1  ;;  %v4949_v49 = vld [vmem:[#allocation13_spill] sm:$0xff] }
 0x192   :  { %4945 = vst [vmem:[#allocation8_spill] sm:$0xff] %v3648_v29  ;;  %v3661_v52 = vpop.eup %2220  ;;  %v1433_v34 = vmul.f32 %v3599_v0, %v1432_v56  ;;  %v707_v53 = vadd.f32 %v706_v57, %v3624_v35  ;;  %v3676_v47 = vadd.f32 %v447_v60, %v2552_v24  ;;  %v844_v38 = vmul.f32 %v3641_v40, %v3641_v40 }
 0x193   :  { %2100 = vst [vmem:[%s4778_s5 + $0xf0] sm:$0xff] %v1972_v42  ;;  %v994_v42 = vadd.f32 %v993_v58, %v842_v13  ;;  %v1439_v5 = vmul.f32 %v3661_v52, %v3611_v37  ;;  %v1166_v1 = vmax.f32 %v1134_v2, 0.0  ;;  %v710_v13 = vadd.f32 %v3648_v29, %v3641_v40  ;;  %v560_v58 = vpop.f32.mrf.mxu3  ;;  %v927_v2 = vpop.xlane.xlu1 %926 }
 0x194   :  { %2101 = vst [vmem:[%s4778_s5 + $0xf8] sm:$0xff] %v1973_v31  ;;  %v639_v31 = vpop.xlane.xlu2 %638  ;;  %v1437_v56 = vsel %vm1436_vm10, %v3599_v0, %v1433_v34  ;;  %708 = vadd.xlane.f32.xlu1 %v707_v53  ;;  %v845_v0 = vmul.f32 %v3648_v29, %v3648_v29  ;;  %v1071_v53 = vmul.f32 0.001953125, %v927_v2  ;;  %vm1445_vm11 = vweird.f32 %v3661_v52 }
 0x195   :  { %4950 = vst [vmem:[#allocation9_spill] sm:$0xff] %v3676_v47  ;;  %v995_v57 = vadd.f32 %v994_v42, %v843_v11  ;;  %v1700_v30 = vmul.f32 %v1437_v56, %v1220_v19  ;;  %v1701_v41 = vmul.f32 %v1437_v56, %v1221_v3  ;;  %v1702_v35 = vmul.f32 %v1437_v56, %v1222_v10  ;;  %v224_v42 = vpop.f32.mrf.mxu0 }
 0x196   :  { %v1703_v43 = vmul.f32 %v1437_v56, %v1223_v28  ;;  %v1440_v60 = vmul.f32 %v3661_v52, %v1439_v5  ;;  %v3684_v36 = vadd.f32 1e-05, %v1166_v1  ;;  %v3688_v34 = vmul.f32 0.001953125, %v639_v31 }
 0x197   :  { %996 = vadd.xlane.f32.xlu0 %v995_v57  ;;  %v1837_v40 = vmul.f32 %v3039_v46, %v1700_v30  ;;  %v1838_v11 = vmul.f32 %v3041_v8, %v1701_v41  ;;  %v1839_v19 = vmul.f32 %v3045_v15, %v1702_v35  ;;  %v3696_v28 = vadd.f32 %v560_v58, %v2554_v25  ;;  %v337_v35 = vpop.f32.mrf.mxu1 }
 0x198   :  { %v1840_v10 = vmul.f32 %v3047_v12, %v1703_v43  ;;  %v1441_v3 = vmul.f32 0.5, %v1440_v60  ;;  %2222 = vrsqrt.f32 %v3684_v36  ;;  %v846_v41 = vmul.f32 %v3676_v47, %v3676_v47  ;;  %v450_v60 = vpop.f32.mrf.mxu2 }
 0x199   :  { %4951 = vst [vmem:[#allocation10_spill] sm:$0xff] %v3696_v28  ;;  %v1974_v5 = vadd.f32 %v3049_v62, %v1837_v40  ;;  %v1975_v1 = vadd.f32 %v3063_v21, %v1838_v11  ;;  %v1976_v31 = vadd.f32 %v3065_v20, %v1839_v19  ;;  %v1103_v57 = vmul.f32 %v3688_v34, %v3688_v34  ;;  %v4952_v40 = vld [vmem:[#allocation14_spill] sm:$0xff] }
 0x19a   :  { %v1977_v43 = vadd.f32 %v3084_v44, %v1840_v10  ;;  %v1442_v56 = vsub.f32 1.5, %v1441_v3  ;;  %v1225_v58 = vsub.f32 %v4952_v40, %v3539_v9  ;;  %vm1444_vm12 = vweird.f32 %v3611_v37  ;;  %v4954_v37 = vld [vmem:[#allocation15_spill] sm:$0xff] }
 0x19b   :  { %2102 = vst [vmem:[%s4778_s5 + $0x100] sm:$0xff] %v1974_v5  ;;  %v3714_v30 = vadd.f32 %v224_v42, %v2539_v17  ;;  %v711_v2 = vadd.f32 %v710_v13, %v3676_v47  ;;  %v1135_v19 = vsub.f32 %v1071_v53, %v1103_v57  ;;  %v847_v10 = vmul.f32 %v3696_v28, %v3696_v28  ;;  %v4955_v13 = vld [vmem:[#allocation16_spill] sm:$0xff]  ;;  %vm1446_vm13 = vmor %vm1444_vm12, %vm1445_vm11  ;;  %v563_v40 = vpop.f32.mrf.mxu3  ;;  %v644_v47 = vpop.xlane.xlu0 %643 }
 0x19c   :  { %2103 = vst [vmem:[%s4778_s5 + $0x108] sm:$0xff] %v1975_v1  ;;  %v1443_v11 = vmul.f32 %v3661_v52, %v1442_v56  ;;  %v998_v3 = vadd.f32 %v845_v0, %v844_v38  ;;  %v1226_v42 = vsub.f32 %v4954_v37, %v3539_v9  ;;  %v1227_v5 = vsub.f32 %v4955_v13, %v3539_v9 }
 0x19d   :  { %4953 = vst [vmem:[#allocation11_spill] sm:$0xff] %v3714_v30  ;;  %v3733_v1 = vadd.f32 %v337_v35, %v2541_v18  ;;  %v712_v53 = vadd.f32 %v711_v2, %v3696_v28  ;;  %v1167_v0 = vmax.f32 %v1135_v19, 0.0  ;;  %v4958_v35 = vsub.f32 %v4949_v49, %v3539_v9 }
 0x19e   :  { %2104 = vst [vmem:[%s4778_s5 + $0x110] sm:$0xff] %v1976_v31  ;;  %v3736_v56 = vpop.eup %2222  ;;  %v1447_v38 = vsel %vm1446_vm13, %v3661_v52, %v1443_v11  ;;  %v3743_v31 = vadd.f32 %v450_v60, %v2552_v24  ;;  %v999_v57 = vadd.f32 %v998_v3, %v846_v41  ;;  %v848_v52 = vmul.f32 %v3714_v30, %v3714_v30 }
 0x19f   :  { %4956 = vst [vmem:[#allocation12_spill] sm:$0xff] %v3733_v1  ;;  %v1704_v37 = vmul.f32 %v1447_v38, %v4958_v35  ;;  %v1705_v13 = vmul.f32 %v1447_v38, %v1225_v58  ;;  %v1706_v2 = vmul.f32 %v1447_v38, %v1226_v42  ;;  %v1707_v28 = vmul.f32 %v1447_v38, %v1227_v5  ;;  %v932_v42 = vpop.xlane.xlu2 %931  ;;  %v227_v38 = vpop.f32.mrf.mxu0  ;;  %v4959_v35 = vld [vmem:[#allocation17_spill] sm:$0xff] }
 0x1a0   :  { %2105 = vst [vmem:[%s4778_s5 + $0x118] sm:$0xff] %v1977_v43  ;;  %713 = vadd.xlane.f32.xlu2 %v712_v53  ;;  %v1449_v43 = vmul.f32 %v3736_v56, %v3684_v36  ;;  %v3750_v29 = vadd.f32 1e-05, %v1167_v0  ;;  %v1000_v60 = vadd.f32 %v999_v57, %v847_v10  ;;  %v715_v19 = vadd.f32 %v3733_v1, %v3714_v30  ;;  %v340_v0 = vpop.f32.mrf.mxu1 }
 0x1a1   :  { %4957 = vst [vmem:[#allocation13_spill] sm:$0xff] %v3743_v31  ;;  %v1841_v41 = vmul.f32 %v3039_v46, %v1704_v37  ;;  %v1842_v11 = vmul.f32 %v3041_v8, %v1705_v13  ;;  %v1843_v9 = vmul.f32 %v3045_v15, %v1706_v2  ;;  %v1844_v49 = vmul.f32 %v3047_v12, %v1707_v28 }
 0x1a2   :  { %v1450_v58 = vmul.f32 %v3736_v56, %v1449_v43  ;;  %2224 = vrsqrt.f32 %v3750_v29  ;;  %1001 = vadd.xlane.f32.xlu1 %v1000_v60  ;;  %v3762_v3 = vmul.f32 0.001953125, %v644_v47  ;;  %v849_v28 = vmul.f32 %v3733_v1, %v3733_v1 }
 0x1a3   :  { %v1978_v10 = vadd.f32 %v3049_v62, %v1841_v41  ;;  %v1979_v5 = vadd.f32 %v3063_v21, %v1842_v11  ;;  %v1980_v53 = vadd.f32 %v3065_v20, %v1843_v9  ;;  %v1981_v57 = vadd.f32 %v3084_v44, %v1844_v49  ;;  %v453_v49 = vpop.f32.mrf.mxu2 }
 0x1a4   :  { %v1228_v37 = vsub.f32 %v4959_v35, %v3613_v33  ;;  %v1451_v13 = vmul.f32 0.5, %v1450_v58  ;;  %v3773_v47 = vadd.f32 %v563_v40, %v2554_v25  ;;  %vm1455_vm14 = vweird.f32 %v3736_v56  ;;  %v4963_v58 = vld [vmem:[#allocation18_spill] sm:$0xff] }
 0x1a5   :  { %2106 = vst [vmem:[%s4778_s5 + $0x120] sm:$0xff] %v1978_v10  ;;  %v850_v2 = vmul.f32 %v3743_v31, %v3743_v31  ;;  %v1072_v43 = vmul.f32 0.001953125, %v932_v42  ;;  %v1104_v60 = vmul.f32 %v3762_v3, %v3762_v3  ;;  %v3787_v40 = vadd.f32 %v227_v38, %v2539_v17  ;;  %v4964_v10 = vld [vmem:[#allocation19_spill] sm:$0xff] }
 0x1a6   :  { %4960 = vst [vmem:[#allocation14_spill] sm:$0xff] %v3773_v47  ;;  %v1452_v41 = vsub.f32 1.5, %v1451_v13  ;;  %v3790_v11 = vadd.f32 %v340_v0, %v2541_v18  ;;  %v716_v9 = vadd.f32 %v715_v19, %v3743_v31  ;;  %v1229_v42 = vsub.f32 %v4963_v58, %v3613_v33  ;;  %v566_v58 = vpop.f32.mrf.mxu3 }
 0x1a7   :  { %2107 = vst [vmem:[%s4778_s5 + $0x128] sm:$0xff] %v1979_v5  ;;  %v1230_v5 = vsub.f32 %v4964_v10, %v3613_v33  ;;  %v1136_v35 = vsub.f32 %v1072_v43, %v1104_v60  ;;  %v1003_v13 = vadd.f32 %v849_v28, %v848_v52  ;;  %vm1454_vm15 = vweird.f32 %v3684_v36  ;;  %v4965_v10 = vld [vmem:[#allocation20_spill] sm:$0xff]  ;;  %v649_v36 = vpop.xlane.xlu1 %648 }
 0x1a8   :  { %4961 = vst [vmem:[#allocation15_spill] sm:$0xff] %v3787_v40  ;;  %v3800_v38 = vpop.eup %2224  ;;  %v1453_v19 = vmul.f32 %v3736_v56, %v1452_v41  ;;  %v851_v0 = vmul.f32 %v3773_v47, %v3773_v47  ;;  %v1231_v43 = vsub.f32 %v4965_v10, %v3613_v33  ;;  %vm1456_vm0 = vmor %vm1454_vm15, %vm1455_vm14  ;;  %v852_v41 = vmul.f32 %v3787_v40, %v3787_v40 }
 0x1a9   :  { %4962 = vst [vmem:[#allocation16_spill] sm:$0xff] %v3790_v11  ;;  %v1459_v52 = vmul.f32 %v3800_v38, %v3750_v29  ;;  %v1168_v28 = vmax.f32 %v1136_v35, 0.0  ;;  %v1004_v33 = vadd.f32 %v1003_v13, %v850_v2  ;;  %v3827_v27 = vmul.f32 0.001953125, %v649_v36  ;;  %v4968_v36 = vld [vmem:[#allocation21_spill] sm:$0xff] }
 0x1aa   :  { %2108 = vst [vmem:[%s4778_s5 + $0x130] sm:$0xff] %v1980_v53  ;;  %v717_v53 = vadd.f32 %v716_v9, %v3773_v47  ;;  %v1457_v60 = vsel %vm1456_vm0, %v3736_v56, %v1453_v19  ;;  %v720_v9 = vadd.f32 %v3790_v11, %v3787_v40  ;;  %vm1465_vm1 = vweird.f32 %v3800_v38 }
 0x1ab   :  { %2109 = vst [vmem:[%s4778_s5 + $0x138] sm:$0xff] %v1981_v57  ;;  %v3817_v57 = vadd.f32 %v453_v49, %v2552_v24  ;;  %v1708_v10 = vmul.f32 %v1457_v60, %v1228_v37  ;;  %v1709_v47 = vmul.f32 %v1457_v60, %v1229_v42  ;;  %v1710_v31 = vmul.f32 %v1457_v60, %v1230_v5  ;;  %v937_v5 = vpop.xlane.xlu0 %936 }
 0x1ac   :  { %718 = vadd.xlane.f32.xlu0 %v717_v53  ;;  %v1711_v1 = vmul.f32 %v1457_v60, %v1231_v43  ;;  %v1460_v35 = vmul.f32 %v3800_v38, %v1459_v52  ;;  %v3825_v30 = vadd.f32 1e-05, %v1168_v28  ;;  %v1005_v49 = vadd.f32 %v1004_v33, %v851_v0  ;;  %v343_v28 = vpop.f32.mrf.mxu1  ;;  %v4969_v60 = vld [vmem:[#allocation22_spill] sm:$0xff] }
 0x1ad   :  { %4966 = vst [vmem:[#allocation17_spill] sm:$0xff] %v3817_v57  ;;  %v1845_v56 = vmul.f32 %v3039_v46, %v1708_v10  ;;  %v1846_v19 = vmul.f32 %v3041_v8, %v1709_v47  ;;  %v1847_v4 = vmul.f32 %v3045_v15, %v1710_v31  ;;  %v853_v37 = vmul.f32 %v3790_v11, %v3790_v11 }
 0x1ae   :  { %v1848_v53 = vmul.f32 %v3047_v12, %v1711_v1  ;;  %v1461_v2 = vmul.f32 0.5, %v1460_v35  ;;  %2226 = vrsqrt.f32 %v3825_v30  ;;  %1006 = vadd.xlane.f32.xlu2 %v1005_v49  ;;  %v3837_v42 = vadd.f32 %v566_v58, %v2554_v25  ;;  %v230_v1 = vpop.f32.mrf.mxu0 }
 0x1af   :  { %v1982_v13 = vadd.f32 %v3049_v62, %v1845_v56  ;;  %v1983_v0 = vadd.f32 %v3063_v21, %v1846_v19  ;;  %v1984_v47 = vadd.f32 %v3065_v20, %v1847_v4  ;;  %v854_v52 = vmul.f32 %v3817_v57, %v3817_v57  ;;  %v456_v56 = vpop.f32.mrf.mxu2 }
 0x1b0   :  { %4967 = vst [vmem:[#allocation18_spill] sm:$0xff] %v3837_v42  ;;  %v1985_v31 = vadd.f32 %v3084_v44, %v1848_v53  ;;  %v1462_v43 = vsub.f32 1.5, %v1461_v2  ;;  %v1105_v58 = vmul.f32 %v3827_v27, %v3827_v27  ;;  %v1232_v4 = vsub.f32 %v4968_v36, %v3688_v34  ;;  %v569_v2 = vpop.f32.mrf.mxu3 }
 0x1b1   :  { %2110 = vst [vmem:[%s4778_s5 + $0x140] sm:$0xff] %v1982_v13  ;;  %v1233_v33 = vsub.f32 %v4969_v60, %v3688_v34  ;;  %v1073_v10 = vmul.f32 0.001953125, %v937_v5  ;;  %v721_v35 = vadd.f32 %v720_v9, %v3817_v57  ;;  %vm1464_vm2 = vweird.f32 %v3750_v29  ;;  %v4970_v9 = vld [vmem:[#allocation23_spill] sm:$0xff]  ;;  %v4971_v13 = vld [vmem:[#allocation24_spill] sm:$0xff] }
 0x1b2   :  { %2111 = vst [vmem:[%s4778_s5 + $0x148] sm:$0xff] %v1983_v0  ;;  %v1463_v49 = vmul.f32 %v3800_v38, %v1462_v43  ;;  %v855_v19 = vmul.f32 %v3837_v42, %v3837_v42  ;;  %v1008_v53 = vadd.f32 %v853_v37, %v852_v41  ;;  %v1234_v5 = vsub.f32 %v4970_v9, %v3688_v34  ;;  %vm1466_vm3 = vmor %vm1464_vm2, %vm1465_vm1 }
 0x1b3   :  { %2112 = vst [vmem:[%s4778_s5 + $0x150] sm:$0xff] %v1984_v47  ;;  %v1235_v0 = vsub.f32 %v4971_v13, %v3688_v34  ;;  %v1137_v29 = vsub.f32 %v1073_v10, %v1105_v58  ;;  %v3873_v43 = vadd.f32 %v230_v1, %v2539_v17  ;;  %v3882_v37 = vadd.f32 %v343_v28, %v2541_v18  ;;  %v654_v1 = vpop.xlane.xlu2 %653 }
 0x1b4   :  { %v3875_v36 = vpop.eup %2226  ;;  %2113 = vst [vmem:[%s4778_s5 + $0x158] sm:$0xff] %v1985_v31  ;;  %v1467_v41 = vsel %vm1466_vm3, %v3800_v38, %v1463_v49  ;;  %v722_v34 = vadd.f32 %v721_v35, %v3837_v42  ;;  %v1009_v47 = vadd.f32 %v1008_v53, %v854_v52  ;;  %v3897_v49 = vmul.f32 0.001953125, %v654_v1  ;;  %v942_v53 = vpop.xlane.xlu1 %941 }
 0x1b5   :  { %4972 = vst [vmem:[#allocation19_spill] sm:$0xff] %v3882_v37  ;;  %v1712_v60 = vmul.f32 %v1467_v41, %v1232_v4  ;;  %v1713_v9 = vmul.f32 %v1467_v41, %v1233_v33  ;;  %v1714_v58 = vmul.f32 %v1467_v41, %v1234_v5  ;;  %v1715_v10 = vmul.f32 %v1467_v41, %v1235_v0 }
 0x1b6   :  { %v1469_v13 = vmul.f32 %v3875_v36, %v3825_v30  ;;  %v1169_v57 = vmax.f32 %v1137_v29, 0.0  ;;  %723 = vadd.xlane.f32.xlu1 %v722_v34  ;;  %v1010_v11 = vadd.f32 %v1009_v47, %v855_v19  ;;  %v3895_v33 = vadd.f32 %v456_v56, %v2552_v24  ;;  %v233_v41 = vpop.f32.mrf.mxu0  ;;  %v4974_v34 = vld [vmem:[#allocation25_spill] sm:$0xff] }
 0x1b7   :  { %v1849_v31 = vmul.f32 %v3039_v46, %v1712_v60  ;;  %v1850_v38 = vmul.f32 %v3041_v8, %v1713_v9  ;;  %v1851_v28 = vmul.f32 %v3045_v15, %v1714_v58  ;;  %v1852_v35 = vmul.f32 %v3047_v12, %v1715_v10  ;;  %v4975_v60 = vld [vmem:[#allocation26_spill] sm:$0xff]  ;;  %v4976_v58 = vld [vmem:[#allocation27_spill] sm:$0xff] }
 0x1b8   :  { %v1470_v52 = vmul.f32 %v3875_v36, %v1469_v13  ;;  %v3892_v4 = vadd.f32 1e-05, %v1169_v57  ;;  %4973 = vst [vmem:[#allocation20_spill] sm:$0xff] %v3895_v33  ;;  %1011 = vadd.xlane.f32.xlu0 %v1010_v11  ;;  %v725_v29 = vadd.f32 %v3882_v37, %v3873_v43  ;;  %v1236_v56 = vsub.f32 %v4974_v34, %v3762_v3  ;;  %v346_v11 = vpop.f32.mrf.mxu1 }
 0x1b9   :  { %v1986_v19 = vadd.f32 %v3049_v62, %v1849_v31  ;;  %v1987_v5 = vadd.f32 %v3063_v21, %v1850_v38  ;;  %v1988_v0 = vadd.f32 %v3065_v20, %v1851_v28  ;;  %v1989_v57 = vadd.f32 %v3084_v44, %v1852_v35  ;;  %v459_v35 = vpop.f32.mrf.mxu2 }
 0x1ba   :  { %v1471_v47 = vmul.f32 0.5, %v1470_v52  ;;  %2228 = vrsqrt.f32 %v3892_v4  ;;  %v1237_v9 = vsub.f32 %v4975_v60, %v3762_v3  ;;  %v1238_v10 = vsub.f32 %v4976_v58, %v3762_v3  ;;  %v572_v52 = vpop.f32.mrf.mxu3  ;;  %v4980_v60 = vld [vmem:[#allocation30_spill] sm:$0xff] }
 0x1bb   :  { %2114 = vst [vmem:[%s4778_s5 + $0x160] sm:$0xff] %v1986_v19  ;;  %v3916_v1 = vadd.f32 %v569_v2, %v2554_v25  ;;  %v1074_v13 = vmul.f32 0.001953125, %v942_v53  ;;  %vm1475_vm4 = vweird.f32 %v3875_v36  ;;  %v1106_v38 = vmul.f32 %v3897_v49, %v3897_v49  ;;  %v4978_v2 = vld [vmem:[#allocation28_spill] sm:$0xff]  ;;  %v4979_v19 = vld [vmem:[#allocation29_spill] sm:$0xff] }
 0x1bc   :  { %2115 = vst [vmem:[%s4778_s5 + $0x168] sm:$0xff] %v1987_v5  ;;  %v1472_v31 = vsub.f32 1.5, %v1471_v47  ;;  %v3925_v28 = vadd.f32 %v233_v41, %v2539_v17  ;;  %v1239_v53 = vsub.f32 %v4978_v2, %v3762_v3  ;;  %vm1474_vm5 = vweird.f32 %v3825_v30  ;;  %v659_v47 = vpop.xlane.xlu0 %658  ;;  %v4982_v30 = vld [vmem:[#allocation31_spill] sm:$0xff] }
 0x1bd   :  { %2116 = vst [vmem:[%s4778_s5 + $0x170] sm:$0xff] %v1988_v0  ;;  %v726_v34 = vadd.f32 %v725_v29, %v3895_v33  ;;  %v1138_v58 = vsub.f32 %v1074_v13, %v1106_v38  ;;  %v3943_v3 = vadd.f32 %v346_v11, %v2541_v18  ;;  %vm1476_vm6 = vmor %vm1474_vm5, %vm1475_vm4  ;;  %v3951_v5 = vadd.f32 %v459_v35, %v2552_v24  ;;  %v947_v35 = vpop.xlane.xlu2 %946 }
 0x1be   :  { %4977 = vst [vmem:[#allocation21_spill] sm:$0xff] %v3925_v28  ;;  %v1473_v41 = vmul.f32 %v3875_v36, %v1472_v31  ;;  %v860_v38 = vmul.f32 %v3925_v28, %v3925_v28  ;;  %v3961_v0 = vmul.f32 0.001953125, %v659_v47  ;;  %vm1484_vm8 = vweird.f32 %v3892_v4 }
 0x1bf   :  { %2117 = vst [vmem:[%s4778_s5 + $0x178] sm:$0xff] %v1989_v57  ;;  %v727_v2 = vadd.f32 %v726_v34, %v3916_v1  ;;  %v3954_v57 = vadd.f32 %v572_v52, %v2554_v25  ;;  %v1170_v11 = vmax.f32 %v1138_v58, 0.0  ;;  %v4983_v58 = vld [vmem:[#allocation32_spill] sm:$0xff] }
 0x1c0   :  { %4981 = vst [vmem:[#allocation22_spill] sm:$0xff] %v3943_v3  ;;  %v3956_v31 = vpop.eup %2228  ;;  %v1477_v13 = vsel %vm1476_vm6, %v3875_v36, %v1473_v41  ;;  %v730_v36 = vadd.f32 %v3943_v3, %v3925_v28  ;;  %v861_v41 = vmul.f32 %v3943_v3, %v3943_v3  ;;  %v349_v28 = vpop.f32.mrf.mxu1 }
 0x1c1   :  { %v1716_v42 = vmul.f32 %v1477_v13, %v1236_v56  ;;  %v1717_v29 = vmul.f32 %v1477_v13, %v1237_v9  ;;  %v1718_v40 = vmul.f32 %v1477_v13, %v1238_v10  ;;  %v1719_v34 = vmul.f32 %v1477_v13, %v1239_v53  ;;  %728 = vadd.xlane.f32.xlu2 %v727_v2  ;;  %v236_v53 = vpop.f32.mrf.mxu0 }
 0x1c2   :  { %v1479_v52 = vmul.f32 %v3956_v31, %v3892_v4  ;;  %v3965_v16 = vadd.f32 1e-05, %v1170_v11  ;;  %v1243_v2 = vsub.f32 %v4983_v58, %v3827_v27  ;;  %v1075_v11 = vmul.f32 0.001953125, %v947_v35 }
 0x1c3   :  { %v1853_v47 = vmul.f32 %v3039_v46, %v1716_v42  ;;  %v1854_v56 = vmul.f32 %v3041_v8, %v1717_v29  ;;  %v1855_v9 = vmul.f32 %v3045_v15, %v1718_v40  ;;  %v1856_v10 = vmul.f32 %v3047_v12, %v1719_v34 }
 0x1c4   :  { %v1480_v13 = vmul.f32 %v3956_v31, %v1479_v52  ;;  %2230 = vrsqrt.f32 %v3965_v16  ;;  %v862_v40 = vmul.f32 %v3951_v5, %v3951_v5  ;;  %v1107_v58 = vmul.f32 %v3961_v0, %v3961_v0  ;;  %v952_v4 = vpop.xlane.xlu0 %951 }
 0x1c5   :  { %v1990_v3 = vadd.f32 %v3049_v62, %v1853_v47  ;;  %v1991_v42 = vadd.f32 %v3063_v21, %v1854_v56  ;;  %v1992_v29 = vadd.f32 %v3065_v20, %v1855_v9  ;;  %v1993_v34 = vadd.f32 %v3084_v44, %v1856_v10  ;;  %v462_v56 = vpop.f32.mrf.mxu2 }
 0x1c6   :  { %v1481_v26 = vmul.f32 0.5, %v1480_v13  ;;  %v3988_v52 = vadd.f32 %v236_v53, %v2539_v17  ;;  %v3994_v35 = vadd.f32 %v349_v28, %v2541_v18  ;;  %v731_v47 = vadd.f32 %v730_v36, %v3951_v5 }
 0x1c7   :  { %2118 = vst [vmem:[%s4778_s5 + $0x180] sm:$0xff] %v1990_v3  ;;  %v863_v9 = vmul.f32 %v3954_v57, %v3954_v57  ;;  %v1018_v10 = vadd.f32 %v861_v41, %v860_v38  ;;  %vm1485_vm7 = vweird.f32 %v3956_v31  ;;  %v4005_v3 = vmul.f32 %v3873_v43, %v3873_v43  ;;  %v664_v41 = vpop.xlane.xlu1 %663 }
 0x1c8   :  { %2119 = vst [vmem:[%s4778_s5 + $0x188] sm:$0xff] %v1991_v42  ;;  %v1482_v17 = vsub.f32 1.5, %v1481_v26  ;;  %v1139_v18 = vsub.f32 %v1075_v11, %v1107_v58  ;;  %v4012_v28 = vmul.f32 %v3882_v37, %v3882_v37  ;;  %v4016_v38 = vmul.f32 %v3895_v33, %v3895_v33  ;;  %vm1486_vm9 = vmor %vm1484_vm8, %vm1485_vm7 }
 0x1c9   :  { %2120 = vst [vmem:[%s4778_s5 + $0x190] sm:$0xff] %v1992_v29  ;;  %v732_v26 = vadd.f32 %v731_v47, %v3954_v57  ;;  %v1019_v36 = vadd.f32 %v1018_v10, %v862_v40  ;;  %v4027_v42 = vadd.f32 %v462_v56, %v2552_v24  ;;  %v864_v40 = vmul.f32 %v3988_v52, %v3988_v52  ;;  %v575_v47 = vpop.f32.mrf.mxu3 }
 0x1ca   :  { %v4019_v53 = vpop.eup %2230  ;;  %2121 = vst [vmem:[%s4778_s5 + $0x198] sm:$0xff] %v1993_v34  ;;  %v1483_v13 = vmul.f32 %v3956_v31, %v1482_v17  ;;  %v1171_v11 = vmax.f32 %v1139_v18, 0.0  ;;  %v735_v34 = vadd.f32 %v3994_v35, %v3988_v52  ;;  %v865_v56 = vmul.f32 %v3994_v35, %v3994_v35 }
 0x1cb   :  { %v1489_v29 = vmul.f32 %v4019_v53, %v3965_v16  ;;  %733 = vadd.xlane.f32.xlu0 %v732_v26  ;;  %v1020_v58 = vadd.f32 %v1019_v36, %v863_v9  ;;  %v4042_v17 = vmul.f32 0.001953125, %v664_v41  ;;  %v4984_v18 = vsub.f32 %v4979_v19, %v3827_v27 }
 0x1cc   :  { %v1487_v10 = vsel %vm1486_vm9, %v3956_v31, %v1483_v13  ;;  %v4038_v24 = vadd.f32 1e-05, %v1171_v11  ;;  %v4985_v37 = vsub.f32 %v4980_v60, %v3827_v27  ;;  %v4986_v9 = vsub.f32 %v4982_v30, %v3827_v27 }
 0x1cd   :  { %v1720_v33 = vmul.f32 %v1487_v10, %v4984_v18  ;;  %v1723_v31 = vmul.f32 %v1487_v10, %v1243_v2  ;;  %1021 = vadd.xlane.f32.xlu2 %v1020_v58  ;;  %v1490_v13 = vmul.f32 %v4019_v53, %v1489_v29  ;;  %v4056_v41 = vadd.f32 %v575_v47, %v2554_v25 }
 0x1ce   :  { %v1721_v26 = vmul.f32 %v1487_v10, %v4985_v37  ;;  %v1722_v36 = vmul.f32 %v1487_v10, %v4986_v9  ;;  %2232 = vrsqrt.f32 %v4038_v24  ;;  %v1076_v11 = vmul.f32 0.001953125, %v952_v4  ;;  %v669_v9 = vpop.xlane.xlu2 %668 }
 0x1cf   :  { %v1857_v19 = vmul.f32 %v3039_v46, %v1720_v33  ;;  %v1860_v60 = vmul.f32 %v3047_v12, %v1723_v31  ;;  %v1491_v27 = vmul.f32 0.5, %v1490_v13  ;;  %v866_v30 = vmul.f32 %v4027_v42, %v4027_v42  ;;  %v4988_v31 = vld [vmem:[#allocation34_spill] sm:$0xff] }
 0x1d0   :  { %v1858_v18 = vmul.f32 %v3041_v8, %v1721_v26  ;;  %v1859_v37 = vmul.f32 %v3045_v15, %v1722_v36  ;;  %v1108_v2 = vmul.f32 %v4042_v17, %v4042_v17  ;;  %v736_v29 = vadd.f32 %v735_v34, %v4027_v42  ;;  %v4987_v34 = vld [vmem:[#allocation33_spill] sm:$0xff] }
 0x1d1   :  { %v1994_v25 = vadd.f32 %v3049_v62, %v1857_v19  ;;  %vm1495_vm10 = vweird.f32 %v4019_v53  ;;  %v1997_v47 = vadd.f32 %v3084_v44, %v1860_v60  ;;  %v1492_v4 = vsub.f32 1.5, %v1491_v27  ;;  %v4989_v19 = vld [vmem:[#allocation35_spill] sm:$0xff]  ;;  %v957_v60 = vpop.xlane.xlu1 %956 }
 0x1d2   :  { %v1995_v58 = vadd.f32 %v3063_v21, %v1858_v18  ;;  %v1996_v33 = vadd.f32 %v3065_v20, %v1859_v37  ;;  %v1140_v10 = vsub.f32 %v1076_v11, %v1108_v2  ;;  %v737_v26 = vadd.f32 %v736_v29, %v4056_v41 }
 0x1d3   :  { %2122 = vst [vmem:[%s4778_s5 + $0x1a0] sm:$0xff] %v1994_v25  ;;  %v1244_v36 = vsub.f32 %v4987_v34, %v3897_v49  ;;  %v1245_v13 = vsub.f32 %v4988_v31, %v3897_v49  ;;  %v1246_v18 = vsub.f32 %v4989_v19, %v3897_v49  ;;  %v1023_v37 = vadd.f32 %v865_v56, %v864_v40  ;;  %v4990_v40 = vld [vmem:[#allocation36_spill] sm:$0xff] }
 0x1d4   :  { %v4082_v27 = vpop.eup %2232  ;;  %2123 = vst [vmem:[%s4778_s5 + $0x1a8] sm:$0xff] %v1995_v58  ;;  %v1493_v11 = vmul.f32 %v4019_v53, %v1492_v4  ;;  %vm1494_vm11 = vweird.f32 %v3965_v16  ;;  %v1172_v2 = vmax.f32 %v1140_v10, 0.0  ;;  %738 = vadd.xlane.f32.xlu1 %v737_v26  ;;  %v867_v29 = vmul.f32 %v4056_v41, %v4056_v41 }
 0x1d5   :  { %2124 = vst [vmem:[%s4778_s5 + $0x1b0] sm:$0xff] %v1996_v33  ;;  %v1247_v56 = vsub.f32 %v4990_v40, %v3897_v49  ;;  %vm1496_vm12 = vmor %vm1494_vm11, %vm1495_vm10  ;;  %v1499_v25 = vmul.f32 %v4082_v27, %v4038_v24  ;;  %v1024_v58 = vadd.f32 %v1023_v37, %v866_v30  ;;  %v4100_v16 = vmul.f32 0.001953125, %v669_v9 }
 0x1d6   :  { %2125 = vst [vmem:[%s4778_s5 + $0x1b8] sm:$0xff] %v1997_v47  ;;  %v1497_v4 = vsel %vm1496_vm12, %v4019_v53, %v1493_v11  ;;  %v4106_v10 = vadd.f32 1e-05, %v1172_v2  ;;  %v1077_v33 = vmul.f32 0.001953125, %v957_v60  ;;  %v1013_v49 = vadd.f32 %v4012_v28, %v4005_v3  ;;  %v674_v28 = vpop.xlane.xlu0 %673 }
 0x1d7   :  { %v1724_v26 = vmul.f32 %v1497_v4, %v1244_v36  ;;  %v1725_v34 = vmul.f32 %v1497_v4, %v1245_v13  ;;  %v1726_v31 = vmul.f32 %v1497_v4, %v1246_v18  ;;  %v1727_v19 = vmul.f32 %v1497_v4, %v1247_v56  ;;  %v962_v56 = vpop.xlane.xlu2 %961 }
 0x1d8   :  { %v1500_v30 = vmul.f32 %v4082_v27, %v1499_v25  ;;  %2234 = vrsqrt.f32 %v4106_v10  ;;  %v1025_v9 = vadd.f32 %v1024_v58, %v867_v29  ;;  %v859_v47 = vmul.f32 %v3916_v1, %v3916_v1 }
 0x1d9   :  { %v1861_v53 = vmul.f32 %v3039_v46, %v1724_v26  ;;  %v1862_v37 = vmul.f32 %v3041_v8, %v1725_v34  ;;  %v1863_v60 = vmul.f32 %v3045_v15, %v1726_v31  ;;  %v1864_v3 = vmul.f32 %v3047_v12, %v1727_v19 }
 0x1da   :  { %v1501_v36 = vmul.f32 0.5, %v1500_v30  ;;  %vm1505_vm13 = vweird.f32 %v4082_v27  ;;  %1026 = vadd.xlane.f32.xlu0 %v1025_v9  ;;  %v1109_v13 = vmul.f32 %v4100_v16, %v4100_v16  ;;  %v1014_v18 = vadd.f32 %v1013_v49, %v4016_v38  ;;  %v4991_v38 = vld [vmem:[#allocation37_spill] sm:$0xff]  ;;  %v4992_v30 = vld [vmem:[#allocation38_spill] sm:$0xff] }
 0x1db   :  { %v1998_v11 = vadd.f32 %v3049_v62, %v1861_v53  ;;  %v1999_v2 = vadd.f32 %v3063_v21, %v1862_v37  ;;  %v2000_v29 = vadd.f32 %v3065_v20, %v1863_v60  ;;  %v2001_v40 = vadd.f32 %v3084_v44, %v1864_v3  ;;  %v4994_v37 = vld [vmem:[#allocation40_spill] sm:$0xff]  ;;  %v679_v3 = vpop.xlane.xlu1 %678 }
 0x1dc   :  { %v1502_v25 = vsub.f32 1.5, %v1501_v36  ;;  %v1141_v58 = vsub.f32 %v1077_v33, %v1109_v13  ;;  %v1015_v4 = vadd.f32 %v1014_v18, %v859_v47  ;;  %v4126_v26 = vmul.f32 0.001953125, %v674_v28  ;;  %v4993_v47 = vld [vmem:[#allocation39_spill] sm:$0xff] }
 0x1dd   :  { %2126 = vst [vmem:[%s4778_s5 + $0x1c0] sm:$0xff] %v1998_v11  ;;  %v1248_v49 = vsub.f32 %v4991_v38, %v3961_v0  ;;  %vm1504_vm14 = vweird.f32 %v4038_v24  ;;  %v1078_v19 = vmul.f32 0.001953125, %v962_v56  ;;  %v1249_v9 = vsub.f32 %v4992_v30, %v3961_v0 }
 0x1de   :  { %v2235_v34 = vpop.eup %2234  ;;  %2127 = vst [vmem:[%s4778_s5 + $0x1c8] sm:$0xff] %v1999_v2  ;;  %v1503_v31 = vmul.f32 %v4082_v27, %v1502_v25  ;;  %v1173_v33 = vmax.f32 %v1141_v58, 0.0  ;;  %1016 = vadd.xlane.f32.xlu1 %v1015_v4  ;;  %v1250_v53 = vsub.f32 %v4993_v47, %v3961_v0  ;;  %v1251_v60 = vsub.f32 %v4994_v37, %v3961_v0  ;;  %vm1506_vm15 = vmor %vm1504_vm14, %vm1505_vm13  ;;  %v4995_v37 = vld [vmem:[#allocation41_spill] sm:$0xff] }
 0x1df   :  { %2128 = vst [vmem:[%s4778_s5 + $0x1d0] sm:$0xff] %v2000_v29  ;;  %v1509_v24 = vmul.f32 %v2235_v34, %v4106_v10  ;;  %v1110_v13 = vmul.f32 %v4126_v26, %v4126_v26  ;;  %v4159_v25 = vmul.f32 0.001953125, %v679_v3  ;;  %vm1515_vm0 = vweird.f32 %v2235_v34 }
 0x1e0   :  { %2129 = vst [vmem:[%s4778_s5 + $0x1d8] sm:$0xff] %v2001_v40  ;;  %v1507_v28 = vsel %vm1506_vm15, %v4082_v27, %v1503_v31  ;;  %v4154_v36 = vadd.f32 1e-05, %v1173_v33  ;;  %vm1514_vm1 = vweird.f32 %v4106_v10 }
 0x1e1   :  { %v1728_v18 = vmul.f32 %v1507_v28, %v1248_v49  ;;  %v1729_v11 = vmul.f32 %v1507_v28, %v1249_v9  ;;  %v1730_v0 = vmul.f32 %v1507_v28, %v1250_v53  ;;  %v1731_v2 = vmul.f32 %v1507_v28, %v1251_v60  ;;  %v967_v49 = vpop.xlane.xlu0 %966  ;;  %v684_v28 = vpop.xlane.xlu2 %683  ;;  %vm1516_vm2 = vmor %vm1514_vm1, %vm1515_vm0 }
 0x1e2   :  { %v1510_v29 = vmul.f32 %v2235_v34, %v1509_v24  ;;  %2236 = vrsqrt.f32 %v4154_v36  ;;  %v1142_v56 = vsub.f32 %v1078_v19, %v1110_v13  ;;  %v1252_v60 = vsub.f32 %v4995_v37, %v4042_v17 }
 0x1e3   :  { %v1865_v58 = vmul.f32 %v3039_v46, %v1728_v18  ;;  %v1866_v40 = vmul.f32 %v3041_v8, %v1729_v11  ;;  %v1867_v27 = vmul.f32 %v3045_v15, %v1730_v0  ;;  %v1868_v4 = vmul.f32 %v3047_v12, %v1731_v2  ;;  %v4996_v18 = vld [vmem:[#allocation42_spill] sm:$0xff]  ;;  %v4997_v2 = vld [vmem:[#allocation43_spill] sm:$0xff] }
 0x1e4   :  { %v1511_v38 = vmul.f32 0.5, %v1510_v29  ;;  %v1174_v31 = vmax.f32 %v1142_v56, 0.0  ;;  %v1111_v24 = vmul.f32 %v4159_v25, %v4159_v25  ;;  %v1079_v3 = vmul.f32 0.001953125, %v967_v49  ;;  %v4998_v56 = vld [vmem:[#allocation44_spill] sm:$0xff] }
 0x1e5   :  { %v2002_v33 = vadd.f32 %v3049_v62, %v1865_v58  ;;  %v2003_v30 = vadd.f32 %v3063_v21, %v1866_v40  ;;  %v2004_v9 = vadd.f32 %v3065_v20, %v1867_v27  ;;  %v2005_v19 = vadd.f32 %v3084_v44, %v1868_v4  ;;  %v972_v4 = vpop.xlane.xlu1 %971 }
 0x1e6   :  { %v1512_v47 = vsub.f32 1.5, %v1511_v38  ;;  %v4169_v53 = vadd.f32 1e-05, %v1174_v31  ;;  %v1253_v11 = vsub.f32 %v4996_v18, %v4042_v17  ;;  %v1254_v29 = vsub.f32 %v4997_v2, %v4042_v17 }
 0x1e7   :  { %2130 = vst [vmem:[%s4778_s5 + $0x1e0] sm:$0xff] %v2002_v33  ;;  %v1255_v58 = vsub.f32 %v4998_v56, %v4042_v17  ;;  %v1143_v27 = vsub.f32 %v1079_v3, %v1111_v24  ;;  %v4197_v38 = vmul.f32 0.001953125, %v684_v28  ;;  %v1080_v17 = vmul.f32 0.001953125, %v972_v4 }
 0x1e8   :  { %v2237_v13 = vpop.eup %2236  ;;  %2131 = vst [vmem:[%s4778_s5 + $0x1e8] sm:$0xff] %v2003_v30  ;;  %v1513_v0 = vmul.f32 %v2235_v34, %v1512_v47  ;;  %2238 = vrsqrt.f32 %v4169_v53  ;;  %vm1524_vm4 = vweird.f32 %v4154_v36  ;;  %vm1534_vm7 = vweird.f32 %v4169_v53 }
 0x1e9   :  { %2132 = vst [vmem:[%s4778_s5 + $0x1f0] sm:$0xff] %v2004_v9  ;;  %v1519_v40 = vmul.f32 %v2237_v13, %v4154_v36  ;;  %v1175_v47 = vmax.f32 %v1143_v27, 0.0  ;;  %vm1525_vm3 = vweird.f32 %v2237_v13 }
 0x1ea   :  { %2133 = vst [vmem:[%s4778_s5 + $0x1f8] sm:$0xff] %v2005_v19  ;;  %v1517_v10 = vsel %vm1516_vm2, %v2235_v34, %v1513_v0  ;;  %v4999_v34 = vld [vmem:[#allocation45_spill] sm:$0xff]  ;;  %vm1526_vm5 = vmor %vm1524_vm4, %vm1525_vm3 }
 0x1eb   :  { %v1732_v31 = vmul.f32 %v1517_v10, %v1252_v60  ;;  %v1733_v49 = vmul.f32 %v1517_v10, %v1253_v11  ;;  %v1734_v33 = vmul.f32 %v1517_v10, %v1254_v29  ;;  %v1735_v30 = vmul.f32 %v1517_v10, %v1255_v58  ;;  %v689_v58 = vpop.xlane.xlu0 %688  ;;  %v5000_v10 = vld [vmem:[#allocation46_spill] sm:$0xff] }
 0x1ec   :  { %v1520_v9 = vmul.f32 %v2237_v13, %v1519_v40  ;;  %v1256_v19 = vsub.f32 %v4999_v34, %v4100_v16  ;;  %v4205_v60 = vadd.f32 1e-05, %v1175_v47  ;;  %v1112_v11 = vmul.f32 %v4197_v38, %v4197_v38  ;;  %v977_v47 = vpop.xlane.xlu2 %976 }
 0x1ed   :  { %v1869_v37 = vmul.f32 %v3039_v46, %v1732_v31  ;;  %v1870_v18 = vmul.f32 %v3041_v8, %v1733_v49  ;;  %v1871_v24 = vmul.f32 %v3045_v15, %v1734_v33  ;;  %v1872_v3 = vmul.f32 %v3047_v12, %v1735_v30  ;;  %v5001_v49 = vld [vmem:[#allocation47_spill] sm:$0xff] }
 0x1ee   :  { %v2239_v2 = vpop.eup %2238  ;;  %v1521_v28 = vmul.f32 0.5, %v1520_v9  ;;  %2240 = vrsqrt.f32 %v4205_v60  ;;  %v1257_v31 = vsub.f32 %v5000_v10, %v4100_v16  ;;  %v1258_v33 = vsub.f32 %v5001_v49, %v4100_v16 }
 0x1ef   :  { %v2006_v0 = vadd.f32 %v3049_v62, %v1869_v37  ;;  %v2007_v29 = vadd.f32 %v3063_v21, %v1870_v18  ;;  %v2008_v56 = vadd.f32 %v3065_v20, %v1871_v24  ;;  %v2009_v40 = vadd.f32 %v3084_v44, %v1872_v3  ;;  %v5002_v3 = vld [vmem:[#allocation48_spill] sm:$0xff] }
 0x1f0   :  { %v1522_v27 = vsub.f32 1.5, %v1521_v28  ;;  %v1529_v4 = vmul.f32 %v2239_v2, %v4169_v53  ;;  %v1144_v30 = vsub.f32 %v1080_v17, %v1112_v11  ;;  %v4222_v9 = vmul.f32 0.001953125, %v689_v58  ;;  %v5003_v17 = vld [vmem:[#allocation49_spill] sm:$0xff]  ;;  %v5004_v11 = vld [vmem:[#allocation50_spill] sm:$0xff]  ;;  %v5005_v58 = vld [vmem:[#allocation51_spill] sm:$0xff] }
 0x1f1   :  { %2134 = vst [vmem:[%s4778_s5 + $0x200] sm:$0xff] %v2006_v0  ;;  %v1081_v24 = vmul.f32 0.001953125, %v977_v47  ;;  %v1259_v34 = vsub.f32 %v5002_v3, %v4100_v16  ;;  %v1260_v28 = vsub.f32 %v5003_v17, %v4126_v26  ;;  %v1261_v0 = vsub.f32 %v5004_v11, %v4126_v26 }
 0x1f2   :  { %2135 = vst [vmem:[%s4778_s5 + $0x208] sm:$0xff] %v2007_v29  ;;  %v1523_v37 = vmul.f32 %v2237_v13, %v1522_v27  ;;  %v1530_v18 = vmul.f32 %v2239_v2, %v1529_v4  ;;  %v1176_v29 = vmax.f32 %v1144_v30, 0.0  ;;  %v1113_v16 = vmul.f32 %v4222_v9, %v4222_v9 }
 0x1f3   :  { %2136 = vst [vmem:[%s4778_s5 + $0x210] sm:$0xff] %v2008_v56  ;;  %v1262_v56 = vsub.f32 %v5005_v58, %v4126_v26  ;;  %vm1535_vm6 = vweird.f32 %v2239_v2  ;;  %vm1544_vm10 = vweird.f32 %v4205_v60 }
 0x1f4   :  { %2137 = vst [vmem:[%s4778_s5 + $0x218] sm:$0xff] %v2009_v40  ;;  %v1527_v36 = vsel %vm1526_vm5, %v2237_v13, %v1523_v37  ;;  %v1531_v27 = vmul.f32 0.5, %v1530_v18  ;;  %v2241_v3 = vpop.eup %2240  ;;  %v4245_v30 = vadd.f32 1e-05, %v1176_v29  ;;  %v1145_v11 = vsub.f32 %v1081_v24, %v1113_v16  ;;  %vm1536_vm8 = vmor %vm1534_vm7, %vm1535_vm6 }
 0x1f5   :  { %v1736_v4 = vmul.f32 %v1527_v36, %v1256_v19  ;;  %v1737_v10 = vmul.f32 %v1527_v36, %v1257_v31  ;;  %v1738_v49 = vmul.f32 %v1527_v36, %v1258_v33  ;;  %v1739_v47 = vmul.f32 %v1527_v36, %v1259_v34  ;;  %v5006_v34 = vld [vmem:[#allocation52_spill] sm:$0xff]  ;;  %v694_v36 = vpop.xlane.xlu1 %693 }
 0x1f6   :  { %v1532_v17 = vsub.f32 1.5, %v1531_v27  ;;  %v1539_v19 = vmul.f32 %v2241_v3, %v4205_v60  ;;  %2242 = vrsqrt.f32 %v4245_v30  ;;  %v1263_v29 = vsub.f32 %v5006_v34, %v4126_v26  ;;  %v5007_v26 = vld [vmem:[#allocation53_spill] sm:$0xff] }
 0x1f7   :  { %v1873_v40 = vmul.f32 %v3039_v46, %v1736_v4  ;;  %v1874_v13 = vmul.f32 %v3041_v8, %v1737_v10  ;;  %v1875_v37 = vmul.f32 %v3045_v15, %v1738_v49  ;;  %v1876_v18 = vmul.f32 %v3047_v12, %v1739_v47 }
 0x1f8   :  { %v1533_v58 = vmul.f32 %v2239_v2, %v1532_v17  ;;  %v1540_v53 = vmul.f32 %v2241_v3, %v1539_v19  ;;  %v1177_v4 = vmax.f32 %v1145_v11, 0.0  ;;  %v5008_v19 = vld [vmem:[#allocation54_spill] sm:$0xff]  ;;  %vm1545_vm9 = vweird.f32 %v2241_v3 }
 0x1f9   :  { %v2010_v31 = vadd.f32 %v3049_v62, %v1873_v40  ;;  %v2011_v33 = vadd.f32 %v3063_v21, %v1874_v13  ;;  %v2012_v24 = vadd.f32 %v3065_v20, %v1875_v37  ;;  %v2013_v27 = vadd.f32 %v3084_v44, %v1876_v18  ;;  %v982_v18 = vpop.xlane.xlu0 %981  ;;  %vm1546_vm11 = vmor %vm1544_vm10, %vm1545_vm9 }
 0x1fa   :  { %v1537_v16 = vsel %vm1536_vm8, %v2239_v2, %v1533_v58  ;;  %v1264_v40 = vsub.f32 %v5007_v26, %v4159_v25  ;;  %v1541_v13 = vmul.f32 0.5, %v1540_v53  ;;  %v4269_v37 = vadd.f32 1e-05, %v1177_v4  ;;  %v5009_v4 = vld [vmem:[#allocation55_spill] sm:$0xff] }
 0x1fb   :  { %2138 = vst [vmem:[%s4778_s5 + $0x220] sm:$0xff] %v2010_v31  ;;  %v1740_v10 = vmul.f32 %v1537_v16, %v1260_v28  ;;  %v1741_v49 = vmul.f32 %v1537_v16, %v1261_v0  ;;  %v1742_v47 = vmul.f32 %v1537_v16, %v1262_v56  ;;  %v1743_v17 = vmul.f32 %v1537_v16, %v1263_v29 }
 0x1fc   :  { %2139 = vst [vmem:[%s4778_s5 + $0x228] sm:$0xff] %v2011_v33  ;;  %v4271_v2 = vmul.f32 0.001953125, %v694_v36  ;;  %v4280_v58 = vpop.eup %2242  ;;  %v1265_v31 = vsub.f32 %v5008_v19, %v4159_v25  ;;  %v1542_v33 = vsub.f32 1.5, %v1541_v13  ;;  %2244 = vrsqrt.f32 %v4269_v37 }
 0x1fd   :  { %2140 = vst [vmem:[%s4778_s5 + $0x230] sm:$0xff] %v2012_v24  ;;  %v1877_v28 = vmul.f32 %v3039_v46, %v1740_v10  ;;  %v1878_v0 = vmul.f32 %v3041_v8, %v1741_v49  ;;  %v1879_v56 = vmul.f32 %v3045_v15, %v1742_v47  ;;  %v1880_v11 = vmul.f32 %v3047_v12, %v1743_v17  ;;  %v699_v17 = vpop.xlane.xlu2 %698 }
 0x1fe   :  { %2141 = vst [vmem:[%s4778_s5 + $0x238] sm:$0xff] %v2013_v27  ;;  %v1543_v16 = vmul.f32 %v2241_v3, %v1542_v33  ;;  %v1549_v27 = vmul.f32 %v4280_v58, %v4245_v30  ;;  %v1082_v53 = vmul.f32 0.001953125, %v982_v18  ;;  %v1266_v10 = vsub.f32 %v5009_v4, %v4159_v25  ;;  %v987_v18 = vpop.xlane.xlu1 %986 }
 0x1ff   :  { %v2014_v24 = vadd.f32 %v3049_v62, %v1877_v28  ;;  %v2015_v34 = vadd.f32 %v3063_v21, %v1878_v0  ;;  %v2016_v29 = vadd.f32 %v3065_v20, %v1879_v56  ;;  %v2017_v36 = vadd.f32 %v3084_v44, %v1880_v11 }
 0x200   :  { %v1267_v49 = vsub.f32 %v3165_v45, %v4159_v25  ;;  %v1268_v60 = vsub.f32 %v3177_v51, %v4197_v38  ;;  %v1114_v47 = vmul.f32 %v4271_v2, %v4271_v2  ;;  %v1547_v26 = vsel %vm1546_vm11, %v2241_v3, %v1543_v16 }
 0x201   :  { %2142 = vst [vmem:[%s4778_s5 + $0x240] sm:$0xff] %v2014_v24  ;;  %v1269_v13 = vsub.f32 %v3184_v39, %v4197_v38  ;;  %v1270_v28 = vsub.f32 %v3229_v63, %v4197_v38  ;;  %v1550_v45 = vmul.f32 %v4280_v58, %v1549_v27  ;;  %v1744_v51 = vmul.f32 %v1547_v26, %v1264_v40 }
 0x202   :  { %2143 = vst [vmem:[%s4778_s5 + $0x248] sm:$0xff] %v2015_v34  ;;  %v1745_v25 = vmul.f32 %v1547_v26, %v1265_v31  ;;  %v1746_v0 = vmul.f32 %v1547_v26, %v1266_v10  ;;  %v1747_v56 = vmul.f32 %v1547_v26, %v1267_v49  ;;  %v2245_v11 = vpop.eup %2244  ;;  %vm1554_vm12 = vweird.f32 %v4245_v30 }
 0x203   :  { %2144 = vst [vmem:[%s4778_s5 + $0x250] sm:$0xff] %v2016_v29  ;;  %v1551_v3 = vmul.f32 0.5, %v1550_v45  ;;  %v1146_v39 = vsub.f32 %v1082_v53, %v1114_v47  ;;  %v4321_v63 = vmul.f32 0.001953125, %v699_v17  ;;  %v1881_v19 = vmul.f32 %v3039_v46, %v1744_v51 }
 0x204   :  { %2145 = vst [vmem:[%s4778_s5 + $0x258] sm:$0xff] %v2017_v36  ;;  %v1882_v33 = vmul.f32 %v3041_v8, %v1745_v25  ;;  %v1883_v40 = vmul.f32 %v3045_v15, %v1746_v0  ;;  %v1884_v31 = vmul.f32 %v3047_v12, %v1747_v56  ;;  %vm1555_vm13 = vweird.f32 %v4280_v58  ;;  %v704_v25 = vpop.xlane.xlu0 %703 }
 0x205   :  { %v1552_v24 = vsub.f32 1.5, %v1551_v3  ;;  %v1559_v34 = vmul.f32 %v2245_v11, %v4269_v37  ;;  %v1178_v29 = vmax.f32 %v1146_v39, 0.0  ;;  %v2018_v36 = vadd.f32 %v3049_v62, %v1881_v19  ;;  %vm1556_vm14 = vmor %vm1554_vm12, %vm1555_vm13 }
 0x206   :  { %v2019_v16 = vadd.f32 %v3063_v21, %v1882_v33  ;;  %v2020_v27 = vadd.f32 %v3065_v20, %v1883_v40  ;;  %v1083_v53 = vmul.f32 0.001953125, %v987_v18  ;;  %v2021_v4 = vadd.f32 %v3084_v44, %v1884_v31 }
 0x207   :  { %v1553_v10 = vmul.f32 %v4280_v58, %v1552_v24  ;;  %v1560_v49 = vmul.f32 %v2245_v11, %v1559_v34  ;;  %v4334_v47 = vadd.f32 1e-05, %v1178_v29  ;;  %2146 = vst [vmem:[%s4778_s5 + $0x260] sm:$0xff] %v2018_v36  ;;  %v1271_v17 = vsub.f32 %v3266_v55, %v4197_v38 }
 0x208   :  { %v1272_v26 = vsub.f32 %v3286_v22, %v4222_v9  ;;  %v1273_v45 = vsub.f32 %v3299_v54, %v4222_v9  ;;  %v1115_v51 = vmul.f32 %v4321_v63, %v4321_v63  ;;  %2147 = vst [vmem:[%s4778_s5 + $0x268] sm:$0xff] %v2019_v16  ;;  %v1274_v55 = vsub.f32 %v3325_v32, %v4222_v9 }
 0x209   :  { %v1557_v0 = vsel %vm1556_vm14, %v4280_v58, %v1553_v10  ;;  %v1561_v38 = vmul.f32 0.5, %v1560_v49  ;;  %2246 = vrsqrt.f32 %v4334_v47  ;;  %2148 = vst [vmem:[%s4778_s5 + $0x270] sm:$0xff] %v2020_v27  ;;  %vm1565_vm15 = vweird.f32 %v2245_v11  ;;  %v709_v49 = vpop.xlane.xlu1 %708 }
 0x20a   :  { %v1748_v22 = vmul.f32 %v1557_v0, %v1268_v60  ;;  %v1749_v54 = vmul.f32 %v1557_v0, %v1269_v13  ;;  %v1750_v30 = vmul.f32 %v1557_v0, %v1270_v28  ;;  %v1751_v56 = vmul.f32 %v1557_v0, %v1271_v17  ;;  %2149 = vst [vmem:[%s4778_s5 + $0x278] sm:$0xff] %v2021_v4  ;;  %v992_v13 = vpop.xlane.xlu2 %991 }
 0x20b   :  { %v1562_v3 = vsub.f32 1.5, %v1561_v38  ;;  %v1147_v58 = vsub.f32 %v1083_v53, %v1115_v51  ;;  %v4362_v39 = vmul.f32 0.001953125, %v704_v25  ;;  %v1275_v28 = vsub.f32 %v3330_v7, %v4222_v9 }
 0x20c   :  { %v1885_v32 = vmul.f32 %v3039_v46, %v1748_v22  ;;  %v1886_v18 = vmul.f32 %v3041_v8, %v1749_v54  ;;  %v1887_v19 = vmul.f32 %v3045_v15, %v1750_v30  ;;  %v1888_v60 = vmul.f32 %v3047_v12, %v1751_v56  ;;  %v997_v17 = vpop.xlane.xlu0 %996 }
 0x20d   :  { %v1563_v33 = vmul.f32 %v2245_v11, %v1562_v3  ;;  %vm1564_vm0 = vweird.f32 %v4269_v37  ;;  %v1179_v40 = vmax.f32 %v1147_v58, 0.0  ;;  %v1084_v53 = vmul.f32 0.001953125, %v992_v13 }
 0x20e   :  { %v2022_v31 = vadd.f32 %v3049_v62, %v1885_v32  ;;  %v2023_v24 = vadd.f32 %v3063_v21, %v1886_v18  ;;  %v2024_v34 = vadd.f32 %v3065_v20, %v1887_v19  ;;  %v2025_v29 = vadd.f32 %v3084_v44, %v1888_v60  ;;  %vm1566_vm1 = vmor %vm1564_vm0, %vm1565_vm15 }
 0x20f   :  { %v2247_v36 = vpop.eup %2246  ;;  %v1567_v16 = vsel %vm1566_vm1, %v2245_v11, %v1563_v33  ;;  %v4376_v27 = vadd.f32 1e-05, %v1179_v40  ;;  %v1116_v7 = vmul.f32 %v4362_v39, %v4362_v39  ;;  %v4398_v38 = vmul.f32 0.001953125, %v709_v49 }
 0x210   :  { %2150 = vst [vmem:[%s4778_s5 + $0x280] sm:$0xff] %v2022_v31  ;;  %v1752_v9 = vmul.f32 %v1567_v16, %v1272_v26  ;;  %v1753_v37 = vmul.f32 %v1567_v16, %v1273_v45  ;;  %v1754_v4 = vmul.f32 %v1567_v16, %v1274_v55  ;;  %v1755_v10 = vmul.f32 %v1567_v16, %v1275_v28 }
 0x211   :  { %2151 = vst [vmem:[%s4778_s5 + $0x288] sm:$0xff] %v2023_v24  ;;  %v1569_v11 = vmul.f32 %v2247_v36, %v4334_v47  ;;  %2248 = vrsqrt.f32 %v4376_v27  ;;  %v1148_v55 = vsub.f32 %v1084_v53, %v1116_v7  ;;  %v1085_v56 = vmul.f32 0.001953125, %v997_v17  ;;  %v5010_v17 = vld [vmem:[#allocation56_spill] sm:$0xff] }
 0x212   :  { %2152 = vst [vmem:[%s4778_s5 + $0x290] sm:$0xff] %v2024_v34  ;;  %v1889_v51 = vmul.f32 %v3039_v46, %v1752_v9  ;;  %v1890_v26 = vmul.f32 %v3041_v8, %v1753_v37  ;;  %v1891_v45 = vmul.f32 %v3045_v15, %v1754_v4  ;;  %v1892_v25 = vmul.f32 %v3047_v12, %v1755_v10 }
 0x213   :  { %2153 = vst [vmem:[%s4778_s5 + $0x298] sm:$0xff] %v2025_v29  ;;  %v1570_v0 = vmul.f32 %v2247_v36, %v1569_v11  ;;  %v1180_v32 = vmax.f32 %v1148_v55, 0.0  ;;  %v1276_v18 = vsub.f32 %v3352_v14, %v4271_v2  ;;  %v1117_v19 = vmul.f32 %v4398_v38, %v4398_v38  ;;  %v714_v60 = vpop.xlane.xlu2 %713 }
 0x214   :  { %v2026_v22 = vadd.f32 %v3049_v62, %v1889_v51  ;;  %v2027_v54 = vadd.f32 %v3063_v21, %v1890_v26  ;;  %v2028_v30 = vadd.f32 %v3065_v20, %v1891_v45  ;;  %v2029_v3 = vadd.f32 %v3084_v44, %v1892_v25 }
 0x215   :  { %v1571_v58 = vmul.f32 0.5, %v1570_v0  ;;  %vm1575_vm2 = vweird.f32 %v2247_v36  ;;  %v4414_v33 = vadd.f32 1e-05, %v1180_v32  ;;  %v4416_v40 = vmul.f32 0.001953125, %v714_v60  ;;  %v1002_v29 = vpop.xlane.xlu1 %1001  ;;  %v5012_v60 = vld [vmem:[#allocation2_spill] sm:$0xff] }
 0x216   :  { %2154 = vst [vmem:[%s4778_s5 + $0x2a0] sm:$0xff] %v2026_v22  ;;  %v1277_v14 = vsub.f32 %v3355_v23, %v4271_v2  ;;  %v1278_v31 = vsub.f32 %v3404_v48, %v4271_v2  ;;  %v1149_v34 = vsub.f32 %v1085_v56, %v1117_v19  ;;  %v1279_v16 = vsub.f32 %v3421_v6, %v4271_v2 }
 0x217   :  { %v2249_v13 = vpop.eup %2248  ;;  %2155 = vst [vmem:[%s4778_s5 + $0x2a8] sm:$0xff] %v2027_v54  ;;  %v1572_v28 = vsub.f32 1.5, %v1571_v58  ;;  %vm1574_vm3 = vweird.f32 %v4334_v47  ;;  %2250 = vrsqrt.f32 %v4414_v33  ;;  %v1280_v23 = vsub.f32 %v3441_v50, %v4321_v63 }
 0x218   :  { %2156 = vst [vmem:[%s4778_s5 + $0x2b0] sm:$0xff] %v2028_v30  ;;  %v1579_v24 = vmul.f32 %v2249_v13, %v4376_v27  ;;  %vm1576_vm4 = vmor %vm1574_vm3, %vm1575_vm2  ;;  %v1281_v48 = vsub.f32 %v3444_v59, %v4321_v63  ;;  %v1181_v9 = vmax.f32 %v1149_v34, 0.0  ;;  %v1282_v4 = vsub.f32 %v3474_v61, %v4321_v63 }
 0x219   :  { %2157 = vst [vmem:[%s4778_s5 + $0x2b8] sm:$0xff] %v2029_v3  ;;  %v1573_v53 = vmul.f32 %v2247_v36, %v1572_v28  ;;  %v1086_v10 = vmul.f32 0.001953125, %v1002_v29  ;;  %v1118_v6 = vmul.f32 %v4416_v40, %v4416_v40  ;;  %v1283_v50 = vsub.f32 %v5010_v17, %v4321_v63 }
 0x21a   :  { %v1580_v7 = vmul.f32 %v2249_v13, %v1579_v24  ;;  %v4443_v26 = vadd.f32 1e-05, %v1181_v9  ;;  %vm1585_vm5 = vweird.f32 %v2249_v13  ;;  %vm1584_vm6 = vweird.f32 %v4376_v27  ;;  %v5013_v27 = vld [vmem:[#allocation3_spill] sm:$0xff] }
 0x21b   :  { %v1577_v37 = vsel %vm1576_vm4, %v2247_v36, %v1573_v53  ;;  %v1150_v59 = vsub.f32 %v1086_v10, %v1118_v6  ;;  %vm1586_vm7 = vmor %vm1584_vm6, %vm1585_vm5  ;;  %v1285_v28 = vsub.f32 %v5012_v60, %v4362_v39  ;;  %v5015_v53 = vld [vmem:[#allocation58_spill] sm:$0xff]  ;;  %vm1594_vm9 = vweird.f32 %v4414_v33  ;;  %v5020_v60 = vld [vmem:[#allocation8_spill] sm:$0xff] }
 0x21c   :  { %v1756_v2 = vmul.f32 %v1577_v37, %v1276_v18  ;;  %v1757_v47 = vmul.f32 %v1577_v37, %v1277_v14  ;;  %v1758_v49 = vmul.f32 %v1577_v37, %v1278_v31  ;;  %v1759_v11 = vmul.f32 %v1577_v37, %v1279_v16  ;;  %v5011_v18 = vld [vmem:[#allocation57_spill] sm:$0xff]  ;;  %v5014_v31 = vld [vmem:[#allocation4_spill] sm:$0xff] }
 0x21d   :  { %v1581_v51 = vmul.f32 0.5, %v1580_v7  ;;  %v2251_v0 = vpop.eup %2250  ;;  %2252 = vrsqrt.f32 %v4443_v26  ;;  %v1182_v22 = vmax.f32 %v1150_v59, 0.0  ;;  %v1284_v19 = vsub.f32 %v5011_v18, %v4362_v39  ;;  %v5019_v18 = vld [vmem:[#allocation7_spill] sm:$0xff] }
 0x21e   :  { %v1893_v36 = vmul.f32 %v3039_v46, %v1756_v2  ;;  %v1894_v45 = vmul.f32 %v3041_v8, %v1757_v47  ;;  %v1895_v61 = vmul.f32 %v3045_v15, %v1758_v49  ;;  %v1896_v25 = vmul.f32 %v3047_v12, %v1759_v11  ;;  %v5016_v47 = vld [vmem:[#allocation59_spill] sm:$0xff]  ;;  %v5017_v11 = vld [vmem:[#allocation5_spill] sm:$0xff] }
 0x21f   :  { %v1582_v55 = vsub.f32 1.5, %v1581_v51  ;;  %v1589_v58 = vmul.f32 %v2251_v0, %v4414_v33  ;;  %v4456_v32 = vadd.f32 1e-05, %v1182_v22  ;;  %v1286_v14 = vsub.f32 %v5013_v27, %v4362_v39  ;;  %v719_v34 = vpop.xlane.xlu0 %718 }
 0x220   :  { %v2030_v63 = vadd.f32 %v3049_v62, %v1893_v36  ;;  %v2031_v54 = vadd.f32 %v3063_v21, %v1894_v45  ;;  %v2032_v30 = vadd.f32 %v3065_v20, %v1895_v61  ;;  %v2033_v56 = vadd.f32 %v3084_v44, %v1896_v25 }
 0x221   :  { %v1583_v3 = vmul.f32 %v2249_v13, %v1582_v55  ;;  %v1287_v24 = vsub.f32 %v5014_v31, %v4362_v39  ;;  %v1590_v16 = vmul.f32 %v2251_v0, %v1589_v58  ;;  %v1288_v7 = vsub.f32 %v5015_v53, %v4398_v38  ;;  %v1007_v6 = vpop.xlane.xlu2 %1006 }
 0x222   :  { %2158 = vst [vmem:[%s4778_s5 + $0x2c0] sm:$0xff] %v2030_v63  ;;  %2254 = vrsqrt.f32 %v4456_v32  ;;  %v1289_v49 = vsub.f32 %v5016_v47, %v4398_v38  ;;  %v1290_v17 = vsub.f32 %v5017_v11, %v4398_v38  ;;  %v4485_v51 = vmul.f32 0.001953125, %v719_v34 }
 0x223   :  { %2159 = vst [vmem:[%s4778_s5 + $0x2c8] sm:$0xff] %v2031_v54  ;;  %v1587_v29 = vsel %vm1586_vm7, %v2249_v13, %v1583_v3  ;;  %v2253_v2 = vpop.eup %2252  ;;  %v1591_v13 = vmul.f32 0.5, %v1590_v16  ;;  %vm1595_vm8 = vweird.f32 %v2251_v0  ;;  %v1087_v45 = vmul.f32 0.001953125, %v1007_v6  ;;  %v5018_v3 = vld [vmem:[#allocation6_spill] sm:$0xff] }
 0x224   :  { %2160 = vst [vmem:[%s4778_s5 + $0x2d0] sm:$0xff] %v2032_v30  ;;  %v1760_v9 = vmul.f32 %v1587_v29, %v1280_v23  ;;  %v1761_v37 = vmul.f32 %v1587_v29, %v1281_v48  ;;  %v1762_v10 = vmul.f32 %v1587_v29, %v1282_v4  ;;  %v1763_v39 = vmul.f32 %v1587_v29, %v1283_v50  ;;  %vm1596_vm10 = vmor %vm1594_vm9, %vm1595_vm8 }
 0x225   :  { %2161 = vst [vmem:[%s4778_s5 + $0x2d8] sm:$0xff] %v2033_v56  ;;  %v1592_v59 = vsub.f32 1.5, %v1591_v13  ;;  %v1599_v36 = vmul.f32 %v2253_v2, %v4443_v26  ;;  %v1119_v56 = vmul.f32 %v4485_v51, %v4485_v51  ;;  %v1291_v58 = vsub.f32 %v5018_v3, %v4398_v38 }
 0x226   :  { %v1897_v23 = vmul.f32 %v3039_v46, %v1760_v9  ;;  %v1898_v48 = vmul.f32 %v3041_v8, %v1761_v37  ;;  %v1899_v4 = vmul.f32 %v3045_v15, %v1762_v10  ;;  %v1900_v50 = vmul.f32 %v3047_v12, %v1763_v39 }
 0x227   :  { %v1593_v54 = vmul.f32 %v2251_v0, %v1592_v59  ;;  %v1600_v30 = vmul.f32 %v2253_v2, %v1599_v36  ;;  %v1292_v33 = vsub.f32 %v5019_v18, %v4416_v40  ;;  %v1293_v27 = vsub.f32 %v5020_v60, %v4416_v40 }
 0x228   :  { %v2034_v61 = vadd.f32 %v3049_v62, %v1897_v23  ;;  %v2035_v25 = vadd.f32 %v3063_v21, %v1898_v48  ;;  %v2036_v55 = vadd.f32 %v3065_v20, %v1899_v4  ;;  %v4496_v22 = vpop.eup %2254  ;;  %v2037_v63 = vadd.f32 %v3084_v44, %v1900_v50 }
 0x229   :  { %v1609_v31 = vmul.f32 %v4496_v22, %v4456_v32  ;;  %v1597_v34 = vsel %vm1596_vm10, %v2251_v0, %v1593_v54  ;;  %v1601_v29 = vmul.f32 0.5, %v1600_v30  ;;  %vm1604_vm11 = vweird.f32 %v4443_v26  ;;  %v724_v6 = vpop.xlane.xlu1 %723 }
 0x22a   :  { %2162 = vst [vmem:[%s4778_s5 + $0x2e0] sm:$0xff] %v2034_v61  ;;  %v1151_v16 = vsub.f32 %v1087_v45, %v1119_v56  ;;  %v1764_v9 = vmul.f32 %v1597_v34, %v1284_v19  ;;  %v1765_v37 = vmul.f32 %v1597_v34, %v1285_v28  ;;  %v1766_v10 = vmul.f32 %v1597_v34, %v1286_v14 }
 0x22b   :  { %2163 = vst [vmem:[%s4778_s5 + $0x2e8] sm:$0xff] %v2035_v25  ;;  %v1767_v39 = vmul.f32 %v1597_v34, %v1287_v24  ;;  %v1602_v13 = vsub.f32 1.5, %v1601_v29  ;;  %vm1605_vm12 = vweird.f32 %v2253_v2  ;;  %v1610_v0 = vmul.f32 %v4496_v22, %v1609_v31  ;;  %v1012_v45 = vpop.xlane.xlu0 %1011 }
 0x22c   :  { %2164 = vst [vmem:[%s4778_s5 + $0x2f0] sm:$0xff] %v2036_v55  ;;  %v1183_v47 = vmax.f32 %v1151_v16, 0.0  ;;  %v1901_v11 = vmul.f32 %v3039_v46, %v1764_v9  ;;  %v1902_v23 = vmul.f32 %v3041_v8, %v1765_v37  ;;  %v1903_v48 = vmul.f32 %v3045_v15, %v1766_v10  ;;  %vm1606_vm13 = vmor %vm1604_vm11, %vm1605_vm12 }
 0x22d   :  { %2165 = vst [vmem:[%s4778_s5 + $0x2f8] sm:$0xff] %v2037_v63  ;;  %v1904_v19 = vmul.f32 %v3047_v12, %v1767_v39  ;;  %v1603_v28 = vmul.f32 %v2253_v2, %v1602_v13  ;;  %v1611_v14 = vmul.f32 0.5, %v1610_v0  ;;  %v4529_v4 = vmul.f32 0.001953125, %v724_v6 }
 0x22e   :  { %v4527_v24 = vadd.f32 1e-05, %v1183_v47  ;;  %v2038_v50 = vadd.f32 %v3049_v62, %v1901_v11  ;;  %v2039_v59 = vadd.f32 %v3063_v21, %v1902_v23  ;;  %v2040_v36 = vadd.f32 %v3065_v20, %v1903_v48 }
 0x22f   :  { %vm1615_vm14 = vweird.f32 %v4496_v22  ;;  %v2041_v61 = vadd.f32 %v3084_v44, %v1904_v19  ;;  %v1607_v25 = vsel %vm1606_vm13, %v2253_v2, %v1603_v28  ;;  %v1612_v55 = vsub.f32 1.5, %v1611_v14 }
 0x230   :  { %2256 = vrsqrt.f32 %v4527_v24  ;;  %2166 = vst [vmem:[%s4778_s5 + $0x300] sm:$0xff] %v2038_v50  ;;  %v1768_v63 = vmul.f32 %v1607_v25, %v1288_v7  ;;  %v1769_v54 = vmul.f32 %v1607_v25, %v1289_v49  ;;  %v1770_v26 = vmul.f32 %v1607_v25, %v1290_v17 }
 0x231   :  { %v1771_v30 = vmul.f32 %v1607_v25, %v1291_v58  ;;  %2167 = vst [vmem:[%s4778_s5 + $0x308] sm:$0xff] %v2039_v59  ;;  %v1613_v2 = vmul.f32 %v4496_v22, %v1612_v55  ;;  %vm1614_vm15 = vweird.f32 %v4456_v32  ;;  %v1120_v56 = vmul.f32 %v4529_v4, %v4529_v4  ;;  %v5021_v32 = vld [vmem:[#allocation9_spill] sm:$0xff]  ;;  %v5022_v58 = vld [vmem:[#allocation10_spill] sm:$0xff]  ;;  %v5023_v55 = vld [vmem:[#allocation11_spill] sm:$0xff] }
 0x232   :  { %v1088_v3 = vmul.f32 0.001953125, %v1012_v45  ;;  %2168 = vst [vmem:[%s4778_s5 + $0x310] sm:$0xff] %v2040_v36  ;;  %v1905_v38 = vmul.f32 %v3039_v46, %v1768_v63  ;;  %v1906_v53 = vmul.f32 %v3041_v8, %v1769_v54  ;;  %v1907_v7 = vmul.f32 %v3045_v15, %v1770_v26  ;;  %vm1616_vm0 = vmor %vm1614_vm15, %vm1615_vm14  ;;  %v5024_v54 = vld [vmem:[#allocation12_spill] sm:$0xff] }
 0x233   :  { %v1908_v49 = vmul.f32 %v3047_v12, %v1771_v30  ;;  %2169 = vst [vmem:[%s4778_s5 + $0x318] sm:$0xff] %v2041_v61  ;;  %v1294_v17 = vsub.f32 %v5021_v32, %v4416_v40  ;;  %v1295_v31 = vsub.f32 %v5022_v58, %v4416_v40  ;;  %v1617_v34 = vsel %vm1616_vm0, %v4496_v22, %v1613_v2  ;;  %v5025_v2 = vld [vmem:[#allocation13_spill] sm:$0xff] }
 0x234   :  { %v1152_v29 = vsub.f32 %v1088_v3, %v1120_v56  ;;  %v2042_v16 = vadd.f32 %v3049_v62, %v1905_v38  ;;  %v2043_v9 = vadd.f32 %v3063_v21, %v1906_v53  ;;  %v2044_v37 = vadd.f32 %v3065_v20, %v1907_v7  ;;  %v4579_v47 = vpop.xlane.xlu2 %728  ;;  %v5026_v3 = vld [vmem:[#allocation14_spill] sm:$0xff] }
 0x235   :  { %v2045_v10 = vadd.f32 %v3084_v44, %v1908_v49  ;;  %v1772_v6 = vmul.f32 %v1617_v34, %v1292_v33  ;;  %v1773_v13 = vmul.f32 %v1617_v34, %v1293_v27  ;;  %v1774_v0 = vmul.f32 %v1617_v34, %v1294_v17 }
 0x236   :  { %v2257_v39 = vpop.eup %2256  ;;  %v1775_v22 = vmul.f32 %v1617_v34, %v1295_v31  ;;  %2170 = vst [vmem:[%s4778_s5 + $0x320] sm:$0xff] %v2042_v16  ;;  %v1184_v23 = vmax.f32 %v1152_v29, 0.0  ;;  %v1296_v63 = vsub.f32 %v5023_v55, %v4485_v51  ;;  %v1297_v26 = vsub.f32 %v5024_v54, %v4485_v51 }
 0x237   :  { %v1619_v11 = vmul.f32 %v2257_v39, %v4527_v24  ;;  %2171 = vst [vmem:[%s4778_s5 + $0x328] sm:$0xff] %v2043_v9  ;;  %v1909_v18 = vmul.f32 %v3039_v46, %v1772_v6  ;;  %v1910_v40 = vmul.f32 %v3041_v8, %v1773_v13  ;;  %v1911_v33 = vmul.f32 %v3045_v15, %v1774_v0 }
 0x238   :  { %v1912_v60 = vmul.f32 %v3047_v12, %v1775_v22  ;;  %2172 = vst [vmem:[%s4778_s5 + $0x330] sm:$0xff] %v2044_v37  ;;  %v4595_v48 = vadd.f32 1e-05, %v1184_v23  ;;  %vm1625_vm1 = vweird.f32 %v2257_v39  ;;  %vm1624_vm2 = vweird.f32 %v4527_v24 }
 0x239   :  { %v1620_v27 = vmul.f32 %v2257_v39, %v1619_v11  ;;  %2173 = vst [vmem:[%s4778_s5 + $0x338] sm:$0xff] %v2045_v10  ;;  %v2046_v19 = vadd.f32 %v3049_v62, %v1909_v18  ;;  %v2047_v28 = vadd.f32 %v3063_v21, %v1910_v40  ;;  %v2048_v14 = vadd.f32 %v3065_v20, %v1911_v33  ;;  %vm1626_vm3 = vmor %vm1624_vm2, %vm1625_vm1 }
 0x23a   :  { %v2049_v50 = vadd.f32 %v3084_v44, %v1912_v60  ;;  %2258 = vrsqrt.f32 %v4595_v48  ;;  %v1298_v56 = vsub.f32 %v5025_v2, %v4485_v51  ;;  %v1299_v38 = vsub.f32 %v5026_v3, %v4485_v51  ;;  %v5027_v60 = vld [vmem:[#allocation15_spill] sm:$0xff] }
 0x23b   :  { %v1621_v59 = vmul.f32 0.5, %v1620_v27  ;;  %2174 = vst [vmem:[%s4778_s5 + $0x340] sm:$0xff] %v2046_v19  ;;  %v1300_v27 = vsub.f32 %v5027_v60, %v4529_v4  ;;  %vm1634_vm5 = vweird.f32 %v4595_v48 }
 0x23c   :  { %2175 = vst [vmem:[%s4778_s5 + $0x348] sm:$0xff] %v2047_v28 }
 0x23d   :  { %v1622_v45 = vsub.f32 1.5, %v1621_v59  ;;  %2176 = vst [vmem:[%s4778_s5 + $0x350] sm:$0xff] %v2048_v14 }
 0x23e   :  { %v734_v36 = vpop.xlane.xlu0 %733  ;;  %2177 = vst [vmem:[%s4778_s5 + $0x358] sm:$0xff] %v2049_v50  ;;  %v5028_v50 = vld [vmem:[#allocation16_spill] sm:$0xff] }
 0x23f   :  { %v4611_v61 = vmul.f32 0.001953125, %v734_v36  ;;  %v1623_v30 = vmul.f32 %v2257_v39, %v1622_v45  ;;  %v1301_v59 = vsub.f32 %v5028_v50, %v4529_v4  ;;  %v5029_v36 = vld [vmem:[#allocation17_spill] sm:$0xff] }
 0x240   :  { %v1022_v25 = vpop.xlane.xlu2 %1021  ;;  %v2259_v49 = vpop.eup %2258  ;;  %v1302_v45 = vsub.f32 %v5029_v36, %v4529_v4 }
 0x241   :  { %v1090_v53 = vmul.f32 0.001953125, %v1022_v25  ;;  %v1122_v7 = vmul.f32 %v4611_v61, %v4611_v61  ;;  %v1627_v32 = vsel %vm1626_vm3, %v2257_v39, %v1623_v30  ;;  %v1629_v29 = vmul.f32 %v2259_v49, %v4595_v48  ;;  %v5030_v25 = vld [vmem:[#allocation18_spill] sm:$0xff] }
 0x242   :  { %v1776_v17 = vmul.f32 %v1627_v32, %v1296_v63  ;;  %v1777_v58 = vmul.f32 %v1627_v32, %v1297_v26  ;;  %v1778_v31 = vmul.f32 %v1627_v32, %v1298_v56  ;;  %v1779_v34 = vmul.f32 %v1627_v32, %v1299_v38 }
 0x243   :  { %v1154_v24 = vsub.f32 %v1090_v53, %v1122_v7  ;;  %v1630_v10 = vmul.f32 %v2259_v49, %v1629_v29  ;;  %vm1635_vm4 = vweird.f32 %v2259_v49  ;;  %v1303_v55 = vsub.f32 %v5030_v25, %v4529_v4 }
 0x244   :  { %v1913_v16 = vmul.f32 %v3039_v46, %v1776_v17  ;;  %v1914_v9 = vmul.f32 %v3041_v8, %v1777_v58  ;;  %v1915_v51 = vmul.f32 %v3045_v15, %v1778_v31  ;;  %v1916_v37 = vmul.f32 %v3047_v12, %v1779_v34  ;;  %vm1636_vm6 = vmor %vm1634_vm5, %vm1635_vm4 }
 0x245   :  { %v1186_v6 = vmax.f32 %v1154_v24, 0.0  ;;  %v1631_v23 = vmul.f32 0.5, %v1630_v10  ;;  %v4665_v26 = vmul.f32 0.001953125, %v4579_v47  ;;  %v1310_v60 = vsub.f32 %v3951_v5, %v4611_v61 }
 0x246   :  { %v2050_v39 = vadd.f32 %v3049_v62, %v1913_v16  ;;  %v2051_v0 = vadd.f32 %v3063_v21, %v1914_v9  ;;  %v2052_v22 = vadd.f32 %v3065_v20, %v1915_v51  ;;  %v2053_v11 = vadd.f32 %v3084_v44, %v1916_v37 }
 0x247   :  { %v739_v13 = vpop.xlane.xlu1 %738  ;;  %v1346_v18 = vadd.f32 1e-05, %v1186_v6  ;;  %v1632_v33 = vsub.f32 1.5, %v1631_v23  ;;  %v1121_v47 = vmul.f32 %v4665_v26, %v4665_v26  ;;  %v5032_v23 = vld [vmem:[#allocation22_spill] sm:$0xff] }
 0x248   :  { %v4639_v40 = vmul.f32 0.001953125, %v739_v13  ;;  %2178 = vst [vmem:[%s4778_s5 + $0x360] sm:$0xff] %v2050_v39 }
 0x249   :  { %2179 = vst [vmem:[%s4778_s5 + $0x368] sm:$0xff] %v2051_v0  ;;  %2260 = vrsqrt.f32 %v1346_v18  ;;  %v1633_v19 = vmul.f32 %v2259_v49, %v1632_v33  ;;  %vm1654_vm8 = vweird.f32 %v1346_v18  ;;  %v1309_v33 = vsub.f32 %v5032_v23, %v4611_v61 }
 0x24a   :  { %2180 = vst [vmem:[%s4778_s5 + $0x370] sm:$0xff] %v2052_v22  ;;  %v1123_v28 = vmul.f32 %v4639_v40, %v4639_v40  ;;  %v5031_v22 = vld [vmem:[#allocation21_spill] sm:$0xff] }
 0x24b   :  { %2181 = vst [vmem:[%s4778_s5 + $0x378] sm:$0xff] %v2053_v11  ;;  %v1637_v54 = vsel %vm1636_vm6, %v2259_v49, %v1633_v19  ;;  %v1308_v11 = vsub.f32 %v5031_v22, %v4611_v61 }
 0x24c   :  { %v1780_v48 = vmul.f32 %v1637_v54, %v1300_v27  ;;  %v1781_v30 = vmul.f32 %v1637_v54, %v1301_v59  ;;  %v1782_v2 = vmul.f32 %v1637_v54, %v1302_v45  ;;  %v1783_v56 = vmul.f32 %v1637_v54, %v1303_v55 }
 0x24d   :  { %v1027_v14 = vpop.xlane.xlu0 %1026  ;;  %v1311_v27 = vsub.f32 %v3954_v57, %v4611_v61 }
 0x24e   :  { %v1091_v63 = vmul.f32 0.001953125, %v1027_v14  ;;  %v1917_v7 = vmul.f32 %v3039_v46, %v1780_v48  ;;  %v1918_v32 = vmul.f32 %v3041_v8, %v1781_v30  ;;  %v1919_v17 = vmul.f32 %v3045_v15, %v1782_v2 }
 0x24f   :  { %v2261_v3 = vpop.eup %2260  ;;  %v1920_v4 = vmul.f32 %v3047_v12, %v1783_v56 }
 0x250   :  { %v1155_v38 = vsub.f32 %v1091_v63, %v1123_v28  ;;  %v1649_v58 = vmul.f32 %v2261_v3, %v1346_v18  ;;  %v2054_v34 = vadd.f32 %v3049_v62, %v1917_v7  ;;  %v2055_v29 = vadd.f32 %v3063_v21, %v1918_v32 }
 0x251   :  { %v1017_v53 = vpop.xlane.xlu1 %1016  ;;  %v2056_v24 = vadd.f32 %v3065_v20, %v1919_v17  ;;  %v2057_v16 = vadd.f32 %v3084_v44, %v1920_v4  ;;  %vm1655_vm7 = vweird.f32 %v2261_v3  ;;  %v1312_v32 = vsub.f32 %v3988_v52, %v4639_v40 }
 0x252   :  { %v1187_v49 = vmax.f32 %v1155_v38, 0.0  ;;  %v1089_v31 = vmul.f32 0.001953125, %v1017_v53  ;;  %v1650_v9 = vmul.f32 %v2261_v3, %v1649_v58  ;;  %2182 = vst [vmem:[%s4778_s5 + $0x380] sm:$0xff] %v2054_v34  ;;  %vm1656_vm9 = vmor %vm1654_vm8, %vm1655_vm7  ;;  %v1313_v17 = vsub.f32 %v3994_v35, %v4639_v40 }
 0x253   :  { %2183 = vst [vmem:[%s4778_s5 + $0x388] sm:$0xff] %v2055_v29  ;;  %v1314_v4 = vsub.f32 %v4027_v42, %v4639_v40  ;;  %v1315_v58 = vsub.f32 %v4056_v41, %v4639_v40  ;;  %v1304_v52 = vsub.f32 %v3873_v43, %v4665_v26  ;;  %v5033_v40 = vld [vmem:[#allocation19_spill] sm:$0xff]  ;;  %v1307_v43 = vsub.f32 %v3916_v1, %v4665_v26 }
 0x254   :  { %v1347_v51 = vadd.f32 1e-05, %v1187_v49  ;;  %v1153_v37 = vsub.f32 %v1089_v31, %v1121_v47  ;;  %v1651_v10 = vmul.f32 0.5, %v1650_v9  ;;  %2184 = vst [vmem:[%s4778_s5 + $0x390] sm:$0xff] %v2056_v24 }
 0x255   :  { %2185 = vst [vmem:[%s4778_s5 + $0x398] sm:$0xff] %v2057_v16 }
 0x256   :  { %2262 = vrsqrt.f32 %v1347_v51  ;;  %v1185_v6 = vmax.f32 %v1153_v37, 0.0  ;;  %v1652_v13 = vsub.f32 1.5, %v1651_v10  ;;  %vm1664_vm11 = vweird.f32 %v1347_v51  ;;  %v5034_v37 = vld [vmem:[#allocation20_spill] sm:$0xff] }
 0x257   :  { %v1306_v10 = vsub.f32 %v5034_v37, %v4665_v26 }
 0x258   :  { %v1345_v39 = vadd.f32 1e-05, %v1185_v6  ;;  %v1653_v0 = vmul.f32 %v2261_v3, %v1652_v13 }
 0x25a   :  { %2264 = vrsqrt.f32 %v1345_v39  ;;  %v1657_v28 = vsel %vm1656_vm9, %v2261_v3, %v1653_v0  ;;  %vm1644_vm14 = vweird.f32 %v1345_v39 }
 0x25b   :  { %v1788_v14 = vmul.f32 %v1657_v28, %v1308_v11  ;;  %v1789_v50 = vmul.f32 %v1657_v28, %v1309_v33  ;;  %v1790_v59 = vmul.f32 %v1657_v28, %v1310_v60  ;;  %v1791_v18 = vmul.f32 %v1657_v28, %v1311_v27 }
 0x25c   :  { %v2263_v19 = vpop.eup %2262 }
 0x25d   :  { %v1659_v36 = vmul.f32 %v2263_v19, %v1347_v51  ;;  %v1925_v45 = vmul.f32 %v3039_v46, %v1788_v14  ;;  %v1926_v25 = vmul.f32 %v3041_v8, %v1789_v50  ;;  %v1927_v55 = vmul.f32 %v3045_v15, %v1790_v59 }
 0x25e   :  { %v1928_v63 = vmul.f32 %v3047_v12, %v1791_v18  ;;  %vm1665_vm10 = vweird.f32 %v2263_v19  ;;  %v1305_v51 = vsub.f32 %v5033_v40, %v4665_v26 }
 0x25f   :  { %v1660_v54 = vmul.f32 %v2263_v19, %v1659_v36  ;;  %v2062_v57 = vadd.f32 %v3049_v62, %v1925_v45  ;;  %v2063_v61 = vadd.f32 %v3063_v21, %v1926_v25  ;;  %v2064_v48 = vadd.f32 %v3065_v20, %v1927_v55  ;;  %vm1666_vm12 = vmor %vm1664_vm11, %vm1665_vm10 }
 0x260   :  { %v2265_v5 = vpop.eup %2264  ;;  %v2065_v30 = vadd.f32 %v3084_v44, %v1928_v63 }
 0x261   :  { %v1661_v2 = vmul.f32 0.5, %v1660_v54  ;;  %v1639_v56 = vmul.f32 %v2265_v5, %v1345_v39  ;;  %2190 = vst [vmem:[%s4778_s5 + $0x3c0] sm:$0xff] %v2062_v57  ;;  %vm1645_vm13 = vweird.f32 %v2265_v5 }
 0x262   :  { %2191 = vst [vmem:[%s4778_s5 + $0x3c8] sm:$0xff] %v2063_v61  ;;  %vm1646_vm15 = vmor %vm1644_vm14, %vm1645_vm13 }
 0x263   :  { %v1662_v3 = vsub.f32 1.5, %v1661_v2  ;;  %v1640_v38 = vmul.f32 %v2265_v5, %v1639_v56  ;;  %2192 = vst [vmem:[%s4778_s5 + $0x3d0] sm:$0xff] %v2064_v48 }
 0x264   :  { %2193 = vst [vmem:[%s4778_s5 + $0x3d8] sm:$0xff] %v2065_v30 }
 0x265   :  { %v1663_v53 = vmul.f32 %v2263_v19, %v1662_v3  ;;  %v1641_v7 = vmul.f32 0.5, %v1640_v38 }
 0x267   :  { %v1667_v49 = vsel %vm1666_vm12, %v2263_v19, %v1663_v53  ;;  %v1642_v31 = vsub.f32 1.5, %v1641_v7 }
 0x268   :  { %v1792_v47 = vmul.f32 %v1667_v49, %v1312_v32  ;;  %v1793_v34 = vmul.f32 %v1667_v49, %v1313_v17  ;;  %v1794_v29 = vmul.f32 %v1667_v49, %v1314_v4  ;;  %v1795_v24 = vmul.f32 %v1667_v49, %v1315_v58 }
 0x269   :  { %v1643_v16 = vmul.f32 %v2265_v5, %v1642_v31 }
 0x26a   :  { %v1929_v35 = vmul.f32 %v3039_v46, %v1792_v47  ;;  %v1930_v42 = vmul.f32 %v3041_v8, %v1793_v34  ;;  %v1931_v9 = vmul.f32 %v3045_v15, %v1794_v29  ;;  %v1932_v41 = vmul.f32 %v3047_v12, %v1795_v24 }
 0x26b   :  { %v1647_v6 = vsel %vm1646_vm15, %v2265_v5, %v1643_v16 }
 0x26c   :  { %v2066_v13 = vadd.f32 %v3049_v62, %v1929_v35  ;;  %v2067_v39 = vadd.f32 %v3063_v21, %v1930_v42  ;;  %v2068_v0 = vadd.f32 %v3065_v20, %v1931_v9  ;;  %v2069_v22 = vadd.f32 %v3084_v44, %v1932_v41 }
 0x26d   :  { %v1784_v11 = vmul.f32 %v1647_v6, %v1304_v52  ;;  %v1785_v23 = vmul.f32 %v1647_v6, %v1305_v51  ;;  %v1786_v33 = vmul.f32 %v1647_v6, %v1306_v10  ;;  %v1787_v60 = vmul.f32 %v1647_v6, %v1307_v43 }
 0x26e   :  { %2194 = vst [vmem:[%s4778_s5 + $0x3e0] sm:$0xff] %v2066_v13 }
 0x26f   :  { %2195 = vst [vmem:[%s4778_s5 + $0x3e8] sm:$0xff] %v2067_v39  ;;  %v1921_v1 = vmul.f32 %v3039_v46, %v1784_v11  ;;  %v1922_v26 = vmul.f32 %v3041_v8, %v1785_v23  ;;  %v1923_v27 = vmul.f32 %v3045_v15, %v1786_v33  ;;  %v1924_v19 = vmul.f32 %v3047_v12, %v1787_v60 }
 0x270   :  { %2196 = vst [vmem:[%s4778_s5 + $0x3f0] sm:$0xff] %v2068_v0 }
 0x271   :  { %2197 = vst [vmem:[%s4778_s5 + $0x3f8] sm:$0xff] %v2069_v22  ;;  %v2058_v28 = vadd.f32 %v3049_v62, %v1921_v1  ;;  %v2059_v14 = vadd.f32 %v3063_v21, %v1922_v26  ;;  %v2060_v46 = vadd.f32 %v3065_v20, %v1923_v27  ;;  %v2061_v8 = vadd.f32 %v3084_v44, %v1924_v19 }
 0x273   :  { %2186 = vst [vmem:[%s4778_s5 + $0x3a0] sm:$0xff] %v2058_v28 }
 0x274   :  { %2187 = vst [vmem:[%s4778_s5 + $0x3a8] sm:$0xff] %v2059_v14 }
 0x275   :  { %2188 = vst [vmem:[%s4778_s5 + $0x3b0] sm:$0xff] %v2060_v46 }
 0x276   :  { %2189 = vst [vmem:[%s4778_s5 + $0x3b8] sm:$0xff] %v2061_v8 }

// kernel: layernorm_lstm_forward.5
= control target key start
LH: loop header
LB: loop body
LE: loop exit
PB: predicated region body
PF: predicated region fallthrough
CT: control target
= control target key end

     0   :  { %s4578_s0 = inlined_call_operand.vmem [shape: f32[16,16,512], index: 0, kind: input, shape index: {}]   ;;  %s4579_s1 = inlined_call_operand.vmem [shape: f32[16,128], index: 1, kind: input, shape index: {}, may-alias: {1,2}]   ;;  %s4580_s2 = inlined_call_operand.vmem [shape: f32[16,128], index: 2, kind: input, shape index: {}, may-alias: {1,2}]   ;;  %s4581_s3 = inlined_call_operand.vmem [shape: f32[128,512], index: 3, kind: input, shape index: {}]   ;;  %s4582_s4 = inlined_call_operand.vmem [shape: f32[1,512], index: 4, kind: input, shape index: {}]   ;;  %s4583_s5 = inlined_call_operand.vmem [shape: f32[1,512], index: 5, kind: input, shape index: {}]   ;;  %s4584_s6 = inlined_call_operand.vmem [shape: f32[1,512], index: 6, kind: input, shape index: {}]   ;;  %s4585_s7 = inlined_call_operand.vmem [shape: f32[1,128], index: 7, kind: input, shape index: {}]   ;;  %s4586_s8 = inlined_call_operand.vmem [shape: f32[1,128], index: 8, kind: input, shape index: {}]   ;;  %s4587_s9 = inlined_call_operand.vmem [shape: f32[16,16,128], index: 9, kind: output, shape index: {0}]   ;;  %s4588_s10 = inlined_call_operand.vmem [shape: f32[16,128], index: 10, kind: output, shape index: {1}]   ;;  %s4589_s11 = inlined_call_operand.vmem [shape: f32[16,128], index: 11, kind: output, shape index: {2}]  }
   0x1   :  { %4716 = sst [smem:[#allocation52_spill]] %s4578_s0 }
   0x2   :  { %4717 = sst [smem:[#allocation53_spill]] %s4587_s9 }
   0x3   :  { %s2833_s17 = smov 0   ;;  %s2835_s18 = smov 0  }
   0x4   :  { %s2837_s19 = smov 0   ;;  %s2839_s20 = smov 0  }
   0x5   :  { %s2841_s21 = smov 0   ;;  %s2843_s22 = smov 0  }
   0x6   :  { %s2845_s23 = smov 0  }
   0x7 LB: > { %4718 = sst [smem:[#allocation6_spill]] %s2763_s21  ;;  %s31_s24 = sadd.s32 1, %s2763_s21  ;;  %s2771_s23 = sphi %s2845_s23, %s22_s23   ;;  %s2767_s22 = sphi %s2843_s22, %s4916_s22   ;;  %s2763_s21 = sphi %s2841_s21, %s4915_s21   ;;  %s2759_s20 = sphi %s2839_s20, %s4920_s20   ;;  %s2755_s19 = sphi %s2837_s19, %s4919_s19   ;;  %s2751_s18 = sphi %s2835_s18, %s4918_s18   ;;  %s2747_s17 = sphi %s2833_s17, %s4917_s17  }
   0x8   : > { %4719 = sst [smem:[#allocation7_spill]] %s2767_s22  ;;  %p32_p0 = scmp.ge.s32.totalorder %s31_s24, 2 }
   0x9   : > { %s34_s25 = sadd.s32 1, %s2767_s22  ;;  %s2355_s26 = sadd.s32 4294967295, %s2771_s23  }
   0xa   : > { %p50_p1 = scmp.ne.s32.totalorder %s2751_s18, %s2747_s17  ;;  %s4922_s24 = smov (%p32_p0, %s31_s24), 0 }
   0xb   : > { %4720 = sst [smem:[#allocation8_spill]] %s4922_s24  ;;  %s4924_s25 = smov (!%p32_p0, %s34_s25), %s2767_s22 }
   0xc   : > { %p51_p2 = scmp.eq.s32.totalorder %s2771_s23, 0  ;;  %p36_p3 = scmp.ge.s32.totalorder %s4924_s25, 2 }
   0xd   : > { %p260_p4 = scmp.eq.s32.totalorder %s2355_s26, 3  ;;  %s38_s27 = ssub.s32 %s2763_s21, %s4922_s24 }
   0xe   : > { %p52_p5 = por %p51_p2, %p50_p1  ;;  %s4926_s25 = smov (%p36_p3, %s4924_s25), 0 }
   0xf   : > { %4721 = sst [smem:[#allocation9_spill]] %s4926_s25  ;;  %p2881_p6 = por %p260_p4, %p50_p1 }
  0x10   : > { %s39_s29 = ssub.s32 %s2767_s22, %s4926_s25  ;;  %s43_s12 = sadd.s32 1, %s2751_s18 }
  0x11   : > { %s4722_s28 = scalar_select %p2881_p6, 1, 0 }
  0x12   : > { %s40_s30 = sor.u32 %s39_s29, %s38_s27  ;;  %p2358_p8 = scmp.ge.s32.totalorder %s2771_s23, 4 }
  0x13   : > { %4723 = sst [smem:[#allocation10_spill]] %s4722_s28  ;;  %p41_p7 = scmp.eq.s32.totalorder %s40_s30, 0 }
  0x14   : > { %352 = sbr.rel (%p2358_p8) target bundleno = 67 (0x43), region = 40 }
  0x15   : > { %s2889_s13 = scalar_select %p41_p7, %s2751_s18, %s43_s12  }
  0x17   : > { %4724 = sst [smem:[#allocation11_spill]] %s2889_s13 }
  0x19   : > { %355 = sbr.rel (!%p52_p5) target bundleno = 67 (0x43), region = 44  ;;  %s357_s14 = sand.u32 (%p52_p5), 1, %s2751_s18  }
  0x1a   : > { %s2361_s15 = sshll.u32 (%p52_p5), %s2767_s22, 2  ;;  %s2359_s16 = sshll.u32 (%p52_p5), %s357_s14, 8 }
  0x1b   : > { %s2413_s26 = sshll.u32 (%p52_p5), %s2763_s21, 6  ;;  %s4725_s0 = sld [smem:[#allocation52_spill]] (%p52_p5) }
  0x1c   : > { %s363_s24 = sadd.s32 (%p52_p5), %s2413_s26, %s2361_s15  ;;  %s2903_s29 = scalar_lea.vmem (%p52_p5), [#allocation4], %s2359_s16 }
  0x1d   : > { %s2363_s9 = sshll.u32 (%p52_p5), %s363_s24, 3 }
  0x21   : > { %s2898_s27 = scalar_lea.vmem %s4725_s0, %s2363_s9 }
  0x22   : > { %v378_v0 = vld [vmem:[%s2898_s27] sm:$0xff]  ;;  %v380_v1 = vld [vmem:[%s2898_s27 + $0x8] sm:$0xff]  ;;  %v382_v2 = vld [vmem:[%s2898_s27 + $0x10] sm:$0xff] }
  0x23   : > { %379 = vst [vmem:[%s2903_s29] sm:$0xff] %v378_v0  ;;  %v384_v3 = vld [vmem:[%s2898_s27 + $0x18] sm:$0xff]  ;;  %v386_v4 = vld [vmem:[%s2898_s27 + $0x40] sm:$0xff]  ;;  %v388_v5 = vld [vmem:[%s2898_s27 + $0x48] sm:$0xff] }
  0x24   : > { %381 = vst [vmem:[%s2903_s29 + $0x8] sm:$0xff] %v380_v1  ;;  %v390_v6 = vld [vmem:[%s2898_s27 + $0x50] sm:$0xff]  ;;  %v392_v7 = vld [vmem:[%s2898_s27 + $0x58] sm:$0xff]  ;;  %v394_v8 = vld [vmem:[%s2898_s27 + $0x80] sm:$0xff] }
  0x25   : > { %383 = vst [vmem:[%s2903_s29 + $0x10] sm:$0xff] %v382_v2  ;;  %v396_v9 = vld [vmem:[%s2898_s27 + $0x88] sm:$0xff]  ;;  %v398_v10 = vld [vmem:[%s2898_s27 + $0x90] sm:$0xff]  ;;  %v400_v11 = vld [vmem:[%s2898_s27 + $0x98] sm:$0xff] }
  0x26   : > { %385 = vst [vmem:[%s2903_s29 + $0x18] sm:$0xff] %v384_v3  ;;  %v402_v12 = vld [vmem:[%s2898_s27 + $0xc0] sm:$0xff]  ;;  %v404_v13 = vld [vmem:[%s2898_s27 + $0xc8] sm:$0xff]  ;;  %v406_v14 = vld [vmem:[%s2898_s27 + $0xd0] sm:$0xff] }
  0x27   : > { %387 = vst [vmem:[%s2903_s29 + $0x20] sm:$0xff] %v386_v4  ;;  %v408_v15 = vld [vmem:[%s2898_s27 + $0xd8] sm:$0xff]  ;;  %v410_v16 = vld [vmem:[%s2898_s27 + $0x100] sm:$0xff]  ;;  %v412_v17 = vld [vmem:[%s2898_s27 + $0x108] sm:$0xff] }
  0x28   : > { %389 = vst [vmem:[%s2903_s29 + $0x28] sm:$0xff] %v388_v5  ;;  %v414_v18 = vld [vmem:[%s2898_s27 + $0x110] sm:$0xff]  ;;  %v416_v19 = vld [vmem:[%s2898_s27 + $0x118] sm:$0xff]  ;;  %v418_v20 = vld [vmem:[%s2898_s27 + $0x140] sm:$0xff] }
  0x29   : > { %391 = vst [vmem:[%s2903_s29 + $0x30] sm:$0xff] %v390_v6  ;;  %v420_v21 = vld [vmem:[%s2898_s27 + $0x148] sm:$0xff]  ;;  %v422_v22 = vld [vmem:[%s2898_s27 + $0x150] sm:$0xff]  ;;  %v424_v23 = vld [vmem:[%s2898_s27 + $0x158] sm:$0xff] }
  0x2a   : > { %393 = vst [vmem:[%s2903_s29 + $0x38] sm:$0xff] %v392_v7  ;;  %v426_v24 = vld [vmem:[%s2898_s27 + $0x180] sm:$0xff]  ;;  %v428_v25 = vld [vmem:[%s2898_s27 + $0x188] sm:$0xff]  ;;  %v430_v26 = vld [vmem:[%s2898_s27 + $0x190] sm:$0xff] }
  0x2b   : > { %395 = vst [vmem:[%s2903_s29 + $0x40] sm:$0xff] %v394_v8  ;;  %v432_v27 = vld [vmem:[%s2898_s27 + $0x198] sm:$0xff]  ;;  %v434_v28 = vld [vmem:[%s2898_s27 + $0x1c0] sm:$0xff]  ;;  %v436_v29 = vld [vmem:[%s2898_s27 + $0x1c8] sm:$0xff] }
  0x2c   : > { %397 = vst [vmem:[%s2903_s29 + $0x48] sm:$0xff] %v396_v9  ;;  %v438_v30 = vld [vmem:[%s2898_s27 + $0x1d0] sm:$0xff]  ;;  %v440_v31 = vld [vmem:[%s2898_s27 + $0x1d8] sm:$0xff] }
  0x2d   : > { %399 = vst [vmem:[%s2903_s29 + $0x50] sm:$0xff] %v398_v10 }
  0x2e   : > { %401 = vst [vmem:[%s2903_s29 + $0x58] sm:$0xff] %v400_v11 }
  0x2f   : > { %403 = vst [vmem:[%s2903_s29 + $0x60] sm:$0xff] %v402_v12 }
  0x30   : > { %405 = vst [vmem:[%s2903_s29 + $0x68] sm:$0xff] %v404_v13 }
  0x31   : > { %407 = vst [vmem:[%s2903_s29 + $0x70] sm:$0xff] %v406_v14 }
  0x32   : > { %409 = vst [vmem:[%s2903_s29 + $0x78] sm:$0xff] %v408_v15 }
  0x33   : > { %411 = vst [vmem:[%s2903_s29 + $0x80] sm:$0xff] %v410_v16 }
  0x34   : > { %413 = vst [vmem:[%s2903_s29 + $0x88] sm:$0xff] %v412_v17 }
  0x35   : > { %415 = vst [vmem:[%s2903_s29 + $0x90] sm:$0xff] %v414_v18 }
  0x36   : > { %417 = vst [vmem:[%s2903_s29 + $0x98] sm:$0xff] %v416_v19 }
  0x37   : > { %419 = vst [vmem:[%s2903_s29 + $0xa0] sm:$0xff] %v418_v20 }
  0x38   : > { %421 = vst [vmem:[%s2903_s29 + $0xa8] sm:$0xff] %v420_v21 }
  0x39   : > { %423 = vst [vmem:[%s2903_s29 + $0xb0] sm:$0xff] %v422_v22 }
  0x3a   : > { %425 = vst [vmem:[%s2903_s29 + $0xb8] sm:$0xff] %v424_v23 }
  0x3b   : > { %427 = vst [vmem:[%s2903_s29 + $0xc0] sm:$0xff] %v426_v24 }
  0x3c   : > { %429 = vst [vmem:[%s2903_s29 + $0xc8] sm:$0xff] %v428_v25 }
  0x3d   : > { %431 = vst [vmem:[%s2903_s29 + $0xd0] sm:$0xff] %v430_v26 }
  0x3e   : > { %433 = vst [vmem:[%s2903_s29 + $0xd8] sm:$0xff] %v432_v27 }
  0x3f   : > { %435 = vst [vmem:[%s2903_s29 + $0xe0] sm:$0xff] %v434_v28 }
  0x40   : > { %437 = vst [vmem:[%s2903_s29 + $0xe8] sm:$0xff] %v436_v29 }
  0x41   : > { %439 = vst [vmem:[%s2903_s29 + $0xf0] sm:$0xff] %v438_v30 }
  0x42   : > { %441 = vst [vmem:[%s2903_s29 + $0xf8] sm:$0xff] %v440_v31 }
  0x43 PF: > { %p2364_p9 = scmp.ge.s32.totalorder %s2771_s23, 1  ;;  %p460_p10 = scmp.lt.s32.totalorder %s2771_s23, 5 }
  0x45   : > { %p461_p11 = pnand %p2364_p9, %p460_p10 }
  0x47   : > { %464 = sbr.rel (%p461_p11) target bundleno = 3894 (0xf36), region = 75 }
  0x4c   : > { %s467_s9 = sand.u32 1, %s2747_s17   ;;  %p522_p12 = scmp.lt.s32.totalorder %s2759_s20, 1 }
  0x4d   : > { %s2365_s24 = sshll.u32 %s467_s9, 8  ;;  %s2366_s25 = sshll.u32 %s467_s9, 6 }
  0x4e   : > { %s523_s28 = scalar_select %p522_p12, %s2759_s20, 1 }
  0x4f   : > { %s2989_s21 = scalar_lea.vmem [#allocation4], %s2365_s24  ;;  %s2991_s13 = scalar_lea.vmem [#allocation5], %s2366_s25 }
  0x50   : > { %s2971_s30 = sshll.u32 %s523_s28, 3  ;;  %p2371_p13 = scmp.ne.s32.totalorder %s2755_s19, 0 }
  0x51   : > { %s525_s15 = scalar_lea.vmem %s4579_s1, %s2971_s30  ;;  %s529_s27 = scalar_lea.vmem %s4580_s2, %s2971_s30 }
  0x52   : > { %s534_s0 = scalar_lea.vmem %s4588_s10, %s2971_s30  ;;  %s538_s28 = scalar_lea.vmem %s4589_s11, %s2971_s30 }
  0x53   : > { %542 = sbr.rel (%p2371_p13) target bundleno = 91 (0x5b), region = 83 }
  0x58   : > { %v543_v32 = vld [vmem:[%s525_s15] sm:$0xff] }
  0x59   : > { %v545_v33 = vld [vmem:[%s529_s27] sm:$0xff]  ;;  %544 = vst [vmem:[#allocation2] sm:$0xff] %v543_v32 }
  0x5a   : > { %546 = vst [vmem:[#allocation3] sm:$0xff] %v545_v33 }
  0x5b PF: > { %v2997_v34 = vld [vmem:[%s4581_s3 + $0x1f0] sm:$0xff]  ;;  %v3007_v36 = vld [vmem:[%s4581_s3 + $0x1f8] sm:$0xff]  ;;  %v3014_v37 = vld [vmem:[%s4581_s3 + $0x1e0] sm:$0xff]  ;;  %s2414_s29 = sshll.u32 (%p2881_p6), %s2755_s19, 4  ;;  %s4911_s12 = sld [smem:[#allocation53_spill]] (%p2881_p6) }
  0x5c   : > { %v3002_v35 = vld [vmem:[%s4581_s3 + $0x1d0] sm:$0xff]  ;;  %691 = vmatpush.msra.mxu2 %v2997_v34  ;;  %711 = vmatpush.msra.mxu3 %v3007_v36  ;;  %v3019_v38 = vld [vmem:[%s4581_s3 + $0x1e8] sm:$0xff]  ;;  %v3031_v40 = vld [vmem:[%s4581_s3 + $0x1d8] sm:$0xff]  ;;  %s2140_s17 = sadd.s32 (%p2881_p6), %s2759_s20, %s2414_s29 }
  0x5d   : > { %v3024_v39 = vld [vmem:[%s4581_s3 + $0x1b0] sm:$0xff]  ;;  %651 = vmatpush.msra.mxu0 %v3014_v37  ;;  %671 = vmatpush.msra.mxu1 %v3019_v38  ;;  %v3036_v41 = vld [vmem:[%s4581_s3 + $0x1c0] sm:$0xff]  ;;  %v3041_v42 = vld [vmem:[%s4581_s3 + $0x1c8] sm:$0xff]  ;;  %s2410_s9 = sshll.u32 (%p2881_p6), %s2140_s17, 3 }
  0x5e   : > { %692 = vmatpush.msra.mxu2 %v3002_v35  ;;  %712 = vmatpush.msra.mxu3 %v3031_v40  ;;  %v3048_v43 = vld [vmem:[%s4581_s3 + $0x1b8] sm:$0xff]  ;;  %v3053_v44 = vld [vmem:[%s4581_s3 + $0x1a0] sm:$0xff]  ;;  %v3060_v45 = vld [vmem:[%s4581_s3 + $0x190] sm:$0xff] }
  0x5f   : > { %652 = vmatpush.msra.mxu0 %v3036_v41  ;;  %672 = vmatpush.msra.mxu1 %v3041_v42  ;;  %v3065_v46 = vld [vmem:[%s4581_s3 + $0x1a8] sm:$0xff]  ;;  %v3070_v47 = vld [vmem:[%s4581_s3 + $0x198] sm:$0xff]  ;;  %v3077_v48 = vld [vmem:[%s4581_s3 + $0x180] sm:$0xff] }
  0x60   : > { %693 = vmatpush.msra.mxu2 %v3024_v39  ;;  %713 = vmatpush.msra.mxu3 %v3048_v43  ;;  %v3082_v49 = vld [vmem:[%s4581_s3 + $0x188] sm:$0xff]  ;;  %v3089_v50 = vld [vmem:[%s4581_s3 + $0x170] sm:$0xff]  ;;  %v3094_v51 = vld [vmem:[%s4581_s3 + $0x178] sm:$0xff] }
  0x61   : > { %653 = vmatpush.msra.mxu0 %v3053_v44  ;;  %673 = vmatpush.msra.mxu1 %v3065_v46  ;;  %v3101_v52 = vld [vmem:[%s4581_s3 + $0x160] sm:$0xff]  ;;  %v3106_v53 = vld [vmem:[%s4581_s3 + $0x168] sm:$0xff]  ;;  %v3113_v54 = vld [vmem:[%s4581_s3 + $0x150] sm:$0xff]  ;;  %s2142_s14 = scalar_lea.vmem (%p2881_p6), %s4911_s12, %s2410_s9 }
  0x62   : > { %694 = vmatpush.msra.mxu2 %v3060_v45  ;;  %714 = vmatpush.msra.mxu3 %v3070_v47  ;;  %v3118_v55 = vld [vmem:[%s4581_s3 + $0x158] sm:$0xff]  ;;  %v3125_v56 = vld [vmem:[%s4581_s3 + $0x140] sm:$0xff]  ;;  %v3130_v57 = vld [vmem:[%s4581_s3 + $0x148] sm:$0xff] }
  0x63   : > { %654 = vmatpush.msra.mxu0 %v3077_v48  ;;  %674 = vmatpush.msra.mxu1 %v3082_v49  ;;  %v3137_v58 = vld [vmem:[%s4581_s3 + $0x130] sm:$0xff]  ;;  %v3142_v59 = vld [vmem:[%s4581_s3 + $0x138] sm:$0xff]  ;;  %v3149_v60 = vld [vmem:[%s4581_s3 + $0x120] sm:$0xff] }
  0x64   : > { %695 = vmatpush.msra.mxu2 %v3089_v50  ;;  %715 = vmatpush.msra.mxu3 %v3094_v51  ;;  %v3154_v61 = vld [vmem:[%s4581_s3 + $0x128] sm:$0xff]  ;;  %v3161_v62 = vld [vmem:[%s4581_s3 + $0x110] sm:$0xff]  ;;  %v3166_v63 = vld [vmem:[%s4581_s3 + $0x118] sm:$0xff] }
  0x65   : > { %655 = vmatpush.msra.mxu0 %v3101_v52  ;;  %675 = vmatpush.msra.mxu1 %v3106_v53  ;;  %v3173_v0 = vld [vmem:[%s4581_s3 + $0x100] sm:$0xff]  ;;  %v3178_v1 = vld [vmem:[%s4581_s3 + $0x108] sm:$0xff]  ;;  %v3185_v2 = vld [vmem:[%s4581_s3 + $0xf0] sm:$0xff] }
  0x66   : > { %696 = vmatpush.msra.mxu2 %v3113_v54  ;;  %716 = vmatpush.msra.mxu3 %v3118_v55  ;;  %v3190_v3 = vld [vmem:[%s4581_s3 + $0xf8] sm:$0xff]  ;;  %v3197_v4 = vld [vmem:[%s4581_s3 + $0xe0] sm:$0xff]  ;;  %v3202_v5 = vld [vmem:[%s4581_s3 + $0xe8] sm:$0xff] }
  0x67   : > { %656 = vmatpush.msra.mxu0 %v3125_v56  ;;  %676 = vmatpush.msra.mxu1 %v3130_v57  ;;  %v3209_v6 = vld [vmem:[%s4581_s3 + $0xd0] sm:$0xff]  ;;  %v3214_v7 = vld [vmem:[%s4581_s3 + $0xd8] sm:$0xff]  ;;  %v3221_v8 = vld [vmem:[%s4581_s3 + $0xc0] sm:$0xff] }
  0x68   : > { %697 = vmatpush.msra.mxu2 %v3137_v58  ;;  %717 = vmatpush.msra.mxu3 %v3142_v59  ;;  %4726 = vst [vmem:[#allocation12_spill] sm:$0xff] %v3209_v6  ;;  %v3226_v9 = vld [vmem:[%s4581_s3 + $0xc8] sm:$0xff]  ;;  %v3233_v10 = vld [vmem:[%s4581_s3 + $0xb0] sm:$0xff]  ;;  %v3238_v11 = vld [vmem:[%s4581_s3 + $0xb8] sm:$0xff] }
  0x69   : > { %657 = vmatpush.msra.mxu0 %v3149_v60  ;;  %677 = vmatpush.msra.mxu1 %v3154_v61  ;;  %4727 = vst [vmem:[#allocation13_spill] sm:$0xff] %v3214_v7  ;;  %v3245_v12 = vld [vmem:[%s4581_s3 + $0xa0] sm:$0xff]  ;;  %v3250_v13 = vld [vmem:[%s4581_s3 + $0xa8] sm:$0xff]  ;;  %v3257_v14 = vld [vmem:[%s4581_s3 + $0x90] sm:$0xff] }
  0x6a   : > { %698 = vmatpush.msra.mxu2 %v3161_v62  ;;  %718 = vmatpush.msra.mxu3 %v3166_v63  ;;  %4728 = vst [vmem:[#allocation14_spill] sm:$0xff] %v3233_v10  ;;  %v3262_v15 = vld [vmem:[%s4581_s3 + $0x98] sm:$0xff]  ;;  %v3269_v16 = vld [vmem:[%s4581_s3 + $0x70] sm:$0xff]  ;;  %v3274_v17 = vld [vmem:[%s4581_s3 + $0x80] sm:$0xff] }
  0x6b   : > { %658 = vmatpush.msra.mxu0 %v3173_v0  ;;  %678 = vmatpush.msra.mxu1 %v3178_v1  ;;  %4729 = vst [vmem:[#allocation15_spill] sm:$0xff] %v3238_v11  ;;  %v3279_v18 = vld [vmem:[%s4581_s3 + $0x88] sm:$0xff]  ;;  %v3286_v19 = vld [vmem:[%s4581_s3 + $0x78] sm:$0xff]  ;;  %v3293_v20 = vld [vmem:[%s4581_s3 + $0x60] sm:$0xff] }
  0x6c   : > { %699 = vmatpush.msra.mxu2 %v3185_v2  ;;  %719 = vmatpush.msra.mxu3 %v3190_v3  ;;  %4730 = vst [vmem:[#allocation16_spill] sm:$0xff] %v3245_v12  ;;  %v3298_v21 = vld [vmem:[%s4581_s3 + $0x68] sm:$0xff]  ;;  %v3305_v22 = vld [vmem:[%s4581_s3 + $0x50] sm:$0xff]  ;;  %v3310_v23 = vld [vmem:[%s4581_s3 + $0x58] sm:$0xff] }
  0x6d   : > { %659 = vmatpush.msra.mxu0 %v3197_v4  ;;  %679 = vmatpush.msra.mxu1 %v3202_v5  ;;  %4731 = vst [vmem:[#allocation17_spill] sm:$0xff] %v3250_v13  ;;  %v3317_v24 = vld [vmem:[%s4581_s3 + $0x40] sm:$0xff]  ;;  %v3322_v25 = vld [vmem:[%s4581_s3 + $0x48] sm:$0xff]  ;;  %v3329_v26 = vld [vmem:[%s4581_s3 + $0x30] sm:$0xff] }
  0x6e   : > { %700 = vmatpush.msra.mxu2 %v3209_v6  ;;  %720 = vmatpush.msra.mxu3 %v3214_v7  ;;  %4732 = vst [vmem:[#allocation18_spill] sm:$0xff] %v3257_v14  ;;  %v3334_v27 = vld [vmem:[%s4581_s3 + $0x38] sm:$0xff]  ;;  %v3341_v28 = vld [vmem:[%s4581_s3 + $0x20] sm:$0xff]  ;;  %v3346_v29 = vld [vmem:[%s4581_s3 + $0x28] sm:$0xff] }
  0x6f   : > { %660 = vmatpush.msra.mxu0 %v3221_v8  ;;  %680 = vmatpush.msra.mxu1 %v3226_v9  ;;  %4733 = vst [vmem:[#allocation19_spill] sm:$0xff] %v3262_v15  ;;  %v3353_v30 = vld [vmem:[%s4581_s3 + $0x10] sm:$0xff]  ;;  %v3358_v31 = vld [vmem:[%s4581_s3 + $0x18] sm:$0xff]  ;;  %v649_v32 = vld [vmem:[#allocation2] sm:$0xff] }
  0x70   : > { %701 = vmatpush.msra.mxu2 %v3233_v10  ;;  %721 = vmatpush.msra.mxu3 %v3238_v11  ;;  %4734 = vst [vmem:[#allocation20_spill] sm:$0xff] %v3269_v16  ;;  %v3367_v33 = vld [vmem:[%s4581_s3] sm:$0xff] }
  0x71   : > { %4735 = vst [vmem:[#allocation21_spill] sm:$0xff] %v3274_v17  ;;  %661 = vmatpush.msra.mxu0 %v3245_v12  ;;  %681 = vmatpush.msra.mxu1 %v3250_v13 }
  0x72   : > { %4736 = vst [vmem:[#allocation22_spill] sm:$0xff] %v3279_v18  ;;  %702 = vmatpush.msra.mxu2 %v3257_v14  ;;  %722 = vmatpush.msra.mxu3 %v3262_v15 }
  0x73   : > { %4737 = vst [vmem:[#allocation23_spill] sm:$0xff] %v3286_v19  ;;  %662 = vmatpush.msra.mxu0 %v3274_v17  ;;  %682 = vmatpush.msra.mxu1 %v3279_v18 }
  0x74   : > { %4738 = vst [vmem:[#allocation24_spill] sm:$0xff] %v3293_v20  ;;  %703 = vmatpush.msra.mxu2 %v3269_v16  ;;  %723 = vmatpush.msra.mxu3 %v3286_v19 }
  0x75   : > { %4739 = vst [vmem:[#allocation25_spill] sm:$0xff] %v3298_v21  ;;  %663 = vmatpush.msra.mxu0 %v3293_v20  ;;  %683 = vmatpush.msra.mxu1 %v3298_v21 }
  0x76   : > { %4740 = vst [vmem:[#allocation26_spill] sm:$0xff] %v3305_v22  ;;  %704 = vmatpush.msra.mxu2 %v3305_v22  ;;  %724 = vmatpush.msra.mxu3 %v3310_v23 }
  0x77   : > { %4741 = vst [vmem:[#allocation27_spill] sm:$0xff] %v3310_v23  ;;  %664 = vmatpush.msra.mxu0 %v3317_v24  ;;  %684 = vmatpush.msra.mxu1 %v3322_v25  ;;  %v3372_v23 = vld [vmem:[%s4581_s3 + $0x8] sm:$0xff] }
  0x78   : > { %4742 = vst [vmem:[#allocation28_spill] sm:$0xff] %v3317_v24  ;;  %705 = vmatpush.msra.mxu2 %v3329_v26  ;;  %725 = vmatpush.msra.mxu3 %v3334_v27 }
  0x79   : > { %4743 = vst [vmem:[#allocation29_spill] sm:$0xff] %v3322_v25  ;;  %665 = vmatpush.msra.mxu0 %v3341_v28  ;;  %685 = vmatpush.msra.mxu1 %v3346_v29 }
  0x7a   : > { %4744 = vst [vmem:[#allocation30_spill] sm:$0xff] %v3329_v26  ;;  %706 = vmatpush.msra.mxu2 %v3353_v30  ;;  %726 = vmatpush.msra.mxu3 %v3358_v31 }
  0x7b   : > { %4745 = vst [vmem:[#allocation31_spill] sm:$0xff] %v3334_v27  ;;  %707 = vmatmul.f32.vlgmr.msra.gmra.mxu2 %v649_v32  ;;  %727 = vmatmul.f32.vlgmr.msra.gmra.mxu3 %v649_v32 }
  0x7c   : > { %4746 = vst [vmem:[#allocation32_spill] sm:$0xff] %v3341_v28  ;;  %666 = vmatpush.msra.mxu0 %v3367_v33  ;;  %686 = vmatpush.msra.mxu1 %v3372_v23 }
  0x7d   : > { %4747 = vst [vmem:[#allocation33_spill] sm:$0xff] %v3346_v29  ;;  %667 = vmatmul.f32.vlgmr.msra.gmra.mxu0 %v649_v32  ;;  %687 = vmatmul.f32.vlgmr.msra.gmra.mxu1 %v649_v32 }
  0x7e   : > { %4748 = vst [vmem:[#allocation34_spill] sm:$0xff] %v3353_v30  ;;  %833 = vmatpush.msrb.mxu0 %v3014_v37  ;;  %853 = vmatpush.msrb.mxu1 %v3019_v38  ;;  %v4752_v32 = vld [vmem:[#allocation27_spill] sm:$0xff] }
  0x7f   : > { %4749 = vst [vmem:[#allocation35_spill] sm:$0xff] %v3358_v31  ;;  %873 = vmatpush.msrb.mxu2 %v2997_v34  ;;  %893 = vmatpush.msrb.mxu3 %v3007_v36 }
  0x80   : > { %4750 = vst [vmem:[#allocation36_spill] sm:$0xff] %v3367_v33  ;;  %834 = vmatpush.msrb.mxu0 %v3036_v41  ;;  %854 = vmatpush.msrb.mxu1 %v3041_v42 }
  0x81   : > { %4751 = vst [vmem:[#allocation37_spill] sm:$0xff] %v3372_v23  ;;  %874 = vmatpush.msrb.mxu2 %v3002_v35  ;;  %894 = vmatpush.msrb.mxu3 %v3031_v40 }
  0x82   : > { %835 = vmatpush.msrb.mxu0 %v3053_v44  ;;  %855 = vmatpush.msrb.mxu1 %v3065_v46 }
  0x83   : > { %875 = vmatpush.msrb.mxu2 %v3024_v39  ;;  %895 = vmatpush.msrb.mxu3 %v3048_v43 }
  0x84   : > { %836 = vmatpush.msrb.mxu0 %v3077_v48  ;;  %856 = vmatpush.msrb.mxu1 %v3082_v49 }
  0x85   : > { %876 = vmatpush.msrb.mxu2 %v3060_v45  ;;  %896 = vmatpush.msrb.mxu3 %v3070_v47 }
  0x86   : > { %837 = vmatpush.msrb.mxu0 %v3101_v52  ;;  %857 = vmatpush.msrb.mxu1 %v3106_v53 }
  0x87   : > { %877 = vmatpush.msrb.mxu2 %v3089_v50  ;;  %897 = vmatpush.msrb.mxu3 %v3094_v51 }
  0x88   : > { %838 = vmatpush.msrb.mxu0 %v3125_v56  ;;  %858 = vmatpush.msrb.mxu1 %v3130_v57 }
  0x89   : > { %878 = vmatpush.msrb.mxu2 %v3113_v54  ;;  %898 = vmatpush.msrb.mxu3 %v3118_v55 }
  0x8a   : > { %839 = vmatpush.msrb.mxu0 %v3149_v60  ;;  %859 = vmatpush.msrb.mxu1 %v3154_v61 }
  0x8b   : > { %879 = vmatpush.msrb.mxu2 %v3137_v58  ;;  %899 = vmatpush.msrb.mxu3 %v3142_v59 }
  0x8c   : > { %840 = vmatpush.msrb.mxu0 %v3173_v0  ;;  %860 = vmatpush.msrb.mxu1 %v3178_v1 }
  0x8d   : > { %880 = vmatpush.msrb.mxu2 %v3161_v62  ;;  %900 = vmatpush.msrb.mxu3 %v3166_v63 }
  0x8e   : > { %841 = vmatpush.msrb.mxu0 %v3197_v4  ;;  %861 = vmatpush.msrb.mxu1 %v3202_v5 }
  0x8f   : > { %881 = vmatpush.msrb.mxu2 %v3185_v2  ;;  %901 = vmatpush.msrb.mxu3 %v3190_v3 }
  0x90   : > { %842 = vmatpush.msrb.mxu0 %v3221_v8  ;;  %862 = vmatpush.msrb.mxu1 %v3226_v9 }
  0x91   : > { %882 = vmatpush.msrb.mxu2 %v3209_v6  ;;  %902 = vmatpush.msrb.mxu3 %v3214_v7 }
  0x92   : > { %843 = vmatpush.msrb.mxu0 %v3245_v12  ;;  %863 = vmatpush.msrb.mxu1 %v3250_v13 }
  0x93   : > { %883 = vmatpush.msrb.mxu2 %v3233_v10  ;;  %903 = vmatpush.msrb.mxu3 %v3238_v11 }
  0x94   : > { %844 = vmatpush.msrb.mxu0 %v3274_v17  ;;  %864 = vmatpush.msrb.mxu1 %v3279_v18 }
  0x95   : > { %884 = vmatpush.msrb.mxu2 %v3257_v14  ;;  %904 = vmatpush.msrb.mxu3 %v3262_v15 }
  0x96   : > { %845 = vmatpush.msrb.mxu0 %v3293_v20  ;;  %865 = vmatpush.msrb.mxu1 %v3298_v21 }
  0x97   : > { %885 = vmatpush.msrb.mxu2 %v3269_v16  ;;  %905 = vmatpush.msrb.mxu3 %v3286_v19 }
  0x98   : > { %846 = vmatpush.msrb.mxu0 %v3317_v24  ;;  %866 = vmatpush.msrb.mxu1 %v3322_v25 }
  0x99   : > { %886 = vmatpush.msrb.mxu2 %v3305_v22  ;;  %906 = vmatpush.msrb.mxu3 %v4752_v32 }
  0x9a   : > { %847 = vmatpush.msrb.mxu0 %v3341_v28  ;;  %867 = vmatpush.msrb.mxu1 %v3346_v29 }
  0x9b   : > { %887 = vmatpush.msrb.mxu2 %v3329_v26  ;;  %907 = vmatpush.msrb.mxu3 %v3334_v27 }
  0x9c   : > { %848 = vmatpush.msrb.mxu0 %v3367_v33  ;;  %868 = vmatpush.msrb.mxu1 %v3372_v23 }
  0x9d   : > { %888 = vmatpush.msrb.mxu2 %v3353_v30  ;;  %908 = vmatpush.msrb.mxu3 %v3358_v31 }
  0x9e   : > { %1017 = vmatpush.msra.mxu0 %v3014_v37  ;;  %1037 = vmatpush.msra.mxu1 %v3019_v38 }
  0x9f   : > { %1057 = vmatpush.msra.mxu2 %v2997_v34  ;;  %1077 = vmatpush.msra.mxu3 %v3007_v36 }
  0xa0   : > { %1018 = vmatpush.msra.mxu0 %v3036_v41  ;;  %1038 = vmatpush.msra.mxu1 %v3041_v42 }
  0xa1   : > { %1058 = vmatpush.msra.mxu2 %v3002_v35  ;;  %1078 = vmatpush.msra.mxu3 %v3031_v40 }
  0xa2   : > { %1019 = vmatpush.msra.mxu0 %v3053_v44  ;;  %1039 = vmatpush.msra.mxu1 %v3065_v46 }
  0xa3   : > { %1059 = vmatpush.msra.mxu2 %v3024_v39  ;;  %1079 = vmatpush.msra.mxu3 %v3048_v43 }
  0xa4   : > { %1020 = vmatpush.msra.mxu0 %v3077_v48  ;;  %1040 = vmatpush.msra.mxu1 %v3082_v49 }
  0xa5   : > { %1060 = vmatpush.msra.mxu2 %v3060_v45  ;;  %1080 = vmatpush.msra.mxu3 %v3070_v47 }
  0xa6   : > { %1021 = vmatpush.msra.mxu0 %v3101_v52  ;;  %1041 = vmatpush.msra.mxu1 %v3106_v53 }
  0xa7   : > { %1061 = vmatpush.msra.mxu2 %v3089_v50  ;;  %1081 = vmatpush.msra.mxu3 %v3094_v51 }
  0xa8   : > { %1022 = vmatpush.msra.mxu0 %v3125_v56  ;;  %1042 = vmatpush.msra.mxu1 %v3130_v57 }
  0xa9   : > { %1062 = vmatpush.msra.mxu2 %v3113_v54  ;;  %1082 = vmatpush.msra.mxu3 %v3118_v55 }
  0xaa   : > { %1023 = vmatpush.msra.mxu0 %v3149_v60  ;;  %1043 = vmatpush.msra.mxu1 %v3154_v61 }
  0xab   : > { %1063 = vmatpush.msra.mxu2 %v3137_v58  ;;  %1083 = vmatpush.msra.mxu3 %v3142_v59 }
  0xac   : > { %1024 = vmatpush.msra.mxu0 %v3173_v0  ;;  %1044 = vmatpush.msra.mxu1 %v3178_v1 }
  0xad   : > { %1064 = vmatpush.msra.mxu2 %v3161_v62  ;;  %1084 = vmatpush.msra.mxu3 %v3166_v63 }
  0xae   : > { %1025 = vmatpush.msra.mxu0 %v3197_v4  ;;  %1045 = vmatpush.msra.mxu1 %v3202_v5 }
  0xaf   : > { %1065 = vmatpush.msra.mxu2 %v3185_v2  ;;  %1085 = vmatpush.msra.mxu3 %v3190_v3 }
  0xb0   : > { %1026 = vmatpush.msra.mxu0 %v3221_v8  ;;  %1046 = vmatpush.msra.mxu1 %v3226_v9 }
  0xb1   : > { %1066 = vmatpush.msra.mxu2 %v3209_v6  ;;  %1086 = vmatpush.msra.mxu3 %v3214_v7 }
  0xb2   : > { %1027 = vmatpush.msra.mxu0 %v3245_v12  ;;  %1047 = vmatpush.msra.mxu1 %v3250_v13 }
  0xb3   : > { %1067 = vmatpush.msra.mxu2 %v3233_v10  ;;  %1087 = vmatpush.msra.mxu3 %v3238_v11 }
  0xb4   : > { %1028 = vmatpush.msra.mxu0 %v3274_v17  ;;  %1048 = vmatpush.msra.mxu1 %v3279_v18 }
  0xb5   : > { %1068 = vmatpush.msra.mxu2 %v3257_v14  ;;  %1088 = vmatpush.msra.mxu3 %v3262_v15 }
  0xb6   : > { %1029 = vmatpush.msra.mxu0 %v3293_v20  ;;  %1049 = vmatpush.msra.mxu1 %v3298_v21 }
  0xb7   : > { %1069 = vmatpush.msra.mxu2 %v3269_v16  ;;  %1089 = vmatpush.msra.mxu3 %v3286_v19 }
  0xb8   : > { %1030 = vmatpush.msra.mxu0 %v3317_v24  ;;  %1050 = vmatpush.msra.mxu1 %v3322_v25 }
  0xb9   : > { %1070 = vmatpush.msra.mxu2 %v3305_v22  ;;  %1090 = vmatpush.msra.mxu3 %v4752_v32  ;;  %v611_v32 = vld [vmem:[%s4582_s4] sm:$0xf] }
  0xba   : > { %1031 = vmatpush.msra.mxu0 %v3341_v28  ;;  %1051 = vmatpush.msra.mxu1 %v3346_v29  ;;  %v3509_v22 = vperm.slane %v611_v32, 0  ;;  %v3511_v28 = vperm.slane %v611_v32, 1  ;;  %v3515_v25 = vperm.slane %v611_v32, 2 }
  0xbb   : > { %1071 = vmatpush.msra.mxu2 %v3329_v26  ;;  %1091 = vmatpush.msra.mxu3 %v3334_v27 }
  0xbc   : > { %1032 = vmatpush.msra.mxu0 %v3367_v33  ;;  %1052 = vmatpush.msra.mxu1 %v3372_v23  ;;  %4753 = vst [vmem:[#allocation38_spill] sm:$0xff] %v3509_v22  ;;  %v3517_v23 = vperm.slane %v611_v32, 3 }
  0xbd   : > { %1072 = vmatpush.msra.mxu2 %v3353_v30  ;;  %1092 = vmatpush.msra.mxu3 %v3358_v31  ;;  %4754 = vst [vmem:[#allocation39_spill] sm:$0xff] %v3511_v28 }
  0xbe   : > { %4755 = vst [vmem:[#allocation40_spill] sm:$0xff] %v3515_v25 }
  0xbf   : > { %4756 = vst [vmem:[#allocation41_spill] sm:$0xff] %v3517_v23 }
  0xfa   : > { %v668_v29 = vpop.f32.mrf.mxu0  ;;  %v688_v26 = vpop.f32.mrf.mxu1 }
  0xfb   : > { %v669_v27 = vadd.f32 %v668_v29, %v3509_v22  ;;  %v689_v33 = vadd.f32 %v688_v26, %v3511_v28 }
  0xfd   : > { %v735_v30 = vadd.f32 %v689_v33, %v669_v27  ;;  %v740_v19 = vmul.f32 %v669_v27, %v669_v27  ;;  %v741_v16 = vmul.f32 %v689_v33, %v689_v33 }
  0xfe   : > { %v708_v31 = vpop.f32.mrf.mxu2  ;;  %v728_v24 = vpop.f32.mrf.mxu3 }
  0xff   : > { %v709_v21 = vadd.f32 %v708_v31, %v3515_v25  ;;  %v729_v20 = vadd.f32 %v728_v24, %v3517_v23  ;;  %v744_v17 = vadd.f32 %v741_v16, %v740_v19  ;;  %v631_v16 = vld [vmem:[%s4584_s6] sm:$0xf] }
 0x101   : > { %v736_v15 = vadd.f32 %v735_v30, %v709_v21  ;;  %v742_v14 = vmul.f32 %v709_v21, %v709_v21  ;;  %v743_v29 = vmul.f32 %v729_v20, %v729_v20 }
 0x103   : > { %v737_v18 = vadd.f32 %v736_v15, %v729_v20  ;;  %v745_v26 = vadd.f32 %v744_v17, %v742_v14  ;;  %v621_v15 = vld [vmem:[%s4583_s5] sm:$0xf] }
 0x104   : > { %v3527_v17 = vperm.slane %v621_v15, 0  ;;  %v3531_v19 = vperm.slane %v621_v15, 3 }
 0x105   : > { %738 = vadd.xlane.f32.xlu0 %v737_v18  ;;  %v746_v28 = vadd.f32 %v745_v26, %v743_v29  ;;  %v3535_v29 = vperm.slane %v631_v16, 1 }
 0x106   : > { %4757 = vst [vmem:[#allocation42_spill] sm:$0xff] %v3527_v17 }
 0x107   : > { %4759 = vst [vmem:[#allocation44_spill] sm:$0xff] %v3531_v19 }
 0x10d   : > { %747 = vadd.xlane.f32.xlu0 %v746_v28  ;;  %v3533_v28 = vperm.slane %v631_v16, 0 }
 0x10f   : > { %4760 = vst [vmem:[#allocation45_spill] sm:$0xff] %v3533_v28 }
 0x178   : > { %v739_v32 = vpop.xlane.xlu0 %738 }
 0x179   : > { %v749_v22 = vmul.f32 0.001953125, %v739_v32 }
 0x17b   : > { %v751_v10 = vmul.f32 %v749_v22, %v749_v22  ;;  %v757_v18 = vsub.f32 %v729_v20, %v749_v22  ;;  %v3540_v20 = vperm.slane %v631_v16, 3 }
 0x180   : > { %v748_v11 = vpop.xlane.xlu0 %747 }
 0x181   : > { %v750_v13 = vmul.f32 0.001953125, %v748_v11  ;;  %v754_v11 = vsub.f32 %v669_v27, %v749_v22 }
 0x183   : > { %v752_v12 = vsub.f32 %v750_v13, %v751_v10  ;;  %v3529_v10 = vperm.slane %v621_v15, 1  ;;  %v756_v13 = vsub.f32 %v709_v21, %v749_v22 }
 0x185   : > { %v753_v7 = vmax.f32 %v752_v12, 0.0  ;;  %4758 = vst [vmem:[#allocation43_spill] sm:$0xff] %v3529_v10  ;;  %v755_v12 = vsub.f32 %v689_v33, %v749_v22  ;;  %v731_v22 = vld [vmem:[%s2989_s21] sm:$0xff]  ;;  %v732_v33 = vld [vmem:[%s2989_s21 + $0x8] sm:$0xff] }
 0x187   : > { %v758_v6 = vadd.f32 1e-05, %v753_v7 }
 0x189   : > { %2473 = vrsqrt.f32 %v758_v6  ;;  %vm765_vm1 = vweird.f32 %v758_v6 }
 0x18f   : > { %v2474_v31 = vpop.eup %2473 }
 0x190   : > { %v760_v24 = vmul.f32 %v2474_v31, %v758_v6  ;;  %vm766_vm0 = vweird.f32 %v2474_v31 }
 0x191   : > { %vm767_vm2 = vmor %vm765_vm1, %vm766_vm0 }
 0x192   : > { %v761_v30 = vmul.f32 %v2474_v31, %v760_v24 }
 0x194   : > { %v762_v23 = vmul.f32 0.5, %v761_v30 }
 0x196   : > { %v763_v14 = vsub.f32 1.5, %v762_v23 }
 0x198   : > { %v764_v7 = vmul.f32 %v2474_v31, %v763_v14 }
 0x19a   : > { %v768_v23 = vsel %vm767_vm2, %v2474_v31, %v764_v7 }
 0x19b   : > { %v769_v26 = vmul.f32 %v768_v23, %v754_v11  ;;  %v770_v32 = vmul.f32 %v768_v23, %v755_v12  ;;  %v771_v24 = vmul.f32 %v768_v23, %v756_v13  ;;  %v772_v30 = vmul.f32 %v768_v23, %v757_v18  ;;  %v734_v12 = vld [vmem:[%s2989_s21 + $0x18] sm:$0xff] }
 0x19d   : > { %v773_v6 = vmul.f32 %v769_v26, %v3527_v17  ;;  %v774_v27 = vmul.f32 %v770_v32, %v3529_v10  ;;  %v776_v21 = vmul.f32 %v772_v30, %v3531_v19  ;;  %v650_v10 = vld [vmem:[#allocation3] sm:$0xff] }
 0x19f   : > { %v777_v31 = vadd.f32 %v773_v6, %v3533_v28  ;;  %v778_v14 = vadd.f32 %v774_v27, %v3535_v29  ;;  %v780_v11 = vadd.f32 %v776_v21, %v3540_v20 }
 0x1a1   : > { %v781_v7 = vadd.f32 %v777_v31, %v731_v22  ;;  %v782_v25 = vadd.f32 %v778_v14, %v732_v33  ;;  %v784_v23 = vadd.f32 %v780_v11, %v734_v12 }
 0x1a3   : > { %v785_v13 = vmul.f32 0.5, %v781_v7  ;;  %v789_v18 = vmul.f32 0.5, %v782_v25 }
 0x1a5   : > { %2475 = vtanh.f32 %v785_v13  ;;  %v3553_v13 = vperm.slane %v621_v15, 2 }
 0x1a6   : > { %2477 = vtanh.f32 %v789_v18 }
 0x1a7   : > { %2479 = vtanh.f32 %v784_v23  ;;  %v733_v23 = vld [vmem:[%s2989_s21 + $0x10] sm:$0xff] }
 0x1ab   : > { %v2476_v26 = vpop.eup %2475 }
 0x1ac   : > { %v2478_v32 = vpop.eup %2477  ;;  %v787_v30 = vmul.f32 0.5, %v2476_v26 }
 0x1ad   : > { %v791_v19 = vmul.f32 0.5, %v2478_v32  ;;  %v2480_v6 = vpop.eup %2479 }
 0x1ae   : > { %v788_v17 = vadd.f32 0.5, %v787_v30 }
 0x1af   : > { %v792_v28 = vadd.f32 0.5, %v791_v19 }
 0x1b0   : > { %v799_v27 = vmul.f32 %v2480_v6, %v788_v17 }
 0x1b1   : > { %v798_v22 = vmul.f32 %v792_v28, %v650_v10  ;;  %v3555_v10 = vperm.slane %v631_v16, 2  ;;  %v775_v28 = vmul.f32 %v771_v24, %v3553_v13  ;;  %v3564_v24 = vld [vmem:[%s4585_s7] ss:$0 sm:$0xff] }
 0x1b3   : > { %v3548_v33 = vadd.f32 %v799_v27, %v798_v22  ;;  %v779_v18 = vadd.f32 %v775_v28, %v3555_v10 }
 0x1b5   : > { %801 = vadd.xlane.f32.xlu1 %v3548_v33  ;;  %v803_v25 = vmul.f32 %v3548_v33, %v3548_v33  ;;  %v783_v30 = vadd.f32 %v779_v18, %v733_v23 }
 0x1b7   : > { %v793_v22 = vmul.f32 0.5, %v783_v30 }
 0x1bd   : > { %804 = vadd.xlane.f32.xlu1 %v803_v25 }
 0x228   : > { %v802_v21 = vpop.xlane.xlu1 %801 }
 0x229   : > { %v806_v31 = vmul.f32 0.0078125, %v802_v21 }
 0x22b   : > { %v808_v7 = vmul.f32 %v806_v31, %v806_v31  ;;  %v811_v16 = vsub.f32 %v3548_v33, %v806_v31 }
 0x230   : > { %v805_v14 = vpop.xlane.xlu1 %804 }
 0x231   : > { %v807_v11 = vmul.f32 0.0078125, %v805_v14  ;;  %v3569_v14 = vld [vmem:[%s4586_s8] ss:$0 sm:$0xff] }
 0x233   : > { %v809_v12 = vsub.f32 %v807_v11, %v808_v7 }
 0x235   : > { %v810_v19 = vmax.f32 %v809_v12, 0.0 }
 0x237   : > { %v812_v17 = vadd.f32 1e-05, %v810_v19 }
 0x239   : > { %2481 = vrsqrt.f32 %v812_v17  ;;  %vm819_vm4 = vweird.f32 %v812_v17 }
 0x23a   : > { %2483 = vtanh.f32 %v793_v22 }
 0x23f   : > { %v2482_v26 = vpop.eup %2481 }
 0x240   : > { %v814_v32 = vmul.f32 %v2482_v26, %v812_v17  ;;  %vm820_vm3 = vweird.f32 %v2482_v26  ;;  %v2484_v12 = vpop.eup %2483 }
 0x241   : > { %vm821_vm5 = vmor %vm819_vm4, %vm820_vm3  ;;  %v795_v31 = vmul.f32 0.5, %v2484_v12 }
 0x242   : > { %v815_v6 = vmul.f32 %v2482_v26, %v814_v32 }
 0x243   : > { %v796_v17 = vadd.f32 0.5, %v795_v31 }
 0x244   : > { %v816_v27 = vmul.f32 0.5, %v815_v6 }
 0x246   : > { %v817_v25 = vsub.f32 1.5, %v816_v27 }
 0x248   : > { %v818_v15 = vmul.f32 %v2482_v26, %v817_v25 }
 0x24a   : > { %v822_v21 = vsel %vm821_vm5, %v2482_v26, %v818_v15  ;;  %v4790_v26 = vld [vmem:[#allocation41_spill] sm:$0xff] }
 0x24b   : > { %v823_v7 = vmul.f32 %v822_v21, %v811_v16 }
 0x24d   : > { %v824_v11 = vmul.f32 %v3564_v24, %v823_v7 }
 0x24f   : > { %v825_v19 = vadd.f32 %v3569_v14, %v824_v11 }
 0x251   : > { %2485 = vtanh.f32 %v825_v19 }
 0x257   : > { %v2486_v28 = vpop.eup %2485 }
 0x258   : > { %v827_v18 = vmul.f32 %v2486_v28, %v796_v17 }
 0x25a   : > { %830 = vst [vmem:[%s2991_s13] sm:$0xff] %v827_v18  ;;  %849 = vmatmul.f32.vlgmr.msrb.gmra.mxu0 %v827_v18  ;;  %869 = vmatmul.f32.vlgmr.msrb.gmra.mxu1 %v827_v18 }
 0x25b   : > { %889 = vmatmul.f32.vlgmr.msrb.gmra.mxu2 %v827_v18  ;;  %909 = vmatmul.f32.vlgmr.msrb.gmra.mxu3 %v827_v18 }
 0x25c   : > { %1201 = vmatpush.msrb.mxu0 %v3014_v37  ;;  %1221 = vmatpush.msrb.mxu1 %v3019_v38  ;;  %v4764_v37 = vld [vmem:[#allocation17_spill] sm:$0xff]  ;;  %v4765_v38 = vld [vmem:[#allocation14_spill] sm:$0xff] }
 0x25d   : > { %1241 = vmatpush.msrb.mxu2 %v2997_v34  ;;  %1261 = vmatpush.msrb.mxu3 %v3007_v36  ;;  %v4761_v34 = vld [vmem:[#allocation12_spill] sm:$0xff] }
 0x25e   : > { %1202 = vmatpush.msrb.mxu0 %v3036_v41  ;;  %1222 = vmatpush.msrb.mxu1 %v3041_v42  ;;  %v4763_v36 = vld [vmem:[#allocation16_spill] sm:$0xff]  ;;  %v4768_v41 = vld [vmem:[#allocation22_spill] sm:$0xff] }
 0x25f   : > { %1242 = vmatpush.msrb.mxu2 %v3002_v35  ;;  %1262 = vmatpush.msrb.mxu3 %v3031_v40  ;;  %v4762_v35 = vld [vmem:[#allocation13_spill] sm:$0xff]  ;;  %v4769_v42 = vld [vmem:[#allocation18_spill] sm:$0xff] }
 0x260   : > { %1203 = vmatpush.msrb.mxu0 %v3053_v44  ;;  %1223 = vmatpush.msrb.mxu1 %v3065_v46  ;;  %v4767_v40 = vld [vmem:[#allocation21_spill] sm:$0xff]  ;;  %v4771_v44 = vld [vmem:[#allocation24_spill] sm:$0xff] }
 0x261   : > { %1243 = vmatpush.msrb.mxu2 %v3024_v39  ;;  %1263 = vmatpush.msrb.mxu3 %v3048_v43  ;;  %v4766_v39 = vld [vmem:[#allocation15_spill] sm:$0xff]  ;;  %v4773_v46 = vld [vmem:[#allocation20_spill] sm:$0xff] }
 0x262   : > { %1204 = vmatpush.msrb.mxu0 %v3077_v48  ;;  %1224 = vmatpush.msrb.mxu1 %v3082_v49  ;;  %v4770_v43 = vld [vmem:[#allocation19_spill] sm:$0xff]  ;;  %v4775_v48 = vld [vmem:[#allocation28_spill] sm:$0xff]  ;;  %v4776_v49 = vld [vmem:[#allocation29_spill] sm:$0xff] }
 0x263   : > { %1244 = vmatpush.msrb.mxu2 %v3060_v45  ;;  %1264 = vmatpush.msrb.mxu3 %v3070_v47  ;;  %v4772_v45 = vld [vmem:[#allocation25_spill] sm:$0xff]  ;;  %v4774_v47 = vld [vmem:[#allocation23_spill] sm:$0xff] }
 0x264   : > { %1205 = vmatpush.msrb.mxu0 %v3101_v52  ;;  %1225 = vmatpush.msrb.mxu1 %v3106_v53  ;;  %v4779_v52 = vld [vmem:[#allocation32_spill] sm:$0xff]  ;;  %v4780_v53 = vld [vmem:[#allocation33_spill] sm:$0xff] }
 0x265   : > { %1245 = vmatpush.msrb.mxu2 %v3089_v50  ;;  %1265 = vmatpush.msrb.mxu3 %v3094_v51  ;;  %v4777_v50 = vld [vmem:[#allocation26_spill] sm:$0xff]  ;;  %v4778_v51 = vld [vmem:[#allocation27_spill] sm:$0xff] }
 0x266   : > { %1206 = vmatpush.msrb.mxu0 %v3125_v56  ;;  %1226 = vmatpush.msrb.mxu1 %v3130_v57  ;;  %v4783_v56 = vld [vmem:[#allocation36_spill] sm:$0xff]  ;;  %v4784_v57 = vld [vmem:[#allocation37_spill] sm:$0xff] }
 0x267   : > { %1246 = vmatpush.msrb.mxu2 %v3113_v54  ;;  %1266 = vmatpush.msrb.mxu3 %v3118_v55  ;;  %v4781_v54 = vld [vmem:[#allocation30_spill] sm:$0xff]  ;;  %v4782_v55 = vld [vmem:[#allocation31_spill] sm:$0xff] }
 0x268   : > { %1207 = vmatpush.msrb.mxu0 %v3149_v60  ;;  %1227 = vmatpush.msrb.mxu1 %v3154_v61 }
 0x269   : > { %1247 = vmatpush.msrb.mxu2 %v3137_v58  ;;  %1267 = vmatpush.msrb.mxu3 %v3142_v59  ;;  %v4785_v58 = vld [vmem:[#allocation34_spill] sm:$0xff]  ;;  %v4786_v59 = vld [vmem:[#allocation35_spill] sm:$0xff] }
 0x26a   : > { %1208 = vmatpush.msrb.mxu0 %v3173_v0  ;;  %1228 = vmatpush.msrb.mxu1 %v3178_v1  ;;  %v4788_v0 = vld [vmem:[#allocation39_spill] sm:$0xff] }
 0x26b   : > { %1248 = vmatpush.msrb.mxu2 %v3161_v62  ;;  %1268 = vmatpush.msrb.mxu3 %v3166_v63  ;;  %v4787_v62 = vld [vmem:[#allocation38_spill] sm:$0xff] }
 0x26c   : > { %1209 = vmatpush.msrb.mxu0 %v3197_v4  ;;  %1229 = vmatpush.msrb.mxu1 %v3202_v5  ;;  %v4789_v4 = vld [vmem:[#allocation40_spill] sm:$0xff] }
 0x26d   : > { %1249 = vmatpush.msrb.mxu2 %v3185_v2  ;;  %1269 = vmatpush.msrb.mxu3 %v3190_v3 }
 0x26e   : > { %1210 = vmatpush.msrb.mxu0 %v3221_v8  ;;  %1230 = vmatpush.msrb.mxu1 %v3226_v9 }
 0x26f   : > { %1250 = vmatpush.msrb.mxu2 %v4761_v34  ;;  %1270 = vmatpush.msrb.mxu3 %v4762_v35 }
 0x270   : > { %1211 = vmatpush.msrb.mxu0 %v4763_v36  ;;  %1231 = vmatpush.msrb.mxu1 %v4764_v37 }
 0x271   : > { %1251 = vmatpush.msrb.mxu2 %v4765_v38  ;;  %1271 = vmatpush.msrb.mxu3 %v4766_v39 }
 0x272   : > { %1212 = vmatpush.msrb.mxu0 %v4767_v40  ;;  %1232 = vmatpush.msrb.mxu1 %v4768_v41 }
 0x273   : > { %1252 = vmatpush.msrb.mxu2 %v4769_v42  ;;  %1272 = vmatpush.msrb.mxu3 %v4770_v43 }
 0x274   : > { %1213 = vmatpush.msrb.mxu0 %v4771_v44  ;;  %1233 = vmatpush.msrb.mxu1 %v4772_v45 }
 0x275   : > { %1253 = vmatpush.msrb.mxu2 %v4773_v46  ;;  %1273 = vmatpush.msrb.mxu3 %v4774_v47 }
 0x276   : > { %1214 = vmatpush.msrb.mxu0 %v4775_v48  ;;  %1234 = vmatpush.msrb.mxu1 %v4776_v49  ;;  %v4791_v48 = vld [vmem:[#allocation42_spill] sm:$0xff] }
 0x277   : > { %1254 = vmatpush.msrb.mxu2 %v4777_v50  ;;  %1274 = vmatpush.msrb.mxu3 %v4778_v51  ;;  %v4792_v50 = vld [vmem:[#allocation43_spill] sm:$0xff] }
 0x278   : > { %1215 = vmatpush.msrb.mxu0 %v4779_v52  ;;  %1235 = vmatpush.msrb.mxu1 %v4780_v53  ;;  %v4793_v52 = vld [vmem:[#allocation44_spill] sm:$0xff] }
 0x279   : > { %1255 = vmatpush.msrb.mxu2 %v4781_v54  ;;  %1275 = vmatpush.msrb.mxu3 %v4782_v55  ;;  %v2372_v54 = vld [vmem:[%s2989_s21 + $0x20] sm:$0xff]  ;;  %v2373_v55 = vld [vmem:[%s2989_s21 + $0x28] sm:$0xff] }
 0x27a   : > { %1216 = vmatpush.msrb.mxu0 %v4783_v56  ;;  %1236 = vmatpush.msrb.mxu1 %v4784_v57  ;;  %v4794_v56 = vld [vmem:[#allocation45_spill] sm:$0xff] }
 0x27b   : > { %1256 = vmatpush.msrb.mxu2 %v4785_v58  ;;  %1276 = vmatpush.msrb.mxu3 %v4786_v59 }
 0x2d7   : > { %v850_v60 = vpop.f32.mrf.mxu0  ;;  %v870_v61 = vpop.f32.mrf.mxu1 }
 0x2d8   : > { %v851_v63 = vadd.f32 %v850_v60, %v4787_v62  ;;  %v871_v1 = vadd.f32 %v870_v61, %v4788_v0 }
 0x2da   : > { %v918_v8 = vadd.f32 %v871_v1, %v851_v63  ;;  %v923_v9 = vmul.f32 %v851_v63, %v851_v63  ;;  %v924_v23 = vmul.f32 %v871_v1, %v871_v1 }
 0x2dc   : > { %v927_v22 = vadd.f32 %v924_v23, %v923_v9 }
 0x2de   : > { %v890_v2 = vpop.f32.mrf.mxu2  ;;  %v910_v3 = vpop.f32.mrf.mxu3 }
 0x2df   : > { %v891_v5 = vadd.f32 %v890_v2, %v4789_v4  ;;  %v911_v32 = vadd.f32 %v910_v3, %v4790_v26 }
 0x2e1   : > { %v919_v30 = vadd.f32 %v918_v8, %v891_v5  ;;  %v925_v6 = vmul.f32 %v891_v5, %v891_v5  ;;  %v926_v15 = vmul.f32 %v911_v32, %v911_v32 }
 0x2e3   : > { %v920_v27 = vadd.f32 %v919_v30, %v911_v32  ;;  %v928_v25 = vadd.f32 %v927_v22, %v925_v6 }
 0x2e5   : > { %921 = vadd.xlane.f32.xlu2 %v920_v27  ;;  %v929_v16 = vadd.f32 %v928_v25, %v926_v15 }
 0x2ed   : > { %930 = vadd.xlane.f32.xlu2 %v929_v16 }
 0x358   : > { %v922_v21 = vpop.xlane.xlu2 %921 }
 0x359   : > { %v932_v7 = vmul.f32 0.001953125, %v922_v21 }
 0x35b   : > { %v934_v12 = vmul.f32 %v932_v7, %v932_v7  ;;  %v937_v39 = vsub.f32 %v851_v63, %v932_v7  ;;  %v938_v40 = vsub.f32 %v871_v1, %v932_v7  ;;  %v939_v41 = vsub.f32 %v891_v5, %v932_v7  ;;  %v2375_v63 = vld [vmem:[%s2989_s21 + $0x38] sm:$0xff] }
 0x35c   : > { %v940_v42 = vsub.f32 %v911_v32, %v932_v7 }
 0x360   : > { %v931_v11 = vpop.xlane.xlu2 %930 }
 0x361   : > { %v933_v19 = vmul.f32 0.001953125, %v931_v11 }
 0x363   : > { %v935_v31 = vsub.f32 %v933_v19, %v934_v12 }
 0x365   : > { %v936_v17 = vmax.f32 %v935_v31, 0.0 }
 0x367   : > { %v941_v28 = vadd.f32 1e-05, %v936_v17 }
 0x369   : > { %2487 = vrsqrt.f32 %v941_v28  ;;  %vm948_vm7 = vweird.f32 %v941_v28 }
 0x36f   : > { %v2488_v18 = vpop.eup %2487 }
 0x370   : > { %v943_v34 = vmul.f32 %v2488_v18, %v941_v28  ;;  %vm949_vm6 = vweird.f32 %v2488_v18 }
 0x371   : > { %vm950_vm8 = vmor %vm948_vm7, %vm949_vm6 }
 0x372   : > { %v944_v35 = vmul.f32 %v2488_v18, %v943_v34 }
 0x374   : > { %v945_v36 = vmul.f32 0.5, %v944_v35 }
 0x376   : > { %v946_v37 = vsub.f32 1.5, %v945_v36 }
 0x378   : > { %v947_v38 = vmul.f32 %v2488_v18, %v946_v37 }
 0x37a   : > { %v951_v43 = vsel %vm950_vm8, %v2488_v18, %v947_v38  ;;  %v2374_v18 = vld [vmem:[%s2989_s21 + $0x30] sm:$0xff] }
 0x37b   : > { %v952_v44 = vmul.f32 %v951_v43, %v937_v39  ;;  %v953_v45 = vmul.f32 %v951_v43, %v938_v40  ;;  %v954_v46 = vmul.f32 %v951_v43, %v939_v41  ;;  %v955_v47 = vmul.f32 %v951_v43, %v940_v42 }
 0x37d   : > { %v956_v49 = vmul.f32 %v952_v44, %v4791_v48  ;;  %v957_v51 = vmul.f32 %v953_v45, %v4792_v50  ;;  %v959_v53 = vmul.f32 %v955_v47, %v4793_v52  ;;  %v958_v28 = vmul.f32 %v954_v46, %v3553_v13 }
 0x37f   : > { %v960_v57 = vadd.f32 %v956_v49, %v4794_v56  ;;  %v961_v58 = vadd.f32 %v957_v51, %v3535_v29  ;;  %v963_v61 = vadd.f32 %v959_v53, %v3540_v20 }
 0x381   : > { %v964_v59 = vadd.f32 %v2372_v54, %v960_v57  ;;  %v965_v60 = vadd.f32 %v2373_v55, %v961_v58  ;;  %v967_v3 = vadd.f32 %v2375_v63, %v963_v61  ;;  %v3667_v55 = vld [vmem:[%s4581_s3 + $0x1e0] sm:$0xff]  ;;  %v3673_v57 = vld [vmem:[%s4581_s3 + $0x1e8] sm:$0xff]  ;;  %v3679_v58 = vld [vmem:[%s4581_s3 + $0x1f0] sm:$0xff] }
 0x382   : > { %v3697_v61 = vld [vmem:[%s4581_s3 + $0x1c8] sm:$0xff]  ;;  %v3703_v63 = vld [vmem:[%s4581_s3 + $0x1d0] sm:$0xff] }
 0x383   : > { %v968_v1 = vmul.f32 0.5, %v964_v59  ;;  %v972_v2 = vmul.f32 0.5, %v965_v60  ;;  %v3685_v59 = vld [vmem:[%s4581_s3 + $0x1f8] sm:$0xff]  ;;  %v3691_v60 = vld [vmem:[%s4581_s3 + $0x1c0] sm:$0xff] }
 0x385   : > { %2489 = vtanh.f32 %v968_v1  ;;  %v3709_v1 = vld [vmem:[%s4581_s3 + $0x1d8] sm:$0xff] }
 0x386   : > { %2491 = vtanh.f32 %v972_v2  ;;  %v3715_v2 = vld [vmem:[%s4581_s3 + $0x1a0] sm:$0xff] }
 0x387   : > { %2493 = vtanh.f32 %v967_v3  ;;  %v3721_v3 = vld [vmem:[%s4581_s3 + $0x1a8] sm:$0xff] }
 0x38b   : > { %v2490_v5 = vpop.eup %2489 }
 0x38c   : > { %v2492_v8 = vpop.eup %2491  ;;  %v970_v9 = vmul.f32 0.5, %v2490_v5  ;;  %v3727_v5 = vld [vmem:[%s4581_s3 + $0x1b0] sm:$0xff] }
 0x38d   : > { %v974_v23 = vmul.f32 0.5, %v2492_v8  ;;  %v2494_v30 = vpop.eup %2493  ;;  %v3733_v8 = vld [vmem:[%s4581_s3 + $0x1b8] sm:$0xff] }
 0x38e   : > { %v971_v32 = vadd.f32 0.5, %v970_v9  ;;  %v3739_v9 = vld [vmem:[%s4581_s3 + $0x180] sm:$0xff] }
 0x38f   : > { %v975_v6 = vadd.f32 0.5, %v974_v23  ;;  %v3745_v23 = vld [vmem:[%s4581_s3 + $0x188] sm:$0xff] }
 0x390   : > { %v982_v27 = vmul.f32 %v2494_v30, %v971_v32  ;;  %v3751_v32 = vld [vmem:[%s4581_s3 + $0x190] sm:$0xff]  ;;  %v3757_v30 = vld [vmem:[%s4581_s3 + $0x198] sm:$0xff] }
 0x391   : > { %v981_v22 = vmul.f32 %v975_v6, %v3548_v33  ;;  %v962_v33 = vadd.f32 %v958_v28, %v3555_v10  ;;  %v3763_v6 = vld [vmem:[%s4581_s3 + $0x160] sm:$0xff] }
 0x392   : > { %v3835_v28 = vld [vmem:[%s4581_s3 + $0x100] sm:$0xff] }
 0x393   : > { %v3652_v25 = vadd.f32 %v982_v27, %v981_v22  ;;  %v966_v36 = vadd.f32 %v2374_v18, %v962_v33  ;;  %v3769_v27 = vld [vmem:[%s4581_s3 + $0x168] sm:$0xff]  ;;  %v3775_v22 = vld [vmem:[%s4581_s3 + $0x170] sm:$0xff]  ;;  %4796 = vst [vmem:[#allocation13_spill] sm:$0xff] %v3835_v28 }
 0x394   : > { %v3841_v33 = vld [vmem:[%s4581_s3 + $0x108] sm:$0xff]  ;;  %v3847_v18 = vld [vmem:[%s4581_s3 + $0x110] sm:$0xff] }
 0x395   : > { %984 = vadd.xlane.f32.xlu0 %v3652_v25  ;;  %v986_v15 = vmul.f32 %v3652_v25, %v3652_v25  ;;  %v976_v39 = vmul.f32 0.5, %v966_v36  ;;  %4797 = vst [vmem:[#allocation16_spill] sm:$0xff] %v3841_v33  ;;  %v3865_v36 = vld [vmem:[%s4581_s3 + $0xe8] sm:$0xff] }
 0x396   : > { %4798 = vst [vmem:[#allocation17_spill] sm:$0xff] %v3847_v18 }
 0x397   : > { %987 = vadd.xlane.f32.xlu1 %v986_v15  ;;  %v3781_v15 = vld [vmem:[%s4581_s3 + $0x178] sm:$0xff]  ;;  %4801 = vst [vmem:[#allocation21_spill] sm:$0xff] %v3865_v36 }
 0x408   : > { %v985_v16 = vpop.xlane.xlu0 %984 }
 0x409   : > { %v989_v21 = vmul.f32 0.0078125, %v985_v16  ;;  %v3787_v16 = vld [vmem:[%s4581_s3 + $0x140] sm:$0xff] }
 0x40a   : > { %v988_v7 = vpop.xlane.xlu1 %987 }
 0x40b   : > { %v991_v11 = vmul.f32 %v989_v21, %v989_v21  ;;  %v990_v12 = vmul.f32 0.0078125, %v988_v7  ;;  %v994_v42 = vsub.f32 %v3652_v25, %v989_v21  ;;  %v3793_v21 = vld [vmem:[%s4581_s3 + $0x148] sm:$0xff]  ;;  %v3799_v7 = vld [vmem:[%s4581_s3 + $0x150] sm:$0xff] }
 0x40d   : > { %v992_v19 = vsub.f32 %v990_v12, %v991_v11  ;;  %v3805_v11 = vld [vmem:[%s4581_s3 + $0x158] sm:$0xff]  ;;  %v3811_v12 = vld [vmem:[%s4581_s3 + $0x120] sm:$0xff] }
 0x40f   : > { %v993_v31 = vmax.f32 %v992_v19, 0.0  ;;  %v3817_v19 = vld [vmem:[%s4581_s3 + $0x128] sm:$0xff] }
 0x411   : > { %v995_v17 = vadd.f32 1e-05, %v993_v31  ;;  %v3823_v31 = vld [vmem:[%s4581_s3 + $0x130] sm:$0xff] }
 0x413   : > { %2495 = vrsqrt.f32 %v995_v17  ;;  %vm1002_vm10 = vweird.f32 %v995_v17 }
 0x414   : > { %2497 = vtanh.f32 %v976_v39  ;;  %v3883_v39 = vld [vmem:[%s4581_s3 + $0xc0] sm:$0xff] }
 0x415   : > { %4804 = vst [vmem:[#allocation19_spill] sm:$0xff] %v3883_v39 }
 0x419   : > { %v2496_v34 = vpop.eup %2495 }
 0x41a   : > { %v997_v35 = vmul.f32 %v2496_v34, %v995_v17  ;;  %vm1003_vm9 = vweird.f32 %v2496_v34  ;;  %v2498_v46 = vpop.eup %2497  ;;  %v3829_v17 = vld [vmem:[%s4581_s3 + $0x138] sm:$0xff] }
 0x41b   : > { %vm1004_vm11 = vmor %vm1002_vm10, %vm1003_vm9  ;;  %v978_v49 = vmul.f32 0.5, %v2498_v46  ;;  %4795 = vst [vmem:[#allocation12_spill] sm:$0xff] %v3829_v17  ;;  %v3925_v46 = vld [vmem:[%s4581_s3 + $0xb8] sm:$0xff] }
 0x41c   : > { %v998_v37 = vmul.f32 %v2496_v34, %v997_v35  ;;  %v3859_v35 = vld [vmem:[%s4581_s3 + $0xe0] sm:$0xff]  ;;  %4811 = vst [vmem:[#allocation26_spill] sm:$0xff] %v3925_v46 }
 0x41d   : > { %v979_v51 = vadd.f32 0.5, %v978_v49  ;;  %4800 = vst [vmem:[#allocation15_spill] sm:$0xff] %v3859_v35  ;;  %v3937_v49 = vld [vmem:[%s4581_s3 + $0x88] sm:$0xff] }
 0x41e   : > { %v999_v38 = vmul.f32 0.5, %v998_v37  ;;  %v3871_v37 = vld [vmem:[%s4581_s3 + $0xf0] sm:$0xff]  ;;  %4813 = vst [vmem:[#allocation32_spill] sm:$0xff] %v3937_v49 }
 0x41f   : > { %4802 = vst [vmem:[#allocation22_spill] sm:$0xff] %v3871_v37 }
 0x420   : > { %v1000_v40 = vsub.f32 1.5, %v999_v38  ;;  %v3877_v38 = vld [vmem:[%s4581_s3 + $0xf8] sm:$0xff] }
 0x421   : > { %4803 = vst [vmem:[#allocation18_spill] sm:$0xff] %v3877_v38 }
 0x422   : > { %v1001_v41 = vmul.f32 %v2496_v34, %v1000_v40  ;;  %v3889_v40 = vld [vmem:[%s4581_s3 + $0xc8] sm:$0xff] }
 0x423   : > { %4805 = vst [vmem:[#allocation24_spill] sm:$0xff] %v3889_v40 }
 0x424   : > { %v1005_v43 = vsel %vm1004_vm11, %v2496_v34, %v1001_v41  ;;  %v3853_v34 = vld [vmem:[%s4581_s3 + $0x118] sm:$0xff]  ;;  %v3895_v41 = vld [vmem:[%s4581_s3 + $0xd0] sm:$0xff] }
 0x425   : > { %v1006_v44 = vmul.f32 %v1005_v43, %v994_v42  ;;  %4799 = vst [vmem:[#allocation14_spill] sm:$0xff] %v3853_v34  ;;  %v3901_v42 = vld [vmem:[%s4581_s3 + $0xd8] sm:$0xff]  ;;  %v3907_v43 = vld [vmem:[%s4581_s3 + $0xa0] sm:$0xff] }
 0x426   : > { %4806 = vst [vmem:[#allocation25_spill] sm:$0xff] %v3895_v41 }
 0x427   : > { %v1007_v45 = vmul.f32 %v3564_v24, %v1006_v44  ;;  %4807 = vst [vmem:[#allocation20_spill] sm:$0xff] %v3901_v42  ;;  %v3913_v44 = vld [vmem:[%s4581_s3 + $0xa8] sm:$0xff] }
 0x428   : > { %4808 = vst [vmem:[#allocation23_spill] sm:$0xff] %v3907_v43 }
 0x429   : > { %v1008_v47 = vadd.f32 %v3569_v14, %v1007_v45  ;;  %4809 = vst [vmem:[#allocation28_spill] sm:$0xff] %v3913_v44  ;;  %v3919_v45 = vld [vmem:[%s4581_s3 + $0xb0] sm:$0xff] }
 0x42a   : > { %4810 = vst [vmem:[#allocation29_spill] sm:$0xff] %v3919_v45 }
 0x42b   : > { %2499 = vtanh.f32 %v1008_v47  ;;  %v3931_v47 = vld [vmem:[%s4581_s3 + $0x80] sm:$0xff] }
 0x42c   : > { %4812 = vst [vmem:[#allocation27_spill] sm:$0xff] %v3931_v47 }
 0x431   : > { %v2500_v53 = vpop.eup %2499 }
 0x432   : > { %v1010_v54 = vmul.f32 %v2500_v53, %v979_v51  ;;  %v3943_v51 = vld [vmem:[%s4581_s3 + $0x90] sm:$0xff]  ;;  %v3949_v53 = vld [vmem:[%s4581_s3 + $0x98] sm:$0xff] }
 0x433   : > { %4814 = vst [vmem:[#allocation33_spill] sm:$0xff] %v3943_v51 }
 0x434   : > { %2376 = vst [vmem:[%s2991_s13 + $0x8] sm:$0xff] %v1010_v54  ;;  %1033 = vmatmul.f32.vlgmr.msra.gmra.mxu0 %v1010_v54  ;;  %1053 = vmatmul.f32.vlgmr.msra.gmra.mxu1 %v1010_v54 }
 0x435   : > { %1073 = vmatmul.f32.vlgmr.msra.gmra.mxu2 %v1010_v54  ;;  %1093 = vmatmul.f32.vlgmr.msra.gmra.mxu3 %v1010_v54  ;;  %4815 = vst [vmem:[#allocation30_spill] sm:$0xff] %v3949_v53  ;;  %v3955_v54 = vld [vmem:[%s4581_s3 + $0x60] sm:$0xff] }
 0x436   : > { %1385 = vmatpush.msra.mxu0 %v3667_v55  ;;  %1405 = vmatpush.msra.mxu1 %v3673_v57  ;;  %4816 = vst [vmem:[#allocation31_spill] sm:$0xff] %v3955_v54 }
 0x437   : > { %1425 = vmatpush.msra.mxu2 %v3679_v58  ;;  %1445 = vmatpush.msra.mxu3 %v3685_v59 }
 0x438   : > { %1386 = vmatpush.msra.mxu0 %v3691_v60  ;;  %1406 = vmatpush.msra.mxu1 %v3697_v61 }
 0x439   : > { %1426 = vmatpush.msra.mxu2 %v3703_v63  ;;  %1446 = vmatpush.msra.mxu3 %v3709_v1 }
 0x43a   : > { %1387 = vmatpush.msra.mxu0 %v3715_v2  ;;  %1407 = vmatpush.msra.mxu1 %v3721_v3 }
 0x43b   : > { %1427 = vmatpush.msra.mxu2 %v3727_v5  ;;  %1447 = vmatpush.msra.mxu3 %v3733_v8 }
 0x43c   : > { %1388 = vmatpush.msra.mxu0 %v3739_v9  ;;  %1408 = vmatpush.msra.mxu1 %v3745_v23 }
 0x43d   : > { %1428 = vmatpush.msra.mxu2 %v3751_v32  ;;  %1448 = vmatpush.msra.mxu3 %v3757_v30 }
 0x43e   : > { %1389 = vmatpush.msra.mxu0 %v3763_v6  ;;  %1409 = vmatpush.msra.mxu1 %v3769_v27 }
 0x43f   : > { %1429 = vmatpush.msra.mxu2 %v3775_v22  ;;  %1449 = vmatpush.msra.mxu3 %v3781_v15 }
 0x440   : > { %1390 = vmatpush.msra.mxu0 %v3787_v16  ;;  %1410 = vmatpush.msra.mxu1 %v3793_v21 }
 0x441   : > { %1430 = vmatpush.msra.mxu2 %v3799_v7  ;;  %1450 = vmatpush.msra.mxu3 %v3805_v11 }
 0x442   : > { %1391 = vmatpush.msra.mxu0 %v3811_v12  ;;  %1411 = vmatpush.msra.mxu1 %v3817_v19 }
 0x443   : > { %1431 = vmatpush.msra.mxu2 %v3823_v31  ;;  %1451 = vmatpush.msra.mxu3 %v3829_v17 }
 0x444   : > { %1392 = vmatpush.msra.mxu0 %v3835_v28  ;;  %1412 = vmatpush.msra.mxu1 %v3841_v33 }
 0x445   : > { %1432 = vmatpush.msra.mxu2 %v3847_v18  ;;  %1452 = vmatpush.msra.mxu3 %v3853_v34 }
 0x446   : > { %1393 = vmatpush.msra.mxu0 %v3859_v35  ;;  %1413 = vmatpush.msra.mxu1 %v3865_v36 }
 0x447   : > { %1433 = vmatpush.msra.mxu2 %v3871_v37  ;;  %1453 = vmatpush.msra.mxu3 %v3877_v38 }
 0x448   : > { %1394 = vmatpush.msra.mxu0 %v3883_v39  ;;  %1414 = vmatpush.msra.mxu1 %v3889_v40 }
 0x449   : > { %1434 = vmatpush.msra.mxu2 %v3895_v41  ;;  %1454 = vmatpush.msra.mxu3 %v3901_v42 }
 0x44a   : > { %1395 = vmatpush.msra.mxu0 %v3907_v43  ;;  %1415 = vmatpush.msra.mxu1 %v3913_v44 }
 0x44b   : > { %1435 = vmatpush.msra.mxu2 %v3919_v45  ;;  %1455 = vmatpush.msra.mxu3 %v3925_v46 }
 0x44c   : > { %1396 = vmatpush.msra.mxu0 %v3931_v47  ;;  %1416 = vmatpush.msra.mxu1 %v3937_v49  ;;  %v3961_v49 = vld [vmem:[%s4581_s3 + $0x68] sm:$0xff] }
 0x44d   : > { %1436 = vmatpush.msra.mxu2 %v3943_v51  ;;  %1456 = vmatpush.msra.mxu3 %v3949_v53  ;;  %4817 = vst [vmem:[#allocation36_spill] sm:$0xff] %v3961_v49  ;;  %v3967_v51 = vld [vmem:[%s4581_s3 + $0x70] sm:$0xff]  ;;  %v3973_v53 = vld [vmem:[%s4581_s3 + $0x78] sm:$0xff] }
 0x44e   : > { %1397 = vmatpush.msra.mxu0 %v3955_v54  ;;  %1417 = vmatpush.msra.mxu1 %v3961_v49  ;;  %4818 = vst [vmem:[#allocation37_spill] sm:$0xff] %v3967_v51  ;;  %v3979_v54 = vld [vmem:[%s4581_s3 + $0x40] sm:$0xff]  ;;  %v3985_v49 = vld [vmem:[%s4581_s3 + $0x48] sm:$0xff] }
 0x44f   : > { %1437 = vmatpush.msra.mxu2 %v3967_v51  ;;  %4819 = vst [vmem:[#allocation34_spill] sm:$0xff] %v3973_v53  ;;  %1457 = vmatpush.msra.mxu3 %v3973_v53  ;;  %v3991_v51 = vld [vmem:[%s4581_s3 + $0x50] sm:$0xff]  ;;  %v3997_v53 = vld [vmem:[%s4581_s3 + $0x58] sm:$0xff] }
 0x450   : > { %4820 = vst [vmem:[#allocation35_spill] sm:$0xff] %v3979_v54  ;;  %1398 = vmatpush.msra.mxu0 %v3979_v54  ;;  %1418 = vmatpush.msra.mxu1 %v3985_v49  ;;  %v4003_v54 = vld [vmem:[%s4581_s3 + $0x20] sm:$0xff] }
 0x451   : > { %4821 = vst [vmem:[#allocation40_spill] sm:$0xff] %v3985_v49  ;;  %1438 = vmatpush.msra.mxu2 %v3991_v51  ;;  %1458 = vmatpush.msra.mxu3 %v3997_v53  ;;  %v4009_v49 = vld [vmem:[%s4581_s3 + $0x28] sm:$0xff] }
 0x452   : > { %4822 = vst [vmem:[#allocation42_spill] sm:$0xff] %v3991_v51  ;;  %1399 = vmatpush.msra.mxu0 %v4003_v54  ;;  %1419 = vmatpush.msra.mxu1 %v4009_v49  ;;  %v4015_v51 = vld [vmem:[%s4581_s3 + $0x30] sm:$0xff] }
 0x453   : > { %4823 = vst [vmem:[#allocation43_spill] sm:$0xff] %v3997_v53  ;;  %1439 = vmatpush.msra.mxu2 %v4015_v51  ;;  %v4021_v53 = vld [vmem:[%s4581_s3 + $0x38] sm:$0xff] }
 0x454   : > { %4824 = vst [vmem:[#allocation44_spill] sm:$0xff] %v4003_v54  ;;  %1459 = vmatpush.msra.mxu3 %v4021_v53  ;;  %v4027_v54 = vld [vmem:[%s4581_s3] sm:$0xff] }
 0x455   : > { %4825 = vst [vmem:[#allocation45_spill] sm:$0xff] %v4009_v49  ;;  %1400 = vmatpush.msra.mxu0 %v4027_v54  ;;  %v4033_v49 = vld [vmem:[%s4581_s3 + $0x8] sm:$0xff] }
 0x456   : > { %4826 = vst [vmem:[#allocation46_spill] sm:$0xff] %v4015_v51  ;;  %1420 = vmatpush.msra.mxu1 %v4033_v49  ;;  %v4039_v51 = vld [vmem:[%s4581_s3 + $0x10] sm:$0xff] }
 0x457   : > { %4827 = vst [vmem:[#allocation47_spill] sm:$0xff] %v4021_v53  ;;  %1440 = vmatpush.msra.mxu2 %v4039_v51  ;;  %v4045_v53 = vld [vmem:[%s4581_s3 + $0x18] sm:$0xff] }
 0x458   : > { %4828 = vst [vmem:[#allocation48_spill] sm:$0xff] %v4027_v54  ;;  %1460 = vmatpush.msra.mxu3 %v4045_v53 }
 0x459   : > { %4829 = vst [vmem:[#allocation49_spill] sm:$0xff] %v4033_v49 }
 0x45a   : > { %4830 = vst [vmem:[#allocation50_spill] sm:$0xff] %v4039_v51 }
 0x45b   : > { %4831 = vst [vmem:[#allocation51_spill] sm:$0xff] %v4045_v53 }
 0x4b1   : > { %v1034_v54 = vpop.f32.mrf.mxu0  ;;  %v1054_v47 = vpop.f32.mrf.mxu1 }
 0x4b2   : > { %v1035_v46 = vadd.f32 %v1034_v54, %v4787_v62  ;;  %v1055_v49 = vadd.f32 %v1054_v47, %v4788_v0 }
 0x4b4   : > { %v1107_v45 = vmul.f32 %v1035_v46, %v1035_v46  ;;  %v1108_v44 = vmul.f32 %v1055_v49, %v1055_v49  ;;  %v1102_v41 = vadd.f32 %v1055_v49, %v1035_v46 }
 0x4b6   : > { %v1111_v37 = vadd.f32 %v1108_v44, %v1107_v45 }
 0x4b8   : > { %v1074_v43 = vpop.f32.mrf.mxu2  ;;  %v1094_v42 = vpop.f32.mrf.mxu3 }
 0x4b9   : > { %v1075_v51 = vadd.f32 %v1074_v43, %v4789_v4  ;;  %v1095_v40 = vadd.f32 %v1094_v42, %v4790_v26 }
 0x4bb   : > { %v1109_v39 = vmul.f32 %v1075_v51, %v1075_v51  ;;  %v1103_v38 = vadd.f32 %v1102_v41, %v1075_v51  ;;  %v1110_v53 = vmul.f32 %v1095_v40, %v1095_v40 }
 0x4bd   : > { %v1104_v36 = vadd.f32 %v1103_v38, %v1095_v40  ;;  %v1112_v35 = vadd.f32 %v1111_v37, %v1109_v39 }
 0x4bf   : > { %1105 = vadd.xlane.f32.xlu2 %v1104_v36  ;;  %v1113_v34 = vadd.f32 %v1112_v35, %v1110_v53  ;;  %v2377_v53 = vld [vmem:[%s2989_s21 + $0x40] sm:$0xff] }
 0x4c1   : > { %1114 = vadd.xlane.f32.xlu0 %v1113_v34 }
 0x532   : > { %v1106_v54 = vpop.xlane.xlu2 %1105 }
 0x533   : > { %v1116_v47 = vmul.f32 0.001953125, %v1106_v54  ;;  %v2378_v54 = vld [vmem:[%s2989_s21 + $0x48] sm:$0xff] }
 0x534   : > { %v1115_v0 = vpop.xlane.xlu0 %1114 }
 0x535   : > { %v1117_v62 = vmul.f32 0.001953125, %v1115_v0  ;;  %v1118_v18 = vmul.f32 %v1116_v47, %v1116_v47  ;;  %v1121_v34 = vsub.f32 %v1035_v46, %v1116_v47  ;;  %v1122_v35 = vsub.f32 %v1055_v49, %v1116_v47 }
 0x536   : > { %v1123_v36 = vsub.f32 %v1075_v51, %v1116_v47  ;;  %v1124_v38 = vsub.f32 %v1095_v40, %v1116_v47  ;;  %v2380_v47 = vld [vmem:[%s2989_s21 + $0x58] sm:$0xff] }
 0x537   : > { %v1119_v33 = vsub.f32 %v1117_v62, %v1118_v18 }
 0x539   : > { %v1120_v28 = vmax.f32 %v1119_v33, 0.0 }
 0x53b   : > { %v1125_v17 = vadd.f32 1e-05, %v1120_v28 }
 0x53d   : > { %2501 = vrsqrt.f32 %v1125_v17  ;;  %vm1132_vm13 = vweird.f32 %v1125_v17 }
 0x543   : > { %v2502_v43 = vpop.eup %2501 }
 0x544   : > { %v1127_v42 = vmul.f32 %v2502_v43, %v1125_v17  ;;  %vm1133_vm12 = vweird.f32 %v2502_v43 }
 0x545   : > { %vm1134_vm14 = vmor %vm1132_vm13, %vm1133_vm12 }
 0x546   : > { %v1128_v26 = vmul.f32 %v2502_v43, %v1127_v42 }
 0x548   : > { %v1129_v41 = vmul.f32 0.5, %v1128_v26 }
 0x54a   : > { %v1130_v44 = vsub.f32 1.5, %v1129_v41 }
 0x54c   : > { %v1131_v37 = vmul.f32 %v2502_v43, %v1130_v44 }
 0x54e   : > { %v1135_v62 = vsel %vm1134_vm14, %v2502_v43, %v1131_v37 }
 0x54f   : > { %v1136_v0 = vmul.f32 %v1135_v62, %v1121_v34  ;;  %v1137_v28 = vmul.f32 %v1135_v62, %v1122_v35  ;;  %v1138_v33 = vmul.f32 %v1135_v62, %v1123_v36  ;;  %v1139_v18 = vmul.f32 %v1135_v62, %v1124_v38 }
 0x551   : > { %v1140_v39 = vmul.f32 %v1136_v0, %v4791_v48  ;;  %v1141_v26 = vmul.f32 %v1137_v28, %v4792_v50  ;;  %v1143_v45 = vmul.f32 %v1139_v18, %v4793_v52 }
 0x553   : > { %v1144_v17 = vadd.f32 %v1140_v39, %v4794_v56  ;;  %v1145_v46 = vadd.f32 %v1141_v26, %v3535_v29  ;;  %v1147_v51 = vadd.f32 %v1143_v45, %v3540_v20 }
 0x555   : > { %v1148_v40 = vadd.f32 %v2377_v53, %v1144_v17  ;;  %v1149_v49 = vadd.f32 %v2378_v54, %v1145_v46  ;;  %v1151_v41 = vadd.f32 %v2380_v47, %v1147_v51  ;;  %v1142_v51 = vmul.f32 %v1138_v33, %v3553_v13  ;;  %v2379_v47 = vld [vmem:[%s2989_s21 + $0x50] sm:$0xff] }
 0x557   : > { %v1152_v43 = vmul.f32 0.5, %v1148_v40  ;;  %v1156_v42 = vmul.f32 0.5, %v1149_v49 }
 0x559   : > { %2503 = vtanh.f32 %v1152_v43 }
 0x55a   : > { %2505 = vtanh.f32 %v1156_v42 }
 0x55b   : > { %2507 = vtanh.f32 %v1151_v41 }
 0x55f   : > { %v2504_v44 = vpop.eup %2503 }
 0x560   : > { %v2506_v37 = vpop.eup %2505  ;;  %v1154_v34 = vmul.f32 0.5, %v2504_v44 }
 0x561   : > { %v1158_v35 = vmul.f32 0.5, %v2506_v37  ;;  %v2508_v38 = vpop.eup %2507 }
 0x562   : > { %v1155_v36 = vadd.f32 0.5, %v1154_v34 }
 0x563   : > { %v1159_v62 = vadd.f32 0.5, %v1158_v35 }
 0x564   : > { %v1166_v0 = vmul.f32 %v2508_v38, %v1155_v36 }
 0x565   : > { %v1165_v28 = vmul.f32 %v1159_v62, %v3652_v25  ;;  %v1146_v25 = vadd.f32 %v1142_v51, %v3555_v10  ;;  %v4838_v51 = vld [vmem:[#allocation21_spill] sm:$0xff] }
 0x567   : > { %v4062_v18 = vadd.f32 %v1166_v0, %v1165_v28  ;;  %v1150_v41 = vadd.f32 %v2379_v47, %v1146_v25  ;;  %v4839_v25 = vld [vmem:[#allocation22_spill] sm:$0xff] }
 0x568   : > { %v4840_v47 = vld [vmem:[#allocation18_spill] sm:$0xff] }
 0x569   : > { %1168 = vadd.xlane.f32.xlu1 %v4062_v18  ;;  %v1170_v39 = vmul.f32 %v4062_v18, %v4062_v18  ;;  %v1160_v34 = vmul.f32 0.5, %v1150_v41  ;;  %v4843_v41 = vld [vmem:[#allocation25_spill] sm:$0xff] }
 0x56b   : > { %1171 = vadd.xlane.f32.xlu2 %v1170_v39 }
 0x5dc   : > { %v1169_v26 = vpop.xlane.xlu1 %1168 }
 0x5dd   : > { %v1173_v45 = vmul.f32 0.0078125, %v1169_v26 }
 0x5de   : > { %v1172_v53 = vpop.xlane.xlu2 %1171 }
 0x5df   : > { %v1175_v54 = vmul.f32 %v1173_v45, %v1173_v45  ;;  %v1174_v17 = vmul.f32 0.0078125, %v1172_v53  ;;  %v1178_v38 = vsub.f32 %v4062_v18, %v1173_v45  ;;  %v4834_v45 = vld [vmem:[#allocation16_spill] sm:$0xff] }
 0x5e1   : > { %v1176_v46 = vsub.f32 %v1174_v17, %v1175_v54 }
 0x5e3   : > { %v1177_v40 = vmax.f32 %v1176_v46, 0.0  ;;  %v4835_v46 = vld [vmem:[#allocation17_spill] sm:$0xff] }
 0x5e5   : > { %v1179_v49 = vadd.f32 1e-05, %v1177_v40  ;;  %v4836_v40 = vld [vmem:[#allocation14_spill] sm:$0xff] }
 0x5e7   : > { %2509 = vrsqrt.f32 %v1179_v49  ;;  %vm1186_vm0 = vweird.f32 %v1179_v49 }
 0x5e8   : > { %2511 = vtanh.f32 %v1160_v34  ;;  %v4846_v34 = vld [vmem:[#allocation28_spill] sm:$0xff] }
 0x5ed   : > { %v2510_v43 = vpop.eup %2509 }
 0x5ee   : > { %v1181_v42 = vmul.f32 %v2510_v43, %v1179_v49  ;;  %vm1187_vm15 = vweird.f32 %v2510_v43  ;;  %v2512_v28 = vpop.eup %2511  ;;  %v4837_v49 = vld [vmem:[#allocation15_spill] sm:$0xff] }
 0x5ef   : > { %vm1188_vm1 = vmor %vm1186_vm0, %vm1187_vm15  ;;  %v1162_v26 = vmul.f32 0.5, %v2512_v28  ;;  %v4853_v28 = vld [vmem:[#allocation31_spill] sm:$0xff] }
 0x5f0   : > { %v1182_v44 = vmul.f32 %v2510_v43, %v1181_v42  ;;  %v4842_v42 = vld [vmem:[#allocation24_spill] sm:$0xff] }
 0x5f1   : > { %v1163_v53 = vadd.f32 0.5, %v1162_v26  ;;  %v4855_v26 = vld [vmem:[#allocation37_spill] sm:$0xff] }
 0x5f2   : > { %v1183_v37 = vmul.f32 0.5, %v1182_v44  ;;  %v4844_v44 = vld [vmem:[#allocation20_spill] sm:$0xff] }
 0x5f4   : > { %v1184_v35 = vsub.f32 1.5, %v1183_v37  ;;  %v4845_v37 = vld [vmem:[#allocation23_spill] sm:$0xff] }
 0x5f6   : > { %v1185_v36 = vmul.f32 %v2510_v43, %v1184_v35  ;;  %v4847_v35 = vld [vmem:[#allocation29_spill] sm:$0xff] }
 0x5f8   : > { %v1189_v33 = vsel %vm1188_vm1, %v2510_v43, %v1185_v36  ;;  %v4841_v43 = vld [vmem:[#allocation19_spill] sm:$0xff]  ;;  %v4848_v36 = vld [vmem:[#allocation26_spill] sm:$0xff] }
 0x5f9   : > { %v1190_v62 = vmul.f32 %v1189_v33, %v1178_v38  ;;  %v4849_v38 = vld [vmem:[#allocation27_spill] sm:$0xff]  ;;  %v4850_v33 = vld [vmem:[#allocation32_spill] sm:$0xff] }
 0x5fb   : > { %v1191_v0 = vmul.f32 %v3564_v24, %v1190_v62  ;;  %v4832_v24 = vld [vmem:[#allocation12_spill] sm:$0xff]  ;;  %v4851_v62 = vld [vmem:[#allocation33_spill] sm:$0xff] }
 0x5fd   : > { %v1192_v39 = vadd.f32 %v3569_v14, %v1191_v0  ;;  %v4833_v14 = vld [vmem:[#allocation13_spill] sm:$0xff]  ;;  %v4852_v0 = vld [vmem:[#allocation30_spill] sm:$0xff] }
 0x5ff   : > { %2513 = vtanh.f32 %v1192_v39  ;;  %v4854_v39 = vld [vmem:[#allocation36_spill] sm:$0xff] }
 0x605   : > { %v2514_v54 = vpop.eup %2513 }
 0x606   : > { %v1194_v17 = vmul.f32 %v2514_v54, %v1163_v53  ;;  %v4856_v53 = vld [vmem:[#allocation34_spill] sm:$0xff]  ;;  %v4857_v54 = vld [vmem:[#allocation35_spill] sm:$0xff] }
 0x608   : > { %2381 = vst [vmem:[%s2991_s13 + $0x10] sm:$0xff] %v1194_v17  ;;  %1217 = vmatmul.f32.vlgmr.msrb.gmra.mxu0 %v1194_v17  ;;  %1237 = vmatmul.f32.vlgmr.msrb.gmra.mxu1 %v1194_v17 }
 0x609   : > { %1257 = vmatmul.f32.vlgmr.msrb.gmra.mxu2 %v1194_v17  ;;  %1277 = vmatmul.f32.vlgmr.msrb.gmra.mxu3 %v1194_v17  ;;  %v4858_v17 = vld [vmem:[#allocation40_spill] sm:$0xff] }
 0x60a   : > { %1569 = vmatpush.msrb.mxu0 %v3667_v55  ;;  %1589 = vmatpush.msrb.mxu1 %v3673_v57 }
 0x60b   : > { %1609 = vmatpush.msrb.mxu2 %v3679_v58  ;;  %1629 = vmatpush.msrb.mxu3 %v3685_v59 }
 0x60c   : > { %1570 = vmatpush.msrb.mxu0 %v3691_v60  ;;  %1590 = vmatpush.msrb.mxu1 %v3697_v61 }
 0x60d   : > { %1610 = vmatpush.msrb.mxu2 %v3703_v63  ;;  %1630 = vmatpush.msrb.mxu3 %v3709_v1 }
 0x60e   : > { %1571 = vmatpush.msrb.mxu0 %v3715_v2  ;;  %1591 = vmatpush.msrb.mxu1 %v3721_v3 }
 0x60f   : > { %1611 = vmatpush.msrb.mxu2 %v3727_v5  ;;  %1631 = vmatpush.msrb.mxu3 %v3733_v8 }
 0x610   : > { %1572 = vmatpush.msrb.mxu0 %v3739_v9  ;;  %1592 = vmatpush.msrb.mxu1 %v3745_v23 }
 0x611   : > { %1612 = vmatpush.msrb.mxu2 %v3751_v32  ;;  %1632 = vmatpush.msrb.mxu3 %v3757_v30 }
 0x612   : > { %1573 = vmatpush.msrb.mxu0 %v3763_v6  ;;  %1593 = vmatpush.msrb.mxu1 %v3769_v27 }
 0x613   : > { %1613 = vmatpush.msrb.mxu2 %v3775_v22  ;;  %1633 = vmatpush.msrb.mxu3 %v3781_v15 }
 0x614   : > { %1574 = vmatpush.msrb.mxu0 %v3787_v16  ;;  %1594 = vmatpush.msrb.mxu1 %v3793_v21 }
 0x615   : > { %1614 = vmatpush.msrb.mxu2 %v3799_v7  ;;  %1634 = vmatpush.msrb.mxu3 %v3805_v11 }
 0x616   : > { %1575 = vmatpush.msrb.mxu0 %v3811_v12  ;;  %1595 = vmatpush.msrb.mxu1 %v3817_v19 }
 0x617   : > { %1615 = vmatpush.msrb.mxu2 %v3823_v31  ;;  %1635 = vmatpush.msrb.mxu3 %v4832_v24 }
 0x618   : > { %1576 = vmatpush.msrb.mxu0 %v4833_v14  ;;  %1596 = vmatpush.msrb.mxu1 %v4834_v45 }
 0x619   : > { %1616 = vmatpush.msrb.mxu2 %v4835_v46  ;;  %1636 = vmatpush.msrb.mxu3 %v4836_v40 }
 0x61a   : > { %1577 = vmatpush.msrb.mxu0 %v4837_v49  ;;  %1597 = vmatpush.msrb.mxu1 %v4838_v51 }
 0x61b   : > { %1617 = vmatpush.msrb.mxu2 %v4839_v25  ;;  %1637 = vmatpush.msrb.mxu3 %v4840_v47 }
 0x61c   : > { %1578 = vmatpush.msrb.mxu0 %v4841_v43  ;;  %1598 = vmatpush.msrb.mxu1 %v4842_v42 }
 0x61d   : > { %1618 = vmatpush.msrb.mxu2 %v4843_v41  ;;  %1638 = vmatpush.msrb.mxu3 %v4844_v44 }
 0x61e   : > { %1579 = vmatpush.msrb.mxu0 %v4845_v37  ;;  %1599 = vmatpush.msrb.mxu1 %v4846_v34  ;;  %v4870_v34 = vld [vmem:[#allocation39_spill] sm:$0xff] }
 0x61f   : > { %1619 = vmatpush.msrb.mxu2 %v4847_v35  ;;  %1639 = vmatpush.msrb.mxu3 %v4848_v36  ;;  %v4859_v36 = vld [vmem:[#allocation42_spill] sm:$0xff] }
 0x620   : > { %1580 = vmatpush.msrb.mxu0 %v4849_v38  ;;  %1600 = vmatpush.msrb.mxu1 %v4850_v33  ;;  %v4860_v38 = vld [vmem:[#allocation43_spill] sm:$0xff]  ;;  %v4861_v33 = vld [vmem:[#allocation44_spill] sm:$0xff]  ;;  %v4869_v35 = vld [vmem:[#allocation38_spill] sm:$0xff] }
 0x621   : > { %1620 = vmatpush.msrb.mxu2 %v4851_v62  ;;  %1640 = vmatpush.msrb.mxu3 %v4852_v0  ;;  %v4862_v62 = vld [vmem:[#allocation45_spill] sm:$0xff]  ;;  %v4863_v0 = vld [vmem:[#allocation46_spill] sm:$0xff] }
 0x622   : > { %1581 = vmatpush.msrb.mxu0 %v4853_v28  ;;  %1601 = vmatpush.msrb.mxu1 %v4854_v39  ;;  %v4864_v28 = vld [vmem:[#allocation47_spill] sm:$0xff]  ;;  %v4865_v39 = vld [vmem:[#allocation48_spill] sm:$0xff] }
 0x623   : > { %1621 = vmatpush.msrb.mxu2 %v4855_v26  ;;  %1641 = vmatpush.msrb.mxu3 %v4856_v53  ;;  %v4866_v26 = vld [vmem:[#allocation49_spill] sm:$0xff]  ;;  %v4867_v53 = vld [vmem:[#allocation50_spill] sm:$0xff] }
 0x624   : > { %1582 = vmatpush.msrb.mxu0 %v4857_v54  ;;  %1602 = vmatpush.msrb.mxu1 %v4858_v17  ;;  %v4868_v54 = vld [vmem:[#allocation51_spill] sm:$0xff] }
 0x625   : > { %1622 = vmatpush.msrb.mxu2 %v4859_v36  ;;  %1642 = vmatpush.msrb.mxu3 %v4860_v38 }
 0x626   : > { %1583 = vmatpush.msrb.mxu0 %v4861_v33  ;;  %1603 = vmatpush.msrb.mxu1 %v4862_v62 }
 0x627   : > { %1623 = vmatpush.msrb.mxu2 %v4863_v0  ;;  %1643 = vmatpush.msrb.mxu3 %v4864_v28 }
 0x628   : > { %1584 = vmatpush.msrb.mxu0 %v4865_v39  ;;  %1604 = vmatpush.msrb.mxu1 %v4866_v26  ;;  %v4871_v39 = vld [vmem:[#allocation41_spill] sm:$0xff] }
 0x629   : > { %1624 = vmatpush.msrb.mxu2 %v4867_v53  ;;  %1644 = vmatpush.msrb.mxu3 %v4868_v54 }
 0x685   : > { %v1218_v17 = vpop.f32.mrf.mxu0  ;;  %v1238_v36 = vpop.f32.mrf.mxu1 }
 0x686   : > { %v1219_v38 = vadd.f32 %v1218_v17, %v4869_v35  ;;  %v1239_v33 = vadd.f32 %v1238_v36, %v4870_v34 }
 0x688   : > { %v1291_v37 = vmul.f32 %v1219_v38, %v1219_v38  ;;  %v1292_v62 = vmul.f32 %v1239_v33, %v1239_v33  ;;  %v1286_v41 = vadd.f32 %v1239_v33, %v1219_v38 }
 0x68a   : > { %v1295_v53 = vadd.f32 %v1292_v62, %v1291_v37 }
 0x68c   : > { %v1258_v44 = vpop.f32.mrf.mxu2  ;;  %v1278_v0 = vpop.f32.mrf.mxu3 }
 0x68d   : > { %v1259_v28 = vadd.f32 %v1258_v44, %v4789_v4  ;;  %v1279_v42 = vadd.f32 %v1278_v0, %v4871_v39 }
 0x68f   : > { %v1293_v26 = vmul.f32 %v1259_v28, %v1259_v28  ;;  %v1287_v43 = vadd.f32 %v1286_v41, %v1259_v28  ;;  %v1294_v54 = vmul.f32 %v1279_v42, %v1279_v42 }
 0x691   : > { %v1288_v47 = vadd.f32 %v1287_v43, %v1279_v42  ;;  %v1296_v25 = vadd.f32 %v1295_v53, %v1293_v26 }
 0x693   : > { %1289 = vadd.xlane.f32.xlu0 %v1288_v47  ;;  %v1297_v51 = vadd.f32 %v1296_v25, %v1294_v54  ;;  %v2382_v54 = vld [vmem:[%s2989_s21 + $0x60] sm:$0xff] }
 0x695   : > { %1298 = vadd.xlane.f32.xlu1 %v1297_v51 }
 0x706   : > { %v1290_v17 = vpop.xlane.xlu0 %1289 }
 0x707   : > { %v1300_v36 = vmul.f32 0.001953125, %v1290_v17  ;;  %v2383_v17 = vld [vmem:[%s2989_s21 + $0x68] sm:$0xff] }
 0x708   : > { %v1299_v34 = vpop.xlane.xlu1 %1298 }
 0x709   : > { %v1301_v35 = vmul.f32 0.001953125, %v1299_v34  ;;  %v1302_v49 = vmul.f32 %v1300_v36, %v1300_v36  ;;  %v1305_v51 = vsub.f32 %v1219_v38, %v1300_v36  ;;  %v1306_v25 = vsub.f32 %v1239_v33, %v1300_v36 }
 0x70a   : > { %v1307_v47 = vsub.f32 %v1259_v28, %v1300_v36  ;;  %v1308_v62 = vsub.f32 %v1279_v42, %v1300_v36  ;;  %v2385_v36 = vld [vmem:[%s2989_s21 + $0x78] sm:$0xff] }
 0x70b   : > { %v1303_v40 = vsub.f32 %v1301_v35, %v1302_v49 }
 0x70d   : > { %v1304_v46 = vmax.f32 %v1303_v40, 0.0 }
 0x70f   : > { %v1309_v45 = vadd.f32 1e-05, %v1304_v46 }
 0x711   : > { %2515 = vrsqrt.f32 %v1309_v45  ;;  %vm1316_vm3 = vweird.f32 %v1309_v45 }
 0x717   : > { %v2516_v44 = vpop.eup %2515 }
 0x718   : > { %v1311_v0 = vmul.f32 %v2516_v44, %v1309_v45  ;;  %vm1317_vm2 = vweird.f32 %v2516_v44 }
 0x719   : > { %vm1318_vm4 = vmor %vm1316_vm3, %vm1317_vm2 }
 0x71a   : > { %v1312_v39 = vmul.f32 %v2516_v44, %v1311_v0 }
 0x71c   : > { %v1313_v41 = vmul.f32 0.5, %v1312_v39 }
 0x71e   : > { %v1314_v37 = vsub.f32 1.5, %v1313_v41 }
 0x720   : > { %v1315_v43 = vmul.f32 %v2516_v44, %v1314_v37 }
 0x722   : > { %v1319_v49 = vsel %vm1318_vm4, %v2516_v44, %v1315_v43 }
 0x723   : > { %v1320_v40 = vmul.f32 %v1319_v49, %v1305_v51  ;;  %v1321_v46 = vmul.f32 %v1319_v49, %v1306_v25  ;;  %v1322_v34 = vmul.f32 %v1319_v49, %v1307_v47  ;;  %v1323_v35 = vmul.f32 %v1319_v49, %v1308_v62 }
 0x725   : > { %v1324_v26 = vmul.f32 %v1320_v40, %v4791_v48  ;;  %v1325_v39 = vmul.f32 %v1321_v46, %v4792_v50  ;;  %v1327_v53 = vmul.f32 %v1323_v35, %v4793_v52 }
 0x727   : > { %v1328_v45 = vadd.f32 %v1324_v26, %v4794_v56  ;;  %v1329_v38 = vadd.f32 %v1325_v39, %v3535_v29  ;;  %v1331_v28 = vadd.f32 %v1327_v53, %v3540_v20 }
 0x729   : > { %v1332_v42 = vadd.f32 %v2382_v54, %v1328_v45  ;;  %v1333_v33 = vadd.f32 %v2383_v17, %v1329_v38  ;;  %v1335_v41 = vadd.f32 %v2385_v36, %v1331_v28  ;;  %v1326_v28 = vmul.f32 %v1322_v34, %v3553_v13  ;;  %v2384_v36 = vld [vmem:[%s2989_s21 + $0x70] sm:$0xff] }
 0x72b   : > { %v1336_v44 = vmul.f32 0.5, %v1332_v42  ;;  %v1340_v0 = vmul.f32 0.5, %v1333_v33 }
 0x72d   : > { %2517 = vtanh.f32 %v1336_v44 }
 0x72e   : > { %2519 = vtanh.f32 %v1340_v0 }
 0x72f   : > { %2521 = vtanh.f32 %v1335_v41 }
 0x733   : > { %v2518_v37 = vpop.eup %2517 }
 0x734   : > { %v2520_v43 = vpop.eup %2519  ;;  %v1338_v51 = vmul.f32 0.5, %v2518_v37 }
 0x735   : > { %v1342_v25 = vmul.f32 0.5, %v2520_v43  ;;  %v2522_v62 = vpop.eup %2521 }
 0x736   : > { %v1339_v47 = vadd.f32 0.5, %v1338_v51 }
 0x737   : > { %v1343_v49 = vadd.f32 0.5, %v1342_v25 }
 0x738   : > { %v1350_v40 = vmul.f32 %v2522_v62, %v1339_v47 }
 0x739   : > { %v1349_v46 = vmul.f32 %v1343_v49, %v4062_v18  ;;  %v1330_v18 = vadd.f32 %v1326_v28, %v3555_v10  ;;  %v4903_v28 = vld [vmem:[#allocation48_spill] sm:$0xff] }
 0x73b   : > { %v4152_v35 = vadd.f32 %v1350_v40, %v1349_v46  ;;  %v1334_v41 = vadd.f32 %v2384_v36, %v1330_v18  ;;  %v4164_v40 = vld [vmem:[%s4585_s7] ss:$0 sm:$0xff]  ;;  %v4904_v18 = vld [vmem:[#allocation49_spill] sm:$0xff] }
 0x73c   : > { %v4905_v36 = vld [vmem:[#allocation50_spill] sm:$0xff] }
 0x73d   : > { %1352 = vadd.xlane.f32.xlu2 %v4152_v35  ;;  %v1354_v26 = vmul.f32 %v4152_v35, %v4152_v35  ;;  %v1344_v51 = vmul.f32 0.5, %v1334_v41 }
 0x73f   : > { %1355 = vadd.xlane.f32.xlu0 %v1354_v26 }
 0x7b0   : > { %v1353_v39 = vpop.xlane.xlu2 %1352 }
 0x7b1   : > { %v1357_v53 = vmul.f32 0.0078125, %v1353_v39  ;;  %v4170_v39 = vld [vmem:[%s4586_s8] ss:$0 sm:$0xff] }
 0x7b2   : > { %v1356_v54 = vpop.xlane.xlu0 %1355 }
 0x7b3   : > { %v1359_v17 = vmul.f32 %v1357_v53, %v1357_v53  ;;  %v1358_v45 = vmul.f32 0.0078125, %v1356_v54  ;;  %v1362_v62 = vsub.f32 %v4152_v35, %v1357_v53 }
 0x7b5   : > { %v1360_v38 = vsub.f32 %v1358_v45, %v1359_v17 }
 0x7b7   : > { %v1361_v42 = vmax.f32 %v1360_v38, 0.0 }
 0x7b9   : > { %v1363_v33 = vadd.f32 1e-05, %v1361_v42  ;;  %v4901_v42 = vld [vmem:[#allocation46_spill] sm:$0xff] }
 0x7bb   : > { %2523 = vrsqrt.f32 %v1363_v33  ;;  %vm1370_vm6 = vweird.f32 %v1363_v33 }
 0x7bc   : > { %2525 = vtanh.f32 %v1344_v51  ;;  %v4908_v51 = vld [vmem:[#allocation39_spill] sm:$0xff] }
 0x7c1   : > { %v2524_v44 = vpop.eup %2523 }
 0x7c2   : > { %v1365_v0 = vmul.f32 %v2524_v44, %v1363_v33  ;;  %vm1371_vm5 = vweird.f32 %v2524_v44  ;;  %v2526_v26 = vpop.eup %2525  ;;  %v4902_v33 = vld [vmem:[#allocation47_spill] sm:$0xff] }
 0x7c3   : > { %vm1372_vm7 = vmor %vm1370_vm6, %vm1371_vm5  ;;  %v1346_v53 = vmul.f32 0.5, %v2526_v26 }
 0x7c4   : > { %v1366_v37 = vmul.f32 %v2524_v44, %v1365_v0 }
 0x7c5   : > { %v1347_v17 = vadd.f32 0.5, %v1346_v53 }
 0x7c6   : > { %v1367_v43 = vmul.f32 0.5, %v1366_v37  ;;  %v4907_v37 = vld [vmem:[#allocation38_spill] sm:$0xff] }
 0x7c8   : > { %v1368_v25 = vsub.f32 1.5, %v1367_v43 }
 0x7ca   : > { %v1369_v47 = vmul.f32 %v2524_v44, %v1368_v25 }
 0x7cc   : > { %v1373_v34 = vsel %vm1372_vm7, %v2524_v44, %v1369_v47  ;;  %v4906_v44 = vld [vmem:[#allocation51_spill] sm:$0xff] }
 0x7cd   : > { %v1374_v49 = vmul.f32 %v1373_v34, %v1362_v62 }
 0x7cf   : > { %v1375_v46 = vmul.f32 %v4164_v40, %v1374_v49 }
 0x7d1   : > { %v1376_v54 = vadd.f32 %v4170_v39, %v1375_v46 }
 0x7d3   : > { %2527 = vtanh.f32 %v1376_v54  ;;  %v4909_v54 = vld [vmem:[#allocation41_spill] sm:$0xff] }
 0x7d9   : > { %v2528_v45 = vpop.eup %2527 }
 0x7da   : > { %v1378_v38 = vmul.f32 %v2528_v45, %v1347_v17 }
 0x7dc   : > { %2386 = vst [vmem:[%s2991_s13 + $0x18] sm:$0xff] %v1378_v38  ;;  %1401 = vmatmul.f32.vlgmr.msra.gmra.mxu0 %v1378_v38  ;;  %1421 = vmatmul.f32.vlgmr.msra.gmra.mxu1 %v1378_v38 }
 0x7dd   : > { %1441 = vmatmul.f32.vlgmr.msra.gmra.mxu2 %v1378_v38  ;;  %1461 = vmatmul.f32.vlgmr.msra.gmra.mxu3 %v1378_v38 }
 0x7de   : > { %1753 = vmatpush.msra.mxu0 %v3667_v55  ;;  %1773 = vmatpush.msra.mxu1 %v3673_v57  ;;  %v4872_v55 = vld [vmem:[#allocation16_spill] sm:$0xff]  ;;  %v4873_v57 = vld [vmem:[#allocation17_spill] sm:$0xff] }
 0x7df   : > { %1793 = vmatpush.msra.mxu2 %v3679_v58  ;;  %1813 = vmatpush.msra.mxu3 %v3685_v59  ;;  %v4874_v58 = vld [vmem:[#allocation14_spill] sm:$0xff]  ;;  %v4875_v59 = vld [vmem:[#allocation15_spill] sm:$0xff] }
 0x7e0   : > { %1754 = vmatpush.msra.mxu0 %v3691_v60  ;;  %1774 = vmatpush.msra.mxu1 %v3697_v61  ;;  %v4876_v60 = vld [vmem:[#allocation21_spill] sm:$0xff]  ;;  %v4877_v61 = vld [vmem:[#allocation22_spill] sm:$0xff] }
 0x7e1   : > { %1794 = vmatpush.msra.mxu2 %v3703_v63  ;;  %1814 = vmatpush.msra.mxu3 %v3709_v1  ;;  %v4878_v63 = vld [vmem:[#allocation18_spill] sm:$0xff]  ;;  %v4879_v1 = vld [vmem:[#allocation19_spill] sm:$0xff] }
 0x7e2   : > { %1755 = vmatpush.msra.mxu0 %v3715_v2  ;;  %1775 = vmatpush.msra.mxu1 %v3721_v3  ;;  %v4880_v2 = vld [vmem:[#allocation24_spill] sm:$0xff]  ;;  %v4881_v3 = vld [vmem:[#allocation25_spill] sm:$0xff] }
 0x7e3   : > { %1795 = vmatpush.msra.mxu2 %v3727_v5  ;;  %1815 = vmatpush.msra.mxu3 %v3733_v8  ;;  %v4882_v5 = vld [vmem:[#allocation20_spill] sm:$0xff]  ;;  %v4883_v8 = vld [vmem:[#allocation23_spill] sm:$0xff] }
 0x7e4   : > { %1756 = vmatpush.msra.mxu0 %v3739_v9  ;;  %1776 = vmatpush.msra.mxu1 %v3745_v23  ;;  %v4884_v9 = vld [vmem:[#allocation28_spill] sm:$0xff]  ;;  %v4885_v23 = vld [vmem:[#allocation29_spill] sm:$0xff] }
 0x7e5   : > { %1796 = vmatpush.msra.mxu2 %v3751_v32  ;;  %1816 = vmatpush.msra.mxu3 %v3757_v30  ;;  %v4886_v32 = vld [vmem:[#allocation26_spill] sm:$0xff]  ;;  %v4887_v30 = vld [vmem:[#allocation27_spill] sm:$0xff] }
 0x7e6   : > { %1757 = vmatpush.msra.mxu0 %v3763_v6  ;;  %1777 = vmatpush.msra.mxu1 %v3769_v27  ;;  %v4888_v6 = vld [vmem:[#allocation32_spill] sm:$0xff]  ;;  %v4889_v27 = vld [vmem:[#allocation33_spill] sm:$0xff] }
 0x7e7   : > { %1797 = vmatpush.msra.mxu2 %v3775_v22  ;;  %1817 = vmatpush.msra.mxu3 %v3781_v15  ;;  %v4890_v22 = vld [vmem:[#allocation30_spill] sm:$0xff]  ;;  %v4891_v15 = vld [vmem:[#allocation31_spill] sm:$0xff] }
 0x7e8   : > { %1758 = vmatpush.msra.mxu0 %v3787_v16  ;;  %1778 = vmatpush.msra.mxu1 %v3793_v21  ;;  %v4892_v16 = vld [vmem:[#allocation36_spill] sm:$0xff]  ;;  %v4893_v21 = vld [vmem:[#allocation37_spill] sm:$0xff] }
 0x7e9   : > { %1798 = vmatpush.msra.mxu2 %v3799_v7  ;;  %1818 = vmatpush.msra.mxu3 %v3805_v11  ;;  %v4894_v7 = vld [vmem:[#allocation34_spill] sm:$0xff]  ;;  %v4895_v11 = vld [vmem:[#allocation35_spill] sm:$0xff] }
 0x7ea   : > { %1759 = vmatpush.msra.mxu0 %v3811_v12  ;;  %1779 = vmatpush.msra.mxu1 %v3817_v19  ;;  %v4896_v12 = vld [vmem:[#allocation40_spill] sm:$0xff]  ;;  %v4897_v19 = vld [vmem:[#allocation42_spill] sm:$0xff] }
 0x7eb   : > { %1799 = vmatpush.msra.mxu2 %v3823_v31  ;;  %1819 = vmatpush.msra.mxu3 %v4832_v24  ;;  %v4898_v31 = vld [vmem:[#allocation43_spill] sm:$0xff]  ;;  %v4899_v24 = vld [vmem:[#allocation44_spill] sm:$0xff] }
 0x7ec   : > { %1760 = vmatpush.msra.mxu0 %v4833_v14  ;;  %1780 = vmatpush.msra.mxu1 %v4872_v55  ;;  %v4900_v14 = vld [vmem:[#allocation45_spill] sm:$0xff] }
 0x7ed   : > { %1800 = vmatpush.msra.mxu2 %v4873_v57  ;;  %1820 = vmatpush.msra.mxu3 %v4874_v58 }
 0x7ee   : > { %1761 = vmatpush.msra.mxu0 %v4875_v59  ;;  %1781 = vmatpush.msra.mxu1 %v4876_v60 }
 0x7ef   : > { %1801 = vmatpush.msra.mxu2 %v4877_v61  ;;  %1821 = vmatpush.msra.mxu3 %v4878_v63 }
 0x7f0   : > { %1762 = vmatpush.msra.mxu0 %v4879_v1  ;;  %1782 = vmatpush.msra.mxu1 %v4880_v2 }
 0x7f1   : > { %1802 = vmatpush.msra.mxu2 %v4881_v3  ;;  %1822 = vmatpush.msra.mxu3 %v4882_v5 }
 0x7f2   : > { %1763 = vmatpush.msra.mxu0 %v4883_v8  ;;  %1783 = vmatpush.msra.mxu1 %v4884_v9 }
 0x7f3   : > { %1803 = vmatpush.msra.mxu2 %v4885_v23  ;;  %1823 = vmatpush.msra.mxu3 %v4886_v32 }
 0x7f4   : > { %1764 = vmatpush.msra.mxu0 %v4887_v30  ;;  %1784 = vmatpush.msra.mxu1 %v4888_v6 }
 0x7f5   : > { %1804 = vmatpush.msra.mxu2 %v4889_v27  ;;  %1824 = vmatpush.msra.mxu3 %v4890_v22 }
 0x7f6   : > { %1765 = vmatpush.msra.mxu0 %v4891_v15  ;;  %1785 = vmatpush.msra.mxu1 %v4892_v16 }
 0x7f7   : > { %1805 = vmatpush.msra.mxu2 %v4893_v21  ;;  %1825 = vmatpush.msra.mxu3 %v4894_v7 }
 0x7f8   : > { %1766 = vmatpush.msra.mxu0 %v4895_v11  ;;  %1786 = vmatpush.msra.mxu1 %v4896_v12 }
 0x7f9   : > { %1806 = vmatpush.msra.mxu2 %v4897_v19  ;;  %1826 = vmatpush.msra.mxu3 %v4898_v31 }
 0x7fa   : > { %1767 = vmatpush.msra.mxu0 %v4899_v24  ;;  %1787 = vmatpush.msra.mxu1 %v4900_v14 }
 0x7fb   : > { %1807 = vmatpush.msra.mxu2 %v4901_v42  ;;  %1827 = vmatpush.msra.mxu3 %v4902_v33  ;;  %v2387_v33 = vld [vmem:[%s2989_s21 + $0x80] sm:$0xff] }
 0x7fc   : > { %1768 = vmatpush.msra.mxu0 %v4903_v28  ;;  %1788 = vmatpush.msra.mxu1 %v4904_v18  ;;  %v2388_v28 = vld [vmem:[%s2989_s21 + $0x88] sm:$0xff] }
 0x7fd   : > { %1808 = vmatpush.msra.mxu2 %v4905_v36  ;;  %1828 = vmatpush.msra.mxu3 %v4906_v44 }
 0x859   : > { %v1402_v0 = vpop.f32.mrf.mxu0  ;;  %v1422_v41 = vpop.f32.mrf.mxu1 }
 0x85a   : > { %v1403_v43 = vadd.f32 %v1402_v0, %v4907_v37  ;;  %v1423_v25 = vadd.f32 %v1422_v41, %v4908_v51 }
 0x85c   : > { %v1475_v47 = vmul.f32 %v1403_v43, %v1403_v43  ;;  %v1476_v62 = vmul.f32 %v1423_v25, %v1423_v25  ;;  %v1470_v46 = vadd.f32 %v1423_v25, %v1403_v43 }
 0x85e   : > { %v1479_v38 = vadd.f32 %v1476_v62, %v1475_v47 }
 0x860   : > { %v1442_v34 = vpop.f32.mrf.mxu2  ;;  %v1462_v49 = vpop.f32.mrf.mxu3 }
 0x861   : > { %v1443_v26 = vadd.f32 %v1442_v34, %v4789_v4  ;;  %v1463_v53 = vadd.f32 %v1462_v49, %v4909_v54 }
 0x863   : > { %v1477_v17 = vmul.f32 %v1443_v26, %v1443_v26  ;;  %v1471_v45 = vadd.f32 %v1470_v46, %v1443_v26  ;;  %v1478_v57 = vmul.f32 %v1463_v53, %v1463_v53 }
 0x865   : > { %v1472_v55 = vadd.f32 %v1471_v45, %v1463_v53  ;;  %v1480_v58 = vadd.f32 %v1479_v38, %v1477_v17 }
 0x867   : > { %1473 = vadd.xlane.f32.xlu1 %v1472_v55  ;;  %v1481_v59 = vadd.f32 %v1480_v58, %v1478_v57 }
 0x869   : > { %1482 = vadd.xlane.f32.xlu2 %v1481_v59 }
 0x8da   : > { %v1474_v60 = vpop.xlane.xlu1 %1473 }
 0x8db   : > { %v1484_v61 = vmul.f32 0.001953125, %v1474_v60 }
 0x8dc   : > { %v1483_v63 = vpop.xlane.xlu2 %1482 }
 0x8dd   : > { %v1485_v1 = vmul.f32 0.001953125, %v1483_v63  ;;  %v1486_v2 = vmul.f32 %v1484_v61, %v1484_v61  ;;  %v1489_v22 = vsub.f32 %v1403_v43, %v1484_v61  ;;  %v1490_v15 = vsub.f32 %v1423_v25, %v1484_v61  ;;  %v2390_v43 = vld [vmem:[%s2989_s21 + $0x98] sm:$0xff] }
 0x8de   : > { %v1491_v16 = vsub.f32 %v1443_v26, %v1484_v61  ;;  %v1492_v21 = vsub.f32 %v1463_v53, %v1484_v61 }
 0x8df   : > { %v1487_v3 = vsub.f32 %v1485_v1, %v1486_v2 }
 0x8e1   : > { %v1488_v5 = vmax.f32 %v1487_v3, 0.0 }
 0x8e3   : > { %v1493_v8 = vadd.f32 1e-05, %v1488_v5 }
 0x8e5   : > { %2529 = vrsqrt.f32 %v1493_v8  ;;  %vm1500_vm9 = vweird.f32 %v1493_v8 }
 0x8eb   : > { %v2530_v9 = vpop.eup %2529 }
 0x8ec   : > { %v1495_v23 = vmul.f32 %v2530_v9, %v1493_v8  ;;  %vm1501_vm8 = vweird.f32 %v2530_v9 }
 0x8ed   : > { %vm1502_vm10 = vmor %vm1500_vm9, %vm1501_vm8 }
 0x8ee   : > { %v1496_v32 = vmul.f32 %v2530_v9, %v1495_v23 }
 0x8f0   : > { %v1497_v30 = vmul.f32 0.5, %v1496_v32 }
 0x8f2   : > { %v1498_v6 = vsub.f32 1.5, %v1497_v30 }
 0x8f4   : > { %v1499_v27 = vmul.f32 %v2530_v9, %v1498_v6 }
 0x8f6   : > { %v1503_v7 = vsel %vm1502_vm10, %v2530_v9, %v1499_v27  ;;  %v2389_v9 = vld [vmem:[%s2989_s21 + $0x90] sm:$0xff] }
 0x8f7   : > { %v1504_v11 = vmul.f32 %v1503_v7, %v1489_v22  ;;  %v1505_v12 = vmul.f32 %v1503_v7, %v1490_v15  ;;  %v1506_v19 = vmul.f32 %v1503_v7, %v1491_v16  ;;  %v1507_v31 = vmul.f32 %v1503_v7, %v1492_v21 }
 0x8f9   : > { %v1508_v24 = vmul.f32 %v1504_v11, %v4791_v48  ;;  %v1509_v14 = vmul.f32 %v1505_v12, %v4792_v50  ;;  %v1511_v42 = vmul.f32 %v1507_v31, %v4793_v52  ;;  %v1510_v8 = vmul.f32 %v1506_v19, %v3553_v13 }
 0x8fb   : > { %v1512_v18 = vadd.f32 %v1508_v24, %v4794_v56  ;;  %v1513_v36 = vadd.f32 %v1509_v14, %v3535_v29  ;;  %v1515_v41 = vadd.f32 %v1511_v42, %v3540_v20 }
 0x8fd   : > { %v1516_v44 = vadd.f32 %v2387_v33, %v1512_v18  ;;  %v1517_v0 = vadd.f32 %v2388_v28, %v1513_v36  ;;  %v1519_v62 = vadd.f32 %v2390_v43, %v1515_v41  ;;  %v2651_v28 = vld [vmem:[%s4581_s3 + $0x1e0] sm:$0xff]  ;;  %v2652_v18 = vld [vmem:[%s4581_s3 + $0x1e8] sm:$0xff]  ;;  %v2653_v36 = vld [vmem:[%s4581_s3 + $0x1f0] sm:$0xff] }
 0x8fe   : > { %v2656_v41 = vld [vmem:[%s4581_s3 + $0x1c8] sm:$0xff]  ;;  %v2657_v43 = vld [vmem:[%s4581_s3 + $0x1d0] sm:$0xff] }
 0x8ff   : > { %v1520_v25 = vmul.f32 0.5, %v1516_v44  ;;  %v1524_v47 = vmul.f32 0.5, %v1517_v0  ;;  %v2654_v44 = vld [vmem:[%s4581_s3 + $0x1f8] sm:$0xff]  ;;  %v2655_v0 = vld [vmem:[%s4581_s3 + $0x1c0] sm:$0xff] }
 0x901   : > { %2531 = vtanh.f32 %v1520_v25  ;;  %v2658_v25 = vld [vmem:[%s4581_s3 + $0x1d8] sm:$0xff] }
 0x902   : > { %2533 = vtanh.f32 %v1524_v47  ;;  %v2659_v47 = vld [vmem:[%s4581_s3 + $0x1a0] sm:$0xff] }
 0x903   : > { %2535 = vtanh.f32 %v1519_v62  ;;  %v2660_v62 = vld [vmem:[%s4581_s3 + $0x1a8] sm:$0xff] }
 0x907   : > { %v2532_v34 = vpop.eup %2531 }
 0x908   : > { %v2534_v49 = vpop.eup %2533  ;;  %v1522_v46 = vmul.f32 0.5, %v2532_v34  ;;  %v2661_v34 = vld [vmem:[%s4581_s3 + $0x1b0] sm:$0xff] }
 0x909   : > { %v1526_v26 = vmul.f32 0.5, %v2534_v49  ;;  %v2536_v17 = vpop.eup %2535  ;;  %v2662_v49 = vld [vmem:[%s4581_s3 + $0x1b8] sm:$0xff] }
 0x90a   : > { %v1523_v53 = vadd.f32 0.5, %v1522_v46  ;;  %v2663_v46 = vld [vmem:[%s4581_s3 + $0x180] sm:$0xff] }
 0x90b   : > { %v1527_v45 = vadd.f32 0.5, %v1526_v26  ;;  %v2664_v26 = vld [vmem:[%s4581_s3 + $0x188] sm:$0xff] }
 0x90c   : > { %v1534_v38 = vmul.f32 %v2536_v17, %v1523_v53  ;;  %v2665_v53 = vld [vmem:[%s4581_s3 + $0x190] sm:$0xff]  ;;  %v2666_v17 = vld [vmem:[%s4581_s3 + $0x198] sm:$0xff] }
 0x90d   : > { %v1533_v55 = vmul.f32 %v1527_v45, %v4152_v35  ;;  %v1514_v35 = vadd.f32 %v1510_v8, %v3555_v10  ;;  %v2667_v45 = vld [vmem:[%s4581_s3 + $0x160] sm:$0xff] }
 0x90e   : > { %v2679_v8 = vld [vmem:[%s4581_s3 + $0x100] sm:$0xff] }
 0x90f   : > { %v4252_v57 = vadd.f32 %v1534_v38, %v1533_v55  ;;  %v1518_v30 = vadd.f32 %v2389_v9, %v1514_v35  ;;  %v2668_v38 = vld [vmem:[%s4581_s3 + $0x168] sm:$0xff]  ;;  %v2669_v55 = vld [vmem:[%s4581_s3 + $0x170] sm:$0xff] }
 0x910   : > { %v2680_v35 = vld [vmem:[%s4581_s3 + $0x108] sm:$0xff]  ;;  %v2681_v9 = vld [vmem:[%s4581_s3 + $0x110] sm:$0xff] }
 0x911   : > { %1536 = vadd.xlane.f32.xlu0 %v4252_v57  ;;  %v1538_v58 = vmul.f32 %v4252_v57, %v4252_v57  ;;  %v1528_v22 = vmul.f32 0.5, %v1518_v30  ;;  %v2684_v30 = vld [vmem:[%s4581_s3 + $0xe8] sm:$0xff] }
 0x913   : > { %1539 = vadd.xlane.f32.xlu1 %v1538_v58  ;;  %v2670_v58 = vld [vmem:[%s4581_s3 + $0x178] sm:$0xff] }
 0x984   : > { %v1537_v59 = vpop.xlane.xlu0 %1536 }
 0x985   : > { %v1541_v60 = vmul.f32 0.0078125, %v1537_v59  ;;  %v2671_v59 = vld [vmem:[%s4581_s3 + $0x140] sm:$0xff] }
 0x986   : > { %v1540_v61 = vpop.xlane.xlu1 %1539 }
 0x987   : > { %v1543_v63 = vmul.f32 %v1541_v60, %v1541_v60  ;;  %v1542_v1 = vmul.f32 0.0078125, %v1540_v61  ;;  %v1546_v21 = vsub.f32 %v4252_v57, %v1541_v60  ;;  %v2672_v60 = vld [vmem:[%s4581_s3 + $0x148] sm:$0xff]  ;;  %v2673_v61 = vld [vmem:[%s4581_s3 + $0x150] sm:$0xff] }
 0x989   : > { %v1544_v2 = vsub.f32 %v1542_v1, %v1543_v63  ;;  %v2674_v63 = vld [vmem:[%s4581_s3 + $0x158] sm:$0xff]  ;;  %v2675_v1 = vld [vmem:[%s4581_s3 + $0x120] sm:$0xff] }
 0x98b   : > { %v1545_v3 = vmax.f32 %v1544_v2, 0.0  ;;  %v2676_v2 = vld [vmem:[%s4581_s3 + $0x128] sm:$0xff] }
 0x98d   : > { %v1547_v5 = vadd.f32 1e-05, %v1545_v3  ;;  %v2677_v3 = vld [vmem:[%s4581_s3 + $0x130] sm:$0xff] }
 0x98f   : > { %2537 = vrsqrt.f32 %v1547_v5  ;;  %vm1554_vm12 = vweird.f32 %v1547_v5 }
 0x990   : > { %2539 = vtanh.f32 %v1528_v22  ;;  %v2687_v22 = vld [vmem:[%s4581_s3 + $0xc0] sm:$0xff] }
 0x995   : > { %v2538_v23 = vpop.eup %2537 }
 0x996   : > { %v1549_v32 = vmul.f32 %v2538_v23, %v1547_v5  ;;  %vm1555_vm11 = vweird.f32 %v2538_v23  ;;  %v2540_v19 = vpop.eup %2539  ;;  %v2678_v5 = vld [vmem:[%s4581_s3 + $0x138] sm:$0xff] }
 0x997   : > { %vm1556_vm13 = vmor %vm1554_vm12, %vm1555_vm11  ;;  %v1530_v24 = vmul.f32 0.5, %v2540_v19  ;;  %v2694_v19 = vld [vmem:[%s4581_s3 + $0xb8] sm:$0xff] }
 0x998   : > { %v1550_v6 = vmul.f32 %v2538_v23, %v1549_v32  ;;  %v2683_v32 = vld [vmem:[%s4581_s3 + $0xe0] sm:$0xff] }
 0x999   : > { %v1531_v14 = vadd.f32 0.5, %v1530_v24  ;;  %v2696_v24 = vld [vmem:[%s4581_s3 + $0x88] sm:$0xff] }
 0x99a   : > { %v1551_v27 = vmul.f32 0.5, %v1550_v6  ;;  %v2685_v6 = vld [vmem:[%s4581_s3 + $0xf0] sm:$0xff] }
 0x99c   : > { %v1552_v15 = vsub.f32 1.5, %v1551_v27  ;;  %v2686_v27 = vld [vmem:[%s4581_s3 + $0xf8] sm:$0xff] }
 0x99e   : > { %v1553_v16 = vmul.f32 %v2538_v23, %v1552_v15  ;;  %v2688_v15 = vld [vmem:[%s4581_s3 + $0xc8] sm:$0xff] }
 0x9a0   : > { %v1557_v7 = vsel %vm1556_vm13, %v2538_v23, %v1553_v16  ;;  %v2682_v23 = vld [vmem:[%s4581_s3 + $0x118] sm:$0xff]  ;;  %v2689_v16 = vld [vmem:[%s4581_s3 + $0xd0] sm:$0xff] }
 0x9a1   : > { %v1558_v11 = vmul.f32 %v1557_v7, %v1546_v21  ;;  %v2690_v21 = vld [vmem:[%s4581_s3 + $0xd8] sm:$0xff]  ;;  %v2691_v7 = vld [vmem:[%s4581_s3 + $0xa0] sm:$0xff] }
 0x9a3   : > { %v1559_v12 = vmul.f32 %v4164_v40, %v1558_v11  ;;  %v2692_v11 = vld [vmem:[%s4581_s3 + $0xa8] sm:$0xff] }
 0x9a5   : > { %v1560_v31 = vadd.f32 %v4170_v39, %v1559_v12  ;;  %v2693_v12 = vld [vmem:[%s4581_s3 + $0xb0] sm:$0xff] }
 0x9a7   : > { %2541 = vtanh.f32 %v1560_v31  ;;  %v2695_v31 = vld [vmem:[%s4581_s3 + $0x80] sm:$0xff] }
 0x9ad   : > { %v2542_v42 = vpop.eup %2541 }
 0x9ae   : > { %v1562_v33 = vmul.f32 %v2542_v42, %v1531_v14  ;;  %v2697_v14 = vld [vmem:[%s4581_s3 + $0x90] sm:$0xff]  ;;  %v2698_v42 = vld [vmem:[%s4581_s3 + $0x98] sm:$0xff] }
 0x9b0   : > { %2391 = vst [vmem:[%s2991_s13 + $0x20] sm:$0xff] %v1562_v33  ;;  %1585 = vmatmul.f32.vlgmr.msrb.gmra.mxu0 %v1562_v33  ;;  %1605 = vmatmul.f32.vlgmr.msrb.gmra.mxu1 %v1562_v33 }
 0x9b1   : > { %1625 = vmatmul.f32.vlgmr.msrb.gmra.mxu2 %v1562_v33  ;;  %1645 = vmatmul.f32.vlgmr.msrb.gmra.mxu3 %v1562_v33  ;;  %v2699_v33 = vld [vmem:[%s4581_s3 + $0x60] sm:$0xff] }
 0x9b2   : > { %1937 = vmatpush.msrb.mxu0 %v2651_v28  ;;  %1957 = vmatpush.msrb.mxu1 %v2652_v18  ;;  %v2700_v28 = vld [vmem:[%s4581_s3 + $0x68] sm:$0xff]  ;;  %v2701_v18 = vld [vmem:[%s4581_s3 + $0x70] sm:$0xff] }
 0x9b3   : > { %1977 = vmatpush.msrb.mxu2 %v2653_v36  ;;  %1997 = vmatpush.msrb.mxu3 %v2654_v44  ;;  %v2702_v36 = vld [vmem:[%s4581_s3 + $0x78] sm:$0xff]  ;;  %v2703_v44 = vld [vmem:[%s4581_s3 + $0x40] sm:$0xff] }
 0x9b4   : > { %1938 = vmatpush.msrb.mxu0 %v2655_v0  ;;  %1958 = vmatpush.msrb.mxu1 %v2656_v41  ;;  %v2704_v0 = vld [vmem:[%s4581_s3 + $0x48] sm:$0xff]  ;;  %v2705_v41 = vld [vmem:[%s4581_s3 + $0x50] sm:$0xff] }
 0x9b5   : > { %1978 = vmatpush.msrb.mxu2 %v2657_v43  ;;  %1998 = vmatpush.msrb.mxu3 %v2658_v25  ;;  %v2706_v43 = vld [vmem:[%s4581_s3 + $0x58] sm:$0xff]  ;;  %v2707_v25 = vld [vmem:[%s4581_s3 + $0x20] sm:$0xff] }
 0x9b6   : > { %1939 = vmatpush.msrb.mxu0 %v2659_v47  ;;  %1959 = vmatpush.msrb.mxu1 %v2660_v62  ;;  %v2708_v47 = vld [vmem:[%s4581_s3 + $0x28] sm:$0xff]  ;;  %v2709_v62 = vld [vmem:[%s4581_s3 + $0x30] sm:$0xff] }
 0x9b7   : > { %1979 = vmatpush.msrb.mxu2 %v2661_v34  ;;  %1999 = vmatpush.msrb.mxu3 %v2662_v49  ;;  %v2710_v34 = vld [vmem:[%s4581_s3 + $0x38] sm:$0xff]  ;;  %v2711_v49 = vld [vmem:[%s4581_s3] sm:$0xff] }
 0x9b8   : > { %1940 = vmatpush.msrb.mxu0 %v2663_v46  ;;  %1960 = vmatpush.msrb.mxu1 %v2664_v26  ;;  %v2712_v46 = vld [vmem:[%s4581_s3 + $0x8] sm:$0xff]  ;;  %v2713_v26 = vld [vmem:[%s4581_s3 + $0x10] sm:$0xff] }
 0x9b9   : > { %1980 = vmatpush.msrb.mxu2 %v2665_v53  ;;  %2000 = vmatpush.msrb.mxu3 %v2666_v17  ;;  %v2714_v53 = vld [vmem:[%s4581_s3 + $0x18] sm:$0xff] }
 0x9ba   : > { %1941 = vmatpush.msrb.mxu0 %v2667_v45  ;;  %1961 = vmatpush.msrb.mxu1 %v2668_v38 }
 0x9bb   : > { %1981 = vmatpush.msrb.mxu2 %v2669_v55  ;;  %2001 = vmatpush.msrb.mxu3 %v2670_v58 }
 0x9bc   : > { %1942 = vmatpush.msrb.mxu0 %v2671_v59  ;;  %1962 = vmatpush.msrb.mxu1 %v2672_v60 }
 0x9bd   : > { %1982 = vmatpush.msrb.mxu2 %v2673_v61  ;;  %2002 = vmatpush.msrb.mxu3 %v2674_v63 }
 0x9be   : > { %1943 = vmatpush.msrb.mxu0 %v2675_v1  ;;  %1963 = vmatpush.msrb.mxu1 %v2676_v2 }
 0x9bf   : > { %1983 = vmatpush.msrb.mxu2 %v2677_v3  ;;  %2003 = vmatpush.msrb.mxu3 %v2678_v5 }
 0x9c0   : > { %1944 = vmatpush.msrb.mxu0 %v2679_v8  ;;  %1964 = vmatpush.msrb.mxu1 %v2680_v35 }
 0x9c1   : > { %1984 = vmatpush.msrb.mxu2 %v2681_v9  ;;  %2004 = vmatpush.msrb.mxu3 %v2682_v23 }
 0x9c2   : > { %1945 = vmatpush.msrb.mxu0 %v2683_v32  ;;  %1965 = vmatpush.msrb.mxu1 %v2684_v30 }
 0x9c3   : > { %1985 = vmatpush.msrb.mxu2 %v2685_v6  ;;  %2005 = vmatpush.msrb.mxu3 %v2686_v27 }
 0x9c4   : > { %1946 = vmatpush.msrb.mxu0 %v2687_v22  ;;  %1966 = vmatpush.msrb.mxu1 %v2688_v15 }
 0x9c5   : > { %1986 = vmatpush.msrb.mxu2 %v2689_v16  ;;  %2006 = vmatpush.msrb.mxu3 %v2690_v21 }
 0x9c6   : > { %1947 = vmatpush.msrb.mxu0 %v2691_v7  ;;  %1967 = vmatpush.msrb.mxu1 %v2692_v11 }
 0x9c7   : > { %1987 = vmatpush.msrb.mxu2 %v2693_v12  ;;  %2007 = vmatpush.msrb.mxu3 %v2694_v19 }
 0x9c8   : > { %1948 = vmatpush.msrb.mxu0 %v2695_v31  ;;  %1968 = vmatpush.msrb.mxu1 %v2696_v24 }
 0x9c9   : > { %1988 = vmatpush.msrb.mxu2 %v2697_v14  ;;  %2008 = vmatpush.msrb.mxu3 %v2698_v42 }
 0x9ca   : > { %1949 = vmatpush.msrb.mxu0 %v2699_v33  ;;  %1969 = vmatpush.msrb.mxu1 %v2700_v28 }
 0x9cb   : > { %1989 = vmatpush.msrb.mxu2 %v2701_v18  ;;  %2009 = vmatpush.msrb.mxu3 %v2702_v36 }
 0x9cc   : > { %1950 = vmatpush.msrb.mxu0 %v2703_v44  ;;  %1970 = vmatpush.msrb.mxu1 %v2704_v0 }
 0x9cd   : > { %1990 = vmatpush.msrb.mxu2 %v2705_v41  ;;  %2010 = vmatpush.msrb.mxu3 %v2706_v43 }
 0x9ce   : > { %1951 = vmatpush.msrb.mxu0 %v2707_v25  ;;  %1971 = vmatpush.msrb.mxu1 %v2708_v47 }
 0x9cf   : > { %1991 = vmatpush.msrb.mxu2 %v2709_v62  ;;  %2011 = vmatpush.msrb.mxu3 %v2710_v34  ;;  %v2392_v34 = vld [vmem:[%s2989_s21 + $0xa0] sm:$0xff] }
 0x9d0   : > { %1952 = vmatpush.msrb.mxu0 %v2711_v49  ;;  %1972 = vmatpush.msrb.mxu1 %v2712_v46  ;;  %v2393_v49 = vld [vmem:[%s2989_s21 + $0xa8] sm:$0xff] }
 0x9d1   : > { %1992 = vmatpush.msrb.mxu2 %v2713_v26  ;;  %2012 = vmatpush.msrb.mxu3 %v2714_v53 }
 0xa2d   : > { %v1586_v17 = vpop.f32.mrf.mxu0  ;;  %v1606_v45 = vpop.f32.mrf.mxu1 }
 0xa2e   : > { %v1587_v38 = vadd.f32 %v1586_v17, %v4907_v37  ;;  %v1607_v55 = vadd.f32 %v1606_v45, %v4908_v51 }
 0xa30   : > { %v1659_v58 = vmul.f32 %v1587_v38, %v1587_v38  ;;  %v1660_v59 = vmul.f32 %v1607_v55, %v1607_v55  ;;  %v1654_v63 = vadd.f32 %v1607_v55, %v1587_v38 }
 0xa32   : > { %v1663_v8 = vadd.f32 %v1660_v59, %v1659_v58 }
 0xa34   : > { %v1626_v60 = vpop.f32.mrf.mxu2  ;;  %v1646_v61 = vpop.f32.mrf.mxu3 }
 0xa35   : > { %v1627_v1 = vadd.f32 %v1626_v60, %v4789_v4  ;;  %v1647_v2 = vadd.f32 %v1646_v61, %v4909_v54 }
 0xa37   : > { %v1661_v3 = vmul.f32 %v1627_v1, %v1627_v1  ;;  %v1655_v5 = vadd.f32 %v1654_v63, %v1627_v1  ;;  %v1662_v9 = vmul.f32 %v1647_v2, %v1647_v2 }
 0xa39   : > { %v1656_v35 = vadd.f32 %v1655_v5, %v1647_v2  ;;  %v1664_v23 = vadd.f32 %v1663_v8, %v1661_v3 }
 0xa3b   : > { %1657 = vadd.xlane.f32.xlu2 %v1656_v35  ;;  %v1665_v32 = vadd.f32 %v1664_v23, %v1662_v9 }
 0xa3d   : > { %1666 = vadd.xlane.f32.xlu0 %v1665_v32 }
 0xaae   : > { %v1658_v30 = vpop.xlane.xlu2 %1657 }
 0xaaf   : > { %v1668_v6 = vmul.f32 0.001953125, %v1658_v30 }
 0xab0   : > { %v1667_v27 = vpop.xlane.xlu0 %1666 }
 0xab1   : > { %v1669_v22 = vmul.f32 0.001953125, %v1667_v27  ;;  %v1670_v15 = vmul.f32 %v1668_v6, %v1668_v6  ;;  %v1673_v42 = vsub.f32 %v1587_v38, %v1668_v6  ;;  %v1674_v33 = vsub.f32 %v1607_v55, %v1668_v6  ;;  %v2395_v38 = vld [vmem:[%s2989_s21 + $0xb8] sm:$0xff] }
 0xab2   : > { %v1675_v28 = vsub.f32 %v1627_v1, %v1668_v6  ;;  %v1676_v18 = vsub.f32 %v1647_v2, %v1668_v6 }
 0xab3   : > { %v1671_v16 = vsub.f32 %v1669_v22, %v1670_v15 }
 0xab5   : > { %v1672_v21 = vmax.f32 %v1671_v16, 0.0 }
 0xab7   : > { %v1677_v7 = vadd.f32 1e-05, %v1672_v21 }
 0xab9   : > { %2543 = vrsqrt.f32 %v1677_v7  ;;  %vm1684_vm15 = vweird.f32 %v1677_v7 }
 0xabf   : > { %v2544_v11 = vpop.eup %2543 }
 0xac0   : > { %v1679_v12 = vmul.f32 %v2544_v11, %v1677_v7  ;;  %vm1685_vm14 = vweird.f32 %v2544_v11 }
 0xac1   : > { %vm1686_vm0 = vmor %vm1684_vm15, %vm1685_vm14 }
 0xac2   : > { %v1680_v19 = vmul.f32 %v2544_v11, %v1679_v12 }
 0xac4   : > { %v1681_v31 = vmul.f32 0.5, %v1680_v19 }
 0xac6   : > { %v1682_v24 = vsub.f32 1.5, %v1681_v31 }
 0xac8   : > { %v1683_v14 = vmul.f32 %v2544_v11, %v1682_v24 }
 0xaca   : > { %v1687_v36 = vsel %vm1686_vm0, %v2544_v11, %v1683_v14  ;;  %v2394_v11 = vld [vmem:[%s2989_s21 + $0xb0] sm:$0xff] }
 0xacb   : > { %v1688_v44 = vmul.f32 %v1687_v36, %v1673_v42  ;;  %v1689_v0 = vmul.f32 %v1687_v36, %v1674_v33  ;;  %v1690_v41 = vmul.f32 %v1687_v36, %v1675_v28  ;;  %v1691_v43 = vmul.f32 %v1687_v36, %v1676_v18 }
 0xacd   : > { %v1692_v25 = vmul.f32 %v1688_v44, %v4791_v48  ;;  %v1693_v47 = vmul.f32 %v1689_v0, %v4792_v50  ;;  %v1695_v62 = vmul.f32 %v1691_v43, %v4793_v52  ;;  %v1694_v7 = vmul.f32 %v1690_v41, %v3553_v13 }
 0xacf   : > { %v1696_v46 = vadd.f32 %v1692_v25, %v4794_v56  ;;  %v1697_v26 = vadd.f32 %v1693_v47, %v3535_v29  ;;  %v1699_v45 = vadd.f32 %v1695_v62, %v3540_v20 }
 0xad1   : > { %v1700_v53 = vadd.f32 %v2392_v34, %v1696_v46  ;;  %v1701_v17 = vadd.f32 %v2393_v49, %v1697_v26  ;;  %v1703_v59 = vadd.f32 %v2395_v38, %v1699_v45 }
 0xad3   : > { %v1704_v55 = vmul.f32 0.5, %v1700_v53  ;;  %v1708_v58 = vmul.f32 0.5, %v1701_v17 }
 0xad5   : > { %2545 = vtanh.f32 %v1704_v55 }
 0xad6   : > { %2547 = vtanh.f32 %v1708_v58 }
 0xad7   : > { %2549 = vtanh.f32 %v1703_v59 }
 0xadb   : > { %v2546_v60 = vpop.eup %2545 }
 0xadc   : > { %v2548_v61 = vpop.eup %2547  ;;  %v1706_v63 = vmul.f32 0.5, %v2546_v60 }
 0xadd   : > { %v1710_v1 = vmul.f32 0.5, %v2548_v61  ;;  %v2550_v3 = vpop.eup %2549 }
 0xade   : > { %v1707_v2 = vadd.f32 0.5, %v1706_v63 }
 0xadf   : > { %v1711_v5 = vadd.f32 0.5, %v1710_v1 }
 0xae0   : > { %v1718_v8 = vmul.f32 %v2550_v3, %v1707_v2 }
 0xae1   : > { %v1717_v35 = vmul.f32 %v1711_v5, %v4252_v57  ;;  %v1698_v57 = vadd.f32 %v1694_v7, %v3555_v10 }
 0xae3   : > { %v4470_v9 = vadd.f32 %v1718_v8, %v1717_v35  ;;  %v1702_v31 = vadd.f32 %v2394_v11, %v1698_v57 }
 0xae5   : > { %1720 = vadd.xlane.f32.xlu1 %v4470_v9  ;;  %v1722_v23 = vmul.f32 %v4470_v9, %v4470_v9  ;;  %v1712_v42 = vmul.f32 0.5, %v1702_v31 }
 0xae7   : > { %1723 = vadd.xlane.f32.xlu2 %v1722_v23 }
 0xb58   : > { %v1721_v32 = vpop.xlane.xlu1 %1720 }
 0xb59   : > { %v1725_v30 = vmul.f32 0.0078125, %v1721_v32 }
 0xb5a   : > { %v1724_v6 = vpop.xlane.xlu2 %1723 }
 0xb5b   : > { %v1727_v27 = vmul.f32 %v1725_v30, %v1725_v30  ;;  %v1726_v22 = vmul.f32 0.0078125, %v1724_v6  ;;  %v1730_v18 = vsub.f32 %v4470_v9, %v1725_v30 }
 0xb5d   : > { %v1728_v15 = vsub.f32 %v1726_v22, %v1727_v27 }
 0xb5f   : > { %v1729_v16 = vmax.f32 %v1728_v15, 0.0 }
 0xb61   : > { %v1731_v21 = vadd.f32 1e-05, %v1729_v16 }
 0xb63   : > { %2551 = vrsqrt.f32 %v1731_v21  ;;  %vm1738_vm2 = vweird.f32 %v1731_v21 }
 0xb64   : > { %2553 = vtanh.f32 %v1712_v42 }
 0xb69   : > { %v2552_v12 = vpop.eup %2551 }
 0xb6a   : > { %v1733_v19 = vmul.f32 %v2552_v12, %v1731_v21  ;;  %vm1739_vm1 = vweird.f32 %v2552_v12  ;;  %v2554_v41 = vpop.eup %2553 }
 0xb6b   : > { %vm1740_vm3 = vmor %vm1738_vm2, %vm1739_vm1  ;;  %v1714_v25 = vmul.f32 0.5, %v2554_v41 }
 0xb6c   : > { %v1734_v24 = vmul.f32 %v2552_v12, %v1733_v19 }
 0xb6d   : > { %v1715_v47 = vadd.f32 0.5, %v1714_v25  ;;  %v2398_v25 = vld [vmem:[%s2989_s21 + $0xc8] sm:$0xff] }
 0xb6e   : > { %v1735_v14 = vmul.f32 0.5, %v1734_v24 }
 0xb70   : > { %v1736_v33 = vsub.f32 1.5, %v1735_v14 }
 0xb72   : > { %v1737_v28 = vmul.f32 %v2552_v12, %v1736_v33 }
 0xb74   : > { %v1741_v36 = vsel %vm1740_vm3, %v2552_v12, %v1737_v28 }
 0xb75   : > { %v1742_v44 = vmul.f32 %v1741_v36, %v1730_v18 }
 0xb77   : > { %v1743_v0 = vmul.f32 %v4164_v40, %v1742_v44 }
 0xb79   : > { %v1744_v43 = vadd.f32 %v4170_v39, %v1743_v0 }
 0xb7b   : > { %2555 = vtanh.f32 %v1744_v43  ;;  %v2397_v43 = vld [vmem:[%s2989_s21 + $0xc0] sm:$0xff] }
 0xb81   : > { %v2556_v62 = vpop.eup %2555 }
 0xb82   : > { %v1746_v34 = vmul.f32 %v2556_v62, %v1715_v47 }
 0xb84   : > { %2396 = vst [vmem:[%s2991_s13 + $0x28] sm:$0xff] %v1746_v34  ;;  %1769 = vmatmul.f32.vlgmr.msra.gmra.mxu0 %v1746_v34  ;;  %1789 = vmatmul.f32.vlgmr.msra.gmra.mxu1 %v1746_v34 }
 0xb85   : > { %1809 = vmatmul.f32.vlgmr.msra.gmra.mxu2 %v1746_v34  ;;  %1829 = vmatmul.f32.vlgmr.msra.gmra.mxu3 %v1746_v34 }
 0xc01   : > { %v1770_v49 = vpop.f32.mrf.mxu0  ;;  %v1790_v46 = vpop.f32.mrf.mxu1 }
 0xc02   : > { %v1771_v26 = vadd.f32 %v1770_v49, %v4907_v37  ;;  %v1791_v53 = vadd.f32 %v1790_v46, %v4908_v51 }
 0xc04   : > { %v1843_v17 = vmul.f32 %v1771_v26, %v1771_v26  ;;  %v1844_v45 = vmul.f32 %v1791_v53, %v1791_v53  ;;  %v1838_v58 = vadd.f32 %v1791_v53, %v1771_v26 }
 0xc06   : > { %v1847_v1 = vadd.f32 %v1844_v45, %v1843_v17 }
 0xc08   : > { %v1810_v38 = vpop.f32.mrf.mxu2  ;;  %v1830_v55 = vpop.f32.mrf.mxu3 }
 0xc09   : > { %v1811_v59 = vadd.f32 %v1810_v38, %v4789_v4  ;;  %v1831_v60 = vadd.f32 %v1830_v55, %v4909_v54 }
 0xc0b   : > { %v1845_v61 = vmul.f32 %v1811_v59, %v1811_v59  ;;  %v1839_v63 = vadd.f32 %v1838_v58, %v1811_v59  ;;  %v1846_v3 = vmul.f32 %v1831_v60, %v1831_v60 }
 0xc0d   : > { %v1840_v2 = vadd.f32 %v1839_v63, %v1831_v60  ;;  %v1848_v5 = vadd.f32 %v1847_v1, %v1845_v61 }
 0xc0f   : > { %1841 = vadd.xlane.f32.xlu0 %v1840_v2  ;;  %v1849_v8 = vadd.f32 %v1848_v5, %v1846_v3 }
 0xc11   : > { %1850 = vadd.xlane.f32.xlu1 %v1849_v8 }
 0xc82   : > { %v1842_v35 = vpop.xlane.xlu0 %1841 }
 0xc83   : > { %v1852_v23 = vmul.f32 0.001953125, %v1842_v35 }
 0xc84   : > { %v1851_v32 = vpop.xlane.xlu1 %1850 }
 0xc85   : > { %v1853_v30 = vmul.f32 0.001953125, %v1851_v32  ;;  %v1854_v6 = vmul.f32 %v1852_v23, %v1852_v23  ;;  %v1857_v19 = vsub.f32 %v1771_v26, %v1852_v23  ;;  %v1858_v31 = vsub.f32 %v1791_v53, %v1852_v23  ;;  %v2400_v26 = vld [vmem:[%s2989_s21 + $0xd8] sm:$0xff] }
 0xc86   : > { %v1859_v24 = vsub.f32 %v1811_v59, %v1852_v23  ;;  %v1860_v14 = vsub.f32 %v1831_v60, %v1852_v23 }
 0xc87   : > { %v1855_v27 = vsub.f32 %v1853_v30, %v1854_v6 }
 0xc89   : > { %v1856_v22 = vmax.f32 %v1855_v27, 0.0 }
 0xc8b   : > { %v1861_v15 = vadd.f32 1e-05, %v1856_v22 }
 0xc8d   : > { %2557 = vrsqrt.f32 %v1861_v15  ;;  %vm1868_vm5 = vweird.f32 %v1861_v15 }
 0xc93   : > { %v2558_v16 = vpop.eup %2557 }
 0xc94   : > { %v1863_v21 = vmul.f32 %v2558_v16, %v1861_v15  ;;  %vm1869_vm4 = vweird.f32 %v2558_v16 }
 0xc95   : > { %vm1870_vm6 = vmor %vm1868_vm5, %vm1869_vm4 }
 0xc96   : > { %v1864_v7 = vmul.f32 %v2558_v16, %v1863_v21 }
 0xc98   : > { %v1865_v57 = vmul.f32 0.5, %v1864_v7 }
 0xc9a   : > { %v1866_v11 = vsub.f32 1.5, %v1865_v57 }
 0xc9c   : > { %v1867_v12 = vmul.f32 %v2558_v16, %v1866_v11 }
 0xc9e   : > { %v1871_v42 = vsel %vm1870_vm6, %v2558_v16, %v1867_v12  ;;  %v2399_v16 = vld [vmem:[%s2989_s21 + $0xd0] sm:$0xff] }
 0xc9f   : > { %v1872_v33 = vmul.f32 %v1871_v42, %v1857_v19  ;;  %v1873_v28 = vmul.f32 %v1871_v42, %v1858_v31  ;;  %v1874_v18 = vmul.f32 %v1871_v42, %v1859_v24  ;;  %v1875_v36 = vmul.f32 %v1871_v42, %v1860_v14 }
 0xca1   : > { %v1876_v44 = vmul.f32 %v1872_v33, %v4791_v48  ;;  %v1877_v0 = vmul.f32 %v1873_v28, %v4792_v50  ;;  %v1879_v41 = vmul.f32 %v1875_v36, %v4793_v52  ;;  %v1878_v15 = vmul.f32 %v1874_v18, %v3553_v13 }
 0xca3   : > { %v1880_v47 = vadd.f32 %v1876_v44, %v4794_v56  ;;  %v1881_v62 = vadd.f32 %v1877_v0, %v3535_v29  ;;  %v1883_v46 = vadd.f32 %v1879_v41, %v3540_v20 }
 0xca5   : > { %v1884_v34 = vadd.f32 %v2397_v43, %v1880_v47  ;;  %v1885_v49 = vadd.f32 %v2398_v25, %v1881_v62  ;;  %v1887_v45 = vadd.f32 %v2400_v26, %v1883_v46 }
 0xca7   : > { %v1888_v53 = vmul.f32 0.5, %v1884_v34  ;;  %v1892_v17 = vmul.f32 0.5, %v1885_v49 }
 0xca9   : > { %2559 = vtanh.f32 %v1888_v53 }
 0xcaa   : > { %2561 = vtanh.f32 %v1892_v17 }
 0xcab   : > { %2563 = vtanh.f32 %v1887_v45 }
 0xcaf   : > { %v2560_v38 = vpop.eup %2559 }
 0xcb0   : > { %v2562_v55 = vpop.eup %2561  ;;  %v1890_v58 = vmul.f32 0.5, %v2560_v38 }
 0xcb1   : > { %v1894_v59 = vmul.f32 0.5, %v2562_v55  ;;  %v2564_v61 = vpop.eup %2563 }
 0xcb2   : > { %v1891_v60 = vadd.f32 0.5, %v1890_v58 }
 0xcb3   : > { %v1895_v63 = vadd.f32 0.5, %v1894_v59 }
 0xcb4   : > { %v1902_v1 = vmul.f32 %v2564_v61, %v1891_v60 }
 0xcb5   : > { %v1901_v2 = vmul.f32 %v1895_v63, %v4470_v9  ;;  %v1882_v9 = vadd.f32 %v1878_v15, %v3555_v10 }
 0xcb7   : > { %v4496_v3 = vadd.f32 %v1902_v1, %v1901_v2  ;;  %v1886_v57 = vadd.f32 %v2399_v16, %v1882_v9 }
 0xcb9   : > { %1904 = vadd.xlane.f32.xlu2 %v4496_v3  ;;  %v1906_v5 = vmul.f32 %v4496_v3, %v4496_v3  ;;  %v1896_v19 = vmul.f32 0.5, %v1886_v57 }
 0xcbb   : > { %1907 = vadd.xlane.f32.xlu0 %v1906_v5 }
 0xd2c   : > { %v1905_v8 = vpop.xlane.xlu2 %1904 }
 0xd2d   : > { %v1909_v35 = vmul.f32 0.0078125, %v1905_v8 }
 0xd2e   : > { %v1908_v23 = vpop.xlane.xlu0 %1907 }
 0xd2f   : > { %v1911_v32 = vmul.f32 %v1909_v35, %v1909_v35  ;;  %v1910_v30 = vmul.f32 0.0078125, %v1908_v23  ;;  %v1914_v14 = vsub.f32 %v4496_v3, %v1909_v35 }
 0xd31   : > { %v1912_v6 = vsub.f32 %v1910_v30, %v1911_v32 }
 0xd33   : > { %v1913_v27 = vmax.f32 %v1912_v6, 0.0 }
 0xd35   : > { %v1915_v22 = vadd.f32 1e-05, %v1913_v27 }
 0xd37   : > { %2565 = vrsqrt.f32 %v1915_v22  ;;  %vm1922_vm8 = vweird.f32 %v1915_v22 }
 0xd38   : > { %2567 = vtanh.f32 %v1896_v19 }
 0xd3d   : > { %v2566_v21 = vpop.eup %2565 }
 0xd3e   : > { %v1917_v7 = vmul.f32 %v2566_v21, %v1915_v22  ;;  %vm1923_vm7 = vweird.f32 %v2566_v21  ;;  %v2568_v18 = vpop.eup %2567 }
 0xd3f   : > { %vm1924_vm9 = vmor %vm1922_vm8, %vm1923_vm7  ;;  %v1898_v44 = vmul.f32 0.5, %v2568_v18 }
 0xd40   : > { %v1918_v11 = vmul.f32 %v2566_v21, %v1917_v7 }
 0xd41   : > { %v1899_v0 = vadd.f32 0.5, %v1898_v44  ;;  %v2405_v44 = vld [vmem:[%s2989_s21 + $0xf8] sm:$0xff] }
 0xd42   : > { %v1919_v12 = vmul.f32 0.5, %v1918_v11 }
 0xd44   : > { %v1920_v31 = vsub.f32 1.5, %v1919_v12 }
 0xd46   : > { %v1921_v24 = vmul.f32 %v2566_v21, %v1920_v31 }
 0xd48   : > { %v1925_v42 = vsel %vm1924_vm9, %v2566_v21, %v1921_v24  ;;  %v2402_v24 = vld [vmem:[%s2989_s21 + $0xe0] sm:$0xff] }
 0xd49   : > { %v1926_v33 = vmul.f32 %v1925_v42, %v1914_v14  ;;  %v2403_v14 = vld [vmem:[%s2989_s21 + $0xe8] sm:$0xff] }
 0xd4b   : > { %v1927_v28 = vmul.f32 %v4164_v40, %v1926_v33 }
 0xd4d   : > { %v1928_v36 = vadd.f32 %v4170_v39, %v1927_v28 }
 0xd4f   : > { %2569 = vtanh.f32 %v1928_v36 }
 0xd55   : > { %v2570_v41 = vpop.eup %2569 }
 0xd56   : > { %v1930_v43 = vmul.f32 %v2570_v41, %v1899_v0 }
 0xd58   : > { %2401 = vst [vmem:[%s2991_s13 + $0x30] sm:$0xff] %v1930_v43  ;;  %1953 = vmatmul.f32.vlgmr.msrb.gmra.mxu0 %v1930_v43  ;;  %1973 = vmatmul.f32.vlgmr.msrb.gmra.mxu1 %v1930_v43 }
 0xd59   : > { %1993 = vmatmul.f32.vlgmr.msrb.gmra.mxu2 %v1930_v43  ;;  %2013 = vmatmul.f32.vlgmr.msrb.gmra.mxu3 %v1930_v43 }
 0xdd5   : > { %v1954_v25 = vpop.f32.mrf.mxu0  ;;  %v1974_v47 = vpop.f32.mrf.mxu1 }
 0xdd6   : > { %v1955_v62 = vadd.f32 %v1954_v25, %v4907_v37  ;;  %v1975_v34 = vadd.f32 %v1974_v47, %v4908_v51 }
 0xdd8   : > { %v2027_v40 = vmul.f32 %v1955_v62, %v1955_v62  ;;  %v2028_v49 = vmul.f32 %v1975_v34, %v1975_v34  ;;  %v2022_v26 = vadd.f32 %v1975_v34, %v1955_v62 }
 0xdda   : > { %v2031_v55 = vadd.f32 %v2028_v49, %v2027_v40 }
 0xddc   : > { %v1994_v46 = vpop.f32.mrf.mxu2  ;;  %v2014_v39 = vpop.f32.mrf.mxu3 }
 0xddd   : > { %v1995_v53 = vadd.f32 %v1994_v46, %v4789_v4  ;;  %v2015_v17 = vadd.f32 %v2014_v39, %v4909_v54 }
 0xddf   : > { %v2029_v45 = vmul.f32 %v1995_v53, %v1995_v53  ;;  %v2023_v38 = vadd.f32 %v2022_v26, %v1995_v53  ;;  %v2030_v59 = vmul.f32 %v2015_v17, %v2015_v17 }
 0xde1   : > { %v2024_v58 = vadd.f32 %v2023_v38, %v2015_v17  ;;  %v2032_v60 = vadd.f32 %v2031_v55, %v2029_v45 }
 0xde3   : > { %2025 = vadd.xlane.f32.xlu1 %v2024_v58  ;;  %v2033_v61 = vadd.f32 %v2032_v60, %v2030_v59  ;;  %v2404_v58 = vld [vmem:[%s2989_s21 + $0xf0] sm:$0xff] }
 0xde5   : > { %2034 = vadd.xlane.f32.xlu2 %v2033_v61 }
 0xe56   : > { %v2026_v37 = vpop.xlane.xlu1 %2025 }
 0xe57   : > { %v2036_v51 = vmul.f32 0.001953125, %v2026_v37 }
 0xe58   : > { %v2035_v63 = vpop.xlane.xlu2 %2034 }
 0xe59   : > { %v2037_v1 = vmul.f32 0.001953125, %v2035_v63  ;;  %v2038_v2 = vmul.f32 %v2036_v51, %v2036_v51  ;;  %v2041_v27 = vsub.f32 %v1955_v62, %v2036_v51  ;;  %v2042_v22 = vsub.f32 %v1975_v34, %v2036_v51 }
 0xe5a   : > { %v2043_v15 = vsub.f32 %v1995_v53, %v2036_v51  ;;  %v2044_v9 = vsub.f32 %v2015_v17, %v2036_v51 }
 0xe5b   : > { %v2039_v5 = vsub.f32 %v2037_v1, %v2038_v2 }
 0xe5d   : > { %v2040_v8 = vmax.f32 %v2039_v5, 0.0 }
 0xe5f   : > { %v2045_v35 = vadd.f32 1e-05, %v2040_v8 }
 0xe61   : > { %2571 = vrsqrt.f32 %v2045_v35  ;;  %vm2052_vm11 = vweird.f32 %v2045_v35 }
 0xe67   : > { %v2572_v4 = vpop.eup %2571 }
 0xe68   : > { %v2047_v54 = vmul.f32 %v2572_v4, %v2045_v35  ;;  %vm2053_vm10 = vweird.f32 %v2572_v4 }
 0xe69   : > { %vm2054_vm12 = vmor %vm2052_vm11, %vm2053_vm10 }
 0xe6a   : > { %v2048_v23 = vmul.f32 %v2572_v4, %v2047_v54  ;;  %v2716_v54 = vld [vmem:[%s4586_s8] ss:$0 sm:$0xff] }
 0xe6c   : > { %v2049_v32 = vmul.f32 0.5, %v2048_v23 }
 0xe6e   : > { %v2050_v30 = vsub.f32 1.5, %v2049_v32 }
 0xe70   : > { %v2051_v6 = vmul.f32 %v2572_v4, %v2050_v30 }
 0xe72   : > { %v2055_v16 = vsel %vm2054_vm12, %v2572_v4, %v2051_v6 }
 0xe73   : > { %v2056_v21 = vmul.f32 %v2055_v16, %v2041_v27  ;;  %v2057_v7 = vmul.f32 %v2055_v16, %v2042_v22  ;;  %v2058_v57 = vmul.f32 %v2055_v16, %v2043_v15  ;;  %v2059_v11 = vmul.f32 %v2055_v16, %v2044_v9  ;;  %v2185_v22 = vld [vmem:[%s2991_s13] sm:$0xff] (%p2881_p6)  ;;  %v2187_v15 = vld [vmem:[%s2991_s13 + $0x8] sm:$0xff] (%p2881_p6)  ;;  %v2189_v9 = vld [vmem:[%s2991_s13 + $0x10] sm:$0xff] (%p2881_p6) }
 0xe74   : > { %2186 = vst [vmem:[%s2142_s14] sm:$0xff] (%p2881_p6), %v2185_v22  ;;  %v2191_v16 = vld [vmem:[%s2991_s13 + $0x18] sm:$0xff] (%p2881_p6) }
 0xe75   : > { %v2060_v12 = vmul.f32 %v2056_v21, %v4791_v48  ;;  %v2061_v19 = vmul.f32 %v2057_v7, %v4792_v50  ;;  %v2063_v31 = vmul.f32 %v2059_v11, %v4793_v52  ;;  %2188 = vst [vmem:[%s2142_s14 + $0x10] sm:$0xff] (%p2881_p6), %v2187_v15  ;;  %v2193_v21 = vld [vmem:[%s2991_s13 + $0x20] sm:$0xff] (%p2881_p6)  ;;  %v2195_v7 = vld [vmem:[%s2991_s13 + $0x28] sm:$0xff] (%p2881_p6) }
 0xe76   : > { %2190 = vst [vmem:[%s2142_s14 + $0x20] sm:$0xff] (%p2881_p6), %v2189_v9 }
 0xe77   : > { %v2064_v42 = vadd.f32 %v2060_v12, %v4794_v56  ;;  %v2065_v33 = vadd.f32 %v2061_v19, %v3535_v29  ;;  %v2067_v36 = vadd.f32 %v2063_v31, %v3540_v20  ;;  %2192 = vst [vmem:[%s2142_s14 + $0x30] sm:$0xff] (%p2881_p6), %v2191_v16 }
 0xe78   : > { %2194 = vst [vmem:[%s2142_s14 + $0x40] sm:$0xff] (%p2881_p6), %v2193_v21 }
 0xe79   : > { %v2068_v28 = vadd.f32 %v2402_v24, %v2064_v42  ;;  %v2069_v18 = vadd.f32 %v2403_v14, %v2065_v33  ;;  %v2071_v43 = vadd.f32 %v2405_v44, %v2067_v36  ;;  %2196 = vst [vmem:[%s2142_s14 + $0x50] sm:$0xff] (%p2881_p6), %v2195_v7 }
 0xe7b   : > { %v2072_v0 = vmul.f32 0.5, %v2068_v28  ;;  %v2076_v41 = vmul.f32 0.5, %v2069_v18 }
 0xe7d   : > { %2573 = vtanh.f32 %v2072_v0 }
 0xe7e   : > { %2575 = vtanh.f32 %v2076_v41 }
 0xe7f   : > { %2577 = vtanh.f32 %v2071_v43 }
 0xe83   : > { %v2574_v48 = vpop.eup %2573 }
 0xe84   : > { %v2576_v50 = vpop.eup %2575  ;;  %v2074_v52 = vmul.f32 0.5, %v2574_v48 }
 0xe85   : > { %v2078_v25 = vmul.f32 0.5, %v2576_v50  ;;  %v2578_v56 = vpop.eup %2577 }
 0xe86   : > { %v2075_v47 = vadd.f32 0.5, %v2074_v52 }
 0xe87   : > { %v2079_v62 = vadd.f32 0.5, %v2078_v25 }
 0xe88   : > { %v2086_v29 = vmul.f32 %v2578_v56, %v2075_v47 }
 0xe89   : > { %v2085_v34 = vmul.f32 %v2079_v62, %v4496_v3  ;;  %v2062_v3 = vmul.f32 %v2058_v57, %v3553_v13  ;;  %v2197_v57 = vld [vmem:[%s2991_s13 + $0x30] sm:$0xff] (%p2881_p6) }
 0xe8a   : > { %2198 = vst [vmem:[%s2142_s14 + $0x60] sm:$0xff] (%p2881_p6), %v2197_v57 }
 0xe8b   : > { %v2087_v40 = vadd.f32 %v2086_v29, %v2085_v34  ;;  %v2066_v55 = vadd.f32 %v2062_v3, %v3555_v10  ;;  %v2715_v10 = vld [vmem:[%s4585_s7] ss:$0 sm:$0xff] }
 0xe8d   : > { %2088 = vadd.xlane.f32.xlu0 %v2087_v40  ;;  %2116 = vst [vmem:[#allocation3] sm:$0xff] %v2087_v40  ;;  %v2090_v20 = vmul.f32 %v2087_v40, %v2087_v40  ;;  %v2070_v61 = vadd.f32 %v2404_v58, %v2066_v55 }
 0xe8e   : > { %2122 = vst [vmem:[%s538_s28] sm:$0xff] %v2087_v40 }
 0xe8f   : > { %2091 = vadd.xlane.f32.xlu1 %v2090_v20  ;;  %v2080_v63 = vmul.f32 0.5, %v2070_v61 }
 0xf00   : > { %v2089_v49 = vpop.xlane.xlu0 %2088 }
 0xf01   : > { %v2093_v46 = vmul.f32 0.0078125, %v2089_v49 }
 0xf02   : > { %v2092_v39 = vpop.xlane.xlu1 %2091 }
 0xf03   : > { %v2095_v26 = vmul.f32 %v2093_v46, %v2093_v46  ;;  %v2094_v53 = vmul.f32 0.0078125, %v2092_v39  ;;  %v2098_v5 = vsub.f32 %v2087_v40, %v2093_v46 }
 0xf05   : > { %v2096_v17 = vsub.f32 %v2094_v53, %v2095_v26 }
 0xf07   : > { %v2097_v45 = vmax.f32 %v2096_v17, 0.0 }
 0xf09   : > { %v2099_v38 = vadd.f32 1e-05, %v2097_v45 }
 0xf0b   : > { %2579 = vrsqrt.f32 %v2099_v38  ;;  %vm2106_vm14 = vweird.f32 %v2099_v38 }
 0xf0c   : > { %2581 = vtanh.f32 %v2080_v63 }
 0xf11   : > { %v2580_v59 = vpop.eup %2579 }
 0xf12   : > { %v2101_v60 = vmul.f32 %v2580_v59, %v2099_v38  ;;  %vm2107_vm13 = vweird.f32 %v2580_v59  ;;  %v2582_v4 = vpop.eup %2581 }
 0xf13   : > { %vm2108_vm15 = vmor %vm2106_vm14, %vm2107_vm13  ;;  %v2082_v32 = vmul.f32 0.5, %v2582_v4 }
 0xf14   : > { %v2102_v37 = vmul.f32 %v2580_v59, %v2101_v60 }
 0xf15   : > { %v2083_v30 = vadd.f32 0.5, %v2082_v32 }
 0xf16   : > { %v2103_v51 = vmul.f32 0.5, %v2102_v37 }
 0xf18   : > { %v2104_v1 = vsub.f32 1.5, %v2103_v51 }
 0xf1a   : > { %v2105_v2 = vmul.f32 %v2580_v59, %v2104_v1 }
 0xf1c   : > { %v2109_v13 = vsel %vm2108_vm15, %v2580_v59, %v2105_v2 }
 0xf1d   : > { %v2110_v8 = vmul.f32 %v2109_v13, %v2098_v5 }
 0xf1f   : > { %v2111_v35 = vmul.f32 %v2715_v10, %v2110_v8 }
 0xf21   : > { %v2112_v23 = vadd.f32 %v2716_v54, %v2111_v35 }
 0xf23   : > { %2583 = vtanh.f32 %v2112_v23 }
 0xf29   : > { %v2584_v6 = vpop.eup %2583 }
 0xf2a   : > { %v2114_v27 = vmul.f32 %v2584_v6, %v2083_v30  ;;  %2137 = sbr.rel (!%p2881_p6) target bundleno = 3894 (0xf36), region = 87 }
 0xf2c   : > { %2115 = vst [vmem:[#allocation2] sm:$0xff] %v2114_v27 }
 0xf2d   : > { %2406 = vst [vmem:[%s2991_s13 + $0x38] sm:$0xff] %v2114_v27 }
 0xf2e   : > { %2120 = vst [vmem:[%s534_s0] sm:$0xff] %v2114_v27 }
 0xf34   : > { %v2199_v11 = vld [vmem:[%s2991_s13 + $0x38] sm:$0xff] }
 0xf35   : > { %2200 = vst [vmem:[%s2142_s14 + $0x70] sm:$0xff] %v2199_v11 }
 0xf36 PF: > { %s22_s23 = sadd.s32 1, %s2771_s23   ;;  %s4912_s19 = sld [smem:[#allocation11_spill]] }
 0xf37   : > { %p19_p0 = scmp.ge.s32.totalorder %s22_s23, 6   ;;  %s4913_s20 = sld [smem:[#allocation6_spill]] }
 0xf38   : > { %s4914_s16 = sld [smem:[#allocation7_spill]]  ;;  %s4917_s17 = smov %s2751_s18 }
 0xf39   : > { %s4915_s21 = sld [smem:[#allocation8_spill]] }
 0xf3a   : > { %s4916_s22 = sld [smem:[#allocation9_spill]]  ;;  %21 = sbr.rel (!%p19_p0) target bundleno = 7 (0x7), region = 200 }
 0xf3c   : > { %s4918_s18 = smov %s4912_s19 }
 0xf3d   : > { %s4919_s19 = smov %s4913_s20 }
 0xf3e   : > { %s4920_s20 = smov %s4914_s16 }

</bundles_post_ra>
